<compile_context>
chip_gen: v7x
topology: tpu7x:2x2x1
jax: 0.10.0
libtpu: 0.0.40
codegen_flags: <defaults>
</compile_context>

<pallas_src>
import math

import jax
import jax.numpy as jnp
from jax.experimental import pallas as pl
from jax.experimental.pallas import tpu as pltpu

D_IN = [1603, 1024, 256, 32, 16, 4]
D_OUT = [1024, 256, 32, 16, 4, 1]
BMAX = max(D_OUT)       # 1024: lane width of the packed bias/scale array
EPS = 1e-5


def mlp_kernel(x_ref, w0, w1, w2, w3, w4, w5, sb_ref, o_ref):
    """Whole MLP in one gridless invocation (weights are the working set).

    x_ref : (N, 1603)  f32   raw input; cast to bf16 in-kernel
    w0    : (1603,1024) int8 per-output-channel symmetric quant (scale = sb row 6)
    w1..w5: (K, D_OUT[i]) bf16, pre-transposed so the kernel computes x @ W
    sb_ref: (7, BMAX)  f32   rows 0..5 = per-layer bias (zero padded),
                             row 6 = w0 dequant scale
    o_ref : (N, 1)     f32
    """
    n = x_ref.shape[0]
    inv_n = 1.0 / n
    w_refs = (w0, w1, w2, w3, w4, w5)

    h = x_ref[...].astype(jnp.bfloat16)                     # in-kernel cast, no wrapper op
    for i, (w_ref, d_out) in enumerate(zip(w_refs, D_OUT)):
        if i == 0:
            # int8 -> bf16 on the VPU (hidden under the w0 DMA); MXU sees bf16.
            w = w_ref[...].astype(jnp.bfloat16)
            y = jnp.dot(h, w, preferred_element_type=jnp.float32)
            # Fold per-channel dequant scale into the bias add.
            y = y * sb_ref[6:7, :] + sb_ref[0:1, :]
        else:
            y = jnp.dot(h, w_ref[...], preferred_element_type=jnp.float32)
            y = y + sb_ref[i:i + 1, :d_out]                 # static slice, (1, d_out)
        # ReLU
        y = jnp.maximum(y, 0.0)
        # BatchNorm1d (training): biased batch stats, gamma=1, beta=0.
        # One fused pass: sum and sum-of-squares, then var = E[y^2] - E[y]^2.
        s1 = jnp.sum(y, axis=0, keepdims=True)
        s2 = jnp.sum(y * y, axis=0, keepdims=True)
        mean = s1 * inv_n
        var = s2 * inv_n - mean * mean
        y = (y - mean) * jax.lax.rsqrt(var + EPS)
        if i + 1 < len(D_OUT):
            h = y.astype(jnp.bfloat16)                      # MXU-native next input
        else:
            o_ref[...] = y                                  # (N, 1) f32


def init_params(key):
    """Torch-equivalent init: xavier_uniform_ weights, bias filled with 0.01.

    Weights are stored transposed (D_in, D_out) so the kernel computes x @ W.
    """
    ws, bs = [], []
    for d_in, d_out in zip(D_IN, D_OUT):
        key, sub = jax.random.split(key)
        bound = math.sqrt(6.0 / (d_in + d_out))
        ws.append(jax.random.uniform(sub, (d_in, d_out), jnp.float32, -bound, bound))
        bs.append(jnp.full((d_out,), 0.01, jnp.float32))
    return ws, bs


def pack_params(ws, bs):
    """Kernel-side layout:
      * w0 -> int8, per-output-channel symmetric scales (halves dominant DMA bytes)
      * w1..w5 -> bf16
      * biases of all layers + w0 scale packed into one (7, 1024) f32 array
    """
    w0 = ws[0]
    amax = jnp.max(jnp.abs(w0), axis=0, keepdims=True)          # (1, 1024)
    scale = jnp.maximum(amax / 127.0, 1e-12)
    w0_q = jnp.clip(jnp.round(w0 / scale), -127, 127).astype(jnp.int8)
    w_k = [w0_q] + [w.astype(jnp.bfloat16) for w in ws[1:]]

    sb = jnp.zeros((7, BMAX), jnp.float32)
    for i, b in enumerate(bs):
        sb = sb.at[i, : b.shape[0]].set(b)
    sb = sb.at[6, :].set(scale[0])
    return w_k, sb


@jax.jit
def high_level_forward(x, w0, w1, w2, w3, w4, w5, sb):
    n = x.shape[0]
    vmem = pl.BlockSpec(memory_space=pltpu.MemorySpace.VMEM)
    return pl.pallas_call(
        mlp_kernel,
        out_shape=jax.ShapeDtypeStruct((n, D_OUT[-1]), jnp.float32),
        in_specs=[vmem] * 8,
        out_specs=vmem,
        compiler_params=pltpu.CompilerParams(
            vmem_limit_bytes=16 * 1024 * 1024),   # ~9 MB working set; headroom on all chips
    )(x, w0, w1, w2, w3, w4, w5, sb)


def reference_forward(x, ws, bs):
    """Pure-JAX f32 reference matching torch Linear->ReLU->BatchNorm1d(train)."""
    h = x
    for w, b in zip(ws, bs):
        y = jnp.dot(h, w, precision=jax.lax.Precision.HIGHEST) + b
        y = jnp.maximum(y, 0.0)
        mean = jnp.mean(y, axis=0, keepdims=True)
        var = jnp.mean((y - mean) ** 2, axis=0, keepdims=True)
        h = (y - mean) * jax.lax.rsqrt(var + EPS)
    return h


if __name__ == "__main__":
    key = jax.random.PRNGKey(0)
    key, xkey = jax.random.split(key)

    # Batch amortization: 128 rows per call divides the dominant weight-stream
    # cost 16x vs batch=8 while matmul time stays negligible.
    batch = 128
    x = jax.random.normal(xkey, (batch, D_IN[0]), jnp.float32)

    ws, bs = init_params(key)
    w_k, sb = pack_params(ws, bs)

    out = high_level_forward(x, *w_k, sb)
    jax.block_until_ready(out)
    assert out.shape == (batch, 1)
    assert bool(jnp.all(jnp.isfinite(out)))

    # Loose-tolerance parity check vs f32 reference (int8 w0 + bf16 activations
    # deviate modestly; BatchNorm re-normalization keeps the error small).
    ref = reference_forward(x, ws, bs)
    err = float(jnp.max(jnp.abs(out - ref)))
    assert err < 0.5, f"max abs error vs f32 reference: {err}"
    print("KERNEL_OK")
</pallas_src>

<mosaic_0001>
module attributes {stable_mosaic.version = 11 : i64} {
  func.func @mlp_kernel(%arg0: memref<128x1603xf32, #tpu.memory_space<vmem>>, %arg1: memref<1603x1024xi8, #tpu.memory_space<vmem>>, %arg2: memref<1024x256xbf16, #tpu.memory_space<vmem>>, %arg3: memref<256x32xbf16, #tpu.memory_space<vmem>>, %arg4: memref<32x16xbf16, #tpu.memory_space<vmem>>, %arg5: memref<16x4xbf16, #tpu.memory_space<vmem>>, %arg6: memref<4x1xbf16, #tpu.memory_space<vmem>>, %arg7: memref<7x1024xf32, #tpu.memory_space<vmem>>, %arg8: memref<128x1xf32, #tpu.memory_space<vmem>>) attributes {dimension_semantics = [], scalar_prefetch = 0 : i64, scratch_operands = 0 : i64, tpu.core_type = #tpu.core_type<tc>} {
    %c0 = arith.constant 0 : index
    %c0_0 = arith.constant 0 : index
    %0 = vector.load %arg0[%c0, %c0_0] : memref<128x1603xf32, #tpu.memory_space<vmem>>, vector<128x1603xf32>
    %1 = arith.truncf %0 : vector<128x1603xf32> to vector<128x1603xbf16>
    %c0_1 = arith.constant 0 : index
    %c0_2 = arith.constant 0 : index
    %2 = vector.load %arg1[%c0_1, %c0_2] : memref<1603x1024xi8, #tpu.memory_space<vmem>>, vector<1603x1024xi8>
    %3 = arith.sitofp %2 : vector<1603x1024xi8> to vector<1603x1024xbf16>
    %cst = arith.constant dense<0.000000e+00> : vector<128x1024xf32>
    %4 = tpu.matmul %1, %3, %cst {dimension_numbers = #tpu.dot_dimension_numbers<[1], [0], [0], [1], [0, 0, 1, 1], [], []>} : vector<128x1603xbf16>, vector<1603x1024xbf16>, vector<128x1024xf32> -> vector<128x1024xf32>
    %c6 = arith.constant 6 : index
    %c0_3 = arith.constant 0 : index
    %5 = vector.load %arg7[%c6, %c0_3] : memref<7x1024xf32, #tpu.memory_space<vmem>>, vector<1x1024xf32>
    %6 = vector.broadcast %5 : vector<1x1024xf32> to vector<128x1024xf32>
    %7 = arith.mulf %4, %6 : vector<128x1024xf32>
    %c0_4 = arith.constant 0 : index
    %c0_5 = arith.constant 0 : index
    %8 = vector.load %arg7[%c0_4, %c0_5] : memref<7x1024xf32, #tpu.memory_space<vmem>>, vector<1x1024xf32>
    %9 = vector.broadcast %8 : vector<1x1024xf32> to vector<128x1024xf32>
    %10 = arith.addf %7, %9 : vector<128x1024xf32>
    %cst_6 = arith.constant 0.000000e+00 : f32
    %11 = vector.broadcast %cst_6 : f32 to vector<128x1024xf32>
    %12 = arith.maximumf %10, %11 : vector<128x1024xf32>
    %cst_7 = arith.constant dense<0.000000e+00> : vector<1024xf32>
    %13 = vector.multi_reduction <add>, %12, %cst_7 [0] : vector<128x1024xf32> to vector<1024xf32>
    %14 = vector.shape_cast %13 : vector<1024xf32> to vector<1x1024xf32>
    %15 = arith.mulf %12, %12 : vector<128x1024xf32>
    %cst_8 = arith.constant dense<0.000000e+00> : vector<1024xf32>
    %16 = vector.multi_reduction <add>, %15, %cst_8 [0] : vector<128x1024xf32> to vector<1024xf32>
    %17 = vector.shape_cast %16 : vector<1024xf32> to vector<1x1024xf32>
    %cst_9 = arith.constant 7.812500e-03 : f32
    %18 = vector.broadcast %cst_9 : f32 to vector<1x1024xf32>
    %19 = arith.mulf %14, %18 : vector<1x1024xf32>
    %cst_10 = arith.constant 7.812500e-03 : f32
    %20 = vector.broadcast %cst_10 : f32 to vector<1x1024xf32>
    %21 = arith.mulf %17, %20 : vector<1x1024xf32>
    %22 = arith.mulf %19, %19 : vector<1x1024xf32>
    %23 = arith.subf %21, %22 : vector<1x1024xf32>
    %24 = vector.broadcast %19 : vector<1x1024xf32> to vector<128x1024xf32>
    %25 = arith.subf %12, %24 : vector<128x1024xf32>
    %cst_11 = arith.constant 9.99999974E-6 : f32
    %26 = vector.broadcast %cst_11 : f32 to vector<1x1024xf32>
    %27 = arith.addf %23, %26 : vector<1x1024xf32>
    %28 = math.rsqrt %27 : vector<1x1024xf32>
    %29 = vector.broadcast %28 : vector<1x1024xf32> to vector<128x1024xf32>
    %30 = arith.mulf %25, %29 : vector<128x1024xf32>
    %31 = arith.truncf %30 : vector<128x1024xf32> to vector<128x1024xbf16>
    %c0_12 = arith.constant 0 : index
    %c0_13 = arith.constant 0 : index
    %32 = vector.load %arg2[%c0_12, %c0_13] : memref<1024x256xbf16, #tpu.memory_space<vmem>>, vector<1024x256xbf16>
    %cst_14 = arith.constant dense<0.000000e+00> : vector<128x256xf32>
    %33 = tpu.matmul %31, %32, %cst_14 {dimension_numbers = #tpu.dot_dimension_numbers<[1], [0], [0], [1], [0, 0, 1, 1], [], []>} : vector<128x1024xbf16>, vector<1024x256xbf16>, vector<128x256xf32> -> vector<128x256xf32>
    %c1 = arith.constant 1 : index
    %c0_15 = arith.constant 0 : index
    %34 = vector.load %arg7[%c1, %c0_15] : memref<7x1024xf32, #tpu.memory_space<vmem>>, vector<1x256xf32>
    %35 = vector.broadcast %34 : vector<1x256xf32> to vector<128x256xf32>
    %36 = arith.addf %33, %35 : vector<128x256xf32>
    %cst_16 = arith.constant 0.000000e+00 : f32
    %37 = vector.broadcast %cst_16 : f32 to vector<128x256xf32>
    %38 = arith.maximumf %36, %37 : vector<128x256xf32>
    %cst_17 = arith.constant dense<0.000000e+00> : vector<256xf32>
    %39 = vector.multi_reduction <add>, %38, %cst_17 [0] : vector<128x256xf32> to vector<256xf32>
    %40 = vector.shape_cast %39 : vector<256xf32> to vector<1x256xf32>
    %41 = arith.mulf %38, %38 : vector<128x256xf32>
    %cst_18 = arith.constant dense<0.000000e+00> : vector<256xf32>
    %42 = vector.multi_reduction <add>, %41, %cst_18 [0] : vector<128x256xf32> to vector<256xf32>
    %43 = vector.shape_cast %42 : vector<256xf32> to vector<1x256xf32>
    %cst_19 = arith.constant 7.812500e-03 : f32
    %44 = vector.broadcast %cst_19 : f32 to vector<1x256xf32>
    %45 = arith.mulf %40, %44 : vector<1x256xf32>
    %cst_20 = arith.constant 7.812500e-03 : f32
    %46 = vector.broadcast %cst_20 : f32 to vector<1x256xf32>
    %47 = arith.mulf %43, %46 : vector<1x256xf32>
    %48 = arith.mulf %45, %45 : vector<1x256xf32>
    %49 = arith.subf %47, %48 : vector<1x256xf32>
    %50 = vector.broadcast %45 : vector<1x256xf32> to vector<128x256xf32>
    %51 = arith.subf %38, %50 : vector<128x256xf32>
    %cst_21 = arith.constant 9.99999974E-6 : f32
    %52 = vector.broadcast %cst_21 : f32 to vector<1x256xf32>
    %53 = arith.addf %49, %52 : vector<1x256xf32>
    %54 = math.rsqrt %53 : vector<1x256xf32>
    %55 = vector.broadcast %54 : vector<1x256xf32> to vector<128x256xf32>
    %56 = arith.mulf %51, %55 : vector<128x256xf32>
    %57 = arith.truncf %56 : vector<128x256xf32> to vector<128x256xbf16>
    %c0_22 = arith.constant 0 : index
    %c0_23 = arith.constant 0 : index
    %58 = vector.load %arg3[%c0_22, %c0_23] : memref<256x32xbf16, #tpu.memory_space<vmem>>, vector<256x32xbf16>
    %cst_24 = arith.constant dense<0.000000e+00> : vector<128x32xf32>
    %59 = tpu.matmul %57, %58, %cst_24 {dimension_numbers = #tpu.dot_dimension_numbers<[1], [0], [0], [1], [0, 0, 1, 1], [], []>} : vector<128x256xbf16>, vector<256x32xbf16>, vector<128x32xf32> -> vector<128x32xf32>
    %c2 = arith.constant 2 : index
    %c0_25 = arith.constant 0 : index
    %60 = vector.load %arg7[%c2, %c0_25] : memref<7x1024xf32, #tpu.memory_space<vmem>>, vector<1x32xf32>
    %61 = vector.broadcast %60 : vector<1x32xf32> to vector<128x32xf32>
    %62 = arith.addf %59, %61 : vector<128x32xf32>
    %cst_26 = arith.constant 0.000000e+00 : f32
    %63 = vector.broadcast %cst_26 : f32 to vector<128x32xf32>
    %64 = arith.maximumf %62, %63 : vector<128x32xf32>
    %cst_27 = arith.constant dense<0.000000e+00> : vector<32xf32>
    %65 = vector.multi_reduction <add>, %64, %cst_27 [0] : vector<128x32xf32> to vector<32xf32>
    %66 = vector.shape_cast %65 : vector<32xf32> to vector<1x32xf32>
    %67 = arith.mulf %64, %64 : vector<128x32xf32>
    %cst_28 = arith.constant dense<0.000000e+00> : vector<32xf32>
    %68 = vector.multi_reduction <add>, %67, %cst_28 [0] : vector<128x32xf32> to vector<32xf32>
    %69 = vector.shape_cast %68 : vector<32xf32> to vector<1x32xf32>
    %cst_29 = arith.constant 7.812500e-03 : f32
    %70 = vector.broadcast %cst_29 : f32 to vector<1x32xf32>
    %71 = arith.mulf %66, %70 : vector<1x32xf32>
    %cst_30 = arith.constant 7.812500e-03 : f32
    %72 = vector.broadcast %cst_30 : f32 to vector<1x32xf32>
    %73 = arith.mulf %69, %72 : vector<1x32xf32>
    %74 = arith.mulf %71, %71 : vector<1x32xf32>
    %75 = arith.subf %73, %74 : vector<1x32xf32>
    %76 = vector.broadcast %71 : vector<1x32xf32> to vector<128x32xf32>
    %77 = arith.subf %64, %76 : vector<128x32xf32>
    %cst_31 = arith.constant 9.99999974E-6 : f32
    %78 = vector.broadcast %cst_31 : f32 to vector<1x32xf32>
    %79 = arith.addf %75, %78 : vector<1x32xf32>
    %80 = math.rsqrt %79 : vector<1x32xf32>
    %81 = vector.broadcast %80 : vector<1x32xf32> to vector<128x32xf32>
    %82 = arith.mulf %77, %81 : vector<128x32xf32>
    %83 = arith.truncf %82 : vector<128x32xf32> to vector<128x32xbf16>
    %c0_32 = arith.constant 0 : index
    %c0_33 = arith.constant 0 : index
    %84 = vector.load %arg4[%c0_32, %c0_33] : memref<32x16xbf16, #tpu.memory_space<vmem>>, vector<32x16xbf16>
    %cst_34 = arith.constant dense<0.000000e+00> : vector<128x16xf32>
    %85 = tpu.matmul %83, %84, %cst_34 {dimension_numbers = #tpu.dot_dimension_numbers<[1], [0], [0], [1], [0, 0, 1, 1], [], []>} : vector<128x32xbf16>, vector<32x16xbf16>, vector<128x16xf32> -> vector<128x16xf32>
    %c3 = arith.constant 3 : index
    %c0_35 = arith.constant 0 : index
    %86 = vector.load %arg7[%c3, %c0_35] : memref<7x1024xf32, #tpu.memory_space<vmem>>, vector<1x16xf32>
    %87 = vector.broadcast %86 : vector<1x16xf32> to vector<128x16xf32>
    %88 = arith.addf %85, %87 : vector<128x16xf32>
    %cst_36 = arith.constant 0.000000e+00 : f32
    %89 = vector.broadcast %cst_36 : f32 to vector<128x16xf32>
    %90 = arith.maximumf %88, %89 : vector<128x16xf32>
    %cst_37 = arith.constant dense<0.000000e+00> : vector<16xf32>
    %91 = vector.multi_reduction <add>, %90, %cst_37 [0] : vector<128x16xf32> to vector<16xf32>
    %92 = vector.shape_cast %91 : vector<16xf32> to vector<1x16xf32>
    %93 = arith.mulf %90, %90 : vector<128x16xf32>
    %cst_38 = arith.constant dense<0.000000e+00> : vector<16xf32>
    %94 = vector.multi_reduction <add>, %93, %cst_38 [0] : vector<128x16xf32> to vector<16xf32>
    %95 = vector.shape_cast %94 : vector<16xf32> to vector<1x16xf32>
    %cst_39 = arith.constant 7.812500e-03 : f32
    %96 = vector.broadcast %cst_39 : f32 to vector<1x16xf32>
    %97 = arith.mulf %92, %96 : vector<1x16xf32>
    %cst_40 = arith.constant 7.812500e-03 : f32
    %98 = vector.broadcast %cst_40 : f32 to vector<1x16xf32>
    %99 = arith.mulf %95, %98 : vector<1x16xf32>
    %100 = arith.mulf %97, %97 : vector<1x16xf32>
    %101 = arith.subf %99, %100 : vector<1x16xf32>
    %102 = vector.broadcast %97 : vector<1x16xf32> to vector<128x16xf32>
    %103 = arith.subf %90, %102 : vector<128x16xf32>
    %cst_41 = arith.constant 9.99999974E-6 : f32
    %104 = vector.broadcast %cst_41 : f32 to vector<1x16xf32>
    %105 = arith.addf %101, %104 : vector<1x16xf32>
    %106 = math.rsqrt %105 : vector<1x16xf32>
    %107 = vector.broadcast %106 : vector<1x16xf32> to vector<128x16xf32>
    %108 = arith.mulf %103, %107 : vector<128x16xf32>
    %109 = arith.truncf %108 : vector<128x16xf32> to vector<128x16xbf16>
    %c0_42 = arith.constant 0 : index
    %c0_43 = arith.constant 0 : index
    %110 = vector.load %arg5[%c0_42, %c0_43] : memref<16x4xbf16, #tpu.memory_space<vmem>>, vector<16x4xbf16>
    %cst_44 = arith.constant dense<0.000000e+00> : vector<128x4xf32>
    %111 = tpu.matmul %109, %110, %cst_44 {dimension_numbers = #tpu.dot_dimension_numbers<[1], [0], [0], [1], [0, 0, 1, 1], [], []>} : vector<128x16xbf16>, vector<16x4xbf16>, vector<128x4xf32> -> vector<128x4xf32>
    %c4 = arith.constant 4 : index
    %c0_45 = arith.constant 0 : index
    %112 = vector.load %arg7[%c4, %c0_45] : memref<7x1024xf32, #tpu.memory_space<vmem>>, vector<1x4xf32>
    %113 = vector.broadcast %112 : vector<1x4xf32> to vector<128x4xf32>
    %114 = arith.addf %111, %113 : vector<128x4xf32>
    %cst_46 = arith.constant 0.000000e+00 : f32
    %115 = vector.broadcast %cst_46 : f32 to vector<128x4xf32>
    %116 = arith.maximumf %114, %115 : vector<128x4xf32>
    %cst_47 = arith.constant dense<0.000000e+00> : vector<4xf32>
    %117 = vector.multi_reduction <add>, %116, %cst_47 [0] : vector<128x4xf32> to vector<4xf32>
    %118 = vector.shape_cast %117 : vector<4xf32> to vector<1x4xf32>
    %119 = arith.mulf %116, %116 : vector<128x4xf32>
    %cst_48 = arith.constant dense<0.000000e+00> : vector<4xf32>
    %120 = vector.multi_reduction <add>, %119, %cst_48 [0] : vector<128x4xf32> to vector<4xf32>
    %121 = vector.shape_cast %120 : vector<4xf32> to vector<1x4xf32>
    %cst_49 = arith.constant 7.812500e-03 : f32
    %122 = vector.broadcast %cst_49 : f32 to vector<1x4xf32>
    %123 = arith.mulf %118, %122 : vector<1x4xf32>
    %cst_50 = arith.constant 7.812500e-03 : f32
    %124 = vector.broadcast %cst_50 : f32 to vector<1x4xf32>
    %125 = arith.mulf %121, %124 : vector<1x4xf32>
    %126 = arith.mulf %123, %123 : vector<1x4xf32>
    %127 = arith.subf %125, %126 : vector<1x4xf32>
    %128 = vector.broadcast %123 : vector<1x4xf32> to vector<128x4xf32>
    %129 = arith.subf %116, %128 : vector<128x4xf32>
    %cst_51 = arith.constant 9.99999974E-6 : f32
    %130 = vector.broadcast %cst_51 : f32 to vector<1x4xf32>
    %131 = arith.addf %127, %130 : vector<1x4xf32>
    %132 = math.rsqrt %131 : vector<1x4xf32>
    %133 = vector.broadcast %132 : vector<1x4xf32> to vector<128x4xf32>
    %134 = arith.mulf %129, %133 : vector<128x4xf32>
    %135 = arith.truncf %134 : vector<128x4xf32> to vector<128x4xbf16>
    %c0_52 = arith.constant 0 : index
    %c0_53 = arith.constant 0 : index
    %136 = vector.load %arg6[%c0_52, %c0_53] : memref<4x1xbf16, #tpu.memory_space<vmem>>, vector<4x1xbf16>
    %cst_54 = arith.constant dense<0.000000e+00> : vector<128x1xf32>
    %137 = tpu.matmul %135, %136, %cst_54 {dimension_numbers = #tpu.dot_dimension_numbers<[1], [0], [0], [1], [0, 0, 1, 1], [], []>} : vector<128x4xbf16>, vector<4x1xbf16>, vector<128x1xf32> -> vector<128x1xf32>
    %c5 = arith.constant 5 : index
    %c0_55 = arith.constant 0 : index
    %138 = vector.load %arg7[%c5, %c0_55] : memref<7x1024xf32, #tpu.memory_space<vmem>>, vector<1x1xf32>
    %139 = vector.broadcast %138 : vector<1x1xf32> to vector<128x1xf32>
    %140 = arith.addf %137, %139 : vector<128x1xf32>
    %cst_56 = arith.constant 0.000000e+00 : f32
    %141 = vector.broadcast %cst_56 : f32 to vector<128x1xf32>
    %142 = arith.maximumf %140, %141 : vector<128x1xf32>
    %cst_57 = arith.constant dense<0.000000e+00> : vector<1xf32>
    %143 = vector.multi_reduction <add>, %142, %cst_57 [0] : vector<128x1xf32> to vector<1xf32>
    %144 = vector.shape_cast %143 : vector<1xf32> to vector<1x1xf32>
    %145 = arith.mulf %142, %142 : vector<128x1xf32>
    %cst_58 = arith.constant dense<0.000000e+00> : vector<1xf32>
    %146 = vector.multi_reduction <add>, %145, %cst_58 [0] : vector<128x1xf32> to vector<1xf32>
    %147 = vector.shape_cast %146 : vector<1xf32> to vector<1x1xf32>
    %cst_59 = arith.constant 7.812500e-03 : f32
    %148 = vector.broadcast %cst_59 : f32 to vector<1x1xf32>
    %149 = arith.mulf %144, %148 : vector<1x1xf32>
    %cst_60 = arith.constant 7.812500e-03 : f32
    %150 = vector.broadcast %cst_60 : f32 to vector<1x1xf32>
    %151 = arith.mulf %147, %150 : vector<1x1xf32>
    %152 = arith.mulf %149, %149 : vector<1x1xf32>
    %153 = arith.subf %151, %152 : vector<1x1xf32>
    %154 = vector.broadcast %149 : vector<1x1xf32> to vector<128x1xf32>
    %155 = arith.subf %142, %154 : vector<128x1xf32>
    %cst_61 = arith.constant 9.99999974E-6 : f32
    %156 = vector.broadcast %cst_61 : f32 to vector<1x1xf32>
    %157 = arith.addf %153, %156 : vector<1x1xf32>
    %158 = math.rsqrt %157 : vector<1x1xf32>
    %159 = vector.broadcast %158 : vector<1x1xf32> to vector<128x1xf32>
    %160 = arith.mulf %155, %159 : vector<128x1xf32>
    %c0_62 = arith.constant 0 : index
    %c0_63 = arith.constant 0 : index
    %161 = vector.load %arg8[%c0_62, %c0_63] : memref<128x1xf32, #tpu.memory_space<vmem>>, vector<128x1xf32>
    tpu.vector_store %arg8[%c0_62, %c0_63], %160 {strides = array<i32>} : memref<128x1xf32, #tpu.memory_space<vmem>>, vector<128x1xf32>,
    return
  }
}

</mosaic_0001>

<bundles_post_ra>
// kernel: high_level_forward.1
= control target key start
LH: loop header
LB: loop body
LE: loop exit
PB: predicated region body
PF: predicated region fallthrough
CT: control target
= control target key end

     0   :  { %13 = vsyncpa [#allocation3], 0  ;;  %s15210_s27 = smov [#allocation2]   ;;  %s23263_s0 = inlined_call_operand.vmem [shape: f32[128,1603], index: 0, kind: input, shape index: {}]   ;;  %s23264_s1 = inlined_call_operand.vmem [shape: s8[1603,1024], index: 1, kind: input, shape index: {}]   ;;  %s23265_s2 = inlined_call_operand.hbm [shape: bf16[1024,256], index: 2, kind: input, shape index: {}]   ;;  %s23266_s3 = inlined_call_operand.vmem [shape: bf16[256,32], index: 3, kind: input, shape index: {}]   ;;  %s23267_s4 = inlined_call_operand.vmem [shape: bf16[32,16], index: 4, kind: input, shape index: {}]   ;;  %s23268_s5 = inlined_call_operand.vmem [shape: bf16[16,4], index: 5, kind: input, shape index: {}]   ;;  %s23269_s6 = inlined_call_operand.vmem [shape: bf16[4,1], index: 6, kind: input, shape index: {}]   ;;  %s23270_s7 = inlined_call_operand.vmem [shape: f32[7,1024], index: 7, kind: input, shape index: {}]   ;;  %s23271_s8 = inlined_call_operand.vmem [shape: f32[128,1], index: 8, kind: output, shape index: {}]  }
   0x1   :  { %s23_s28 = sshll.u32 %s15210_s27, 4  ;;  %s15186_s9 = scalar_lea.hbm %s23265_s2, 16384  ;;  %s24_s28 = int_to_ptr.vmem [resolvable:$true] %s23_s28 }
   0x2   :  { %p15187_p0 = scmp.ne.s32.totalorder %s23265_s2, %s15186_s9  ;;  %p15190_p1 = scmp.lt.u32.totalorder %s15186_s9, %s23265_s2 }
   0x4   :  { %p15192_p2 = pnand %p15190_p1, %p15187_p0 }
   0x6   :  { %15195 = shalt.err (!%p15192_p2)
}
   0x7   :  { %s15196_s14 = scalar_lea.vmem %s24_s28, 16384  ;;  %p15201_p4 = scmp.lt.s32.totalorder %s24_s28, %s24_s28 }
   0x8   :  { %p15197_p3 = scmp.ne.s32.totalorder %s24_s28, %s15196_s14  ;;  %p15202_p5 = scmp.lt.s32.totalorder %s15196_s14, %s15196_s14 }
   0xa   :  { %p15203_p6 = por %p15202_p5, %p15201_p4 }
   0xc   :  { %p15204_p7 = pnand %p15203_p6, %p15197_p3 }
   0xe   :  { %15207 = shalt.err (!%p15204_p7)
}
   0xf   :  { %s15211_s15 = smov 128   ;;  %s15212_s16 = smov 8  }
  0x10   :  { %29 = dma.hbm_to_vmem [thread:$0]  %s23265_s2, 16384, %s24_s28, [#allocation3], %s15211_s15, %s15211_s15, %s15212_s16  }
  0x11   :  { %15208 = dma.done.wait [#allocation3], 16384  }
  0x12   :  { %15209 = vsyncadd [#allocation3], 4294950912  ;;  %v23272_v0 = vmov 0   ;;  %v15276_v1 = vld [vmem:[%s23264_s1] sm:$0xff]  ;;  %v15281_v2 = vld [vmem:[%s23264_s1 + $0x10] sm:$0xff]  ;;  %vm5607_vm0 = vcmask 1040384  }
  0x13   :  { %6345 = vmatprep.mubr.bf16.mxu1 %v23272_v0  ;;  %v15286_v3 = vld [vmem:[%s23264_s1 + $0xc00] sm:$0xff]  ;;  %v758_v4 = vunpack.c.l.s8.bf16 %v15276_v1  ;;  %v762_v5 = vunpack.c.l.s8.bf16 %v15281_v2  ;;  %v15293_v6 = vld [vmem:[%s23264_s1 + $0xc10] sm:$0xff]  ;;  %vm5608_vm1 = vcmask 1041408   ;;  %v15214_v51 = vmov 65535  }
  0x14   :  { %v15298_v7 = vld [vmem:[%s23264_s1 + $0x20] sm:$0xff]  ;;  %v15303_v8 = vld [vmem:[%s23264_s1 + $0x30] sm:$0xff]  ;;  %v1526_v9 = vunpack.c.l.s8.bf16 %v15286_v3  ;;  %v23274_v10 = vunpack.c.h.s8.bf16 %v15286_v3  ;;  %v1530_v11 = vunpack.c.l.s8.bf16 %v15293_v6  ;;  %v23275_v12 = vunpack.c.h.s8.bf16 %v15293_v6 }
  0x15   :  { %v744_v13 = vld [vmem:[%s23264_s1 + $0xc20] sm:$0xff]  ;;  %v746_v14 = vld [vmem:[%s23264_s1 + $0xc30] sm:$0xff]  ;;  %v12823_v16 = vcombine.high %v758_v4, %v762_v5  ;;  %v12822_v17 = vcombine.low %v758_v4, %v762_v5  ;;  %v766_v18 = vunpack.c.l.s8.bf16 %v15298_v7  ;;  %v770_v25 = vunpack.c.l.s8.bf16 %v15303_v8 }
  0x16   :  { %v15318_v15 = vld [vmem:[%s23264_s1 + $0x40] sm:$0xff]  ;;  %v15324_v19 = vld [vmem:[%s23264_s1 + $0x50] sm:$0xff]  ;;  %v13591_v22 = vcombine.high %v1526_v9, %v1530_v11  ;;  %v15336_v23 = vcombine.low %v23274_v10, %v23275_v12  ;;  %v13590_v24 = vcombine.low %v1526_v9, %v1530_v11  ;;  %v1534_v26 = vunpack.c.l.s8.bf16 %v744_v13 }
  0x17   :  { %v748_v20 = vld [vmem:[%s23264_s1 + $0xc40] sm:$0xff]  ;;  %v750_v21 = vld [vmem:[%s23264_s1 + $0xc50] sm:$0xff]  ;;  %5635 = vmatprep.subr.bf16.mxu0 %v12823_v16  ;;  %v1538_v27 = vunpack.c.l.s8.bf16 %v746_v14  ;;  %v774_v28 = vunpack.c.l.s8.bf16 %v15318_v15  ;;  %v778_v29 = vunpack.c.l.s8.bf16 %v15324_v19  ;;  %v12831_v32 = vcombine.high %v766_v18, %v770_v25 }
  0x18   :  { %v15344_v30 = vld [vmem:[%s23264_s1 + $0x60] sm:$0xff]  ;;  %v15349_v31 = vld [vmem:[%s23264_s1 + $0x70] sm:$0xff]  ;;  %6313 = vmatprep.subr.bf16.mxu1 %v13591_v22  ;;  %5636 = vmatpush1.bf16.msra.mxu0 %v12822_v17  ;;  %v12830_v33 = vcombine.low %v766_v18, %v770_v25  ;;  %v1542_v34 = vunpack.c.l.s8.bf16 %v748_v20  ;;  %v1546_v35 = vunpack.c.l.s8.bf16 %v750_v21  ;;  %v5609_v52 = vsel %vm5607_vm0, 4294967295, %v15214_v51  ;;  %v69_v22 = vld [vmem:[%s23263_s0 + $0xc8] sm:$0xff] }
  0x19   :  { %v752_v36 = vld [vmem:[%s23264_s1 + $0xc60] sm:$0xff]  ;;  %v754_v37 = vld [vmem:[%s23264_s1 + $0xc70] sm:$0xff]  ;;  %6314 = vmatpush1.bf16.msra.mxu1 %v13590_v24  ;;  %v13599_v38 = vcombine.high %v1534_v26, %v1538_v27  ;;  %v13598_v39 = vcombine.low %v1534_v26, %v1538_v27  ;;  %v12839_v40 = vcombine.high %v774_v28, %v778_v29  ;;  %5637 = vmatprep.subr.bf16.mxu0 %v12831_v32  ;;  %v782_v43 = vunpack.c.l.s8.bf16 %v15344_v30 }
  0x1a   :  { %v756_v41 = vld [vmem:[%s23264_s1 + $0xc80] sm:$0x55]  ;;  %v13607_v42 = vcombine.high %v1542_v34, %v1546_v35  ;;  %v786_v44 = vunpack.c.l.s8.bf16 %v15349_v31  ;;  %v15370_v46 = vld [vmem:[%s23264_s1 + $0x90] sm:$0xff]  ;;  %v1550_v47 = vunpack.c.l.s8.bf16 %v752_v36  ;;  %v1554_v48 = vunpack.c.l.s8.bf16 %v754_v37 }
  0x1b   :  { %v15365_v45 = vld [vmem:[%s23264_s1 + $0x80] sm:$0xff]  ;;  %6315 = vmatprep.subr.bf16.mxu1 %v13599_v38  ;;  %v12838_v49 = vcombine.low %v774_v28, %v778_v29  ;;  %v1558_v50 = vunpack.c.l.s8.bf16 %v756_v41  ;;  %v13606_v53 = vcombine.low %v1542_v34, %v1546_v35  ;;  %v794_v56 = vunpack.c.l.s8.bf16 %v15370_v46  ;;  %v15383_v60 = vld [vmem:[%s23264_s1 + $0xb0] sm:$0xff] }
  0x1c   :  { %5638 = vmatpush1.bf16.msra.mxu0 %v12830_v33  ;;  %v12847_v54 = vcombine.high %v782_v43, %v786_v44  ;;  %v790_v55 = vunpack.c.l.s8.bf16 %v15365_v45  ;;  %v15378_v57 = vld [vmem:[%s23264_s1 + $0xa0] sm:$0xff]  ;;  %v13615_v58 = vcombine.high %v1550_v47, %v1554_v48  ;;  %v15386_v61 = vsel %vm5608_vm1, %v5609_v52, 0  ;;  %v15401_v18 = vld [vmem:[%s23264_s1 + $0xd0] sm:$0xff] }
  0x1d   :  { %6316 = vmatpush1.bf16.msra.mxu1 %v13598_v39  ;;  %5639 = vmatprep.subr.bf16.mxu0 %v12839_v40  ;;  %v13623_v59 = vcombine.high %v1558_v50, %v1558_v50  ;;  %23653 = vst [vmem:[#allocation5_spill] sm:$0xff] %v15386_v61  ;;  %v12846_v62 = vcombine.low %v782_v43, %v786_v44  ;;  %v798_v63 = vunpack.c.l.s8.bf16 %v15378_v57  ;;  %v802_v11 = vunpack.c.l.s8.bf16 %v15383_v60  ;;  %v15396_v17 = vld [vmem:[%s23264_s1 + $0xc0] sm:$0xff]  ;;  %v15422_v32 = vld [vmem:[%s23264_s1 + $0xf0] sm:$0xff]  ;;  %v95_v44 = vld [vmem:[%s23263_s0 + $0x198] sm:$0xff] }
  0x1e   :  { %6317 = vmatprep.subr.bf16.mxu1 %v13607_v42  ;;  %v13614_v4 = vcombine.low %v1550_v47, %v1554_v48  ;;  %v12855_v5 = vcombine.high %v790_v55, %v794_v56  ;;  %v13622_v9 = vcombine.low %v1558_v50, %v1558_v50  ;;  %v759_v13 = vunpack.c.h.s8.bf16 %v15276_v1  ;;  %v56_v21 = vld [vmem:[%s23263_s0 + $0x60] sm:$0xff]  ;;  %v15438_v41 = vld [vmem:[%s23264_s1 + $0x110] sm:$0xff] }
  0x1f   :  { %v763_v14 = vunpack.c.h.s8.bf16 %v15281_v2  ;;  %v5615_v16 = vand.u32 %v13623_v59, %v15386_v61  ;;  %v12854_v20 = vcombine.low %v790_v55, %v794_v56  ;;  %v12863_v2 = vcombine.high %v798_v63, %v802_v11  ;;  %v15417_v29 = vld [vmem:[%s23264_s1 + $0xe0] sm:$0xff] }
  0x20   :  { %5640 = vmatpush1.bf16.msra.mxu0 %v12838_v49  ;;  %v5612_v1 = vand.u32 %v13622_v9, %v15386_v61  ;;  %v806_v24 = vunpack.c.l.s8.bf16 %v15396_v17  ;;  %v810_v25 = vunpack.c.l.s8.bf16 %v15401_v18  ;;  %v767_v27 = vunpack.c.h.s8.bf16 %v15298_v7  ;;  %v15433_v40 = vld [vmem:[%s23264_s1 + $0x100] sm:$0xff]  ;;  %v45_v9 = vld [vmem:[%s23263_s0 + $0x8] sm:$0xff] }
  0x21   :  { %6318 = vmatpush1.bf16.msra.mxu1 %v13606_v53  ;;  %5641 = vmatprep.subr.bf16.mxu0 %v12847_v54  ;;  %v12825_v26 = vcombine.high %v759_v13, %v763_v14  ;;  %v771_v28 = vunpack.c.h.s8.bf16 %v15303_v8  ;;  %v15424_v33 = vpack.c.bf16 %v69_v22, %v56_v21  ;;  %vm5582_vm2 = vcmask 547840   ;;  %v15456_v52 = vld [vmem:[%s23264_s1 + $0x120] sm:$0xff]  ;;  %v15461_v53 = vld [vmem:[%s23264_s1 + $0x130] sm:$0xff] }
  0x22   :  { %6319 = vmatprep.subr.bf16.mxu1 %v13615_v58  ;;  %v12862_v34 = vcombine.low %v798_v63, %v802_v11  ;;  %v12824_v35 = vcombine.low %v759_v13, %v763_v14  ;;  %v12871_v7 = vcombine.high %v806_v24, %v810_v25  ;;  %v814_v8 = vunpack.c.l.s8.bf16 %v15417_v29  ;;  %v15470_v59 = vld [vmem:[%s23264_s1 + $0x140] sm:$0xff]  ;;  %v58_v11 = vld [vmem:[%s23263_s0 + $0x70] sm:$0xff] }
  0x23   :  { %23654 = vst [vmem:[#allocation6_spill] sm:$0xff] %v15424_v33  ;;  %v818_v36 = vunpack.c.l.s8.bf16 %v15422_v32  ;;  %v12833_v37 = vcombine.high %v767_v27, %v771_v28  ;;  %v775_v38 = vunpack.c.h.s8.bf16 %v15318_v15  ;;  %v779_v39 = vunpack.c.h.s8.bf16 %v15324_v19  ;;  %v82_v19 = vld [vmem:[%s23263_s0 + $0x130] sm:$0xff]  ;;  %v108_v14 = vld [vmem:[%s23263_s0 + $0x200] sm:$0xff] }
  0x24   :  { %5642 = vmatpush1.bf16.msra.mxu0 %v12846_v62  ;;  %v12870_v42 = vcombine.low %v806_v24, %v810_v25  ;;  %v12832_v15 = vcombine.low %v767_v27, %v771_v28  ;;  %v822_v47 = vunpack.c.l.s8.bf16 %v15433_v40  ;;  %v826_v48 = vunpack.c.l.s8.bf16 %v15438_v41  ;;  %v15503_v25 = vld [vmem:[%s23264_s1 + $0x160] sm:$0xff] }
  0x25   :  { %6320 = vmatpush1.bf16.msra.mxu1 %v13614_v4  ;;  %5643 = vmatprep.subr.bf16.mxu0 %v12855_v5  ;;  %v12879_v43 = vcombine.high %v814_v8, %v818_v36  ;;  %v12841_v49 = vcombine.high %v775_v38, %v779_v39  ;;  %v783_v50 = vunpack.c.h.s8.bf16 %v15344_v30  ;;  %v787_v51 = vunpack.c.h.s8.bf16 %v15349_v31  ;;  %v15477_v5 = vld [vmem:[%s23264_s1 + $0x150] sm:$0xff] }
  0x26   :  { %6321 = vmatprep.subr.bf16.mxu1 %v5615_v16  ;;  %v15463_v54 = vpack.c.bf16 %v95_v44, %v82_v19  ;;  %v12878_v55 = vcombine.low %v814_v8, %v818_v36  ;;  %v12840_v56 = vcombine.low %v775_v38, %v779_v39  ;;  %v12887_v30 = vcombine.high %v822_v47, %v826_v48  ;;  %v121_v16 = vld [vmem:[%s23263_s0 + $0x268] sm:$0xff]  ;;  %v15525_v38 = vld [vmem:[%s23264_s1 + $0x190] sm:$0xff] }
  0x27   :  { %v830_v31 = vunpack.c.l.s8.bf16 %v15456_v52  ;;  %v834_v58 = vunpack.c.l.s8.bf16 %v15461_v53  ;;  %v12849_v62 = vcombine.high %v783_v50, %v787_v51  ;;  %v791_v63 = vunpack.c.h.s8.bf16 %v15365_v45 }
  0x28   :  { %5644 = vmatpush1.bf16.msra.mxu0 %v12854_v20  ;;  %23655 = vst [vmem:[#allocation7_spill] sm:$0xff] %v15463_v54  ;;  %v795_v4 = vunpack.c.h.s8.bf16 %v15370_v46  ;;  %v12886_v45 = vcombine.low %v822_v47, %v826_v48  ;;  %v12848_v13 = vcombine.low %v783_v50, %v787_v51  ;;  %v838_v20 = vunpack.c.l.s8.bf16 %v15470_v59  ;;  %v15548_v50 = vld [vmem:[%s23264_s1 + $0x1b0] sm:$0xff] }
  0x29   :  { %6322 = vmatpush1.bf16.msra.mxu1 %v5612_v1  ;;  %5645 = vmatprep.subr.bf16.mxu0 %v12863_v2  ;;  %v12895_v46 = vcombine.high %v830_v31, %v834_v58  ;;  %v842_v1 = vunpack.c.l.s8.bf16 %v15477_v5  ;;  %v15495_v2 = vpack.c.bf16 %v58_v11, %v45_v9  ;;  %v799_v22 = vunpack.c.h.s8.bf16 %v15378_v57 }
  0x2a   :  { %6426 = vmatprep.subr.bf16.mxu1 %v12825_v26  ;;  %v12857_v21 = vcombine.high %v791_v63, %v795_v4  ;;  %v803_v24 = vunpack.c.h.s8.bf16 %v15383_v60  ;;  %v15508_v26 = vld [vmem:[%s23264_s1 + $0x170] sm:$0xff]  ;;  %v15511_v27 = vpack.c.bf16 %v121_v16, %v108_v14  ;;  %v12894_v28 = vcombine.low %v830_v31, %v834_v58 }
  0x2b   :  { %23656 = vst [vmem:[#allocation8_spill] sm:$0xff] %v15495_v2  ;;  %5667 = vmatprep.mubr.bf16.mxu0 %v15495_v2  ;;  %v12856_v57 = vcombine.low %v791_v63, %v795_v4  ;;  %v12903_v60 = vcombine.high %v838_v20, %v842_v1  ;;  %v807_v8 = vunpack.c.h.s8.bf16 %v15396_v17  ;;  %v811_v36 = vunpack.c.h.s8.bf16 %v15401_v18  ;;  %v134_v18 = vld [vmem:[%s23263_s0 + $0x2d0] sm:$0xff]  ;;  %v15559_v63 = vld [vmem:[%s23264_s1 + $0x1c0] sm:$0xff] }
  0x2c   :  { %13630 = vmatmul.mubr.msk.bf16.vlgmr.msra.gmra.mrb[0].mxu1 %vm5582_vm2, %v15424_v33  ;;  %5646 = vmatpush1.bf16.msra.mxu0 %v12862_v34  ;;  %23657 = vst [vmem:[#allocation9_spill] sm:$0xff] %v15511_v27  ;;  %v846_v34 = vunpack.c.l.s8.bf16 %v15503_v25  ;;  %v12902_v39 = vcombine.low %v838_v20, %v842_v1  ;;  %v12864_v17 = vcombine.low %v799_v22, %v803_v24  ;;  %v858_v19 = vunpack.c.l.s8.bf16 %v15525_v38  ;;  %v15564_v4 = vld [vmem:[%s23264_s1 + $0x1d0] sm:$0xff]  ;;  %v15582_v1 = vld [vmem:[%s23264_s1 + $0x1e0] sm:$0xff] }
  0x2d   :  { %6427 = vmatpush1.bf16.msra.mxu1 %v12824_v35  ;;  %5647 = vmatprep.subr.bf16.mxu0 %v12871_v7  ;;  %v850_v35 = vunpack.c.l.s8.bf16 %v15508_v26  ;;  %v12865_v7 = vcombine.high %v799_v22, %v803_v24  ;;  %v12873_v44 = vcombine.high %v807_v8, %v811_v36  ;;  %v815_v47 = vunpack.c.h.s8.bf16 %v15417_v29 }
  0x2e   :  { %6428 = vmatprep.subr.bf16.mxu1 %v12833_v37  ;;  %6355 = vmatprep.mubr.bf16.mxu1 %v23272_v0  ;;  %v15520_v37 = vld [vmem:[%s23264_s1 + $0x180] sm:$0xff]  ;;  %v819_v48 = vunpack.c.h.s8.bf16 %v15422_v32  ;;  %v823_v58 = vunpack.c.h.s8.bf16 %v15433_v40  ;;  %v831_v16 = vunpack.c.h.s8.bf16 %v15456_v52  ;;  %v835_v20 = vunpack.c.h.s8.bf16 %v15461_v53 }
  0x2f   :  { %v878_v53 = vunpack.c.l.s8.bf16 %v15582_v1  ;;  %vm11819_vm3 = vcmask 261120   ;;  %vm12110_vm4 = vcmask 130048   ;;  %vm12393_vm5 = vcmask 31744  }
  0x30   :  { %5648 = vmatpush1.bf16.msra.mxu0 %v12870_v42  ;;  %v12911_v42 = vcombine.high %v846_v34, %v850_v35  ;;  %v12881_v31 = vcombine.high %v815_v47, %v819_v48  ;;  %v12880_v40 = vcombine.low %v815_v47, %v819_v48  ;;  %v851_v47 = vunpack.c.h.s8.bf16 %v15508_v26  ;;  %v15627_v48 = vld [vmem:[%s23264_s1 + $0x220] sm:$0xff] }
  0x31   :  { %6429 = vmatpush1.bf16.msra.mxu1 %v12832_v15  ;;  %5649 = vmatprep.subr.bf16.mxu0 %v12879_v43  ;;  %v147_v15 = vld [vmem:[%s23263_s0 + $0x338] sm:$0xff]  ;;  %v854_v43 = vunpack.c.l.s8.bf16 %v15520_v37  ;;  %vm12672_vm6 = vcmask 7168  }
  0x32   :  { %6430 = vmatprep.subr.bf16.mxu1 %v12841_v49  ;;  %v15543_v49 = vld [vmem:[%s23264_s1 + $0x1a0] sm:$0xff]  ;;  %v15550_v51 = vpack.c.bf16 %v147_v15, %v134_v18 }
  0x33   :  { %v12919_v29 = vcombine.high %v854_v43, %v858_v19  ;;  %v862_v32 = vunpack.c.l.s8.bf16 %v15543_v49  ;;  %v12918_v9 = vcombine.low %v854_v43, %v858_v19  ;;  %v44_v43 = vld [vmem:[%s23263_s0] sm:$0xff]  ;;  %v57_v19 = vld [vmem:[%s23263_s0 + $0x68] sm:$0xff] }
  0x34   :  { %13631 = vmatmul.mubr.msk.bf16.gmra.mrb[4].mxu1 %vm5582_vm2, %v15463_v54  ;;  %5650 = vmatpush1.bf16.msra.mxu0 %v12878_v55  ;;  %23658 = vst [vmem:[#allocation10_spill] sm:$0xff] %v15550_v51  ;;  %v12910_v55 = vcombine.low %v846_v34, %v850_v35  ;;  %v839_v34 = vunpack.c.h.s8.bf16 %v15470_v59  ;;  %v843_v35 = vunpack.c.h.s8.bf16 %v15477_v5  ;;  %v12896_v59 = vcombine.low %v831_v16, %v835_v20  ;;  %v186_v5 = vld [vmem:[%s23263_s0 + $0x470] sm:$0xff] }
  0x35   :  { %6431 = vmatpush1.bf16.msra.mxu1 %v12840_v56  ;;  %5651 = vmatprep.subr.bf16.mxu0 %v12887_v30  ;;  %v12872_v56 = vcombine.low %v807_v8, %v811_v36  ;;  %v866_v30 = vunpack.c.l.s8.bf16 %v15548_v50  ;;  %v15603_v8 = vld [vmem:[%s23264_s1 + $0x210] sm:$0xff] }
  0x36   :  { %6432 = vmatprep.subr.bf16.mxu1 %v12849_v62  ;;  %6365 = vmatprep.mubr.bf16.mxu1 %v23272_v0  ;;  %v827_v62 = vunpack.c.h.s8.bf16 %v15438_v41  ;;  %v160_v41 = vld [vmem:[%s23263_s0 + $0x3a0] sm:$0xff]  ;;  %v890_v18 = vunpack.c.l.s8.bf16 %v15603_v8  ;;  %v12905_v15 = vcombine.high %v839_v34, %v843_v35 }
  0x37   :  { %v12927_v11 = vcombine.high %v862_v32, %v866_v30  ;;  %v12926_v24 = vcombine.low %v862_v32, %v866_v30  ;;  %v15645_v32 = vld [vmem:[%s23264_s1 + $0x240] sm:$0xff]  ;;  %v15650_v30 = vld [vmem:[%s23264_s1 + $0x250] sm:$0xff] }
  0x38   :  { %5652 = vmatpush1.bf16.msra.mxu0 %v12886_v45  ;;  %v173_v45 = vld [vmem:[%s23263_s0 + $0x408] sm:$0xff]  ;;  %v12889_v14 = vcombine.high %v823_v58, %v827_v62 }
  0x39   :  { %6433 = vmatpush1.bf16.msra.mxu1 %v12848_v13  ;;  %5653 = vmatprep.subr.bf16.mxu0 %v12895_v46  ;;  %v870_v13 = vunpack.c.l.s8.bf16 %v15559_v63  ;;  %v874_v46 = vunpack.c.l.s8.bf16 %v15564_v4  ;;  %v15589_v22 = vpack.c.bf16 %v173_v45, %v160_v41  ;;  %v859_v41 = vunpack.c.h.s8.bf16 %v15525_v38 }
  0x3a   :  { %6434 = vmatprep.subr.bf16.mxu1 %v12857_v21  ;;  %v15587_v21 = vld [vmem:[%s23264_s1 + $0x1f0] sm:$0xff]  ;;  %v15656_v45 = vpack.c.bf16 %v57_v19, %v44_v43  ;;  %v871_v19 = vunpack.c.h.s8.bf16 %v15559_v63 }
  0x3b   :  { %23659 = vst [vmem:[#allocation11_spill] sm:$0xff] %v15589_v22  ;;  %v12935_v52 = vcombine.high %v870_v13, %v874_v46  ;;  %v12934_v36 = vcombine.low %v870_v13, %v874_v46  ;;  %v212_v46 = vld [vmem:[%s23263_s0 + $0x540] sm:$0xff] }
  0x3c   :  { %13632 = vmatmul.mubr.msk.bf16.gmra.mrb[8].mxu1 %vm5582_vm2, %v15511_v27  ;;  %5654 = vmatpush1.bf16.msra.mxu0 %v12894_v28  ;;  %v12888_v28 = vcombine.low %v823_v58, %v827_v62  ;;  %v894_v62 = vunpack.c.l.s8.bf16 %v15627_v48  ;;  %23661 = vst [vmem:[#allocation13_spill] sm:$0xff] %v15656_v45 }
  0x3d   :  { %6435 = vmatpush1.bf16.msra.mxu1 %v12856_v57  ;;  %5655 = vmatprep.subr.bf16.mxu0 %v12903_v60  ;;  %v882_v57 = vunpack.c.l.s8.bf16 %v15587_v21  ;;  %v12897_v60 = vcombine.high %v831_v16, %v835_v20  ;;  %v902_v20 = vunpack.c.l.s8.bf16 %v15645_v32 }
  0x3e   :  { %6436 = vmatprep.subr.bf16.mxu1 %v12865_v7  ;;  %6375 = vmatprep.mubr.bf16.mxu1 %v23272_v0  ;;  %v15598_v7 = vld [vmem:[%s23264_s1 + $0x200] sm:$0xff] }
  0x40   :  { %5656 = vmatpush1.bf16.msra.mxu0 %v12902_v39  ;;  %v12943_v39 = vcombine.high %v878_v53, %v882_v57 }
  0x41   :  { %6437 = vmatpush1.bf16.msra.mxu1 %v12864_v17  ;;  %5657 = vmatprep.subr.bf16.mxu0 %v12911_v42  ;;  %v199_v17 = vld [vmem:[%s23263_s0 + $0x4d8] sm:$0xff]  ;;  %v886_v42 = vunpack.c.l.s8.bf16 %v15598_v7 }
  0x42   :  { %6438 = vmatprep.subr.bf16.mxu1 %v12873_v44  ;;  %v847_v44 = vunpack.c.h.s8.bf16 %v15503_v25  ;;  %v84_v25 = vld [vmem:[%s23263_s0 + $0x140] sm:$0xff]  ;;  %v15640_v26 = vpack.c.bf16 %v199_v17, %v186_v5 }
  0x43   :  { %v12951_v58 = vcombine.high %v886_v42, %v890_v18  ;;  %v12950_v13 = vcombine.low %v886_v42, %v890_v18 }
  0x44   :  { %13633 = vmatmul.mubr.msk.bf16.gmra.mrb[12].mxu1 %vm5582_vm2, %v15550_v51  ;;  %5658 = vmatpush1.bf16.msra.mxu0 %v12910_v55  ;;  %v15632_v55 = vld [vmem:[%s23264_s1 + $0x230] sm:$0xff]  ;;  %23660 = vst [vmem:[#allocation12_spill] sm:$0xff] %v15640_v26 }
  0x45   :  { %6439 = vmatpush1.bf16.msra.mxu1 %v12872_v56  ;;  %5659 = vmatprep.subr.bf16.mxu0 %v12919_v29  ;;  %v71_v56 = vld [vmem:[%s23263_s0 + $0xd8] sm:$0xff]  ;;  %v12942_v29 = vcombine.low %v878_v53, %v882_v57  ;;  %v70_v57 = vld [vmem:[%s23263_s0 + $0xd0] sm:$0xff] }
  0x46   :  { %6440 = vmatprep.subr.bf16.mxu1 %v12881_v31  ;;  %6385 = vmatprep.mubr.bf16.mxu1 %v23272_v0  ;;  %v12904_v31 = vcombine.low %v839_v34, %v843_v35  ;;  %v15666_v16 = vpack.c.bf16 %v84_v25, %v71_v56  ;;  %v863_v34 = vunpack.c.h.s8.bf16 %v15543_v49  ;;  %v867_v35 = vunpack.c.h.s8.bf16 %v15548_v50  ;;  %v15702_v49 = vld [vmem:[%s23264_s1 + $0x280] sm:$0xff]  ;;  %v15707_v50 = vld [vmem:[%s23264_s1 + $0x290] sm:$0xff] }
  0x47   :  { %v238_v25 = vld [vmem:[%s23263_s0 + $0x610] sm:$0xff] }
  0x48   :  { %5660 = vmatpush1.bf16.msra.mxu0 %v12918_v9  ;;  %v898_v9 = vunpack.c.l.s8.bf16 %v15632_v55  ;;  %23662 = vst [vmem:[#allocation14_spill] sm:$0xff] %v15666_v16  ;;  %v12929_v43 = vcombine.high %v863_v34, %v867_v35  ;;  %v12928_v63 = vcombine.low %v863_v34, %v867_v35 }
  0x49   :  { %6441 = vmatpush1.bf16.msra.mxu1 %v12880_v40  ;;  %5661 = vmatprep.subr.bf16.mxu0 %v12927_v11  ;;  %v12913_v40 = vcombine.high %v847_v44, %v851_v47  ;;  %v855_v11 = vunpack.c.h.s8.bf16 %v15520_v37  ;;  %v12912_v37 = vcombine.low %v847_v44, %v851_v47  ;;  %v875_v44 = vunpack.c.h.s8.bf16 %v15564_v4 }
  0x4a   :  { %6442 = vmatprep.subr.bf16.mxu1 %v12889_v14  ;;  %v225_v14 = vld [vmem:[%s23263_s0 + $0x5a8] sm:$0xff]  ;;  %v12959_v38 = vcombine.high %v894_v62, %v898_v9  ;;  %v12958_v5 = vcombine.low %v894_v62, %v898_v9  ;;  %v922_v62 = vunpack.c.l.s8.bf16 %v15707_v50  ;;  %v15730_v9 = vld [vmem:[%s23264_s1 + $0x2a0] sm:$0xff] }
  0x4b   :  { %v12921_v53 = vcombine.high %v855_v11, %v859_v41  ;;  %v12920_v17 = vcombine.low %v855_v11, %v859_v41  ;;  %v12937_v11 = vcombine.high %v871_v19, %v875_v44  ;;  %v96_v41 = vld [vmem:[%s23263_s0 + $0x1a0] sm:$0xff] }
  0x4c   :  { %13634 = vmatmul.mubr.msk.bf16.gmra.mrb[16].mxu1 %vm5582_vm2, %v15589_v22  ;;  %5662 = vmatpush1.bf16.msra.mxu0 %v12926_v24  ;;  %v906_v24 = vunpack.c.l.s8.bf16 %v15650_v30 }
  0x4d   :  { %6443 = vmatpush1.bf16.msra.mxu1 %v12888_v28  ;;  %5663 = vmatprep.subr.bf16.mxu0 %v12935_v52  ;;  %v15673_v28 = vld [vmem:[%s23264_s1 + $0x260] sm:$0xff]  ;;  %v15678_v52 = vld [vmem:[%s23264_s1 + $0x270] sm:$0xff] }
  0x4e   :  { %6444 = vmatprep.subr.bf16.mxu1 %v12897_v60  ;;  %6395 = vmatprep.mubr.bf16.mxu1 %v23272_v0  ;;  %v83_v60 = vld [vmem:[%s23263_s0 + $0x138] sm:$0xff]  ;;  %v12967_v42 = vcombine.high %v902_v20, %v906_v24  ;;  %v910_v18 = vunpack.c.l.s8.bf16 %v15673_v28  ;;  %v12966_v56 = vcombine.low %v902_v20, %v906_v24 }
  0x4f   :  { %v15713_v47 = vpack.c.bf16 %v83_v60, %v70_v57  ;;  %v926_v60 = vunpack.c.l.s8.bf16 %v15730_v9 }
  0x50   :  { %5664 = vmatpush1.bf16.msra.mxu0 %v12934_v36  ;;  %v97_v36 = vld [vmem:[%s23263_s0 + $0x1a8] sm:$0xff] }
  0x51   :  { %6445 = vmatpush1.bf16.msra.mxu1 %v12896_v59  ;;  %5665 = vmatprep.subr.bf16.mxu0 %v12943_v39  ;;  %v110_v59 = vld [vmem:[%s23263_s0 + $0x210] sm:$0xff]  ;;  %v15696_v39 = vpack.c.bf16 %v225_v14, %v212_v46  ;;  %23664 = vst [vmem:[#allocation16_spill] sm:$0xff] %v15713_v47  ;;  %v879_v46 = vunpack.c.h.s8.bf16 %v15582_v1  ;;  %v883_v14 = vunpack.c.h.s8.bf16 %v15587_v21  ;;  %v15759_v1 = vld [vmem:[%s23264_s1 + $0x2c0] sm:$0xff] }
  0x52   :  { %6446 = vmatprep.subr.bf16.mxu1 %v12905_v15  ;;  %v914_v15 = vunpack.c.l.s8.bf16 %v15678_v52  ;;  %v15764_v21 = vld [vmem:[%s23264_s1 + $0x2d0] sm:$0xff] }
  0x53   :  { %23663 = vst [vmem:[#allocation15_spill] sm:$0xff] %v15696_v39  ;;  %v12945_v35 = vcombine.high %v879_v46, %v883_v14 }
  0x54   :  { %13635 = vmatmul.mubr.msk.bf16.gmra.mrb[20].mxu1 %vm5582_vm2, %v15640_v26  ;;  %5666 = vmatpush1.bf16.msra.mxu0 %v12942_v29  ;;  %v251_v29 = vld [vmem:[%s23263_s0 + $0x678] sm:$0xff]  ;;  %v12975_v4 = vcombine.high %v910_v18, %v914_v15  ;;  %v12974_v24 = vcombine.low %v910_v18, %v914_v15  ;;  %v12944_v18 = vcombine.low %v879_v46, %v883_v14 }
  0x55   :  { %6447 = vmatpush1.bf16.msra.mxu1 %v12904_v31  ;;  %5748 = vmatprep.subr.bf16.mxu0 %v12951_v58  ;;  %v15723_v31 = vpack.c.bf16 %v110_v59, %v97_v36  ;;  %v918_v58 = vunpack.c.l.s8.bf16 %v15702_v49  ;;  %v15753_v20 = vpack.c.bf16 %v251_v29, %v238_v25  ;;  %v887_v36 = vunpack.c.h.s8.bf16 %v15598_v7  ;;  %v15781_v7 = vld [vmem:[%s23264_s1 + $0x2e0] sm:$0xff]  ;;  %v135_v25 = vld [vmem:[%s23263_s0 + $0x2d8] sm:$0xff] }
  0x56   :  { %6448 = vmatprep.subr.bf16.mxu1 %v12913_v40  ;;  %6405 = vmatprep.mubr.bf16.mxu1 %v23272_v0  ;;  %v15735_v40 = vld [vmem:[%s23264_s1 + $0x2b0] sm:$0xff]  ;;  %v891_v59 = vunpack.c.h.s8.bf16 %v15603_v8  ;;  %v895_v29 = vunpack.c.h.s8.bf16 %v15627_v48  ;;  %v15808_v48 = vld [vmem:[%s23264_s1 + $0x300] sm:$0xff] }
  0x57   :  { %5668 = vmatmul.mubr.bf16.vlgmr.msra.gmra.mrb[0].mxu0 %v15656_v45  ;;  %23665 = vst [vmem:[#allocation17_spill] sm:$0xff] %v15723_v31  ;;  %23666 = vst [vmem:[#allocation18_spill] sm:$0xff] %v15753_v20  ;;  %v12983_v57 = vcombine.high %v918_v58, %v922_v62  ;;  %v930_v34 = vunpack.c.l.s8.bf16 %v15735_v40  ;;  %v15786_v8 = vld [vmem:[%s23264_s1 + $0x2f0] sm:$0xff] }
  0x58   :  { %5749 = vmatpush1.bf16.msra.mxu0 %v12950_v13  ;;  %5677 = vmatprep.mubr.bf16.mxu0 %v15666_v16  ;;  %v109_v13 = vld [vmem:[%s23263_s0 + $0x208] sm:$0xff]  ;;  %v946_v46 = vunpack.c.l.s8.bf16 %v15786_v8 }
  0x59   :  { %6449 = vmatpush1.bf16.msra.mxu1 %v12912_v37  ;;  %5750 = vmatprep.subr.bf16.mxu0 %v12959_v38  ;;  %v123_v37 = vld [vmem:[%s23263_s0 + $0x278] sm:$0xff]  ;;  %v136_v38 = vld [vmem:[%s23263_s0 + $0x2e0] sm:$0xff]  ;;  %v12991_v15 = vcombine.high %v926_v60, %v930_v34 }
  0x5a   :  { %6450 = vmatprep.subr.bf16.mxu1 %v12921_v53  ;;  %v12936_v53 = vcombine.low %v871_v19, %v875_v44  ;;  %v938_v19 = vunpack.c.l.s8.bf16 %v15764_v21  ;;  %v12953_v44 = vcombine.high %v887_v36, %v891_v59 }
  0x5c   :  { %13636 = vmatmul.mubr.msk.bf16.gmra.mrb[24].mxu1 %vm5582_vm2, %v15696_v39  ;;  %5751 = vmatpush1.bf16.msra.mxu0 %v12958_v5  ;;  %v15770_v5 = vpack.c.bf16 %v109_v13, %v96_v41  ;;  %v942_v13 = vunpack.c.l.s8.bf16 %v15781_v7 }
  0x5d   :  { %6451 = vmatpush1.bf16.msra.mxu1 %v12920_v17  ;;  %5752 = vmatprep.subr.bf16.mxu0 %v12967_v42  ;;  %v12982_v17 = vcombine.low %v918_v58, %v922_v62  ;;  %v15774_v42 = vpack.c.bf16 %v136_v38, %v123_v37  ;;  %v162_v58 = vld [vmem:[%s23263_s0 + $0x3b0] sm:$0xff]  ;;  %v12990_v62 = vcombine.low %v926_v60, %v930_v34  ;;  %v903_v37 = vunpack.c.h.s8.bf16 %v15645_v32  ;;  %v15829_v32 = vld [vmem:[%s23264_s1 + $0x320] sm:$0xff] }
  0x5e   :  { %6452 = vmatprep.subr.bf16.mxu1 %v12929_v43  ;;  %6415 = vmatprep.mubr.bf16.mxu1 %v23272_v0  ;;  %23667 = vst [vmem:[#allocation19_spill] sm:$0xff] %v15770_v5  ;;  %v934_v43 = vunpack.c.l.s8.bf16 %v15759_v1  ;;  %v907_v38 = vunpack.c.h.s8.bf16 %v15650_v30  ;;  %v13007_v34 = vcombine.high %v942_v13, %v946_v46  ;;  %v15834_v30 = vld [vmem:[%s23264_s1 + $0x330] sm:$0xff] }
  0x5f   :  { %5678 = vmatmul.mubr.bf16.gmra.mrb[4].mxu0 %v15713_v47  ;;  %23668 = vst [vmem:[#allocation20_spill] sm:$0xff] %v15774_v42 }
  0x60   :  { %5753 = vmatpush1.bf16.msra.mxu0 %v12966_v56  ;;  %5687 = vmatprep.mubr.bf16.mxu0 %v15723_v31  ;;  %v122_v56 = vld [vmem:[%s23263_s0 + $0x270] sm:$0xff]  ;;  %v12999_v41 = vcombine.high %v934_v43, %v938_v19 }
  0x61   :  { %6453 = vmatpush1.bf16.msra.mxu1 %v12928_v63  ;;  %5754 = vmatprep.subr.bf16.mxu0 %v12975_v4  ;;  %v899_v63 = vunpack.c.h.s8.bf16 %v15632_v55  ;;  %v149_v4 = vld [vmem:[%s23263_s0 + $0x348] sm:$0xff]  ;;  %v15813_v55 = vld [vmem:[%s23264_s1 + $0x310] sm:$0xff] }
  0x62   :  { %6454 = vmatprep.subr.bf16.mxu1 %v12937_v11  ;;  %v12952_v11 = vcombine.low %v887_v36, %v891_v59  ;;  %v954_v36 = vunpack.c.l.s8.bf16 %v15813_v55  ;;  %v12969_v59 = vcombine.high %v903_v37, %v907_v38 }
  0x63   :  { %v12961_v14 = vcombine.high %v895_v29, %v899_v63  ;;  %v12960_v60 = vcombine.low %v895_v29, %v899_v63  ;;  %v958_v63 = vunpack.c.l.s8.bf16 %v15829_v32 }
  0x64   :  { %13637 = vmatmul.mubr.msk.bf16.gmra.mrb[28].mxu1 %vm5582_vm2, %v15753_v20  ;;  %5755 = vmatpush1.bf16.msra.mxu0 %v12974_v24  ;;  %v15819_v24 = vpack.c.bf16 %v135_v25, %v122_v56  ;;  %v13006_v56 = vcombine.low %v942_v13, %v946_v46  ;;  %v12968_v25 = vcombine.low %v903_v37, %v907_v38 }
  0x65   :  { %6455 = vmatpush1.bf16.msra.mxu1 %v12936_v53  ;;  %5756 = vmatprep.subr.bf16.mxu0 %v12983_v57  ;;  %v12998_v53 = vcombine.low %v934_v43, %v938_v19  ;;  %v15822_v57 = vpack.c.bf16 %v162_v58, %v149_v4  ;;  %v915_v43 = vunpack.c.h.s8.bf16 %v15678_v52  ;;  %v175_v19 = vld [vmem:[%s23263_s0 + $0x418] sm:$0xff]  ;;  %v15861_v52 = vld [vmem:[%s23264_s1 + $0x350] sm:$0xff]  ;;  %v962_v4 = vunpack.c.l.s8.bf16 %v15834_v30 }
  0x66   :  { %6456 = vmatprep.subr.bf16.mxu1 %v12945_v35  ;;  %6458 = vmatprep.mubr.bf16.mxu1 %v15495_v2  ;;  %23669 = vst [vmem:[#allocation21_spill] sm:$0xff] %v15819_v24  ;;  %v950_v35 = vunpack.c.l.s8.bf16 %v15808_v48 }
  0x67   :  { %5688 = vmatmul.mubr.bf16.gmra.mrb[8].mxu0 %v15770_v5  ;;  %23670 = vst [vmem:[#allocation22_spill] sm:$0xff] %v15822_v57  ;;  %v13023_v37 = vcombine.high %v958_v63, %v962_v4 }
  0x68   :  { %5757 = vmatpush1.bf16.msra.mxu0 %v12982_v17  ;;  %5697 = vmatprep.mubr.bf16.mxu0 %v15774_v42  ;;  %v148_v17 = vld [vmem:[%s23263_s0 + $0x340] sm:$0xff]  ;;  %v13015_v29 = vcombine.high %v950_v35, %v954_v36  ;;  %v13014_v13 = vcombine.low %v950_v35, %v954_v36  ;;  %v187_v35 = vld [vmem:[%s23263_s0 + $0x478] sm:$0xff]  ;;  %v927_v36 = vunpack.c.h.s8.bf16 %v15730_v9 }
  0x69   :  { %6457 = vmatpush1.bf16.msra.mxu1 %v12944_v18  ;;  %5758 = vmatprep.subr.bf16.mxu0 %v12991_v15  ;;  %v161_v18 = vld [vmem:[%s23263_s0 + $0x3a8] sm:$0xff]  ;;  %v911_v15 = vunpack.c.h.s8.bf16 %v15673_v28  ;;  %v15856_v28 = vld [vmem:[%s23264_s1 + $0x340] sm:$0xff] }
  0x6a   :  { %6539 = vmatprep.subr.bf16.mxu1 %v12953_v44  ;;  %v188_v44 = vld [vmem:[%s23263_s0 + $0x480] sm:$0xff]  ;;  %v966_v38 = vunpack.c.l.s8.bf16 %v15856_v28 }
  0x6b   :  { %v12977_v58 = vcombine.high %v911_v15, %v915_v43  ;;  %v15870_v46 = vpack.c.bf16 %v188_v44, %v175_v19  ;;  %v15904_v9 = vld [vmem:[%s23264_s1 + $0x380] sm:$0xff] }
  0x6c   :  { %6459 = vmatmul.mubr.bf16.vlgmr.msra.gmra.mrb[32].mxu1 %v15656_v45  ;;  %5759 = vmatpush1.bf16.msra.mxu0 %v12990_v62  ;;  %v919_v62 = vunpack.c.h.s8.bf16 %v15702_v49  ;;  %v15877_v49 = vld [vmem:[%s23264_s1 + $0x360] sm:$0xff] }
  0x6d   :  { %6540 = vmatpush1.bf16.msra.mxu1 %v12952_v11  ;;  %5760 = vmatprep.subr.bf16.mxu0 %v12999_v41  ;;  %v923_v11 = vunpack.c.h.s8.bf16 %v15707_v50  ;;  %v15867_v41 = vpack.c.bf16 %v161_v18, %v148_v17  ;;  %23672 = vst [vmem:[#allocation24_spill] sm:$0xff] %v15870_v46  ;;  %v15882_v50 = vld [vmem:[%s23264_s1 + $0x370] sm:$0xff]  ;;  %v201_v17 = vld [vmem:[%s23263_s0 + $0x4e8] sm:$0xff]  ;;  %v974_v44 = vunpack.c.l.s8.bf16 %v15877_v49 }
  0x6e   :  { %6541 = vmatprep.subr.bf16.mxu1 %v12961_v14  ;;  %6468 = vmatprep.mubr.bf16.mxu1 %v15666_v16  ;;  %v12976_v14 = vcombine.low %v911_v15, %v915_v43  ;;  %v214_v18 = vld [vmem:[%s23263_s0 + $0x550] sm:$0xff]  ;;  %v13022_v15 = vcombine.low %v958_v63, %v962_v4  ;;  %v939_v63 = vunpack.c.h.s8.bf16 %v15764_v21 }
  0x6f   :  { %5698 = vmatmul.mubr.bf16.gmra.mrb[12].mxu0 %v15819_v24  ;;  %23671 = vst [vmem:[#allocation23_spill] sm:$0xff] %v15867_v41  ;;  %v12984_v43 = vcombine.low %v919_v62, %v923_v11  ;;  %v15930_v21 = vld [vmem:[%s23264_s1 + $0x3b0] sm:$0xff] }
  0x70   :  { %5761 = vmatpush1.bf16.msra.mxu0 %v12998_v53  ;;  %5707 = vmatprep.mubr.bf16.mxu0 %v15822_v57  ;;  %v970_v53 = vunpack.c.l.s8.bf16 %v15861_v52 }
  0x71   :  { %6542 = vmatpush1.bf16.msra.mxu1 %v12960_v60  ;;  %5762 = vmatprep.subr.bf16.mxu0 %v13007_v34  ;;  %v12985_v60 = vcombine.high %v919_v62, %v923_v11  ;;  %v174_v34 = vld [vmem:[%s23263_s0 + $0x410] sm:$0xff] }
  0x72   :  { %6543 = vmatprep.subr.bf16.mxu1 %v12969_v59  ;;  %v931_v59 = vunpack.c.h.s8.bf16 %v15735_v40  ;;  %v15909_v40 = vld [vmem:[%s23264_s1 + $0x390] sm:$0xff]  ;;  %v13031_v19 = vcombine.high %v966_v38, %v970_v53  ;;  %v15915_v4 = vpack.c.bf16 %v187_v35, %v174_v34  ;;  %v943_v34 = vunpack.c.h.s8.bf16 %v15781_v7  ;;  %v15952_v7 = vld [vmem:[%s23264_s1 + $0x3c0] sm:$0xff] }
  0x73   :  { %v947_v35 = vunpack.c.h.s8.bf16 %v15786_v8  ;;  %v15957_v8 = vld [vmem:[%s23264_s1 + $0x3d0] sm:$0xff] }
  0x74   :  { %6469 = vmatmul.mubr.bf16.gmra.mrb[36].mxu1 %v15713_v47  ;;  %5763 = vmatpush1.bf16.msra.mxu0 %v13006_v56  ;;  %v978_v56 = vunpack.c.l.s8.bf16 %v15882_v50  ;;  %23673 = vst [vmem:[#allocation25_spill] sm:$0xff] %v15915_v4  ;;  %v12992_v62 = vcombine.low %v927_v36, %v931_v59 }
  0x75   :  { %6544 = vmatpush1.bf16.msra.mxu1 %v12968_v25  ;;  %5764 = vmatprep.subr.bf16.mxu0 %v13015_v29  ;;  %v12993_v25 = vcombine.high %v927_v36, %v931_v59  ;;  %v935_v29 = vunpack.c.h.s8.bf16 %v15759_v1  ;;  %v15925_v1 = vld [vmem:[%s23264_s1 + $0x3a0] sm:$0xff]  ;;  %v227_v36 = vld [vmem:[%s23263_s0 + $0x5b8] sm:$0xff] }
  0x76   :  { %6545 = vmatprep.subr.bf16.mxu1 %v12977_v58  ;;  %6478 = vmatprep.mubr.bf16.mxu1 %v15723_v31  ;;  %v13030_v58 = vcombine.low %v966_v38, %v970_v53  ;;  %v13039_v11 = vcombine.high %v974_v44, %v978_v56  ;;  %v200_v53 = vld [vmem:[%s23263_s0 + $0x4e0] sm:$0xff] }
  0x77   :  { %5708 = vmatmul.mubr.bf16.gmra.mrb[16].mxu0 %v15867_v41  ;;  %v13001_v38 = vcombine.high %v935_v29, %v939_v63  ;;  %v240_v59 = vld [vmem:[%s23263_s0 + $0x620] sm:$0xff] }
  0x78   :  { %5765 = vmatpush1.bf16.msra.mxu0 %v13014_v13  ;;  %5717 = vmatprep.mubr.bf16.mxu0 %v15870_v46  ;;  %v15918_v13 = vpack.c.bf16 %v214_v18, %v201_v17  ;;  %v13038_v17 = vcombine.low %v974_v44, %v978_v56  ;;  %v13000_v18 = vcombine.low %v935_v29, %v939_v63  ;;  %v951_v56 = vunpack.c.h.s8.bf16 %v15808_v48  ;;  %v15973_v48 = vld [vmem:[%s23264_s1 + $0x3e0] sm:$0xff] }
  0x79   :  { %6546 = vmatpush1.bf16.msra.mxu1 %v12976_v14  ;;  %5766 = vmatprep.subr.bf16.mxu0 %v13023_v37  ;;  %v982_v14 = vunpack.c.l.s8.bf16 %v15904_v9  ;;  %v986_v37 = vunpack.c.l.s8.bf16 %v15909_v40  ;;  %v13009_v44 = vcombine.high %v943_v34, %v947_v35  ;;  %v13008_v29 = vcombine.low %v943_v34, %v947_v35  ;;  %v47_v35 = vld [vmem:[%s23263_s0 + $0x18] sm:$0xff] }
  0x7a   :  { %6547 = vmatprep.subr.bf16.mxu1 %v12985_v60  ;;  %23674 = vst [vmem:[#allocation26_spill] sm:$0xff] %v15918_v13  ;;  %v213_v60 = vld [vmem:[%s23263_s0 + $0x548] sm:$0xff]  ;;  %v963_v34 = vunpack.c.h.s8.bf16 %v15834_v30  ;;  %v16005_v30 = vld [vmem:[%s23264_s1 + $0x410] sm:$0xff] }
  0x7b   :  { %v13046_v0 = vcombine.low %v982_v14, %v986_v37 }
  0x7c   :  { %6479 = vmatmul.mubr.bf16.gmra.mrb[40].mxu1 %v15770_v5  ;;  %5767 = vmatpush1.bf16.msra.mxu0 %v13022_v15  ;;  %v13047_v15 = vcombine.high %v982_v14, %v986_v37  ;;  %v226_v37 = vld [vmem:[%s23263_s0 + $0x5b0] sm:$0xff] }
  0x7d   :  { %6548 = vmatpush1.bf16.msra.mxu1 %v12984_v43  ;;  %5768 = vmatprep.subr.bf16.mxu0 %v13031_v19  ;;  %v990_v43 = vunpack.c.l.s8.bf16 %v15925_v1  ;;  %v994_v19 = vunpack.c.l.s8.bf16 %v15930_v21 }
  0x7e   :  { %6549 = vmatprep.subr.bf16.mxu1 %v12993_v25  ;;  %6488 = vmatprep.mubr.bf16.mxu1 %v15774_v42  ;;  %v955_v25 = vunpack.c.h.s8.bf16 %v15813_v55  ;;  %v15978_v55 = vld [vmem:[%s23264_s1 + $0x3f0] sm:$0xff] }
  0x7f   :  { %5718 = vmatmul.mubr.bf16.gmra.mrb[20].mxu0 %v15915_v4  ;;  %v13055_v63 = vcombine.high %v990_v43, %v994_v19 }
  0x80   :  { %5769 = vmatpush1.bf16.msra.mxu0 %v13030_v58  ;;  %5727 = vmatprep.mubr.bf16.mxu0 %v15918_v13  ;;  %v15963_v58 = vpack.c.bf16 %v213_v60, %v200_v53  ;;  %v13017_v14 = vcombine.high %v951_v56, %v955_v25  ;;  %v239_v53 = vld [vmem:[%s23263_s0 + $0x618] sm:$0xff]  ;;  %v959_v60 = vunpack.c.h.s8.bf16 %v15829_v32  ;;  %v16000_v32 = vld [vmem:[%s23264_s1 + $0x400] sm:$0xff] }
  0x81   :  { %6550 = vmatpush1.bf16.msra.mxu1 %v12992_v62  ;;  %5770 = vmatprep.subr.bf16.mxu0 %v13039_v11  ;;  %v15966_v62 = vpack.c.bf16 %v240_v59, %v227_v36  ;;  %v998_v11 = vunpack.c.l.s8.bf16 %v15952_v7  ;;  %v60_v36 = vld [vmem:[%s23263_s0 + $0x80] sm:$0xff]  ;;  %v13054_v59 = vcombine.low %v990_v43, %v994_v19  ;;  %v967_v19 = vunpack.c.h.s8.bf16 %v15856_v28 }
  0x82   :  { %6551 = vmatprep.subr.bf16.mxu1 %v13001_v38  ;;  %23675 = vst [vmem:[#allocation27_spill] sm:$0xff] %v15963_v58  ;;  %v1002_v38 = vunpack.c.l.s8.bf16 %v15957_v8  ;;  %v13025_v43 = vcombine.high %v959_v60, %v963_v34  ;;  %v16011_v10 = vpack.c.bf16 %v239_v53, %v226_v37  ;;  %v16021_v28 = vld [vmem:[%s23264_s1 + $0x420] sm:$0xff]  ;;  %v59_v37 = vld [vmem:[%s23263_s0 + $0x78] sm:$0xff]  ;;  %v975_v53 = vunpack.c.h.s8.bf16 %v15877_v49 }
  0x83   :  { %23676 = vst [vmem:[#allocation28_spill] sm:$0xff] %v15966_v62  ;;  %v16048_v49 = vld [vmem:[%s23264_s1 + $0x440] sm:$0xff] }
  0x84   :  { %6489 = vmatmul.mubr.bf16.gmra.mrb[44].mxu1 %v15819_v24  ;;  %5771 = vmatpush1.bf16.msra.mxu0 %v13038_v17  ;;  %v13016_v17 = vcombine.low %v951_v56, %v955_v25  ;;  %23677 = vst [vmem:[#allocation29_spill] sm:$0xff] %v16011_v10  ;;  %v13062_v12 = vcombine.low %v998_v11, %v1002_v38 }
  0x85   :  { %6552 = vmatpush1.bf16.msra.mxu1 %v13000_v18  ;;  %5772 = vmatprep.subr.bf16.mxu0 %v13047_v15  ;;  %v13063_v18 = vcombine.high %v998_v11, %v1002_v38  ;;  %v1006_v15 = vunpack.c.l.s8.bf16 %v15973_v48  ;;  %v13024_v56 = vcombine.low %v959_v60, %v963_v34  ;;  %v46_v38 = vld [vmem:[%s23263_s0 + $0x10] sm:$0xff]  ;;  %v979_v60 = vunpack.c.h.s8.bf16 %v15882_v50  ;;  %v73_v34 = vld [vmem:[%s23263_s0 + $0xe8] sm:$0xff] }
  0x86   :  { %6553 = vmatprep.subr.bf16.mxu1 %v13009_v44  ;;  %6498 = vmatprep.mubr.bf16.mxu1 %v15822_v57  ;;  %v971_v44 = vunpack.c.h.s8.bf16 %v15861_v52  ;;  %v16026_v52 = vld [vmem:[%s23264_s1 + $0x430] sm:$0xff]  ;;  %v16059_v20 = vpack.c.bf16 %v59_v37, %v46_v38  ;;  %v85_v38 = vld [vmem:[%s23263_s0 + $0x148] sm:$0xff]  ;;  %v991_v37 = vunpack.c.h.s8.bf16 %v15925_v1  ;;  %v16096_v1 = vld [vmem:[%s23264_s1 + $0x480] sm:$0xff] }
  0x87   :  { %5728 = vmatmul.mubr.bf16.gmra.mrb[24].mxu0 %v15963_v58  ;;  %v16053_v50 = vld [vmem:[%s23264_s1 + $0x450] sm:$0xff] }
  0x88   :  { %5773 = vmatpush1.bf16.msra.mxu0 %v13046_v0  ;;  %5737 = vmatprep.mubr.bf16.mxu0 %v15966_v62  ;;  %v1010_v0 = vunpack.c.l.s8.bf16 %v15978_v55  ;;  %v13033_v11 = vcombine.high %v967_v19, %v971_v44  ;;  %23679 = vst [vmem:[#allocation31_spill] sm:$0xff] %v16059_v20 }
  0x89   :  { %6554 = vmatpush1.bf16.msra.mxu1 %v13008_v29  ;;  %5774 = vmatprep.subr.bf16.mxu0 %v13055_v63  ;;  %v16014_v29 = vpack.c.bf16 %v60_v36, %v47_v35  ;;  %v1014_v63 = vunpack.c.l.s8.bf16 %v16000_v32  ;;  %v86_v35 = vld [vmem:[%s23263_s0 + $0x150] sm:$0xff] }
  0x8a   :  { %6555 = vmatprep.subr.bf16.mxu1 %v13017_v14  ;;  %v13071_v25 = vcombine.high %v1006_v15, %v1010_v0  ;;  %v1018_v14 = vunpack.c.l.s8.bf16 %v16005_v30  ;;  %v13070_v36 = vcombine.low %v1006_v15, %v1010_v0  ;;  %v13041_v15 = vcombine.high %v975_v53, %v979_v60 }
  0x8b   :  { %23678 = vst [vmem:[#allocation30_spill] sm:$0xff] %v16014_v29  ;;  %v983_v0 = vunpack.c.h.s8.bf16 %v15904_v9  ;;  %v16069_v9 = vld [vmem:[%s23264_s1 + $0x460] sm:$0xff] }
  0x8c   :  { %6499 = vmatmul.mubr.bf16.gmra.mrb[48].mxu1 %v15867_v41  ;;  %5775 = vmatpush1.bf16.msra.mxu0 %v13054_v59  ;;  %v13032_v59 = vcombine.low %v967_v19, %v971_v44  ;;  %v13078_v39 = vcombine.low %v1014_v63, %v1018_v14  ;;  %v13040_v19 = vcombine.low %v975_v53, %v979_v60  ;;  %v995_v53 = vunpack.c.h.s8.bf16 %v15930_v21  ;;  %v99_v60 = vld [vmem:[%s23263_s0 + $0x1b8] sm:$0xff]  ;;  %v16101_v21 = vld [vmem:[%s23264_s1 + $0x490] sm:$0xff] }
  0x8d   :  { %6556 = vmatpush1.bf16.msra.mxu1 %v13016_v17  ;;  %5776 = vmatprep.subr.bf16.mxu0 %v13063_v18  ;;  %v13079_v17 = vcombine.high %v1014_v63, %v1018_v14  ;;  %v1022_v18 = vunpack.c.l.s8.bf16 %v16021_v28  ;;  %v72_v14 = vld [vmem:[%s23263_s0 + $0xe0] sm:$0xff] }
  0x8e   :  { %6557 = vmatprep.subr.bf16.mxu1 %v13025_v43  ;;  %6508 = vmatprep.mubr.bf16.mxu1 %v15870_v46  ;;  %v987_v43 = vunpack.c.h.s8.bf16 %v15909_v40  ;;  %v16074_v40 = vld [vmem:[%s23264_s1 + $0x470] sm:$0xff]  ;;  %v16107_v26 = vpack.c.bf16 %v85_v38, %v72_v14  ;;  %v1007_v14 = vunpack.c.h.s8.bf16 %v15973_v48  ;;  %v1011_v38 = vunpack.c.h.s8.bf16 %v15978_v55 }
  0x8f   :  { %5738 = vmatmul.mubr.bf16.gmra.mrb[28].mxu0 %v16011_v10 }
  0x90   :  { %5777 = vmatpush1.bf16.msra.mxu0 %v13062_v12  ;;  %5780 = vmatprep.mubr.bf16.mxu0 %v16014_v29  ;;  %v1026_v12 = vunpack.c.l.s8.bf16 %v16026_v52  ;;  %v13049_v63 = vcombine.high %v983_v0, %v987_v43  ;;  %23681 = vst [vmem:[#allocation33_spill] sm:$0xff] %v16107_v26 }
  0x91   :  { %6558 = vmatpush1.bf16.msra.mxu1 %v13024_v56  ;;  %5778 = vmatprep.subr.bf16.mxu0 %v13071_v25  ;;  %v16062_v56 = vpack.c.bf16 %v86_v35, %v73_v34  ;;  %v1030_v25 = vunpack.c.l.s8.bf16 %v16048_v49  ;;  %v112_v34 = vld [vmem:[%s23263_s0 + $0x220] sm:$0xff] }
  0x92   :  { %6559 = vmatprep.subr.bf16.mxu1 %v13033_v11  ;;  %v13087_v44 = vcombine.high %v1022_v18, %v1026_v12  ;;  %v1034_v11 = vunpack.c.l.s8.bf16 %v16053_v50  ;;  %v13086_v35 = vcombine.low %v1022_v18, %v1026_v12  ;;  %v13057_v18 = vcombine.high %v991_v37, %v995_v53 }
  0x93   :  { %23680 = vst [vmem:[#allocation32_spill] sm:$0xff] %v16062_v56  ;;  %v999_v12 = vunpack.c.h.s8.bf16 %v15952_v7  ;;  %v16117_v7 = vld [vmem:[%s23264_s1 + $0x4a0] sm:$0xff] }
  0x94   :  { %6509 = vmatmul.mubr.bf16.gmra.mrb[52].mxu1 %v15915_v4  ;;  %5779 = vmatpush1.bf16.msra.mxu0 %v13070_v36  ;;  %v13048_v36 = vcombine.low %v983_v0, %v987_v43  ;;  %v13094_v22 = vcombine.low %v1030_v25, %v1034_v11  ;;  %v13056_v0 = vcombine.low %v991_v37, %v995_v53  ;;  %v111_v37 = vld [vmem:[%s23263_s0 + $0x218] sm:$0xff]  ;;  %v125_v53 = vld [vmem:[%s23263_s0 + $0x288] sm:$0xff]  ;;  %v1054_v55 = vunpack.c.l.s8.bf16 %v16117_v7 }
  0x95   :  { %6560 = vmatpush1.bf16.msra.mxu1 %v13032_v59  ;;  %5861 = vmatprep.subr.bf16.mxu0 %v13079_v17  ;;  %v13095_v59 = vcombine.high %v1030_v25, %v1034_v11  ;;  %v1038_v17 = vunpack.c.l.s8.bf16 %v16069_v9  ;;  %v98_v11 = vld [vmem:[%s23263_s0 + $0x1b0] sm:$0xff] }
  0x96   :  { %6561 = vmatprep.subr.bf16.mxu1 %v13041_v15  ;;  %6518 = vmatprep.mubr.bf16.mxu1 %v15918_v13  ;;  %v1003_v15 = vunpack.c.h.s8.bf16 %v15957_v8  ;;  %v16122_v8 = vld [vmem:[%s23264_s1 + $0x4b0] sm:$0xff] }
  0x97   :  { %5781 = vmatmul.mubr.bf16.vlgmr.msra.gmra.mrb[0].mxu0 %v16059_v20 }
  0x98   :  { %5862 = vmatpush1.bf16.msra.mxu0 %v13078_v39  ;;  %5790 = vmatprep.mubr.bf16.mxu0 %v16062_v56  ;;  %v1042_v39 = vunpack.c.l.s8.bf16 %v16074_v40  ;;  %v13065_v25 = vcombine.high %v999_v12, %v1003_v15 }
  0x99   :  { %6562 = vmatpush1.bf16.msra.mxu1 %v13040_v19  ;;  %5863 = vmatprep.subr.bf16.mxu0 %v13087_v44  ;;  %v16110_v19 = vpack.c.bf16 %v112_v34, %v99_v60  ;;  %v1046_v44 = vunpack.c.l.s8.bf16 %v16096_v1  ;;  %v13064_v34 = vcombine.low %v999_v12, %v1003_v15  ;;  %v16155_v12 = vpack.c.bf16 %v111_v37, %v98_v11 }
  0x9a   :  { %6563 = vmatprep.subr.bf16.mxu1 %v13049_v63  ;;  %v13103_v43 = vcombine.high %v1038_v17, %v1042_v39  ;;  %v1050_v63 = vunpack.c.l.s8.bf16 %v16101_v21  ;;  %v13102_v60 = vcombine.low %v1038_v17, %v1042_v39  ;;  %v16148_v17 = vld [vmem:[%s23264_s1 + $0x4c0] sm:$0xff]  ;;  %v16153_v39 = vld [vmem:[%s23264_s1 + $0x4d0] sm:$0xff]  ;;  %v1023_v11 = vunpack.c.h.s8.bf16 %v16021_v28 }
  0x9b   :  { %23682 = vst [vmem:[#allocation34_spill] sm:$0xff] %v16110_v19  ;;  %23683 = vst [vmem:[#allocation35_spill] sm:$0xff] %v16155_v12  ;;  %v1027_v37 = vunpack.c.h.s8.bf16 %v16026_v52  ;;  %v124_v28 = vld [vmem:[%s23263_s0 + $0x280] sm:$0xff]  ;;  %v137_v52 = vld [vmem:[%s23263_s0 + $0x2e8] sm:$0xff] }
  0x9c   :  { %6519 = vmatmul.mubr.bf16.gmra.mrb[56].mxu1 %v15963_v58  ;;  %5864 = vmatpush1.bf16.msra.mxu0 %v13086_v35  ;;  %v13111_v48 = vcombine.high %v1046_v44, %v1050_v63  ;;  %v1058_v35 = vunpack.c.l.s8.bf16 %v16122_v8  ;;  %v13110_v15 = vcombine.low %v1046_v44, %v1050_v63  ;;  %v16168_v44 = vld [vmem:[%s23264_s1 + $0x4e0] sm:$0xff]  ;;  %v16173_v63 = vld [vmem:[%s23264_s1 + $0x4f0] sm:$0xff] }
  0x9d   :  { %6564 = vmatpush1.bf16.msra.mxu1 %v13048_v36  ;;  %5865 = vmatprep.subr.bf16.mxu0 %v13095_v59  ;;  %v138_v36 = vld [vmem:[%s23263_s0 + $0x2f0] sm:$0xff]  ;;  %v13073_v59 = vcombine.high %v1007_v14, %v1011_v38 }
  0x9e   :  { %6565 = vmatprep.subr.bf16.mxu1 %v13057_v18  ;;  %6528 = vmatprep.mubr.bf16.mxu1 %v15966_v62  ;;  %v1015_v18 = vunpack.c.h.s8.bf16 %v16000_v32  ;;  %v13072_v32 = vcombine.low %v1007_v14, %v1011_v38  ;;  %v13118_v14 = vcombine.low %v1054_v55, %v1058_v35 }
  0x9f   :  { %5791 = vmatmul.mubr.bf16.gmra.mrb[4].mxu0 %v16107_v26 }
  0xa0   :  { %5866 = vmatpush1.bf16.msra.mxu0 %v13094_v22  ;;  %5800 = vmatprep.mubr.bf16.mxu0 %v16110_v19  ;;  %v1019_v22 = vunpack.c.h.s8.bf16 %v16005_v30  ;;  %v13119_v30 = vcombine.high %v1054_v55, %v1058_v35  ;;  %v164_v55 = vld [vmem:[%s23263_s0 + $0x3c0] sm:$0xff]  ;;  %v13089_v35 = vcombine.high %v1023_v11, %v1027_v37 }
  0xa1   :  { %6566 = vmatpush1.bf16.msra.mxu1 %v13056_v0  ;;  %5867 = vmatprep.subr.bf16.mxu0 %v13103_v43  ;;  %v16158_v0 = vpack.c.bf16 %v138_v36, %v125_v53  ;;  %v1062_v43 = vunpack.c.l.s8.bf16 %v16148_v17  ;;  %v1031_v36 = vunpack.c.h.s8.bf16 %v16048_v49  ;;  %v13088_v49 = vcombine.low %v1023_v11, %v1027_v37 }
  0xa2   :  { %6567 = vmatprep.subr.bf16.mxu1 %v13065_v25  ;;  %v1066_v25 = vunpack.c.l.s8.bf16 %v16153_v39  ;;  %v13081_v62 = vcombine.high %v1015_v18, %v1019_v22  ;;  %v13080_v38 = vcombine.low %v1015_v18, %v1019_v22  ;;  %v16196_v18 = vld [vmem:[%s23264_s1 + $0x500] sm:$0xff]  ;;  %v16201_v22 = vld [vmem:[%s23264_s1 + $0x510] sm:$0xff] }
  0xa3   :  { %23684 = vst [vmem:[#allocation36_spill] sm:$0xff] %v16158_v0 }
  0xa4   :  { %6529 = vmatmul.mubr.bf16.gmra.mrb[60].mxu1 %v16011_v10  ;;  %5868 = vmatpush1.bf16.msra.mxu0 %v13102_v60  ;;  %v13127_v53 = vcombine.high %v1062_v43, %v1066_v25  ;;  %v1070_v60 = vunpack.c.l.s8.bf16 %v16168_v44 }
  0xa5   :  { %6568 = vmatpush1.bf16.msra.mxu1 %v13064_v34  ;;  %5869 = vmatprep.subr.bf16.mxu0 %v13111_v48  ;;  %v1074_v34 = vunpack.c.l.s8.bf16 %v16173_v63  ;;  %v151_v48 = vld [vmem:[%s23263_s0 + $0x358] sm:$0xff] }
  0xa6   :  { %6569 = vmatprep.subr.bf16.mxu1 %v13073_v59  ;;  %6571 = vmatprep.mubr.bf16.mxu1 %v16014_v29  ;;  %v1035_v59 = vunpack.c.h.s8.bf16 %v16053_v50  ;;  %v1082_v29 = vunpack.c.l.s8.bf16 %v16201_v22 }
  0xa7   :  { %5801 = vmatmul.mubr.bf16.gmra.mrb[8].mxu0 %v16155_v12  ;;  %v13135_v50 = vcombine.high %v1070_v60, %v1074_v34  ;;  %v13134_v11 = vcombine.low %v1070_v60, %v1074_v34  ;;  %v177_v60 = vld [vmem:[%s23263_s0 + $0x428] sm:$0xff]  ;;  %v190_v34 = vld [vmem:[%s23263_s0 + $0x490] sm:$0xff] }
  0xa8   :  { %5870 = vmatpush1.bf16.msra.mxu0 %v13110_v15  ;;  %5810 = vmatprep.mubr.bf16.mxu0 %v16158_v0  ;;  %v16203_v15 = vpack.c.bf16 %v137_v52, %v124_v28  ;;  %v13097_v10 = vcombine.high %v1031_v36, %v1035_v59  ;;  %v1039_v28 = vunpack.c.h.s8.bf16 %v16069_v9  ;;  %v1043_v52 = vunpack.c.h.s8.bf16 %v16074_v40  ;;  %v150_v9 = vld [vmem:[%s23263_s0 + $0x350] sm:$0xff]  ;;  %v163_v40 = vld [vmem:[%s23263_s0 + $0x3b8] sm:$0xff] }
  0xa9   :  { %6570 = vmatpush1.bf16.msra.mxu1 %v13072_v32  ;;  %5871 = vmatprep.subr.bf16.mxu0 %v13119_v30  ;;  %v16206_v32 = vpack.c.bf16 %v164_v55, %v151_v48  ;;  %v1078_v30 = vunpack.c.l.s8.bf16 %v16196_v18  ;;  %v13096_v37 = vcombine.low %v1031_v36, %v1035_v59  ;;  %v1047_v55 = vunpack.c.h.s8.bf16 %v16096_v1  ;;  %v16244_v36 = vld [vmem:[%s23264_s1 + $0x540] sm:$0xff]  ;;  %v16249_v59 = vld [vmem:[%s23264_s1 + $0x550] sm:$0xff] }
  0xaa   :  { %6652 = vmatprep.subr.bf16.mxu1 %v13081_v62  ;;  %23685 = vst [vmem:[#allocation37_spill] sm:$0xff] %v16203_v15  ;;  %v13126_v62 = vcombine.low %v1062_v43, %v1066_v25  ;;  %v16216_v43 = vld [vmem:[%s23264_s1 + $0x520] sm:$0xff]  ;;  %v16221_v25 = vld [vmem:[%s23264_s1 + $0x530] sm:$0xff]  ;;  %v13105_v48 = vcombine.high %v1039_v28, %v1043_v52  ;;  %v13104_v1 = vcombine.low %v1039_v28, %v1043_v52 }
  0xab   :  { %23686 = vst [vmem:[#allocation38_spill] sm:$0xff] %v16206_v32 }
  0xac   :  { %6572 = vmatmul.mubr.bf16.vlgmr.msra.gmra.mrb[32].mxu1 %v16059_v20  ;;  %5872 = vmatpush1.bf16.msra.mxu0 %v13118_v14  ;;  %v13143_v14 = vcombine.high %v1078_v30, %v1082_v29 }
  0xad   :  { %6653 = vmatpush1.bf16.msra.mxu1 %v13080_v38  ;;  %5873 = vmatprep.subr.bf16.mxu0 %v13127_v53  ;;  %v1086_v38 = vunpack.c.l.s8.bf16 %v16216_v43  ;;  %v1090_v53 = vunpack.c.l.s8.bf16 %v16221_v25 }
  0xae   :  { %6654 = vmatprep.subr.bf16.mxu1 %v13089_v35  ;;  %6581 = vmatprep.mubr.bf16.mxu1 %v16062_v56  ;;  %v1051_v35 = vunpack.c.h.s8.bf16 %v16101_v21  ;;  %v1098_v56 = vunpack.c.l.s8.bf16 %v16249_v59 }
  0xaf   :  { %5811 = vmatmul.mubr.bf16.gmra.mrb[12].mxu0 %v16203_v15  ;;  %v13151_v21 = vcombine.high %v1086_v38, %v1090_v53  ;;  %v13150_v28 = vcombine.low %v1086_v38, %v1090_v53  ;;  %v203_v38 = vld [vmem:[%s23263_s0 + $0x4f8] sm:$0xff]  ;;  %v216_v53 = vld [vmem:[%s23263_s0 + $0x560] sm:$0xff] }
  0xb0   :  { %5874 = vmatpush1.bf16.msra.mxu0 %v13126_v62  ;;  %5820 = vmatprep.mubr.bf16.mxu0 %v16206_v32  ;;  %v16251_v62 = vpack.c.bf16 %v163_v40, %v150_v9  ;;  %v13113_v20 = vcombine.high %v1047_v55, %v1051_v35  ;;  %v1055_v9 = vunpack.c.h.s8.bf16 %v16117_v7  ;;  %v1059_v40 = vunpack.c.h.s8.bf16 %v16122_v8  ;;  %v176_v7 = vld [vmem:[%s23263_s0 + $0x420] sm:$0xff]  ;;  %v189_v8 = vld [vmem:[%s23263_s0 + $0x488] sm:$0xff] }
  0xb1   :  { %6655 = vmatpush1.bf16.msra.mxu1 %v13088_v49  ;;  %5875 = vmatprep.subr.bf16.mxu0 %v13135_v50  ;;  %v16254_v49 = vpack.c.bf16 %v190_v34, %v177_v60  ;;  %v1094_v50 = vunpack.c.l.s8.bf16 %v16244_v36  ;;  %v13112_v52 = vcombine.low %v1047_v55, %v1051_v35  ;;  %v1063_v34 = vunpack.c.h.s8.bf16 %v16148_v17  ;;  %v16292_v55 = vld [vmem:[%s23264_s1 + $0x580] sm:$0xff]  ;;  %v16297_v35 = vld [vmem:[%s23264_s1 + $0x590] sm:$0xff] }
  0xb2   :  { %6656 = vmatprep.subr.bf16.mxu1 %v13097_v10  ;;  %23687 = vst [vmem:[#allocation39_spill] sm:$0xff] %v16251_v62  ;;  %v13142_v10 = vcombine.low %v1078_v30, %v1082_v29  ;;  %v16264_v29 = vld [vmem:[%s23264_s1 + $0x560] sm:$0xff]  ;;  %v16269_v30 = vld [vmem:[%s23264_s1 + $0x570] sm:$0xff]  ;;  %v13121_v60 = vcombine.high %v1055_v9, %v1059_v40  ;;  %v13120_v17 = vcombine.low %v1055_v9, %v1059_v40 }
  0xb3   :  { %23688 = vst [vmem:[#allocation40_spill] sm:$0xff] %v16254_v49 }
  0xb4   :  { %6582 = vmatmul.mubr.bf16.gmra.mrb[36].mxu1 %v16107_v26  ;;  %5876 = vmatpush1.bf16.msra.mxu0 %v13134_v11  ;;  %v13159_v11 = vcombine.high %v1094_v50, %v1098_v56 }
  0xb5   :  { %6657 = vmatpush1.bf16.msra.mxu1 %v13096_v37  ;;  %5877 = vmatprep.subr.bf16.mxu0 %v13143_v14  ;;  %v1102_v37 = vunpack.c.l.s8.bf16 %v16264_v29  ;;  %v1106_v14 = vunpack.c.l.s8.bf16 %v16269_v30 }
  0xb6   :  { %6658 = vmatprep.subr.bf16.mxu1 %v13105_v48  ;;  %6591 = vmatprep.mubr.bf16.mxu1 %v16110_v19  ;;  %v1067_v48 = vunpack.c.h.s8.bf16 %v16153_v39  ;;  %v1114_v19 = vunpack.c.l.s8.bf16 %v16297_v35 }
  0xb7   :  { %5821 = vmatmul.mubr.bf16.gmra.mrb[16].mxu0 %v16251_v62  ;;  %v13167_v39 = vcombine.high %v1102_v37, %v1106_v14  ;;  %v13166_v9 = vcombine.low %v1102_v37, %v1106_v14  ;;  %v229_v37 = vld [vmem:[%s23263_s0 + $0x5c8] sm:$0xff]  ;;  %v242_v14 = vld [vmem:[%s23263_s0 + $0x630] sm:$0xff] }
  0xb8   :  { %5878 = vmatpush1.bf16.msra.mxu0 %v13142_v10  ;;  %5830 = vmatprep.mubr.bf16.mxu0 %v16254_v49  ;;  %v16299_v10 = vpack.c.bf16 %v189_v8, %v176_v7  ;;  %v13129_v26 = vcombine.high %v1063_v34, %v1067_v48  ;;  %v1071_v7 = vunpack.c.h.s8.bf16 %v16168_v44  ;;  %v1075_v8 = vunpack.c.h.s8.bf16 %v16173_v63  ;;  %v202_v44 = vld [vmem:[%s23263_s0 + $0x4f0] sm:$0xff]  ;;  %v215_v63 = vld [vmem:[%s23263_s0 + $0x558] sm:$0xff] }
  0xb9   :  { %6659 = vmatpush1.bf16.msra.mxu1 %v13104_v1  ;;  %5879 = vmatprep.subr.bf16.mxu0 %v13151_v21  ;;  %v16302_v1 = vpack.c.bf16 %v216_v53, %v203_v38  ;;  %v1110_v21 = vunpack.c.l.s8.bf16 %v16292_v55  ;;  %v13128_v40 = vcombine.low %v1063_v34, %v1067_v48  ;;  %v1079_v53 = vunpack.c.h.s8.bf16 %v16196_v18  ;;  %v16340_v34 = vld [vmem:[%s23264_s1 + $0x5c0] sm:$0xff]  ;;  %v16345_v48 = vld [vmem:[%s23264_s1 + $0x5d0] sm:$0xff] }
  0xba   :  { %6660 = vmatprep.subr.bf16.mxu1 %v13113_v20  ;;  %23689 = vst [vmem:[#allocation41_spill] sm:$0xff] %v16299_v10  ;;  %v13158_v20 = vcombine.low %v1094_v50, %v1098_v56  ;;  %v16312_v56 = vld [vmem:[%s23264_s1 + $0x5a0] sm:$0xff]  ;;  %v16317_v50 = vld [vmem:[%s23264_s1 + $0x5b0] sm:$0xff]  ;;  %v13137_v38 = vcombine.high %v1071_v7, %v1075_v8  ;;  %v13136_v18 = vcombine.low %v1071_v7, %v1075_v8 }
  0xbb   :  { %23690 = vst [vmem:[#allocation42_spill] sm:$0xff] %v16302_v1 }
  0xbc   :  { %6592 = vmatmul.mubr.bf16.gmra.mrb[40].mxu1 %v16155_v12  ;;  %5880 = vmatpush1.bf16.msra.mxu0 %v13150_v28  ;;  %v13175_v28 = vcombine.high %v1110_v21, %v1114_v19 }
  0xbd   :  { %6661 = vmatpush1.bf16.msra.mxu1 %v13112_v52  ;;  %5881 = vmatprep.subr.bf16.mxu0 %v13159_v11  ;;  %v1118_v52 = vunpack.c.l.s8.bf16 %v16312_v56  ;;  %v1122_v11 = vunpack.c.l.s8.bf16 %v16317_v50 }
  0xbe   :  { %6662 = vmatprep.subr.bf16.mxu1 %v13121_v60  ;;  %6601 = vmatprep.mubr.bf16.mxu1 %v16158_v0  ;;  %v1083_v60 = vunpack.c.h.s8.bf16 %v16201_v22  ;;  %v1130_v0 = vunpack.c.l.s8.bf16 %v16345_v48 }
  0xbf   :  { %5831 = vmatmul.mubr.bf16.gmra.mrb[20].mxu0 %v16299_v10  ;;  %v13183_v22 = vcombine.high %v1118_v52, %v1122_v11  ;;  %v13182_v7 = vcombine.low %v1118_v52, %v1122_v11  ;;  %v49_v52 = vld [vmem:[%s23263_s0 + $0x28] sm:$0xff]  ;;  %v62_v11 = vld [vmem:[%s23263_s0 + $0x90] sm:$0xff] }
  0xc0   :  { %5882 = vmatpush1.bf16.msra.mxu0 %v13158_v20  ;;  %5840 = vmatprep.mubr.bf16.mxu0 %v16302_v1  ;;  %v16347_v20 = vpack.c.bf16 %v215_v63, %v202_v44  ;;  %v13145_v12 = vcombine.high %v1079_v53, %v1083_v60  ;;  %v1087_v44 = vunpack.c.h.s8.bf16 %v16216_v43  ;;  %v1091_v63 = vunpack.c.h.s8.bf16 %v16221_v25  ;;  %v228_v43 = vld [vmem:[%s23263_s0 + $0x5c0] sm:$0xff]  ;;  %v241_v25 = vld [vmem:[%s23263_s0 + $0x628] sm:$0xff] }
  0xc1   :  { %6663 = vmatpush1.bf16.msra.mxu1 %v13120_v17  ;;  %5883 = vmatprep.subr.bf16.mxu0 %v13167_v39  ;;  %v16350_v17 = vpack.c.bf16 %v242_v14, %v229_v37  ;;  %v1126_v39 = vunpack.c.l.s8.bf16 %v16340_v34  ;;  %v13144_v8 = vcombine.low %v1079_v53, %v1083_v60  ;;  %v1095_v14 = vunpack.c.h.s8.bf16 %v16244_v36  ;;  %v16388_v53 = vld [vmem:[%s23264_s1 + $0x600] sm:$0xff]  ;;  %v16393_v60 = vld [vmem:[%s23264_s1 + $0x610] sm:$0xff] }
  0xc2   :  { %6664 = vmatprep.subr.bf16.mxu1 %v13129_v26  ;;  %23691 = vst [vmem:[#allocation43_spill] sm:$0xff] %v16347_v20  ;;  %v13174_v26 = vcombine.low %v1110_v21, %v1114_v19  ;;  %v16360_v19 = vld [vmem:[%s23264_s1 + $0x5e0] sm:$0xff]  ;;  %v16365_v21 = vld [vmem:[%s23264_s1 + $0x5f0] sm:$0xff]  ;;  %v13153_v37 = vcombine.high %v1087_v44, %v1091_v63  ;;  %v13152_v36 = vcombine.low %v1087_v44, %v1091_v63 }
  0xc3   :  { %23692 = vst [vmem:[#allocation44_spill] sm:$0xff] %v16350_v17 }
  0xc4   :  { %6602 = vmatmul.mubr.bf16.gmra.mrb[44].mxu1 %v16203_v15  ;;  %5884 = vmatpush1.bf16.msra.mxu0 %v13166_v9  ;;  %v13191_v9 = vcombine.high %v1126_v39, %v1130_v0 }
  0xc5   :  { %6665 = vmatpush1.bf16.msra.mxu1 %v13128_v40  ;;  %5885 = vmatprep.subr.bf16.mxu0 %v13175_v28  ;;  %v1134_v40 = vunpack.c.l.s8.bf16 %v16360_v19  ;;  %v1138_v28 = vunpack.c.l.s8.bf16 %v16365_v21 }
  0xc6   :  { %6666 = vmatprep.subr.bf16.mxu1 %v13137_v38  ;;  %6611 = vmatprep.mubr.bf16.mxu1 %v16206_v32  ;;  %v1099_v38 = vunpack.c.h.s8.bf16 %v16249_v59  ;;  %v1146_v32 = vunpack.c.l.s8.bf16 %v16393_v60 }
  0xc7   :  { %5841 = vmatmul.mubr.bf16.gmra.mrb[24].mxu0 %v16347_v20  ;;  %v13199_v59 = vcombine.high %v1134_v40, %v1138_v28  ;;  %v13198_v44 = vcombine.low %v1134_v40, %v1138_v28  ;;  %v75_v40 = vld [vmem:[%s23263_s0 + $0xf8] sm:$0xff]  ;;  %v88_v28 = vld [vmem:[%s23263_s0 + $0x160] sm:$0xff] }
  0xc8   :  { %5886 = vmatpush1.bf16.msra.mxu0 %v13174_v26  ;;  %5850 = vmatprep.mubr.bf16.mxu0 %v16350_v17  ;;  %v16395_v26 = vpack.c.bf16 %v241_v25, %v228_v43  ;;  %v13161_v15 = vcombine.high %v1095_v14, %v1099_v38  ;;  %v1103_v43 = vunpack.c.h.s8.bf16 %v16264_v29  ;;  %v1107_v25 = vunpack.c.h.s8.bf16 %v16269_v30  ;;  %v48_v29 = vld [vmem:[%s23263_s0 + $0x20] sm:$0xff]  ;;  %v61_v30 = vld [vmem:[%s23263_s0 + $0x88] sm:$0xff] }
  0xc9   :  { %6667 = vmatpush1.bf16.msra.mxu1 %v13136_v18  ;;  %5887 = vmatprep.subr.bf16.mxu0 %v13183_v22  ;;  %v16398_v18 = vpack.c.bf16 %v62_v11, %v49_v52  ;;  %v1142_v22 = vunpack.c.l.s8.bf16 %v16388_v53  ;;  %v13160_v63 = vcombine.low %v1095_v14, %v1099_v38  ;;  %v1111_v11 = vunpack.c.h.s8.bf16 %v16292_v55  ;;  %v16436_v14 = vld [vmem:[%s23264_s1 + $0x640] sm:$0xff]  ;;  %v16441_v38 = vld [vmem:[%s23264_s1 + $0x650] sm:$0xff] }
  0xca   :  { %6668 = vmatprep.subr.bf16.mxu1 %v13145_v12  ;;  %23693 = vst [vmem:[#allocation45_spill] sm:$0xff] %v16395_v26  ;;  %v13190_v12 = vcombine.low %v1126_v39, %v1130_v0  ;;  %v16408_v0 = vld [vmem:[%s23264_s1 + $0x620] sm:$0xff]  ;;  %v16413_v39 = vld [vmem:[%s23264_s1 + $0x630] sm:$0xff]  ;;  %v13169_v52 = vcombine.high %v1103_v43, %v1107_v25  ;;  %v13168_v55 = vcombine.low %v1103_v43, %v1107_v25 }
  0xcb   :  { %23694 = vst [vmem:[#allocation46_spill] sm:$0xff] %v16398_v18 }
  0xcc   :  { %6612 = vmatmul.mubr.bf16.gmra.mrb[48].mxu1 %v16251_v62  ;;  %5888 = vmatpush1.bf16.msra.mxu0 %v13182_v7  ;;  %v13207_v7 = vcombine.high %v1142_v22, %v1146_v32 }
  0xcd   :  { %6669 = vmatpush1.bf16.msra.mxu1 %v13144_v8  ;;  %5889 = vmatprep.subr.bf16.mxu0 %v13191_v9  ;;  %v1150_v8 = vunpack.c.l.s8.bf16 %v16408_v0  ;;  %v1154_v9 = vunpack.c.l.s8.bf16 %v16413_v39 }
  0xce   :  { %6670 = vmatprep.subr.bf16.mxu1 %v13153_v37  ;;  %6621 = vmatprep.mubr.bf16.mxu1 %v16254_v49  ;;  %v1115_v37 = vunpack.c.h.s8.bf16 %v16297_v35  ;;  %v1162_v49 = vunpack.c.l.s8.bf16 %v16441_v38 }
  0xcf   :  { %5851 = vmatmul.mubr.bf16.gmra.mrb[28].mxu0 %v16395_v26  ;;  %v13215_v35 = vcombine.high %v1150_v8, %v1154_v9  ;;  %v13214_v43 = vcombine.low %v1150_v8, %v1154_v9  ;;  %v101_v8 = vld [vmem:[%s23263_s0 + $0x1c8] sm:$0xff]  ;;  %v114_v9 = vld [vmem:[%s23263_s0 + $0x230] sm:$0xff] }
  0xd0   :  { %5890 = vmatpush1.bf16.msra.mxu0 %v13190_v12  ;;  %5893 = vmatprep.mubr.bf16.mxu0 %v16398_v18  ;;  %v16443_v12 = vpack.c.bf16 %v61_v30, %v48_v29  ;;  %v13177_v62 = vcombine.high %v1111_v11, %v1115_v37  ;;  %v1119_v29 = vunpack.c.h.s8.bf16 %v16312_v56  ;;  %v1123_v30 = vunpack.c.h.s8.bf16 %v16317_v50  ;;  %v74_v56 = vld [vmem:[%s23263_s0 + $0xf0] sm:$0xff]  ;;  %v87_v50 = vld [vmem:[%s23263_s0 + $0x158] sm:$0xff] }
  0xd1   :  { %6671 = vmatpush1.bf16.msra.mxu1 %v13152_v36  ;;  %5891 = vmatprep.subr.bf16.mxu0 %v13199_v59  ;;  %v16446_v36 = vpack.c.bf16 %v88_v28, %v75_v40  ;;  %v1158_v59 = vunpack.c.l.s8.bf16 %v16436_v14  ;;  %v13176_v25 = vcombine.low %v1111_v11, %v1115_v37  ;;  %v1127_v28 = vunpack.c.h.s8.bf16 %v16340_v34  ;;  %v16484_v11 = vld [vmem:[%s23264_s1 + $0x680] sm:$0xff]  ;;  %v16489_v37 = vld [vmem:[%s23264_s1 + $0x690] sm:$0xff] }
  0xd2   :  { %6672 = vmatprep.subr.bf16.mxu1 %v13161_v15  ;;  %23695 = vst [vmem:[#allocation47_spill] sm:$0xff] %v16443_v12  ;;  %v13206_v15 = vcombine.low %v1142_v22, %v1146_v32  ;;  %v16456_v32 = vld [vmem:[%s23264_s1 + $0x660] sm:$0xff]  ;;  %v16461_v22 = vld [vmem:[%s23264_s1 + $0x670] sm:$0xff]  ;;  %v13185_v40 = vcombine.high %v1119_v29, %v1123_v30  ;;  %v13184_v34 = vcombine.low %v1119_v29, %v1123_v30 }
  0xd3   :  { %23696 = vst [vmem:[#allocation48_spill] sm:$0xff] %v16446_v36 }
  0xd4   :  { %6622 = vmatmul.mubr.bf16.gmra.mrb[52].mxu1 %v16299_v10  ;;  %5892 = vmatpush1.bf16.msra.mxu0 %v13198_v44  ;;  %v13223_v44 = vcombine.high %v1158_v59, %v1162_v49 }
  0xd5   :  { %6673 = vmatpush1.bf16.msra.mxu1 %v13160_v63  ;;  %5974 = vmatprep.subr.bf16.mxu0 %v13207_v7  ;;  %v1166_v63 = vunpack.c.l.s8.bf16 %v16456_v32  ;;  %v1170_v7 = vunpack.c.l.s8.bf16 %v16461_v22 }
  0xd6   :  { %6674 = vmatprep.subr.bf16.mxu1 %v13169_v52  ;;  %6631 = vmatprep.mubr.bf16.mxu1 %v16302_v1  ;;  %v1131_v52 = vunpack.c.h.s8.bf16 %v16345_v48  ;;  %v1178_v1 = vunpack.c.l.s8.bf16 %v16489_v37 }
  0xd7   :  { %5894 = vmatmul.mubr.bf16.vlgmr.msra.gmra.mrb[0].mxu0 %v16443_v12  ;;  %v13231_v48 = vcombine.high %v1166_v63, %v1170_v7  ;;  %v13230_v29 = vcombine.low %v1166_v63, %v1170_v7  ;;  %v127_v63 = vld [vmem:[%s23263_s0 + $0x298] sm:$0xff]  ;;  %v140_v7 = vld [vmem:[%s23263_s0 + $0x300] sm:$0xff] }
  0xd8   :  { %5975 = vmatpush1.bf16.msra.mxu0 %v13206_v15  ;;  %5903 = vmatprep.mubr.bf16.mxu0 %v16446_v36  ;;  %v16491_v15 = vpack.c.bf16 %v87_v50, %v74_v56  ;;  %v13193_v10 = vcombine.high %v1127_v28, %v1131_v52  ;;  %v1135_v56 = vunpack.c.h.s8.bf16 %v16360_v19  ;;  %v1139_v50 = vunpack.c.h.s8.bf16 %v16365_v21  ;;  %v100_v19 = vld [vmem:[%s23263_s0 + $0x1c0] sm:$0xff]  ;;  %v113_v21 = vld [vmem:[%s23263_s0 + $0x228] sm:$0xff] }
  0xd9   :  { %6675 = vmatpush1.bf16.msra.mxu1 %v13168_v55  ;;  %5976 = vmatprep.subr.bf16.mxu0 %v13215_v35  ;;  %v16494_v55 = vpack.c.bf16 %v114_v9, %v101_v8  ;;  %v1174_v35 = vunpack.c.l.s8.bf16 %v16484_v11  ;;  %v13192_v30 = vcombine.low %v1127_v28, %v1131_v52  ;;  %v1143_v9 = vunpack.c.h.s8.bf16 %v16388_v53  ;;  %v16532_v28 = vld [vmem:[%s23264_s1 + $0x6c0] sm:$0xff]  ;;  %v16537_v52 = vld [vmem:[%s23264_s1 + $0x6d0] sm:$0xff] }
  0xda   :  { %6676 = vmatprep.subr.bf16.mxu1 %v13177_v62  ;;  %23697 = vst [vmem:[#allocation49_spill] sm:$0xff] %v16491_v15  ;;  %v13222_v62 = vcombine.low %v1158_v59, %v1162_v49  ;;  %v16504_v49 = vld [vmem:[%s23264_s1 + $0x6a0] sm:$0xff]  ;;  %v16509_v59 = vld [vmem:[%s23264_s1 + $0x6b0] sm:$0xff]  ;;  %v13201_v8 = vcombine.high %v1135_v56, %v1139_v50  ;;  %v13200_v53 = vcombine.low %v1135_v56, %v1139_v50 }
  0xdb   :  { %23698 = vst [vmem:[#allocation50_spill] sm:$0xff] %v16494_v55 }
  0xdc   :  { %6632 = vmatmul.mubr.bf16.gmra.mrb[56].mxu1 %v16347_v20  ;;  %5977 = vmatpush1.bf16.msra.mxu0 %v13214_v43  ;;  %v13239_v43 = vcombine.high %v1174_v35, %v1178_v1 }
  0xdd   :  { %6677 = vmatpush1.bf16.msra.mxu1 %v13176_v25  ;;  %5978 = vmatprep.subr.bf16.mxu0 %v13223_v44  ;;  %v1182_v25 = vunpack.c.l.s8.bf16 %v16504_v49  ;;  %v1186_v44 = vunpack.c.l.s8.bf16 %v16509_v59 }
  0xde   :  { %6678 = vmatprep.subr.bf16.mxu1 %v13185_v40  ;;  %6641 = vmatprep.mubr.bf16.mxu1 %v16350_v17  ;;  %v1147_v40 = vunpack.c.h.s8.bf16 %v16393_v60  ;;  %v1194_v17 = vunpack.c.l.s8.bf16 %v16537_v52 }
  0xdf   :  { %5904 = vmatmul.mubr.bf16.gmra.mrb[4].mxu0 %v16491_v15  ;;  %v13247_v60 = vcombine.high %v1182_v25, %v1186_v44  ;;  %v13246_v56 = vcombine.low %v1182_v25, %v1186_v44  ;;  %v153_v25 = vld [vmem:[%s23263_s0 + $0x368] sm:$0xff]  ;;  %v166_v44 = vld [vmem:[%s23263_s0 + $0x3d0] sm:$0xff] }
  0xe0   :  { %5979 = vmatpush1.bf16.msra.mxu0 %v13222_v62  ;;  %5913 = vmatprep.mubr.bf16.mxu0 %v16494_v55  ;;  %v16539_v62 = vpack.c.bf16 %v113_v21, %v100_v19  ;;  %v13209_v20 = vcombine.high %v1143_v9, %v1147_v40  ;;  %v1151_v19 = vunpack.c.h.s8.bf16 %v16408_v0  ;;  %v1155_v21 = vunpack.c.h.s8.bf16 %v16413_v39  ;;  %v126_v0 = vld [vmem:[%s23263_s0 + $0x290] sm:$0xff]  ;;  %v139_v39 = vld [vmem:[%s23263_s0 + $0x2f8] sm:$0xff] }
  0xe1   :  { %6679 = vmatpush1.bf16.msra.mxu1 %v13184_v34  ;;  %5980 = vmatprep.subr.bf16.mxu0 %v13231_v48  ;;  %v16542_v34 = vpack.c.bf16 %v140_v7, %v127_v63  ;;  %v1190_v48 = vunpack.c.l.s8.bf16 %v16532_v28  ;;  %v13208_v50 = vcombine.low %v1143_v9, %v1147_v40  ;;  %v1159_v7 = vunpack.c.h.s8.bf16 %v16436_v14  ;;  %v16580_v9 = vld [vmem:[%s23264_s1 + $0x700] sm:$0xff]  ;;  %v16585_v40 = vld [vmem:[%s23264_s1 + $0x710] sm:$0xff] }
  0xe2   :  { %6680 = vmatprep.subr.bf16.mxu1 %v13193_v10  ;;  %23699 = vst [vmem:[#allocation51_spill] sm:$0xff] %v16539_v62  ;;  %v13238_v10 = vcombine.low %v1174_v35, %v1178_v1  ;;  %v16552_v1 = vld [vmem:[%s23264_s1 + $0x6e0] sm:$0xff]  ;;  %v16557_v35 = vld [vmem:[%s23264_s1 + $0x6f0] sm:$0xff]  ;;  %v13217_v63 = vcombine.high %v1151_v19, %v1155_v21  ;;  %v13216_v14 = vcombine.low %v1151_v19, %v1155_v21 }
  0xe3   :  { %23700 = vst [vmem:[#allocation52_spill] sm:$0xff] %v16542_v34 }
  0xe4   :  { %6642 = vmatmul.mubr.bf16.gmra.mrb[60].mxu1 %v16395_v26  ;;  %5981 = vmatpush1.bf16.msra.mxu0 %v13230_v29  ;;  %v13255_v29 = vcombine.high %v1190_v48, %v1194_v17 }
  0xe5   :  { %6681 = vmatpush1.bf16.msra.mxu1 %v13192_v30  ;;  %5982 = vmatprep.subr.bf16.mxu0 %v13239_v43  ;;  %v1198_v30 = vunpack.c.l.s8.bf16 %v16552_v1  ;;  %v1202_v43 = vunpack.c.l.s8.bf16 %v16557_v35 }
  0xe6   :  { %6682 = vmatprep.subr.bf16.mxu1 %v13201_v8  ;;  %6684 = vmatprep.mubr.bf16.mxu1 %v16398_v18  ;;  %v1163_v8 = vunpack.c.h.s8.bf16 %v16441_v38  ;;  %v1210_v18 = vunpack.c.l.s8.bf16 %v16585_v40 }
  0xe7   :  { %5914 = vmatmul.mubr.bf16.gmra.mrb[8].mxu0 %v16539_v62  ;;  %v13263_v38 = vcombine.high %v1198_v30, %v1202_v43  ;;  %v13262_v19 = vcombine.low %v1198_v30, %v1202_v43  ;;  %v179_v30 = vld [vmem:[%s23263_s0 + $0x438] sm:$0xff]  ;;  %v192_v43 = vld [vmem:[%s23263_s0 + $0x4a0] sm:$0xff] }
  0xe8   :  { %5983 = vmatpush1.bf16.msra.mxu0 %v13238_v10  ;;  %5923 = vmatprep.mubr.bf16.mxu0 %v16542_v34  ;;  %v16587_v10 = vpack.c.bf16 %v139_v39, %v126_v0  ;;  %v13225_v26 = vcombine.high %v1159_v7, %v1163_v8  ;;  %v1167_v0 = vunpack.c.h.s8.bf16 %v16456_v32  ;;  %v1171_v39 = vunpack.c.h.s8.bf16 %v16461_v22  ;;  %v152_v32 = vld [vmem:[%s23263_s0 + $0x360] sm:$0xff]  ;;  %v165_v22 = vld [vmem:[%s23263_s0 + $0x3c8] sm:$0xff] }
  0xe9   :  { %6683 = vmatpush1.bf16.msra.mxu1 %v13200_v53  ;;  %5984 = vmatprep.subr.bf16.mxu0 %v13247_v60  ;;  %v16590_v53 = vpack.c.bf16 %v166_v44, %v153_v25  ;;  %v1206_v60 = vunpack.c.l.s8.bf16 %v16580_v9  ;;  %v13224_v21 = vcombine.low %v1159_v7, %v1163_v8  ;;  %v1175_v44 = vunpack.c.h.s8.bf16 %v16484_v11  ;;  %v16628_v7 = vld [vmem:[%s23264_s1 + $0x740] sm:$0xff]  ;;  %v16633_v8 = vld [vmem:[%s23264_s1 + $0x750] sm:$0xff] }
  0xea   :  { %6765 = vmatprep.subr.bf16.mxu1 %v13209_v20  ;;  %23701 = vst [vmem:[#allocation53_spill] sm:$0xff] %v16587_v10  ;;  %v13254_v20 = vcombine.low %v1190_v48, %v1194_v17  ;;  %v16600_v17 = vld [vmem:[%s23264_s1 + $0x720] sm:$0xff]  ;;  %v16605_v48 = vld [vmem:[%s23264_s1 + $0x730] sm:$0xff]  ;;  %v13233_v25 = vcombine.high %v1167_v0, %v1171_v39  ;;  %v13232_v11 = vcombine.low %v1167_v0, %v1171_v39 }
  0xeb   :  { %23702 = vst [vmem:[#allocation54_spill] sm:$0xff] %v16590_v53 }
  0xec   :  { %6685 = vmatmul.mubr.bf16.vlgmr.msra.gmra.mrb[32].mxu1 %v16443_v12  ;;  %5985 = vmatpush1.bf16.msra.mxu0 %v13246_v56  ;;  %v13271_v56 = vcombine.high %v1206_v60, %v1210_v18 }
  0xed   :  { %6766 = vmatpush1.bf16.msra.mxu1 %v13208_v50  ;;  %5986 = vmatprep.subr.bf16.mxu0 %v13255_v29  ;;  %v1214_v50 = vunpack.c.l.s8.bf16 %v16600_v17  ;;  %v1218_v29 = vunpack.c.l.s8.bf16 %v16605_v48 }
  0xee   :  { %6767 = vmatprep.subr.bf16.mxu1 %v13217_v63  ;;  %6694 = vmatprep.mubr.bf16.mxu1 %v16446_v36  ;;  %v1179_v63 = vunpack.c.h.s8.bf16 %v16489_v37  ;;  %v1226_v36 = vunpack.c.l.s8.bf16 %v16633_v8 }
  0xef   :  { %5924 = vmatmul.mubr.bf16.gmra.mrb[12].mxu0 %v16587_v10  ;;  %v13279_v37 = vcombine.high %v1214_v50, %v1218_v29  ;;  %v13278_v0 = vcombine.low %v1214_v50, %v1218_v29  ;;  %v205_v50 = vld [vmem:[%s23263_s0 + $0x508] sm:$0xff]  ;;  %v218_v29 = vld [vmem:[%s23263_s0 + $0x570] sm:$0xff] }
  0xf0   :  { %5987 = vmatpush1.bf16.msra.mxu0 %v13254_v20  ;;  %5933 = vmatprep.mubr.bf16.mxu0 %v16590_v53  ;;  %v16635_v20 = vpack.c.bf16 %v165_v22, %v152_v32  ;;  %v13241_v12 = vcombine.high %v1175_v44, %v1179_v63  ;;  %v1183_v32 = vunpack.c.h.s8.bf16 %v16504_v49  ;;  %v1187_v22 = vunpack.c.h.s8.bf16 %v16509_v59  ;;  %v178_v49 = vld [vmem:[%s23263_s0 + $0x430] sm:$0xff]  ;;  %v191_v59 = vld [vmem:[%s23263_s0 + $0x498] sm:$0xff] }
  0xf1   :  { %6768 = vmatpush1.bf16.msra.mxu1 %v13216_v14  ;;  %5988 = vmatprep.subr.bf16.mxu0 %v13263_v38  ;;  %v16638_v14 = vpack.c.bf16 %v192_v43, %v179_v30  ;;  %v1222_v38 = vunpack.c.l.s8.bf16 %v16628_v7  ;;  %v13240_v39 = vcombine.low %v1175_v44, %v1179_v63  ;;  %v1191_v43 = vunpack.c.h.s8.bf16 %v16532_v28  ;;  %v16676_v44 = vld [vmem:[%s23264_s1 + $0x780] sm:$0xff]  ;;  %v16681_v63 = vld [vmem:[%s23264_s1 + $0x790] sm:$0xff] }
  0xf2   :  { %6769 = vmatprep.subr.bf16.mxu1 %v13225_v26  ;;  %23703 = vst [vmem:[#allocation55_spill] sm:$0xff] %v16635_v20  ;;  %v13270_v26 = vcombine.low %v1206_v60, %v1210_v18  ;;  %v16648_v18 = vld [vmem:[%s23264_s1 + $0x760] sm:$0xff]  ;;  %v16653_v60 = vld [vmem:[%s23264_s1 + $0x770] sm:$0xff]  ;;  %v13249_v30 = vcombine.high %v1183_v32, %v1187_v22  ;;  %v13248_v28 = vcombine.low %v1183_v32, %v1187_v22 }
  0xf3   :  { %23704 = vst [vmem:[#allocation56_spill] sm:$0xff] %v16638_v14 }
  0xf4   :  { %6695 = vmatmul.mubr.bf16.gmra.mrb[36].mxu1 %v16491_v15  ;;  %5989 = vmatpush1.bf16.msra.mxu0 %v13262_v19  ;;  %v13287_v19 = vcombine.high %v1222_v38, %v1226_v36 }
  0xf5   :  { %6770 = vmatpush1.bf16.msra.mxu1 %v13224_v21  ;;  %5990 = vmatprep.subr.bf16.mxu0 %v13271_v56  ;;  %v1230_v21 = vunpack.c.l.s8.bf16 %v16648_v18  ;;  %v1234_v56 = vunpack.c.l.s8.bf16 %v16653_v60 }
  0xf6   :  { %6771 = vmatprep.subr.bf16.mxu1 %v13233_v25  ;;  %6704 = vmatprep.mubr.bf16.mxu1 %v16494_v55  ;;  %v1195_v25 = vunpack.c.h.s8.bf16 %v16537_v52  ;;  %v1242_v55 = vunpack.c.l.s8.bf16 %v16681_v63 }
  0xf7   :  { %5934 = vmatmul.mubr.bf16.gmra.mrb[16].mxu0 %v16635_v20  ;;  %v13295_v52 = vcombine.high %v1230_v21, %v1234_v56 }
  0xf8   :  { %5991 = vmatpush1.bf16.msra.mxu0 %v13270_v26  ;;  %5943 = vmatprep.mubr.bf16.mxu0 %v16638_v14  ;;  %v16683_v26 = vpack.c.bf16 %v191_v59, %v178_v49  ;;  %v13257_v15 = vcombine.high %v1191_v43, %v1195_v25  ;;  %v1199_v49 = vunpack.c.h.s8.bf16 %v16552_v1  ;;  %v1203_v59 = vunpack.c.h.s8.bf16 %v16557_v35  ;;  %v204_v35 = vld [vmem:[%s23263_s0 + $0x500] sm:$0xff] }
  0xf9   :  { %6772 = vmatpush1.bf16.msra.mxu1 %v13232_v11  ;;  %5992 = vmatprep.subr.bf16.mxu0 %v13279_v37  ;;  %v16686_v11 = vpack.c.bf16 %v218_v29, %v205_v50  ;;  %v1238_v37 = vunpack.c.l.s8.bf16 %v16676_v44  ;;  %v13294_v1 = vcombine.low %v1230_v21, %v1234_v56  ;;  %v231_v56 = vld [vmem:[%s23263_s0 + $0x5d8] sm:$0xff] }
  0xfa   :  { %6773 = vmatprep.subr.bf16.mxu1 %v13241_v12  ;;  %23705 = vst [vmem:[#allocation57_spill] sm:$0xff] %v16683_v26  ;;  %v13286_v12 = vcombine.low %v1222_v38, %v1226_v36  ;;  %v16696_v36 = vld [vmem:[%s23264_s1 + $0x7a0] sm:$0xff]  ;;  %v16701_v38 = vld [vmem:[%s23264_s1 + $0x7b0] sm:$0xff] }
  0xfb   :  { %23706 = vst [vmem:[#allocation58_spill] sm:$0xff] %v16686_v11  ;;  %v13303_v50 = vcombine.high %v1238_v37, %v1242_v55  ;;  %v1246_v29 = vunpack.c.l.s8.bf16 %v16696_v36  ;;  %v1250_v21 = vunpack.c.l.s8.bf16 %v16701_v38 }
  0xfc   :  { %6705 = vmatmul.mubr.bf16.gmra.mrb[40].mxu1 %v16539_v62  ;;  %5993 = vmatpush1.bf16.msra.mxu0 %v13278_v0  ;;  %v217_v0 = vld [vmem:[%s23263_s0 + $0x568] sm:$0xff] }
  0xfd   :  { %6774 = vmatpush1.bf16.msra.mxu1 %v13240_v39  ;;  %5994 = vmatprep.subr.bf16.mxu0 %v13287_v19  ;;  %v13256_v19 = vcombine.low %v1191_v43, %v1195_v25  ;;  %v1211_v43 = vunpack.c.h.s8.bf16 %v16585_v40  ;;  %v16732_v25 = vld [vmem:[%s23264_s1 + $0x7c0] sm:$0xff]  ;;  %v13311_v40 = vcombine.high %v1246_v29, %v1250_v21 }
  0xfe   :  { %6775 = vmatprep.subr.bf16.mxu1 %v13249_v30  ;;  %6714 = vmatprep.mubr.bf16.mxu1 %v16542_v34  ;;  %v244_v30 = vld [vmem:[%s23263_s0 + $0x640] sm:$0xff] }
  0xff   :  { %v16703_v32 = vpop.f32.mrb[0].mxu1  ;;  %5944 = vmatmul.mubr.bf16.gmra.mrb[20].mxu0 %v16683_v26 }
 0x100   :  { %23707 = vst [vmem:[#allocation59_spill] sm:$0xff] %v16703_v32  ;;  %v16706_v22 = vpop.f32.mrb[1].mxu1  ;;  %5995 = vmatpush1.bf16.msra.mxu0 %v13286_v12  ;;  %5953 = vmatprep.mubr.bf16.mxu0 %v16686_v11  ;;  %v1254_v32 = vunpack.c.l.s8.bf16 %v16732_v25 }
 0x101   :  { %23708 = vst [vmem:[#allocation60_spill] sm:$0xff] %v16706_v22  ;;  %v16715_v39 = vpop.f32.mrb[2].mxu1  ;;  %6776 = vmatpush1.bf16.msra.mxu1 %v13248_v28  ;;  %5996 = vmatprep.subr.bf16.mxu0 %v13295_v52  ;;  %v1207_v28 = vunpack.c.h.s8.bf16 %v16580_v9  ;;  %v16737_v52 = vld [vmem:[%s23264_s1 + $0x7d0] sm:$0xff]  ;;  %v16739_v22 = vpack.c.bf16 %v217_v0, %v204_v35  ;;  %v13264_v9 = vcombine.low %v1199_v49, %v1203_v59  ;;  %v1215_v35 = vunpack.c.h.s8.bf16 %v16600_v17 }
 0x102   :  { %23709 = vst [vmem:[#allocation61_spill] sm:$0xff] %v16715_v39  ;;  %v16725_v12 = vpop.f32.mrb[3].mxu1  ;;  %6777 = vmatprep.subr.bf16.mxu1 %v13257_v15  ;;  %v13265_v39 = vcombine.high %v1199_v49, %v1203_v59  ;;  %v13302_v15 = vcombine.low %v1238_v37, %v1242_v55  ;;  %v1258_v34 = vunpack.c.l.s8.bf16 %v16737_v52  ;;  %v1219_v0 = vunpack.c.h.s8.bf16 %v16605_v48  ;;  %v16752_v55 = vld [vmem:[%s23264_s1 + $0x7e0] sm:$0xff]  ;;  %v16757_v37 = vld [vmem:[%s23264_s1 + $0x7f0] sm:$0xff] }
 0x103   :  { %23710 = vst [vmem:[#allocation62_spill] sm:$0xff] %v16725_v12  ;;  %23711 = vst [vmem:[#allocation63_spill] sm:$0xff] %v16739_v22  ;;  %v16742_v12 = vpack.c.bf16 %v244_v30, %v231_v56  ;;  %v13273_v62 = vcombine.high %v1207_v28, %v1211_v43  ;;  %v13310_v17 = vcombine.low %v1246_v29, %v1250_v21  ;;  %v230_v48 = vld [vmem:[%s23263_s0 + $0x5d0] sm:$0xff]  ;;  %v1262_v56 = vunpack.c.l.s8.bf16 %v16752_v55  ;;  %v51_v21 = vld [vmem:[%s23263_s0 + $0x38] sm:$0xff] }
 0x104   :  { %6715 = vmatmul.mubr.bf16.gmra.mrb[44].mxu1 %v16587_v10  ;;  %5997 = vmatpush1.bf16.msra.mxu0 %v13294_v1  ;;  %v243_v1 = vld [vmem:[%s23263_s0 + $0x638] sm:$0xff]  ;;  %v1266_v29 = vunpack.c.l.s8.bf16 %v16757_v37  ;;  %v64_v30 = vld [vmem:[%s23263_s0 + $0xa0] sm:$0xff] }
 0x105   :  { %23712 = vst [vmem:[#allocation64_spill] sm:$0xff] %v16742_v12  ;;  %6778 = vmatpush1.bf16.msra.mxu1 %v13256_v19  ;;  %5998 = vmatprep.subr.bf16.mxu0 %v13303_v50  ;;  %v13272_v19 = vcombine.low %v1207_v28, %v1211_v43  ;;  %v13319_v50 = vcombine.high %v1254_v32, %v1258_v34  ;;  %v1227_v28 = vunpack.c.h.s8.bf16 %v16633_v8  ;;  %v16788_v43 = vld [vmem:[%s23264_s1 + $0x800] sm:$0xff] }
 0x106   :  { %6779 = vmatprep.subr.bf16.mxu1 %v13265_v39  ;;  %6724 = vmatprep.mubr.bf16.mxu1 %v16590_v53  ;;  %v13327_v8 = vcombine.high %v1262_v56, %v1266_v29 }
 0x107   :  { %v16759_v49 = vpop.f32.mrb[4].mxu1  ;;  %5954 = vmatmul.mubr.bf16.gmra.mrb[24].mxu0 %v16739_v22 }
 0x108   :  { %23713 = vst [vmem:[#allocation65_spill] sm:$0xff] %v16759_v49  ;;  %v16762_v59 = vpop.f32.mrb[5].mxu1  ;;  %5999 = vmatpush1.bf16.msra.mxu0 %v13302_v15  ;;  %5963 = vmatprep.mubr.bf16.mxu0 %v16742_v12  ;;  %v1270_v49 = vunpack.c.l.s8.bf16 %v16788_v43 }
 0x109   :  { %23714 = vst [vmem:[#allocation66_spill] sm:$0xff] %v16762_v59  ;;  %v16771_v39 = vpop.f32.mrb[6].mxu1  ;;  %6780 = vmatpush1.bf16.msra.mxu1 %v13264_v9  ;;  %6000 = vmatprep.subr.bf16.mxu0 %v13311_v40  ;;  %v1223_v9 = vunpack.c.h.s8.bf16 %v16628_v7  ;;  %v16793_v40 = vld [vmem:[%s23264_s1 + $0x810] sm:$0xff]  ;;  %v16795_v59 = vpack.c.bf16 %v243_v1, %v230_v48  ;;  %v13280_v7 = vcombine.low %v1215_v35, %v1219_v0  ;;  %v1231_v48 = vunpack.c.h.s8.bf16 %v16648_v18 }
 0x10a   :  { %23715 = vst [vmem:[#allocation67_spill] sm:$0xff] %v16771_v39  ;;  %v16781_v15 = vpop.f32.mrb[7].mxu1  ;;  %6781 = vmatprep.subr.bf16.mxu1 %v13273_v62  ;;  %v13281_v39 = vcombine.high %v1215_v35, %v1219_v0  ;;  %v13318_v62 = vcombine.low %v1254_v32, %v1258_v34  ;;  %v1274_v53 = vunpack.c.l.s8.bf16 %v16793_v40  ;;  %v1235_v1 = vunpack.c.h.s8.bf16 %v16653_v60  ;;  %v16808_v34 = vld [vmem:[%s23264_s1 + $0x820] sm:$0xff]  ;;  %v16813_v32 = vld [vmem:[%s23264_s1 + $0x830] sm:$0xff] }
 0x10b   :  { %23716 = vst [vmem:[#allocation68_spill] sm:$0xff] %v16781_v15  ;;  %23717 = vst [vmem:[#allocation69_spill] sm:$0xff] %v16795_v59  ;;  %v16798_v15 = vpack.c.bf16 %v64_v30, %v51_v21  ;;  %v13289_v10 = vcombine.high %v1223_v9, %v1227_v28  ;;  %v13326_v18 = vcombine.low %v1262_v56, %v1266_v29  ;;  %v50_v60 = vld [vmem:[%s23263_s0 + $0x30] sm:$0xff]  ;;  %v1278_v21 = vunpack.c.l.s8.bf16 %v16808_v34  ;;  %v77_v29 = vld [vmem:[%s23263_s0 + $0x108] sm:$0xff] }
 0x10c   :  { %6725 = vmatmul.mubr.bf16.gmra.mrb[48].mxu1 %v16635_v20  ;;  %6001 = vmatpush1.bf16.msra.mxu0 %v13310_v17  ;;  %v63_v17 = vld [vmem:[%s23263_s0 + $0x98] sm:$0xff]  ;;  %v1282_v56 = vunpack.c.l.s8.bf16 %v16813_v32  ;;  %v90_v30 = vld [vmem:[%s23263_s0 + $0x170] sm:$0xff] }
 0x10d   :  { %23718 = vst [vmem:[#allocation70_spill] sm:$0xff] %v16798_v15  ;;  %6782 = vmatpush1.bf16.msra.mxu1 %v13272_v19  ;;  %6002 = vmatprep.subr.bf16.mxu0 %v13319_v50  ;;  %v13288_v19 = vcombine.low %v1223_v9, %v1227_v28  ;;  %v13335_v50 = vcombine.high %v1270_v49, %v1274_v53  ;;  %v1243_v9 = vunpack.c.h.s8.bf16 %v16681_v63  ;;  %v16844_v28 = vld [vmem:[%s23264_s1 + $0x840] sm:$0xff] }
 0x10e   :  { %6783 = vmatprep.subr.bf16.mxu1 %v13281_v39  ;;  %6734 = vmatprep.mubr.bf16.mxu1 %v16638_v14  ;;  %v13343_v63 = vcombine.high %v1278_v21, %v1282_v56 }
 0x10f   :  { %v16815_v35 = vpop.f32.mrb[8].mxu1  ;;  %5964 = vmatmul.mubr.bf16.gmra.mrb[28].mxu0 %v16795_v59 }
 0x110   :  { %23719 = vst [vmem:[#allocation71_spill] sm:$0xff] %v16815_v35  ;;  %v16818_v0 = vpop.f32.mrb[9].mxu1  ;;  %6003 = vmatpush1.bf16.msra.mxu0 %v13318_v62  ;;  %6006 = vmatprep.mubr.bf16.mxu0 %v16798_v15  ;;  %v1286_v35 = vunpack.c.l.s8.bf16 %v16844_v28 }
 0x111   :  { %23720 = vst [vmem:[#allocation72_spill] sm:$0xff] %v16818_v0  ;;  %v16827_v39 = vpop.f32.mrb[10].mxu1  ;;  %6784 = vmatpush1.bf16.msra.mxu1 %v13280_v7  ;;  %6004 = vmatprep.subr.bf16.mxu0 %v13327_v8  ;;  %v1239_v7 = vunpack.c.h.s8.bf16 %v16676_v44  ;;  %v16849_v8 = vld [vmem:[%s23264_s1 + $0x850] sm:$0xff]  ;;  %v16851_v0 = vpack.c.bf16 %v63_v17, %v50_v60  ;;  %v13296_v44 = vcombine.low %v1231_v48, %v1235_v1  ;;  %v1247_v60 = vunpack.c.h.s8.bf16 %v16696_v36 }
 0x112   :  { %23721 = vst [vmem:[#allocation73_spill] sm:$0xff] %v16827_v39  ;;  %v16837_v62 = vpop.f32.mrb[11].mxu1  ;;  %6785 = vmatprep.subr.bf16.mxu1 %v13289_v10  ;;  %v13297_v39 = vcombine.high %v1231_v48, %v1235_v1  ;;  %v13334_v10 = vcombine.low %v1270_v49, %v1274_v53  ;;  %v1290_v14 = vunpack.c.l.s8.bf16 %v16849_v8  ;;  %v1251_v17 = vunpack.c.h.s8.bf16 %v16701_v38  ;;  %v16864_v53 = vld [vmem:[%s23264_s1 + $0x860] sm:$0xff]  ;;  %v16869_v49 = vld [vmem:[%s23264_s1 + $0x870] sm:$0xff] }
 0x113   :  { %23722 = vst [vmem:[#allocation74_spill] sm:$0xff] %v16837_v62  ;;  %23723 = vst [vmem:[#allocation75_spill] sm:$0xff] %v16851_v0  ;;  %v16854_v62 = vpack.c.bf16 %v90_v30, %v77_v29  ;;  %v13305_v20 = vcombine.high %v1239_v7, %v1243_v9  ;;  %v13342_v36 = vcombine.low %v1278_v21, %v1282_v56  ;;  %v76_v38 = vld [vmem:[%s23263_s0 + $0x100] sm:$0xff]  ;;  %v1294_v29 = vunpack.c.l.s8.bf16 %v16864_v53  ;;  %v103_v56 = vld [vmem:[%s23263_s0 + $0x1d8] sm:$0xff] }
 0x114   :  { %6735 = vmatmul.mubr.bf16.gmra.mrb[52].mxu1 %v16683_v26  ;;  %6005 = vmatpush1.bf16.msra.mxu0 %v13326_v18  ;;  %v89_v18 = vld [vmem:[%s23263_s0 + $0x168] sm:$0xff]  ;;  %v1298_v21 = vunpack.c.l.s8.bf16 %v16869_v49  ;;  %v116_v30 = vld [vmem:[%s23263_s0 + $0x240] sm:$0xff] }
 0x115   :  { %23724 = vst [vmem:[#allocation76_spill] sm:$0xff] %v16854_v62  ;;  %6786 = vmatpush1.bf16.msra.mxu1 %v13288_v19  ;;  %6087 = vmatprep.subr.bf16.mxu0 %v13335_v50  ;;  %v13304_v19 = vcombine.low %v1239_v7, %v1243_v9  ;;  %v13351_v50 = vcombine.high %v1286_v35, %v1290_v14  ;;  %v1259_v7 = vunpack.c.h.s8.bf16 %v16737_v52  ;;  %v16900_v9 = vld [vmem:[%s23264_s1 + $0x880] sm:$0xff] }
 0x116   :  { %6787 = vmatprep.subr.bf16.mxu1 %v13297_v39  ;;  %6744 = vmatprep.mubr.bf16.mxu1 %v16686_v11  ;;  %v13359_v52 = vcombine.high %v1294_v29, %v1298_v21 }
 0x117   :  { %v16871_v48 = vpop.f32.mrb[12].mxu1  ;;  %6007 = vmatmul.mubr.bf16.vlgmr.msra.gmra.mrb[0].mxu0 %v16851_v0 }
 0x118   :  { %23725 = vst [vmem:[#allocation77_spill] sm:$0xff] %v16871_v48  ;;  %v16874_v1 = vpop.f32.mrb[13].mxu1  ;;  %6088 = vmatpush1.bf16.msra.mxu0 %v13334_v10  ;;  %6016 = vmatprep.mubr.bf16.mxu0 %v16854_v62  ;;  %v1302_v48 = vunpack.c.l.s8.bf16 %v16900_v9 }
 0x119   :  { %23726 = vst [vmem:[#allocation78_spill] sm:$0xff] %v16874_v1  ;;  %v16883_v39 = vpop.f32.mrb[14].mxu1  ;;  %6788 = vmatpush1.bf16.msra.mxu1 %v13296_v44  ;;  %6089 = vmatprep.subr.bf16.mxu0 %v13343_v63  ;;  %v1255_v44 = vunpack.c.h.s8.bf16 %v16732_v25  ;;  %v16905_v63 = vld [vmem:[%s23264_s1 + $0x890] sm:$0xff]  ;;  %v16907_v1 = vpack.c.bf16 %v89_v18, %v76_v38  ;;  %v13312_v25 = vcombine.low %v1247_v60, %v1251_v17  ;;  %v1263_v38 = vunpack.c.h.s8.bf16 %v16752_v55 }
 0x11a   :  { %23727 = vst [vmem:[#allocation79_spill] sm:$0xff] %v16883_v39  ;;  %v16893_v10 = vpop.f32.mrb[15].mxu1  ;;  %6789 = vmatprep.subr.bf16.mxu1 %v13305_v20  ;;  %v13313_v39 = vcombine.high %v1247_v60, %v1251_v17  ;;  %v13350_v20 = vcombine.low %v1286_v35, %v1290_v14  ;;  %v1306_v11 = vunpack.c.l.s8.bf16 %v16905_v63  ;;  %v1267_v18 = vunpack.c.h.s8.bf16 %v16757_v37  ;;  %v16920_v14 = vld [vmem:[%s23264_s1 + $0x8a0] sm:$0xff]  ;;  %v16925_v35 = vld [vmem:[%s23264_s1 + $0x8b0] sm:$0xff] }
 0x11b   :  { %23728 = vst [vmem:[#allocation80_spill] sm:$0xff] %v16893_v10  ;;  %23729 = vst [vmem:[#allocation81_spill] sm:$0xff] %v16907_v1  ;;  %v16910_v10 = vpack.c.bf16 %v116_v30, %v103_v56  ;;  %v13321_v26 = vcombine.high %v1255_v44, %v1259_v7  ;;  %v13358_v55 = vcombine.low %v1294_v29, %v1298_v21  ;;  %v102_v37 = vld [vmem:[%s23263_s0 + $0x1d0] sm:$0xff]  ;;  %v1310_v56 = vunpack.c.l.s8.bf16 %v16920_v14  ;;  %v129_v21 = vld [vmem:[%s23263_s0 + $0x2a8] sm:$0xff] }
 0x11c   :  { %6745 = vmatmul.mubr.bf16.gmra.mrb[56].mxu1 %v16739_v22  ;;  %6090 = vmatpush1.bf16.msra.mxu0 %v13342_v36  ;;  %v115_v36 = vld [vmem:[%s23263_s0 + $0x238] sm:$0xff]  ;;  %v1314_v29 = vunpack.c.l.s8.bf16 %v16925_v35  ;;  %v142_v30 = vld [vmem:[%s23263_s0 + $0x310] sm:$0xff] }
 0x11d   :  { %23730 = vst [vmem:[#allocation82_spill] sm:$0xff] %v16910_v10  ;;  %6790 = vmatpush1.bf16.msra.mxu1 %v13304_v19  ;;  %6091 = vmatprep.subr.bf16.mxu0 %v13351_v50  ;;  %v13320_v19 = vcombine.low %v1255_v44, %v1259_v7  ;;  %v13367_v50 = vcombine.high %v1302_v48, %v1306_v11  ;;  %v1275_v44 = vunpack.c.h.s8.bf16 %v16793_v40  ;;  %v16956_v7 = vld [vmem:[%s23264_s1 + $0x8c0] sm:$0xff] }
 0x11e   :  { %6791 = vmatprep.subr.bf16.mxu1 %v13313_v39  ;;  %6754 = vmatprep.mubr.bf16.mxu1 %v16742_v12  ;;  %v13375_v40 = vcombine.high %v1310_v56, %v1314_v29  ;;  %v1318_v12 = vunpack.c.l.s8.bf16 %v16956_v7 }
 0x11f   :  { %v16927_v60 = vpop.f32.mrb[16].mxu1  ;;  %6017 = vmatmul.mubr.bf16.gmra.mrb[4].mxu0 %v16907_v1 }
 0x120   :  { %23731 = vst [vmem:[#allocation83_spill] sm:$0xff] %v16927_v60  ;;  %v16930_v17 = vpop.f32.mrb[17].mxu1  ;;  %6092 = vmatpush1.bf16.msra.mxu0 %v13350_v20  ;;  %6026 = vmatprep.mubr.bf16.mxu0 %v16910_v10 }
 0x121   :  { %23732 = vst [vmem:[#allocation84_spill] sm:$0xff] %v16930_v17  ;;  %v16939_v39 = vpop.f32.mrb[18].mxu1  ;;  %6792 = vmatpush1.bf16.msra.mxu1 %v13312_v25  ;;  %6093 = vmatprep.subr.bf16.mxu0 %v13359_v52  ;;  %v1271_v25 = vunpack.c.h.s8.bf16 %v16788_v43  ;;  %v16961_v52 = vld [vmem:[%s23264_s1 + $0x8d0] sm:$0xff]  ;;  %v16963_v17 = vpack.c.bf16 %v115_v36, %v102_v37  ;;  %v13328_v43 = vcombine.low %v1263_v38, %v1267_v18  ;;  %v1279_v37 = vunpack.c.h.s8.bf16 %v16808_v34 }
 0x122   :  { %23733 = vst [vmem:[#allocation85_spill] sm:$0xff] %v16939_v39  ;;  %v16949_v20 = vpop.f32.mrb[19].mxu1  ;;  %6793 = vmatprep.subr.bf16.mxu1 %v13321_v26  ;;  %v13329_v39 = vcombine.high %v1263_v38, %v1267_v18  ;;  %v13366_v26 = vcombine.low %v1302_v48, %v1306_v11  ;;  %v1322_v60 = vunpack.c.l.s8.bf16 %v16961_v52  ;;  %v1283_v36 = vunpack.c.h.s8.bf16 %v16813_v32  ;;  %v16976_v11 = vld [vmem:[%s23264_s1 + $0x8e0] sm:$0xff]  ;;  %v16981_v48 = vld [vmem:[%s23264_s1 + $0x8f0] sm:$0xff] }
 0x123   :  { %23734 = vst [vmem:[#allocation86_spill] sm:$0xff] %v16949_v20  ;;  %23735 = vst [vmem:[#allocation87_spill] sm:$0xff] %v16963_v17  ;;  %v16966_v20 = vpack.c.bf16 %v142_v30, %v129_v21  ;;  %v13337_v22 = vcombine.high %v1271_v25, %v1275_v44  ;;  %v13374_v34 = vcombine.low %v1310_v56, %v1314_v29  ;;  %v128_v32 = vld [vmem:[%s23263_s0 + $0x2a0] sm:$0xff]  ;;  %v1326_v21 = vunpack.c.l.s8.bf16 %v16976_v11  ;;  %v155_v29 = vld [vmem:[%s23263_s0 + $0x378] sm:$0xff] }
 0x124   :  { %6755 = vmatmul.mubr.bf16.gmra.mrb[60].mxu1 %v16795_v59  ;;  %6094 = vmatpush1.bf16.msra.mxu0 %v13358_v55  ;;  %v141_v55 = vld [vmem:[%s23263_s0 + $0x308] sm:$0xff]  ;;  %v1330_v56 = vunpack.c.l.s8.bf16 %v16981_v48  ;;  %v168_v30 = vld [vmem:[%s23263_s0 + $0x3e0] sm:$0xff] }
 0x125   :  { %23736 = vst [vmem:[#allocation88_spill] sm:$0xff] %v16966_v20  ;;  %6794 = vmatpush1.bf16.msra.mxu1 %v13320_v19  ;;  %6095 = vmatprep.subr.bf16.mxu0 %v13367_v50  ;;  %v13336_v19 = vcombine.low %v1271_v25, %v1275_v44  ;;  %v13383_v50 = vcombine.high %v1318_v12, %v1322_v60  ;;  %v1291_v25 = vunpack.c.h.s8.bf16 %v16849_v8  ;;  %v17012_v44 = vld [vmem:[%s23264_s1 + $0x900] sm:$0xff]  ;;  %v23744_v8 = vunpack.c.h.s8.bf16 %v15286_v3 }
 0x126   :  { %6795 = vmatprep.subr.bf16.mxu1 %v13329_v39  ;;  %6797 = vmatprep.mubr.bf16.mxu1 %v16798_v15  ;;  %v13391_v59 = vcombine.high %v1326_v21, %v1330_v56  ;;  %v1334_v58 = vunpack.c.l.s8.bf16 %v17012_v44  ;;  %v17038_v3 = vld [vmem:[%s23264_s1 + $0x920] sm:$0xff] }
 0x127   :  { %v16983_v38 = vpop.f32.mrb[20].mxu1  ;;  %6027 = vmatmul.mubr.bf16.gmra.mrb[8].mxu0 %v16963_v17 }
 0x128   :  { %23737 = vst [vmem:[#allocation89_spill] sm:$0xff] %v16983_v38  ;;  %v16986_v18 = vpop.f32.mrb[21].mxu1  ;;  %6096 = vmatpush1.bf16.msra.mxu0 %v13366_v26  ;;  %6036 = vmatprep.mubr.bf16.mxu0 %v16966_v20  ;;  %v13344_v38 = vcombine.low %v1279_v37, %v1283_v36 }
 0x129   :  { %23738 = vst [vmem:[#allocation90_spill] sm:$0xff] %v16986_v18  ;;  %v16995_v39 = vpop.f32.mrb[22].mxu1  ;;  %6796 = vmatpush1.bf16.msra.mxu1 %v13328_v43  ;;  %6097 = vmatprep.subr.bf16.mxu0 %v13375_v40  ;;  %v1287_v43 = vunpack.c.h.s8.bf16 %v16844_v28  ;;  %v17017_v40 = vld [vmem:[%s23264_s1 + $0x910] sm:$0xff]  ;;  %v17019_v18 = vpack.c.bf16 %v141_v55, %v128_v32  ;;  %v23743_v28 = vunpack.c.h.s8.bf16 %v15293_v6  ;;  %v1299_v6 = vunpack.c.h.s8.bf16 %v16869_v49  ;;  %v167_v55 = vld [vmem:[%s23263_s0 + $0x3d8] sm:$0xff] }
 0x12a   :  { %23739 = vst [vmem:[#allocation91_spill] sm:$0xff] %v16995_v39  ;;  %v17005_v26 = vpop.f32.mrb[23].mxu1  ;;  %6878 = vmatprep.subr.bf16.mxu1 %v13337_v22  ;;  %v13345_v39 = vcombine.high %v1279_v37, %v1283_v36  ;;  %v13382_v22 = vcombine.low %v1318_v12, %v1322_v60  ;;  %v1338_v32 = vunpack.c.l.s8.bf16 %v17017_v40  ;;  %v1295_v60 = vunpack.c.h.s8.bf16 %v16864_v53  ;;  %v17043_v37 = vld [vmem:[%s23264_s1 + $0x930] sm:$0xff] }
 0x12b   :  { %23740 = vst [vmem:[#allocation92_spill] sm:$0xff] %v17005_v26  ;;  %23741 = vst [vmem:[#allocation93_spill] sm:$0xff] %v17019_v18  ;;  %v17022_v26 = vpack.c.bf16 %v168_v30, %v155_v29  ;;  %v17028_v15 = vcombine.high %v23744_v8, %v23743_v28  ;;  %v13353_v12 = vcombine.high %v1287_v43, %v1291_v25  ;;  %v154_v49 = vld [vmem:[%s23263_s0 + $0x370] sm:$0xff]  ;;  %v1342_v29 = vunpack.c.l.s8.bf16 %v17038_v3 }
 0x12c   :  { %6798 = vmatmul.mubr.bf16.vlgmr.msra.gmra.mrb[32].mxu1 %v16851_v0  ;;  %6098 = vmatpush1.bf16.msra.mxu0 %v13374_v34  ;;  %v13390_v53 = vcombine.low %v1326_v21, %v1330_v56  ;;  %v1346_v21 = vunpack.c.l.s8.bf16 %v17043_v37  ;;  %v181_v56 = vld [vmem:[%s23263_s0 + $0x448] sm:$0xff]  ;;  %v194_v30 = vld [vmem:[%s23263_s0 + $0x4b0] sm:$0xff]  ;;  %v13361_v28 = vcombine.high %v1295_v60, %v1299_v6  ;;  %v17081_v8 = vpack.c.bf16 %v167_v55, %v154_v49 }
 0x12d   :  { %23742 = vst [vmem:[#allocation94_spill] sm:$0xff] %v17022_v26  ;;  %6879 = vmatpush1.bf16.msra.mxu1 %v13336_v19  ;;  %6099 = vmatprep.subr.bf16.mxu0 %v13383_v50  ;;  %v13352_v19 = vcombine.low %v1287_v43, %v1291_v25  ;;  %v13399_v50 = vcombine.high %v1334_v58, %v1338_v32  ;;  %v17074_v43 = vld [vmem:[%s23264_s1 + $0x940] sm:$0xff]  ;;  %v17079_v25 = vld [vmem:[%s23264_s1 + $0x950] sm:$0xff]  ;;  %v1311_v49 = vunpack.c.h.s8.bf16 %v16920_v14  ;;  %v1315_v55 = vunpack.c.h.s8.bf16 %v16925_v35 }
 0x12e   :  { %6880 = vmatprep.subr.bf16.mxu1 %v13345_v39  ;;  %6807 = vmatprep.mubr.bf16.mxu1 %v16854_v62  ;;  %23749 = vst [vmem:[#allocation99_spill] sm:$0xff] %v17081_v8  ;;  %v13406_v14 = vcombine.low %v1342_v29, %v1346_v21  ;;  %v180_v35 = vld [vmem:[%s23263_s0 + $0x440] sm:$0xff] }
 0x12f   :  { %v17045_v36 = vpop.f32.mrb[24].mxu1  ;;  %6037 = vmatmul.mubr.bf16.gmra.mrb[12].mxu0 %v17019_v18 }
 0x130   :  { %23745 = vst [vmem:[#allocation95_spill] sm:$0xff] %v17045_v36  ;;  %v17048_v34 = vpop.f32.mrb[25].mxu1  ;;  %6100 = vmatpush1.bf16.msra.mxu0 %v13382_v22  ;;  %6046 = vmatprep.mubr.bf16.mxu0 %v17022_v26 }
 0x131   :  { %23746 = vst [vmem:[#allocation96_spill] sm:$0xff] %v17048_v34  ;;  %v17057_v39 = vpop.f32.mrb[26].mxu1  ;;  %6881 = vmatpush1.bf16.msra.mxu1 %v13344_v38  ;;  %6101 = vmatprep.subr.bf16.mxu0 %v13391_v59  ;;  %v1303_v59 = vunpack.c.h.s8.bf16 %v16900_v9  ;;  %v1307_v38 = vunpack.c.h.s8.bf16 %v16905_v63  ;;  %v13360_v9 = vcombine.low %v1295_v60, %v1299_v6  ;;  %v13407_v63 = vcombine.high %v1342_v29, %v1346_v21  ;;  %v207_v21 = vld [vmem:[%s23263_s0 + $0x518] sm:$0xff] }
 0x132   :  { %23747 = vst [vmem:[#allocation97_spill] sm:$0xff] %v17057_v39  ;;  %v17067_v22 = vpop.f32.mrb[27].mxu1  ;;  %6882 = vmatprep.subr.bf16.mxu1 %v13353_v12  ;;  %v13398_v12 = vcombine.low %v1334_v58, %v1338_v32  ;;  %v1350_v39 = vunpack.c.l.s8.bf16 %v17074_v43  ;;  %v1354_v34 = vunpack.c.l.s8.bf16 %v17079_v25  ;;  %v17094_v58 = vld [vmem:[%s23264_s1 + $0x960] sm:$0xff]  ;;  %v17099_v32 = vld [vmem:[%s23264_s1 + $0x970] sm:$0xff] }
 0x133   :  { %23748 = vst [vmem:[#allocation98_spill] sm:$0xff] %v17067_v22  ;;  %v17084_v22 = vpack.c.bf16 %v194_v30, %v181_v56  ;;  %v13369_v62 = vcombine.high %v1303_v59, %v1307_v38  ;;  %v1358_v30 = vunpack.c.l.s8.bf16 %v17094_v58  ;;  %v1362_v29 = vunpack.c.l.s8.bf16 %v17099_v32 }
 0x134   :  { %6808 = vmatmul.mubr.bf16.gmra.mrb[36].mxu1 %v16907_v1  ;;  %6102 = vmatpush1.bf16.msra.mxu0 %v13390_v53  ;;  %v193_v53 = vld [vmem:[%s23263_s0 + $0x4a8] sm:$0xff]  ;;  %v13415_v56 = vcombine.high %v1350_v39, %v1354_v34 }
 0x135   :  { %23750 = vst [vmem:[#allocation100_spill] sm:$0xff] %v17084_v22  ;;  %6883 = vmatpush1.bf16.msra.mxu1 %v13352_v19  ;;  %6103 = vmatprep.subr.bf16.mxu0 %v13399_v50  ;;  %v13368_v50 = vcombine.low %v1303_v59, %v1307_v38  ;;  %v1323_v59 = vunpack.c.h.s8.bf16 %v16961_v52  ;;  %v17130_v38 = vld [vmem:[%s23264_s1 + $0x980] sm:$0xff]  ;;  %v13423_v52 = vcombine.high %v1358_v30, %v1362_v29 }
 0x136   :  { %6884 = vmatprep.subr.bf16.mxu1 %v13361_v28  ;;  %6817 = vmatprep.mubr.bf16.mxu1 %v16910_v10  ;;  %v220_v28 = vld [vmem:[%s23263_s0 + $0x580] sm:$0xff]  ;;  %v13377_v10 = vcombine.high %v1311_v49, %v1315_v55 }
 0x137   :  { %v17101_v60 = vpop.f32.mrb[28].mxu1  ;;  %6047 = vmatmul.mubr.bf16.gmra.mrb[16].mxu0 %v17081_v8 }
 0x138   :  { %23751 = vst [vmem:[#allocation101_spill] sm:$0xff] %v17101_v60  ;;  %v17104_v6 = vpop.f32.mrb[29].mxu1  ;;  %6104 = vmatpush1.bf16.msra.mxu0 %v13398_v12  ;;  %6056 = vmatprep.mubr.bf16.mxu0 %v17084_v22 }
 0x139   :  { %23752 = vst [vmem:[#allocation102_spill] sm:$0xff] %v17104_v6  ;;  %v17113_v19 = vpop.f32.mrb[30].mxu1  ;;  %6885 = vmatpush1.bf16.msra.mxu1 %v13360_v9  ;;  %6105 = vmatprep.subr.bf16.mxu0 %v13407_v63  ;;  %v1319_v9 = vunpack.c.h.s8.bf16 %v16956_v7  ;;  %v17135_v63 = vld [vmem:[%s23264_s1 + $0x990] sm:$0xff]  ;;  %v13376_v7 = vcombine.low %v1311_v49, %v1315_v55  ;;  %v1366_v6 = vunpack.c.l.s8.bf16 %v17130_v38 }
 0x13a   :  { %23753 = vst [vmem:[#allocation103_spill] sm:$0xff] %v17113_v19  ;;  %v17123_v12 = vpop.f32.mrb[31].mxu1  ;;  %6886 = vmatprep.subr.bf16.mxu1 %v13369_v62  ;;  %v17137_v19 = vpack.c.bf16 %v193_v53, %v180_v35  ;;  %v13414_v62 = vcombine.low %v1350_v39, %v1354_v34  ;;  %v1370_v60 = vunpack.c.l.s8.bf16 %v17135_v63  ;;  %v1327_v35 = vunpack.c.h.s8.bf16 %v16976_v11  ;;  %v17150_v34 = vld [vmem:[%s23264_s1 + $0x9a0] sm:$0xff]  ;;  %v17155_v39 = vld [vmem:[%s23264_s1 + $0x9b0] sm:$0xff] }
 0x13b   :  { %23754 = vst [vmem:[#allocation104_spill] sm:$0xff] %v17123_v12  ;;  %v17140_v12 = vpack.c.bf16 %v220_v28, %v207_v21  ;;  %v13385_v1 = vcombine.high %v1319_v9, %v1323_v59  ;;  %v1331_v53 = vunpack.c.h.s8.bf16 %v16981_v48  ;;  %v206_v11 = vld [vmem:[%s23263_s0 + $0x510] sm:$0xff]  ;;  %v219_v48 = vld [vmem:[%s23263_s0 + $0x578] sm:$0xff]  ;;  %v13384_v49 = vcombine.low %v1319_v9, %v1323_v59  ;;  %v17178_v9 = vld [vmem:[%s23264_s1 + $0x9c0] sm:$0xff] }
 0x13c   :  { %23755 = vst [vmem:[#allocation105_spill] sm:$0xff] %v17137_v19  ;;  %6818 = vmatmul.mubr.bf16.gmra.mrb[40].mxu1 %v16963_v17  ;;  %6106 = vmatpush1.bf16.msra.mxu0 %v13406_v14  ;;  %v13431_v55 = vcombine.high %v1366_v6, %v1370_v60  ;;  %v1374_v14 = vunpack.c.l.s8.bf16 %v17150_v34  ;;  %v1335_v21 = vunpack.c.h.s8.bf16 %v17012_v44  ;;  %v1339_v28 = vunpack.c.h.s8.bf16 %v17017_v40  ;;  %v17183_v59 = vld [vmem:[%s23264_s1 + $0x9d0] sm:$0xff] }
 0x13d   :  { %23756 = vst [vmem:[#allocation106_spill] sm:$0xff] %v17140_v12  ;;  %6887 = vmatpush1.bf16.msra.mxu1 %v13368_v50  ;;  %6107 = vmatprep.subr.bf16.mxu0 %v13415_v56  ;;  %v1378_v50 = vunpack.c.l.s8.bf16 %v17155_v39  ;;  %v233_v56 = vld [vmem:[%s23263_s0 + $0x5e8] sm:$0xff]  ;;  %v13392_v44 = vcombine.low %v1327_v35, %v1331_v53 }
 0x13e   :  { %6888 = vmatprep.subr.bf16.mxu1 %v13377_v10  ;;  %6827 = vmatprep.mubr.bf16.mxu1 %v16966_v20  ;;  %v13422_v10 = vcombine.low %v1358_v30, %v1362_v29  ;;  %v246_v30 = vld [vmem:[%s23263_s0 + $0x650] sm:$0xff]  ;;  %v13393_v29 = vcombine.high %v1327_v35, %v1331_v53  ;;  %v1386_v20 = vunpack.c.l.s8.bf16 %v17183_v59  ;;  %v13401_v17 = vcombine.high %v1335_v21, %v1339_v28 }
 0x13f   :  { %6057 = vmatmul.mubr.bf16.gmra.mrb[20].mxu0 %v17137_v19  ;;  %v13439_v40 = vcombine.high %v1374_v14, %v1378_v50  ;;  %v13438_v35 = vcombine.low %v1374_v14, %v1378_v50  ;;  %v13400_v53 = vcombine.low %v1335_v21, %v1339_v28  ;;  %v53_v14 = vld [vmem:[%s23263_s0 + $0x48] sm:$0xff]  ;;  %v66_v50 = vld [vmem:[%s23263_s0 + $0xb0] sm:$0xff]  ;;  %v17226_v21 = vld [vmem:[%s23264_s1 + $0xa00] sm:$0xff] }
 0x140   :  { %6108 = vmatpush1.bf16.msra.mxu0 %v13414_v62  ;;  %6066 = vmatprep.mubr.bf16.mxu0 %v17140_v12  ;;  %v17185_v62 = vpack.c.bf16 %v219_v48, %v206_v11  ;;  %v1343_v11 = vunpack.c.h.s8.bf16 %v17038_v3  ;;  %v1347_v48 = vunpack.c.h.s8.bf16 %v17043_v37  ;;  %v232_v3 = vld [vmem:[%s23263_s0 + $0x5e0] sm:$0xff]  ;;  %v245_v37 = vld [vmem:[%s23263_s0 + $0x648] sm:$0xff]  ;;  %v17231_v28 = vld [vmem:[%s23264_s1 + $0xa10] sm:$0xff] }
 0x141   :  { %6889 = vmatpush1.bf16.msra.mxu1 %v13376_v7  ;;  %6109 = vmatprep.subr.bf16.mxu0 %v13423_v52  ;;  %v17188_v7 = vpack.c.bf16 %v246_v30, %v233_v56  ;;  %v1382_v52 = vunpack.c.l.s8.bf16 %v17178_v9  ;;  %v1351_v30 = vunpack.c.h.s8.bf16 %v17074_v43 }
 0x142   :  { %6890 = vmatprep.subr.bf16.mxu1 %v13385_v1  ;;  %23757 = vst [vmem:[#allocation107_spill] sm:$0xff] %v17185_v62  ;;  %v13430_v1 = vcombine.low %v1366_v6, %v1370_v60  ;;  %v17198_v60 = vld [vmem:[%s23264_s1 + $0x9e0] sm:$0xff]  ;;  %v17203_v6 = vld [vmem:[%s23264_s1 + $0x9f0] sm:$0xff]  ;;  %v13409_v56 = vcombine.high %v1343_v11, %v1347_v48  ;;  %v13408_v43 = vcombine.low %v1343_v11, %v1347_v48 }
 0x143   :  { %23758 = vst [vmem:[#allocation108_spill] sm:$0xff] %v17188_v7 }
 0x144   :  { %6828 = vmatmul.mubr.bf16.gmra.mrb[44].mxu1 %v17019_v18  ;;  %6110 = vmatpush1.bf16.msra.mxu0 %v13422_v10  ;;  %v13447_v10 = vcombine.high %v1382_v52, %v1386_v20 }
 0x145   :  { %6891 = vmatpush1.bf16.msra.mxu1 %v13384_v49  ;;  %6111 = vmatprep.subr.bf16.mxu0 %v13431_v55  ;;  %v1390_v49 = vunpack.c.l.s8.bf16 %v17198_v60  ;;  %v1394_v55 = vunpack.c.l.s8.bf16 %v17203_v6 }
 0x146   :  { %6892 = vmatprep.subr.bf16.mxu1 %v13393_v29  ;;  %6837 = vmatprep.mubr.bf16.mxu1 %v17022_v26  ;;  %v1355_v29 = vunpack.c.h.s8.bf16 %v17079_v25  ;;  %v1402_v26 = vunpack.c.l.s8.bf16 %v17231_v28 }
 0x147   :  { %6067 = vmatmul.mubr.bf16.gmra.mrb[24].mxu0 %v17185_v62  ;;  %v13455_v25 = vcombine.high %v1390_v49, %v1394_v55  ;;  %v13454_v11 = vcombine.low %v1390_v49, %v1394_v55  ;;  %v79_v49 = vld [vmem:[%s23263_s0 + $0x118] sm:$0xff]  ;;  %v92_v55 = vld [vmem:[%s23263_s0 + $0x180] sm:$0xff] }
 0x148   :  { %6112 = vmatpush1.bf16.msra.mxu0 %v13430_v1  ;;  %6076 = vmatprep.mubr.bf16.mxu0 %v17188_v7  ;;  %v17233_v1 = vpack.c.bf16 %v245_v37, %v232_v3  ;;  %v13417_v18 = vcombine.high %v1351_v30, %v1355_v29  ;;  %v1359_v3 = vunpack.c.h.s8.bf16 %v17094_v58  ;;  %v1363_v37 = vunpack.c.h.s8.bf16 %v17099_v32  ;;  %v52_v58 = vld [vmem:[%s23263_s0 + $0x40] sm:$0xff]  ;;  %v65_v32 = vld [vmem:[%s23263_s0 + $0xa8] sm:$0xff] }
 0x149   :  { %6893 = vmatpush1.bf16.msra.mxu1 %v13392_v44  ;;  %6113 = vmatprep.subr.bf16.mxu0 %v13439_v40  ;;  %v17236_v44 = vpack.c.bf16 %v66_v50, %v53_v14  ;;  %v1398_v40 = vunpack.c.l.s8.bf16 %v17226_v21  ;;  %v13416_v48 = vcombine.low %v1351_v30, %v1355_v29  ;;  %v1367_v50 = vunpack.c.h.s8.bf16 %v17130_v38  ;;  %v17274_v30 = vld [vmem:[%s23264_s1 + $0xa40] sm:$0xff]  ;;  %v17279_v29 = vld [vmem:[%s23264_s1 + $0xa50] sm:$0xff] }
 0x14a   :  { %6894 = vmatprep.subr.bf16.mxu1 %v13401_v17  ;;  %23759 = vst [vmem:[#allocation109_spill] sm:$0xff] %v17233_v1  ;;  %v13446_v17 = vcombine.low %v1382_v52, %v1386_v20  ;;  %v17246_v20 = vld [vmem:[%s23264_s1 + $0xa20] sm:$0xff]  ;;  %v17251_v52 = vld [vmem:[%s23264_s1 + $0xa30] sm:$0xff]  ;;  %v13425_v14 = vcombine.high %v1359_v3, %v1363_v37  ;;  %v13424_v38 = vcombine.low %v1359_v3, %v1363_v37 }
 0x14b   :  { %23760 = vst [vmem:[#allocation110_spill] sm:$0xff] %v17236_v44 }
 0x14c   :  { %6838 = vmatmul.mubr.bf16.gmra.mrb[48].mxu1 %v17081_v8  ;;  %6114 = vmatpush1.bf16.msra.mxu0 %v13438_v35  ;;  %v13463_v35 = vcombine.high %v1398_v40, %v1402_v26 }
 0x14d   :  { %6895 = vmatpush1.bf16.msra.mxu1 %v13400_v53  ;;  %6115 = vmatprep.subr.bf16.mxu0 %v13447_v10  ;;  %v1406_v53 = vunpack.c.l.s8.bf16 %v17246_v20  ;;  %v1410_v10 = vunpack.c.l.s8.bf16 %v17251_v52 }
 0x14e   :  { %6896 = vmatprep.subr.bf16.mxu1 %v13409_v56  ;;  %6847 = vmatprep.mubr.bf16.mxu1 %v17084_v22  ;;  %v1371_v56 = vunpack.c.h.s8.bf16 %v17135_v63  ;;  %v1418_v22 = vunpack.c.l.s8.bf16 %v17279_v29 }
 0x14f   :  { %6077 = vmatmul.mubr.bf16.gmra.mrb[28].mxu0 %v17233_v1  ;;  %v13471_v63 = vcombine.high %v1406_v53, %v1410_v10  ;;  %v13470_v3 = vcombine.low %v1406_v53, %v1410_v10  ;;  %v105_v53 = vld [vmem:[%s23263_s0 + $0x1e8] sm:$0xff]  ;;  %v118_v10 = vld [vmem:[%s23263_s0 + $0x250] sm:$0xff] }
 0x150   :  { %6116 = vmatpush1.bf16.msra.mxu0 %v13446_v17  ;;  %6119 = vmatprep.mubr.bf16.mxu0 %v17236_v44  ;;  %v17281_v17 = vpack.c.bf16 %v65_v32, %v52_v58  ;;  %v13433_v8 = vcombine.high %v1367_v50, %v1371_v56  ;;  %v1375_v58 = vunpack.c.h.s8.bf16 %v17150_v34  ;;  %v1379_v32 = vunpack.c.h.s8.bf16 %v17155_v39  ;;  %v78_v34 = vld [vmem:[%s23263_s0 + $0x110] sm:$0xff]  ;;  %v91_v39 = vld [vmem:[%s23263_s0 + $0x178] sm:$0xff] }
 0x151   :  { %6897 = vmatpush1.bf16.msra.mxu1 %v13408_v43  ;;  %6117 = vmatprep.subr.bf16.mxu0 %v13455_v25  ;;  %v17284_v43 = vpack.c.bf16 %v92_v55, %v79_v49  ;;  %v1414_v25 = vunpack.c.l.s8.bf16 %v17274_v30  ;;  %v13432_v37 = vcombine.low %v1367_v50, %v1371_v56  ;;  %v1383_v55 = vunpack.c.h.s8.bf16 %v17178_v9  ;;  %v17322_v50 = vld [vmem:[%s23264_s1 + $0xa80] sm:$0xff]  ;;  %v17327_v56 = vld [vmem:[%s23264_s1 + $0xa90] sm:$0xff] }
 0x152   :  { %6898 = vmatprep.subr.bf16.mxu1 %v13417_v18  ;;  %23761 = vst [vmem:[#allocation111_spill] sm:$0xff] %v17281_v17  ;;  %v13462_v18 = vcombine.low %v1398_v40, %v1402_v26  ;;  %v17294_v26 = vld [vmem:[%s23264_s1 + $0xa60] sm:$0xff]  ;;  %v17299_v40 = vld [vmem:[%s23264_s1 + $0xa70] sm:$0xff]  ;;  %v13441_v49 = vcombine.high %v1375_v58, %v1379_v32  ;;  %v13440_v9 = vcombine.low %v1375_v58, %v1379_v32 }
 0x153   :  { %23762 = vst [vmem:[#allocation112_spill] sm:$0xff] %v17284_v43 }
 0x154   :  { %6848 = vmatmul.mubr.bf16.gmra.mrb[52].mxu1 %v17137_v19  ;;  %6118 = vmatpush1.bf16.msra.mxu0 %v13454_v11  ;;  %v13479_v11 = vcombine.high %v1414_v25, %v1418_v22 }
 0x155   :  { %6899 = vmatpush1.bf16.msra.mxu1 %v13416_v48  ;;  %6200 = vmatprep.subr.bf16.mxu0 %v13463_v35  ;;  %v1422_v48 = vunpack.c.l.s8.bf16 %v17294_v26  ;;  %v1426_v35 = vunpack.c.l.s8.bf16 %v17299_v40 }
 0x156   :  { %6900 = vmatprep.subr.bf16.mxu1 %v13425_v14  ;;  %6857 = vmatprep.mubr.bf16.mxu1 %v17140_v12  ;;  %v1387_v14 = vunpack.c.h.s8.bf16 %v17183_v59  ;;  %v1434_v12 = vunpack.c.l.s8.bf16 %v17327_v56 }
 0x157   :  { %6120 = vmatmul.mubr.bf16.vlgmr.msra.gmra.mrb[0].mxu0 %v17281_v17  ;;  %v13487_v59 = vcombine.high %v1422_v48, %v1426_v35  ;;  %v13486_v58 = vcombine.low %v1422_v48, %v1426_v35  ;;  %v131_v48 = vld [vmem:[%s23263_s0 + $0x2b8] sm:$0xff]  ;;  %v144_v35 = vld [vmem:[%s23263_s0 + $0x320] sm:$0xff] }
 0x158   :  { %6201 = vmatpush1.bf16.msra.mxu0 %v13462_v18  ;;  %6129 = vmatprep.mubr.bf16.mxu0 %v17284_v43  ;;  %v17329_v18 = vpack.c.bf16 %v91_v39, %v78_v34  ;;  %v13449_v19 = vcombine.high %v1383_v55, %v1387_v14  ;;  %v1391_v34 = vunpack.c.h.s8.bf16 %v17198_v60  ;;  %v1395_v39 = vunpack.c.h.s8.bf16 %v17203_v6  ;;  %v104_v60 = vld [vmem:[%s23263_s0 + $0x1e0] sm:$0xff]  ;;  %v117_v6 = vld [vmem:[%s23263_s0 + $0x248] sm:$0xff] }
 0x159   :  { %6901 = vmatpush1.bf16.msra.mxu1 %v13424_v38  ;;  %6202 = vmatprep.subr.bf16.mxu0 %v13471_v63  ;;  %v17332_v38 = vpack.c.bf16 %v118_v10, %v105_v53  ;;  %v1430_v63 = vunpack.c.l.s8.bf16 %v17322_v50  ;;  %v13448_v32 = vcombine.low %v1383_v55, %v1387_v14  ;;  %v1399_v10 = vunpack.c.h.s8.bf16 %v17226_v21  ;;  %v17370_v55 = vld [vmem:[%s23264_s1 + $0xac0] sm:$0xff]  ;;  %v17375_v14 = vld [vmem:[%s23264_s1 + $0xad0] sm:$0xff] }
 0x15a   :  { %6902 = vmatprep.subr.bf16.mxu1 %v13433_v8  ;;  %23763 = vst [vmem:[#allocation113_spill] sm:$0xff] %v17329_v18  ;;  %v13478_v8 = vcombine.low %v1414_v25, %v1418_v22  ;;  %v17342_v22 = vld [vmem:[%s23264_s1 + $0xaa0] sm:$0xff]  ;;  %v17347_v25 = vld [vmem:[%s23264_s1 + $0xab0] sm:$0xff]  ;;  %v13457_v53 = vcombine.high %v1391_v34, %v1395_v39  ;;  %v13456_v21 = vcombine.low %v1391_v34, %v1395_v39 }
 0x15b   :  { %23764 = vst [vmem:[#allocation114_spill] sm:$0xff] %v17332_v38 }
 0x15c   :  { %6858 = vmatmul.mubr.bf16.gmra.mrb[56].mxu1 %v17185_v62  ;;  %6203 = vmatpush1.bf16.msra.mxu0 %v13470_v3  ;;  %v13495_v3 = vcombine.high %v1430_v63, %v1434_v12 }
 0x15d   :  { %6903 = vmatpush1.bf16.msra.mxu1 %v13432_v37  ;;  %6204 = vmatprep.subr.bf16.mxu0 %v13479_v11  ;;  %v1438_v37 = vunpack.c.l.s8.bf16 %v17342_v22  ;;  %v1442_v11 = vunpack.c.l.s8.bf16 %v17347_v25 }
 0x15e   :  { %6904 = vmatprep.subr.bf16.mxu1 %v13441_v49  ;;  %6867 = vmatprep.mubr.bf16.mxu1 %v17188_v7  ;;  %v1403_v49 = vunpack.c.h.s8.bf16 %v17231_v28  ;;  %v1450_v7 = vunpack.c.l.s8.bf16 %v17375_v14 }
 0x15f   :  { %6130 = vmatmul.mubr.bf16.gmra.mrb[4].mxu0 %v17329_v18  ;;  %v13503_v28 = vcombine.high %v1438_v37, %v1442_v11  ;;  %v13502_v34 = vcombine.low %v1438_v37, %v1442_v11  ;;  %v157_v37 = vld [vmem:[%s23263_s0 + $0x388] sm:$0xff]  ;;  %v170_v11 = vld [vmem:[%s23263_s0 + $0x3f0] sm:$0xff] }
 0x160   :  { %6205 = vmatpush1.bf16.msra.mxu0 %v13478_v8  ;;  %6139 = vmatprep.mubr.bf16.mxu0 %v17332_v38  ;;  %v17377_v8 = vpack.c.bf16 %v117_v6, %v104_v60  ;;  %v13465_v62 = vcombine.high %v1399_v10, %v1403_v49  ;;  %v1407_v60 = vunpack.c.h.s8.bf16 %v17246_v20  ;;  %v1411_v6 = vunpack.c.h.s8.bf16 %v17251_v52  ;;  %v130_v20 = vld [vmem:[%s23263_s0 + $0x2b0] sm:$0xff]  ;;  %v143_v52 = vld [vmem:[%s23263_s0 + $0x318] sm:$0xff] }
 0x161   :  { %6905 = vmatpush1.bf16.msra.mxu1 %v13440_v9  ;;  %6206 = vmatprep.subr.bf16.mxu0 %v13487_v59  ;;  %v17380_v9 = vpack.c.bf16 %v144_v35, %v131_v48  ;;  %v1446_v59 = vunpack.c.l.s8.bf16 %v17370_v55  ;;  %v13464_v39 = vcombine.low %v1399_v10, %v1403_v49  ;;  %v1415_v35 = vunpack.c.h.s8.bf16 %v17274_v30  ;;  %v17418_v10 = vld [vmem:[%s23264_s1 + $0xb00] sm:$0xff]  ;;  %v17423_v49 = vld [vmem:[%s23264_s1 + $0xb10] sm:$0xff] }
 0x162   :  { %6906 = vmatprep.subr.bf16.mxu1 %v13449_v19  ;;  %23765 = vst [vmem:[#allocation115_spill] sm:$0xff] %v17377_v8  ;;  %v13494_v19 = vcombine.low %v1430_v63, %v1434_v12  ;;  %v17390_v12 = vld [vmem:[%s23264_s1 + $0xae0] sm:$0xff]  ;;  %v17395_v63 = vld [vmem:[%s23264_s1 + $0xaf0] sm:$0xff]  ;;  %v13473_v48 = vcombine.high %v1407_v60, %v1411_v6  ;;  %v13472_v30 = vcombine.low %v1407_v60, %v1411_v6 }
 0x163   :  { %23766 = vst [vmem:[#allocation116_spill] sm:$0xff] %v17380_v9 }
 0x164   :  { %6868 = vmatmul.mubr.bf16.gmra.mrb[60].mxu1 %v17233_v1  ;;  %6207 = vmatpush1.bf16.msra.mxu0 %v13486_v58  ;;  %v13511_v58 = vcombine.high %v1446_v59, %v1450_v7 }
 0x165   :  { %6907 = vmatpush1.bf16.msra.mxu1 %v13448_v32  ;;  %6208 = vmatprep.subr.bf16.mxu0 %v13495_v3  ;;  %v1454_v32 = vunpack.c.l.s8.bf16 %v17390_v12  ;;  %v1458_v3 = vunpack.c.l.s8.bf16 %v17395_v63 }
 0x166   :  { %6908 = vmatprep.subr.bf16.mxu1 %v13457_v53  ;;  %6910 = vmatprep.mubr.bf16.mxu1 %v17236_v44  ;;  %v1419_v53 = vunpack.c.h.s8.bf16 %v17279_v29  ;;  %v1466_v44 = vunpack.c.l.s8.bf16 %v17423_v49 }
 0x167   :  { %6140 = vmatmul.mubr.bf16.gmra.mrb[8].mxu0 %v17377_v8  ;;  %v13519_v29 = vcombine.high %v1454_v32, %v1458_v3  ;;  %v13518_v60 = vcombine.low %v1454_v32, %v1458_v3  ;;  %v183_v32 = vld [vmem:[%s23263_s0 + $0x458] sm:$0xff]  ;;  %v196_v3 = vld [vmem:[%s23263_s0 + $0x4c0] sm:$0xff] }
 0x168   :  { %6209 = vmatpush1.bf16.msra.mxu0 %v13494_v19  ;;  %6149 = vmatprep.mubr.bf16.mxu0 %v17380_v9  ;;  %v17425_v19 = vpack.c.bf16 %v143_v52, %v130_v20  ;;  %v13481_v1 = vcombine.high %v1415_v35, %v1419_v53  ;;  %v1423_v20 = vunpack.c.h.s8.bf16 %v17294_v26  ;;  %v1427_v52 = vunpack.c.h.s8.bf16 %v17299_v40  ;;  %v156_v26 = vld [vmem:[%s23263_s0 + $0x380] sm:$0xff]  ;;  %v169_v40 = vld [vmem:[%s23263_s0 + $0x3e8] sm:$0xff] }
 0x169   :  { %6909 = vmatpush1.bf16.msra.mxu1 %v13456_v21  ;;  %6210 = vmatprep.subr.bf16.mxu0 %v13503_v28  ;;  %v17428_v21 = vpack.c.bf16 %v170_v11, %v157_v37  ;;  %v1462_v28 = vunpack.c.l.s8.bf16 %v17418_v10  ;;  %v13480_v6 = vcombine.low %v1415_v35, %v1419_v53  ;;  %v1431_v11 = vunpack.c.h.s8.bf16 %v17322_v50  ;;  %v17466_v35 = vld [vmem:[%s23264_s1 + $0xb40] sm:$0xff]  ;;  %v17471_v53 = vld [vmem:[%s23264_s1 + $0xb50] sm:$0xff] }
 0x16a   :  { %6991 = vmatprep.subr.bf16.mxu1 %v13465_v62  ;;  %23767 = vst [vmem:[#allocation117_spill] sm:$0xff] %v17425_v19  ;;  %v13510_v62 = vcombine.low %v1446_v59, %v1450_v7  ;;  %v17438_v7 = vld [vmem:[%s23264_s1 + $0xb20] sm:$0xff]  ;;  %v17443_v59 = vld [vmem:[%s23264_s1 + $0xb30] sm:$0xff]  ;;  %v13489_v37 = vcombine.high %v1423_v20, %v1427_v52  ;;  %v13488_v50 = vcombine.low %v1423_v20, %v1427_v52 }
 0x16b   :  { %23768 = vst [vmem:[#allocation118_spill] sm:$0xff] %v17428_v21 }
 0x16c   :  { %6911 = vmatmul.mubr.bf16.vlgmr.msra.gmra.mrb[32].mxu1 %v17281_v17  ;;  %6211 = vmatpush1.bf16.msra.mxu0 %v13502_v34  ;;  %v13527_v34 = vcombine.high %v1462_v28, %v1466_v44 }
 0x16d   :  { %6992 = vmatpush1.bf16.msra.mxu1 %v13464_v39  ;;  %6212 = vmatprep.subr.bf16.mxu0 %v13511_v58  ;;  %v1470_v39 = vunpack.c.l.s8.bf16 %v17438_v7  ;;  %v1474_v58 = vunpack.c.l.s8.bf16 %v17443_v59 }
 0x16e   :  { %6993 = vmatprep.subr.bf16.mxu1 %v13473_v48  ;;  %6920 = vmatprep.mubr.bf16.mxu1 %v17284_v43  ;;  %v1435_v48 = vunpack.c.h.s8.bf16 %v17327_v56  ;;  %v1482_v43 = vunpack.c.l.s8.bf16 %v17471_v53 }
 0x16f   :  { %6150 = vmatmul.mubr.bf16.gmra.mrb[12].mxu0 %v17425_v19  ;;  %v13535_v56 = vcombine.high %v1470_v39, %v1474_v58  ;;  %v13534_v20 = vcombine.low %v1470_v39, %v1474_v58  ;;  %v209_v39 = vld [vmem:[%s23263_s0 + $0x528] sm:$0xff]  ;;  %v222_v58 = vld [vmem:[%s23263_s0 + $0x590] sm:$0xff] }
 0x170   :  { %6213 = vmatpush1.bf16.msra.mxu0 %v13510_v62  ;;  %6159 = vmatprep.mubr.bf16.mxu0 %v17428_v21  ;;  %v17473_v62 = vpack.c.bf16 %v169_v40, %v156_v26  ;;  %v13497_v17 = vcombine.high %v1431_v11, %v1435_v48  ;;  %v1439_v26 = vunpack.c.h.s8.bf16 %v17342_v22  ;;  %v1443_v40 = vunpack.c.h.s8.bf16 %v17347_v25  ;;  %v182_v22 = vld [vmem:[%s23263_s0 + $0x450] sm:$0xff]  ;;  %v195_v25 = vld [vmem:[%s23263_s0 + $0x4b8] sm:$0xff] }
 0x171   :  { %6994 = vmatpush1.bf16.msra.mxu1 %v13472_v30  ;;  %6214 = vmatprep.subr.bf16.mxu0 %v13519_v29  ;;  %v17476_v30 = vpack.c.bf16 %v196_v3, %v183_v32  ;;  %v1478_v29 = vunpack.c.l.s8.bf16 %v17466_v35  ;;  %v13496_v52 = vcombine.low %v1431_v11, %v1435_v48  ;;  %v1447_v3 = vunpack.c.h.s8.bf16 %v17370_v55  ;;  %v17514_v11 = vld [vmem:[%s23264_s1 + $0xb80] sm:$0xff]  ;;  %v17519_v48 = vld [vmem:[%s23264_s1 + $0xb90] sm:$0xff] }
 0x172   :  { %6995 = vmatprep.subr.bf16.mxu1 %v13481_v1  ;;  %23769 = vst [vmem:[#allocation119_spill] sm:$0xff] %v17473_v62  ;;  %v13526_v1 = vcombine.low %v1462_v28, %v1466_v44  ;;  %v17486_v44 = vld [vmem:[%s23264_s1 + $0xb60] sm:$0xff]  ;;  %v17491_v28 = vld [vmem:[%s23264_s1 + $0xb70] sm:$0xff]  ;;  %v13505_v32 = vcombine.high %v1439_v26, %v1443_v40  ;;  %v13504_v55 = vcombine.low %v1439_v26, %v1443_v40 }
 0x173   :  { %23770 = vst [vmem:[#allocation120_spill] sm:$0xff] %v17476_v30 }
 0x174   :  { %6921 = vmatmul.mubr.bf16.gmra.mrb[36].mxu1 %v17329_v18  ;;  %6215 = vmatpush1.bf16.msra.mxu0 %v13518_v60  ;;  %v13543_v60 = vcombine.high %v1478_v29, %v1482_v43 }
 0x175   :  { %6996 = vmatpush1.bf16.msra.mxu1 %v13480_v6  ;;  %6216 = vmatprep.subr.bf16.mxu0 %v13527_v34  ;;  %v1486_v6 = vunpack.c.l.s8.bf16 %v17486_v44  ;;  %v1490_v34 = vunpack.c.l.s8.bf16 %v17491_v28 }
 0x176   :  { %6997 = vmatprep.subr.bf16.mxu1 %v13489_v37  ;;  %6930 = vmatprep.mubr.bf16.mxu1 %v17332_v38  ;;  %v1451_v37 = vunpack.c.h.s8.bf16 %v17375_v14  ;;  %v1498_v38 = vunpack.c.l.s8.bf16 %v17519_v48 }
 0x177   :  { %6160 = vmatmul.mubr.bf16.gmra.mrb[16].mxu0 %v17473_v62  ;;  %v13551_v14 = vcombine.high %v1486_v6, %v1490_v34  ;;  %v13550_v26 = vcombine.low %v1486_v6, %v1490_v34  ;;  %v235_v6 = vld [vmem:[%s23263_s0 + $0x5f8] sm:$0xff]  ;;  %v248_v34 = vld [vmem:[%s23263_s0 + $0x660] sm:$0xff] }
 0x178   :  { %6217 = vmatpush1.bf16.msra.mxu0 %v13526_v1  ;;  %6169 = vmatprep.mubr.bf16.mxu0 %v17476_v30  ;;  %v17521_v1 = vpack.c.bf16 %v195_v25, %v182_v22  ;;  %v13513_v18 = vcombine.high %v1447_v3, %v1451_v37  ;;  %v1455_v22 = vunpack.c.h.s8.bf16 %v17390_v12  ;;  %v1459_v25 = vunpack.c.h.s8.bf16 %v17395_v63  ;;  %v208_v12 = vld [vmem:[%s23263_s0 + $0x520] sm:$0xff]  ;;  %v221_v63 = vld [vmem:[%s23263_s0 + $0x588] sm:$0xff] }
 0x179   :  { %6998 = vmatpush1.bf16.msra.mxu1 %v13488_v50  ;;  %6218 = vmatprep.subr.bf16.mxu0 %v13535_v56  ;;  %v17524_v50 = vpack.c.bf16 %v222_v58, %v209_v39  ;;  %v1494_v56 = vunpack.c.l.s8.bf16 %v17514_v11  ;;  %v13512_v40 = vcombine.low %v1447_v3, %v1451_v37  ;;  %v1463_v58 = vunpack.c.h.s8.bf16 %v17418_v10  ;;  %v17562_v3 = vld [vmem:[%s23264_s1 + $0xbc0] sm:$0xff]  ;;  %v17567_v37 = vld [vmem:[%s23264_s1 + $0xbd0] sm:$0xff] }
 0x17a   :  { %6999 = vmatprep.subr.bf16.mxu1 %v13497_v17  ;;  %23771 = vst [vmem:[#allocation121_spill] sm:$0xff] %v17521_v1  ;;  %v13542_v17 = vcombine.low %v1478_v29, %v1482_v43  ;;  %v17534_v43 = vld [vmem:[%s23264_s1 + $0xba0] sm:$0xff]  ;;  %v17539_v29 = vld [vmem:[%s23264_s1 + $0xbb0] sm:$0xff]  ;;  %v13521_v39 = vcombine.high %v1455_v22, %v1459_v25  ;;  %v13520_v10 = vcombine.low %v1455_v22, %v1459_v25 }
 0x17b   :  { %23772 = vst [vmem:[#allocation122_spill] sm:$0xff] %v17524_v50 }
 0x17c   :  { %6931 = vmatmul.mubr.bf16.gmra.mrb[40].mxu1 %v17377_v8  ;;  %6219 = vmatpush1.bf16.msra.mxu0 %v13534_v20  ;;  %v13559_v20 = vcombine.high %v1494_v56, %v1498_v38 }
 0x17d   :  { %7000 = vmatpush1.bf16.msra.mxu1 %v13496_v52  ;;  %6220 = vmatprep.subr.bf16.mxu0 %v13543_v60  ;;  %v1502_v52 = vunpack.c.l.s8.bf16 %v17534_v43  ;;  %v1506_v60 = vunpack.c.l.s8.bf16 %v17539_v29 }
 0x17e   :  { %7001 = vmatprep.subr.bf16.mxu1 %v13505_v32  ;;  %6940 = vmatprep.mubr.bf16.mxu1 %v17380_v9  ;;  %v1467_v32 = vunpack.c.h.s8.bf16 %v17423_v49  ;;  %v1514_v9 = vunpack.c.l.s8.bf16 %v17567_v37 }
 0x17f   :  { %6170 = vmatmul.mubr.bf16.gmra.mrb[20].mxu0 %v17521_v1  ;;  %v13567_v49 = vcombine.high %v1502_v52, %v1506_v60  ;;  %v13566_v22 = vcombine.low %v1502_v52, %v1506_v60  ;;  %v55_v52 = vld [vmem:[%s23263_s0 + $0x58] sm:$0xff]  ;;  %v68_v60 = vld [vmem:[%s23263_s0 + $0xc0] sm:$0xff] }
 0x180   :  { %6221 = vmatpush1.bf16.msra.mxu0 %v13542_v17  ;;  %6179 = vmatprep.mubr.bf16.mxu0 %v17524_v50  ;;  %v17569_v17 = vpack.c.bf16 %v221_v63, %v208_v12  ;;  %v13529_v8 = vcombine.high %v1463_v58, %v1467_v32  ;;  %v1471_v12 = vunpack.c.h.s8.bf16 %v17438_v7  ;;  %v1475_v63 = vunpack.c.h.s8.bf16 %v17443_v59  ;;  %v234_v7 = vld [vmem:[%s23263_s0 + $0x5f0] sm:$0xff]  ;;  %v247_v59 = vld [vmem:[%s23263_s0 + $0x658] sm:$0xff] }
 0x181   :  { %7002 = vmatpush1.bf16.msra.mxu1 %v13504_v55  ;;  %6222 = vmatprep.subr.bf16.mxu0 %v13551_v14  ;;  %v17572_v55 = vpack.c.bf16 %v248_v34, %v235_v6  ;;  %v1510_v14 = vunpack.c.l.s8.bf16 %v17562_v3  ;;  %v13528_v25 = vcombine.low %v1463_v58, %v1467_v32  ;;  %v1479_v34 = vunpack.c.h.s8.bf16 %v17466_v35  ;;  %v17610_v58 = vld [vmem:[%s23264_s1 + $0x8] sm:$0xff]  ;;  %v17615_v32 = vld [vmem:[%s23264_s1 + $0x18] sm:$0xff] }
 0x182   :  { %7003 = vmatprep.subr.bf16.mxu1 %v13513_v18  ;;  %23773 = vst [vmem:[#allocation123_spill] sm:$0xff] %v17569_v17  ;;  %v13558_v18 = vcombine.low %v1494_v56, %v1498_v38  ;;  %v17582_v38 = vld [vmem:[%s23264_s1 + $0xbe0] sm:$0xff]  ;;  %v17587_v56 = vld [vmem:[%s23264_s1 + $0xbf0] sm:$0xff]  ;;  %v13537_v6 = vcombine.high %v1471_v12, %v1475_v63  ;;  %v13536_v35 = vcombine.low %v1471_v12, %v1475_v63 }
 0x183   :  { %23774 = vst [vmem:[#allocation124_spill] sm:$0xff] %v17572_v55 }
 0x184   :  { %6941 = vmatmul.mubr.bf16.gmra.mrb[44].mxu1 %v17425_v19  ;;  %6223 = vmatpush1.bf16.msra.mxu0 %v13550_v26  ;;  %v13575_v26 = vcombine.high %v1510_v14, %v1514_v9 }
 0x185   :  { %7004 = vmatpush1.bf16.msra.mxu1 %v13512_v40  ;;  %6224 = vmatprep.subr.bf16.mxu0 %v13559_v20  ;;  %v1518_v40 = vunpack.c.l.s8.bf16 %v17582_v38  ;;  %v1522_v20 = vunpack.c.l.s8.bf16 %v17587_v56 }
 0x186   :  { %7005 = vmatprep.subr.bf16.mxu1 %v13521_v39  ;;  %6950 = vmatprep.mubr.bf16.mxu1 %v17428_v21  ;;  %v1483_v39 = vunpack.c.h.s8.bf16 %v17471_v53  ;;  %v764_v21 = vunpack.c.l.s8.bf16 %v17615_v32 }
 0x187   :  { %6180 = vmatmul.mubr.bf16.gmra.mrb[24].mxu0 %v17569_v17  ;;  %v13583_v53 = vcombine.high %v1518_v40, %v1522_v20  ;;  %v13582_v12 = vcombine.low %v1518_v40, %v1522_v20  ;;  %v81_v40 = vld [vmem:[%s23263_s0 + $0x128] sm:$0xff]  ;;  %v94_v20 = vld [vmem:[%s23263_s0 + $0x190] sm:$0xff] }
 0x188   :  { %6225 = vmatpush1.bf16.msra.mxu0 %v13558_v18  ;;  %6189 = vmatprep.mubr.bf16.mxu0 %v17572_v55  ;;  %v17617_v18 = vpack.c.bf16 %v247_v59, %v234_v7  ;;  %v13545_v19 = vcombine.high %v1479_v34, %v1483_v39  ;;  %v1487_v7 = vunpack.c.h.s8.bf16 %v17486_v44  ;;  %v1491_v59 = vunpack.c.h.s8.bf16 %v17491_v28  ;;  %v54_v44 = vld [vmem:[%s23263_s0 + $0x50] sm:$0xff]  ;;  %v67_v28 = vld [vmem:[%s23263_s0 + $0xb8] sm:$0xff] }
 0x189   :  { %7006 = vmatpush1.bf16.msra.mxu1 %v13520_v10  ;;  %6226 = vmatprep.subr.bf16.mxu0 %v13567_v49  ;;  %v17620_v10 = vpack.c.bf16 %v68_v60, %v55_v52  ;;  %v760_v49 = vunpack.c.l.s8.bf16 %v17610_v58  ;;  %v13544_v63 = vcombine.low %v1479_v34, %v1483_v39  ;;  %v1495_v60 = vunpack.c.h.s8.bf16 %v17514_v11  ;;  %v17658_v34 = vld [vmem:[%s23264_s1 + $0x48] sm:$0xff]  ;;  %v17663_v39 = vld [vmem:[%s23264_s1 + $0x58] sm:$0xff] }
 0x18a   :  { %7007 = vmatprep.subr.bf16.mxu1 %v13529_v8  ;;  %23775 = vst [vmem:[#allocation125_spill] sm:$0xff] %v17617_v18  ;;  %v13574_v8 = vcombine.low %v1510_v14, %v1514_v9  ;;  %v17630_v9 = vld [vmem:[%s23264_s1 + $0x28] sm:$0xff]  ;;  %v17635_v14 = vld [vmem:[%s23264_s1 + $0x38] sm:$0xff]  ;;  %v13553_v52 = vcombine.high %v1487_v7, %v1491_v59  ;;  %v13552_v11 = vcombine.low %v1487_v7, %v1491_v59 }
 0x18b   :  { %23776 = vst [vmem:[#allocation126_spill] sm:$0xff] %v17620_v10 }
 0x18c   :  { %6951 = vmatmul.mubr.bf16.gmra.mrb[48].mxu1 %v17473_v62  ;;  %6227 = vmatpush1.bf16.msra.mxu0 %v13566_v22  ;;  %v12827_v22 = vcombine.high %v760_v49, %v764_v21 }
 0x18d   :  { %7008 = vmatpush1.bf16.msra.mxu1 %v13528_v25  ;;  %6228 = vmatprep.subr.bf16.mxu0 %v13575_v26  ;;  %v768_v25 = vunpack.c.l.s8.bf16 %v17630_v9  ;;  %v772_v26 = vunpack.c.l.s8.bf16 %v17635_v14 }
 0x18e   :  { %7009 = vmatprep.subr.bf16.mxu1 %v13537_v6  ;;  %6960 = vmatprep.mubr.bf16.mxu1 %v17476_v30  ;;  %v1499_v6 = vunpack.c.h.s8.bf16 %v17519_v48  ;;  %v780_v30 = vunpack.c.l.s8.bf16 %v17663_v39 }
 0x18f   :  { %6190 = vmatmul.mubr.bf16.gmra.mrb[28].mxu0 %v17617_v18  ;;  %v12835_v48 = vcombine.high %v768_v25, %v772_v26  ;;  %v12834_v7 = vcombine.low %v768_v25, %v772_v26  ;;  %v107_v25 = vld [vmem:[%s23263_s0 + $0x1f8] sm:$0xff]  ;;  %v120_v26 = vld [vmem:[%s23263_s0 + $0x260] sm:$0xff] }
 0x190   :  { %6229 = vmatpush1.bf16.msra.mxu0 %v13574_v8  ;;  %6232 = vmatprep.mubr.bf16.mxu0 %v17620_v10  ;;  %v17665_v8 = vpack.c.bf16 %v67_v28, %v54_v44  ;;  %v13561_v62 = vcombine.high %v1495_v60, %v1499_v6  ;;  %v1503_v44 = vunpack.c.h.s8.bf16 %v17534_v43  ;;  %v1507_v28 = vunpack.c.h.s8.bf16 %v17539_v29  ;;  %v80_v43 = vld [vmem:[%s23263_s0 + $0x120] sm:$0xff]  ;;  %v93_v29 = vld [vmem:[%s23263_s0 + $0x188] sm:$0xff] }
 0x191   :  { %7010 = vmatpush1.bf16.msra.mxu1 %v13536_v35  ;;  %6230 = vmatprep.subr.bf16.mxu0 %v13583_v53  ;;  %v17668_v35 = vpack.c.bf16 %v94_v20, %v81_v40  ;;  %v776_v53 = vunpack.c.l.s8.bf16 %v17658_v34  ;;  %v13560_v59 = vcombine.low %v1495_v60, %v1499_v6  ;;  %v1511_v20 = vunpack.c.h.s8.bf16 %v17562_v3  ;;  %v17706_v60 = vld [vmem:[%s23264_s1 + $0x88] sm:$0xff]  ;;  %v17711_v6 = vld [vmem:[%s23264_s1 + $0x98] sm:$0xff] }
 0x192   :  { %7011 = vmatprep.subr.bf16.mxu1 %v13545_v19  ;;  %23777 = vst [vmem:[#allocation127_spill] sm:$0xff] %v17665_v8  ;;  %v12826_v19 = vcombine.low %v760_v49, %v764_v21  ;;  %v17678_v21 = vld [vmem:[%s23264_s1 + $0x68] sm:$0xff]  ;;  %v17683_v49 = vld [vmem:[%s23264_s1 + $0x78] sm:$0xff]  ;;  %v13569_v40 = vcombine.high %v1503_v44, %v1507_v28  ;;  %v13568_v3 = vcombine.low %v1503_v44, %v1507_v28 }
 0x193   :  { %23778 = vst [vmem:[#allocation128_spill] sm:$0xff] %v17668_v35 }
 0x194   :  { %6961 = vmatmul.mubr.bf16.gmra.mrb[52].mxu1 %v17521_v1  ;;  %6231 = vmatpush1.bf16.msra.mxu0 %v13582_v12  ;;  %v12843_v12 = vcombine.high %v776_v53, %v780_v30 }
 0x195   :  { %7012 = vmatpush1.bf16.msra.mxu1 %v13544_v63  ;;  %7217 = vmatprep.subr.bf16.mxu0 %v12827_v22  ;;  %v784_v63 = vunpack.c.l.s8.bf16 %v17678_v21  ;;  %v788_v22 = vunpack.c.l.s8.bf16 %v17683_v49 }
 0x196   :  { %7013 = vmatprep.subr.bf16.mxu1 %v13553_v52  ;;  %6970 = vmatprep.mubr.bf16.mxu1 %v17524_v50  ;;  %v1515_v52 = vunpack.c.h.s8.bf16 %v17567_v37  ;;  %v796_v50 = vunpack.c.l.s8.bf16 %v17711_v6 }
 0x197   :  { %6233 = vmatmul.mubr.bf16.vlgmr.msra.gmra.mrb[0].mxu0 %v17665_v8  ;;  %v12851_v37 = vcombine.high %v784_v63, %v788_v22  ;;  %v12850_v44 = vcombine.low %v784_v63, %v788_v22  ;;  %v133_v63 = vld [vmem:[%s23263_s0 + $0x2c8] sm:$0xff]  ;;  %v146_v22 = vld [vmem:[%s23263_s0 + $0x330] sm:$0xff] }
 0x198   :  { %7218 = vmatpush1.bf16.msra.mxu0 %v12826_v19  ;;  %6242 = vmatprep.mubr.bf16.mxu0 %v17668_v35  ;;  %v17713_v19 = vpack.c.bf16 %v93_v29, %v80_v43  ;;  %v13577_v1 = vcombine.high %v1511_v20, %v1515_v52  ;;  %v1519_v43 = vunpack.c.h.s8.bf16 %v17582_v38  ;;  %v1523_v29 = vunpack.c.h.s8.bf16 %v17587_v56  ;;  %v106_v38 = vld [vmem:[%s23263_s0 + $0x1f0] sm:$0xff]  ;;  %v119_v56 = vld [vmem:[%s23263_s0 + $0x258] sm:$0xff] }
 0x199   :  { %7014 = vmatpush1.bf16.msra.mxu1 %v13552_v11  ;;  %7219 = vmatprep.subr.bf16.mxu0 %v12835_v48  ;;  %v17716_v11 = vpack.c.bf16 %v120_v26, %v107_v25  ;;  %v792_v48 = vunpack.c.l.s8.bf16 %v17706_v60  ;;  %v13576_v28 = vcombine.low %v1511_v20, %v1515_v52  ;;  %v17752_v26 = vld [vmem:[%s23264_s1 + $0xc8] sm:$0xff]  ;;  %v17759_v20 = vpack.c.bf16 %v119_v56, %v106_v38 }
 0x19a   :  { %7015 = vmatprep.subr.bf16.mxu1 %v13561_v62  ;;  %23779 = vst [vmem:[#allocation129_spill] sm:$0xff] %v17713_v19  ;;  %v12842_v62 = vcombine.low %v776_v53, %v780_v30  ;;  %v17726_v30 = vld [vmem:[%s23264_s1 + $0xa8] sm:$0xff]  ;;  %v17731_v53 = vld [vmem:[%s23264_s1 + $0xb8] sm:$0xff]  ;;  %v13585_v25 = vcombine.high %v1519_v43, %v1523_v29 }
 0x19b   :  { %23780 = vst [vmem:[#allocation130_spill] sm:$0xff] %v17716_v11  ;;  %23781 = vst [vmem:[#allocation131_spill] sm:$0xff] %v17759_v20  ;;  %v12858_v52 = vcombine.low %v792_v48, %v796_v50  ;;  %v17770_v38 = vld [vmem:[%s23264_s1 + $0xe8] sm:$0xff] }
 0x19c   :  { %6971 = vmatmul.mubr.bf16.gmra.mrb[56].mxu1 %v17569_v17  ;;  %7220 = vmatpush1.bf16.msra.mxu0 %v12834_v7  ;;  %v12859_v7 = vcombine.high %v792_v48, %v796_v50  ;;  %v17775_v50 = vld [vmem:[%s23264_s1 + $0xf8] sm:$0xff]  ;;  %v15125_v48 = vld [vmem:[%s23264_s1 + $0xc20] sm:$0xff] }
 0x19d   :  { %7016 = vmatpush1.bf16.msra.mxu1 %v13560_v59  ;;  %7221 = vmatprep.subr.bf16.mxu0 %v12843_v12  ;;  %v800_v59 = vunpack.c.l.s8.bf16 %v17726_v30  ;;  %v804_v12 = vunpack.c.l.s8.bf16 %v17731_v53 }
 0x19e   :  { %7017 = vmatprep.subr.bf16.mxu1 %v13569_v40  ;;  %6980 = vmatprep.mubr.bf16.mxu1 %v17572_v55  ;;  %v17757_v40 = vld [vmem:[%s23264_s1 + $0xd8] sm:$0xff] }
 0x19f   :  { %6243 = vmatmul.mubr.bf16.gmra.mrb[4].mxu0 %v17713_v19  ;;  %v812_v55 = vunpack.c.l.s8.bf16 %v17757_v40  ;;  %v12866_v56 = vcombine.low %v800_v59, %v804_v12 }
 0x1a0   :  { %7222 = vmatpush1.bf16.msra.mxu0 %v12842_v62  ;;  %6252 = vmatprep.mubr.bf16.mxu0 %v17716_v11  ;;  %v17762_v62 = vpack.c.bf16 %v146_v22, %v133_v63  ;;  %v816_v22 = vunpack.c.l.s8.bf16 %v17770_v38 }
 0x1a1   :  { %7018 = vmatpush1.bf16.msra.mxu1 %v13568_v3  ;;  %7223 = vmatprep.subr.bf16.mxu0 %v12851_v37  ;;  %v12867_v3 = vcombine.high %v800_v59, %v804_v12  ;;  %v808_v37 = vunpack.c.l.s8.bf16 %v17752_v26  ;;  %v159_v59 = vld [vmem:[%s23263_s0 + $0x398] sm:$0xff]  ;;  %v172_v12 = vld [vmem:[%s23263_s0 + $0x400] sm:$0xff] }
 0x1a2   :  { %7019 = vmatprep.subr.bf16.mxu1 %v13577_v1  ;;  %23782 = vst [vmem:[#allocation132_spill] sm:$0xff] %v17762_v62  ;;  %v13584_v1 = vcombine.low %v1519_v43, %v1523_v29  ;;  %v1535_v43 = vunpack.c.h.s8.bf16 %v15125_v48  ;;  %v15126_v29 = vld [vmem:[%s23264_s1 + $0xc30] sm:$0xff]  ;;  %v15127_v48 = vld [vmem:[%s23264_s1 + $0xc40] sm:$0xff]  ;;  %v17819_v36 = vpack.c.bf16 %v172_v12, %v159_v59 }
 0x1a3   :  { %v12875_v63 = vcombine.high %v808_v37, %v812_v55  ;;  %v12874_v17 = vcombine.low %v808_v37, %v812_v55  ;;  %v17833_v55 = vld [vmem:[%s23264_s1 + $0x138] sm:$0xff]  ;;  %v15129_v37 = vld [vmem:[%s23264_s1 + $0xc60] sm:$0xff]  ;;  %v158_v12 = vld [vmem:[%s23263_s0 + $0x390] sm:$0xff] }
 0x1a4   :  { %6981 = vmatmul.mubr.bf16.gmra.mrb[60].mxu1 %v17617_v18  ;;  %7224 = vmatpush1.bf16.msra.mxu0 %v12850_v44  ;;  %v1539_v44 = vunpack.c.h.s8.bf16 %v15126_v29  ;;  %v1543_v29 = vunpack.c.h.s8.bf16 %v15127_v48  ;;  %23786 = vst [vmem:[#allocation136_spill] sm:$0xff] %v17819_v36  ;;  %23788 = vst [vmem:[#allocation138_spill] sm:$0xff] %v17833_v55 }
 0x1a5   :  { %7020 = vmatpush1.bf16.msra.mxu1 %v13576_v28  ;;  %7225 = vmatprep.subr.bf16.mxu0 %v12859_v7  ;;  %v132_v28 = vld [vmem:[%s23263_s0 + $0x2c0] sm:$0xff]  ;;  %v145_v7 = vld [vmem:[%s23263_s0 + $0x328] sm:$0xff] }
 0x1a6   :  { %7021 = vmatprep.subr.bf16.mxu1 %v13585_v25  ;;  %7023 = vmatprep.mubr.bf16.mxu1 %v17620_v10  ;;  %v820_v25 = vunpack.c.l.s8.bf16 %v17775_v50  ;;  %v17816_v18 = vpack.c.bf16 %v145_v7, %v132_v28  ;;  %v13600_v13 = vcombine.low %v1535_v43, %v1539_v44  ;;  %v17828_v28 = vld [vmem:[%s23264_s1 + $0x128] sm:$0xff]  ;;  %v15131_v7 = vld [vmem:[%s23264_s1 + $0xc80] sm:$0x55] }
 0x1a7   :  { %6253 = vmatmul.mubr.bf16.gmra.mrb[8].mxu0 %v17759_v20  ;;  %23787 = vst [vmem:[#allocation137_spill] sm:$0xff] %v17828_v28 }
 0x1a8   :  { %7226 = vmatpush1.bf16.msra.mxu0 %v12858_v52  ;;  %6262 = vmatprep.mubr.bf16.mxu0 %v17762_v62  ;;  %v17803_v52 = vld [vmem:[%s23264_s1 + $0x108] sm:$0xff]  ;;  %23785 = vst [vmem:[#allocation135_spill] sm:$0xff] %v17816_v18  ;;  %v12883_v0 = vcombine.high %v816_v22, %v820_v25  ;;  %v12882_v59 = vcombine.low %v816_v22, %v820_v25  ;;  %v198_v22 = vld [vmem:[%s23263_s0 + $0x4d0] sm:$0xff] }
 0x1a9   :  { %7022 = vmatpush1.bf16.msra.mxu1 %v13584_v1  ;;  %7227 = vmatprep.subr.bf16.mxu0 %v12867_v3  ;;  %23783 = vst [vmem:[#allocation133_spill] sm:$0xff] %v17803_v52  ;;  %v17808_v1 = vld [vmem:[%s23264_s1 + $0x118] sm:$0xff]  ;;  %v13601_v3 = vcombine.high %v1535_v43, %v1539_v44  ;;  %v824_v51 = vunpack.c.l.s8.bf16 %v17803_v52  ;;  %v1551_v43 = vunpack.c.h.s8.bf16 %v15129_v37  ;;  %v15130_v44 = vld [vmem:[%s23264_s1 + $0xc70] sm:$0xff]  ;;  %v832_v37 = vunpack.c.l.s8.bf16 %v17828_v28  ;;  %v17863_v25 = vld [vmem:[%s23264_s1 + $0x148] sm:$0xff] }
 0x1aa   :  { %7104 = vmatprep.subr.bf16.mxu1 %v17028_v15  ;;  %23784 = vst [vmem:[#allocation134_spill] sm:$0xff] %v17808_v1  ;;  %v15128_v15 = vld [vmem:[%s23264_s1 + $0xc50] sm:$0xff]  ;;  %v828_v48 = vunpack.c.l.s8.bf16 %v17808_v1  ;;  %v840_v52 = vunpack.c.l.s8.bf16 %v17863_v25 }
 0x1ab   :  { %v1547_v10 = vunpack.c.h.s8.bf16 %v15128_v15 }
 0x1ac   :  { %7024 = vmatmul.mubr.bf16.vlgmr.msra.gmra.mrb[32].mxu1 %v17665_v8  ;;  %7228 = vmatpush1.bf16.msra.mxu0 %v12866_v56  ;;  %v1555_v56 = vunpack.c.h.s8.bf16 %v15130_v44  ;;  %v12891_v15 = vcombine.high %v824_v51, %v828_v48  ;;  %v836_v44 = vunpack.c.l.s8.bf16 %v17833_v55  ;;  %v12890_v55 = vcombine.low %v824_v51, %v828_v48 }
 0x1ad   :  { %7105 = vmatpush1.bf16.msra.mxu1 %v15336_v23  ;;  %7229 = vmatprep.subr.bf16.mxu0 %v12875_v63  ;;  %v13609_v23 = vcombine.high %v1543_v29, %v1547_v10  ;;  %v1559_v63 = vunpack.c.h.s8.bf16 %v15131_v7 }
 0x1ae   :  { %7033 = vmatprep.mubr.bf16.mxu1 %v17668_v35  ;;  %7106 = vmatprep.subr.bf16.mxu1 %v13601_v3  ;;  %v171_v3 = vld [vmem:[%s23263_s0 + $0x3f8] sm:$0xff]  ;;  %v13617_v35 = vcombine.high %v1551_v43, %v1555_v56  ;;  %v12899_v1 = vcombine.high %v832_v37, %v836_v44  ;;  %v13616_v51 = vcombine.low %v1551_v43, %v1555_v56  ;;  %v197_v43 = vld [vmem:[%s23263_s0 + $0x4c8] sm:$0xff] }
 0x1af   :  { %6263 = vmatmul.mubr.bf16.gmra.mrb[12].mxu0 %v17816_v18  ;;  %v17870_v7 = vpack.c.bf16 %v171_v3, %v158_v12  ;;  %v13625_v8 = vcombine.high %v1559_v63, %v1559_v63  ;;  %v13624_v48 = vcombine.low %v1559_v63, %v1559_v63  ;;  %v23437_v12 = vunpack.c.h.s8.bf16 %v17615_v32  ;;  %v224_v63 = vld [vmem:[%s23263_s0 + $0x5a0] sm:$0xff] }
 0x1b0   :  { %7230 = vmatpush1.bf16.msra.mxu0 %v12874_v17  ;;  %6272 = vmatprep.mubr.bf16.mxu0 %v17819_v36  ;;  %v185_v17 = vld [vmem:[%s23263_s0 + $0x468] sm:$0xff]  ;;  %v12898_v3 = vcombine.low %v832_v37, %v836_v44 }
 0x1b1   :  { %7231 = vmatprep.subr.bf16.mxu0 %v12883_v0  ;;  %7107 = vmatpush1.bf16.msra.mxu1 %v13600_v13  ;;  %v17868_v13 = vld [vmem:[%s23264_s1 + $0x158] sm:$0xff]  ;;  %v13608_v0 = vcombine.low %v1543_v29, %v1547_v10  ;;  %23789 = vst [vmem:[#allocation139_spill] sm:$0xff] %v17870_v7  ;;  %v17873_v28 = vpack.c.bf16 %v198_v22, %v185_v17  ;;  %v17881_v10 = vld [vmem:[%s23264_s1 + $0x168] sm:$0xff] }
 0x1b2   :  { %7108 = vmatprep.subr.bf16.mxu1 %v13609_v23  ;;  %v844_v4 = vunpack.c.l.s8.bf16 %v17868_v13  ;;  %v17886_v29 = vld [vmem:[%s23264_s1 + $0x178] sm:$0xff]  ;;  %v5621_v23 = vand.u32 %v13625_v8, %v15386_v61  ;;  %v848_v8 = vunpack.c.l.s8.bf16 %v17881_v10  ;;  %v17910_v37 = vld [vmem:[%s23264_s1 + $0x188] sm:$0xff]  ;;  %v5618_v44 = vand.u32 %v13624_v48, %v15386_v61 }
 0x1b3   :  { %23790 = vst [vmem:[#allocation140_spill] sm:$0xff] %v17873_v28  ;;  %v852_v56 = vunpack.c.l.s8.bf16 %v17886_v29  ;;  %v856_v48 = vunpack.c.l.s8.bf16 %v17910_v37  ;;  %v17977_v61 = vld [vmem:[%s23264_s1 + $0x1e8] sm:$0xff] }
 0x1b4   :  { %7034 = vmatmul.mubr.bf16.gmra.mrb[36].mxu1 %v17713_v19  ;;  %7232 = vmatpush1.bf16.msra.mxu0 %v12882_v59  ;;  %v23436_v59 = vunpack.c.h.s8.bf16 %v17610_v58  ;;  %v18013_v19 = vld [vmem:[%s23264_s1 + $0x228] sm:$0xff] }
 0x1b5   :  { %7233 = vmatprep.subr.bf16.mxu0 %v12891_v15  ;;  %7043 = vmatprep.mubr.bf16.mxu1 %v17716_v11  ;;  %v184_v15 = vld [vmem:[%s23263_s0 + $0x460] sm:$0xff] }
 0x1b6   :  { %7109 = vmatpush1.bf16.msra.mxu1 %v13608_v0  ;;  %v17918_v17 = vpack.c.bf16 %v197_v43, %v184_v15  ;;  %v12829_v22 = vcombine.high %v23436_v59, %v23437_v12  ;;  %v12906_v0 = vcombine.low %v840_v52, %v844_v4  ;;  %v223_v43 = vld [vmem:[%s23263_s0 + $0x598] sm:$0xff] }
 0x1b7   :  { %6273 = vmatmul.mubr.bf16.gmra.mrb[16].mxu0 %v17870_v7  ;;  %7110 = vmatprep.subr.bf16.mxu1 %v13617_v35  ;;  %v12907_v35 = vcombine.high %v840_v52, %v844_v4  ;;  %v12914_v4 = vcombine.low %v848_v8, %v852_v56  ;;  %v210_v52 = vld [vmem:[%s23263_s0 + $0x530] sm:$0xff] }
 0x1b8   :  { %7234 = vmatpush1.bf16.msra.mxu0 %v12890_v55  ;;  %6282 = vmatprep.mubr.bf16.mxu0 %v17873_v28  ;;  %v211_v55 = vld [vmem:[%s23263_s0 + $0x538] sm:$0xff]  ;;  %23791 = vst [vmem:[#allocation141_spill] sm:$0xff] %v17918_v17 }
 0x1b9   :  { %7235 = vmatprep.subr.bf16.mxu0 %v12899_v1  ;;  %v17915_v1 = vld [vmem:[%s23264_s1 + $0x198] sm:$0xff]  ;;  %v17925_v11 = vpack.c.bf16 %v224_v63, %v211_v55 }
 0x1ba   :  { %7111 = vmatpush1.bf16.msra.mxu1 %v13616_v51  ;;  %v12915_v51 = vcombine.high %v848_v8, %v852_v56  ;;  %v860_v15 = vunpack.c.l.s8.bf16 %v17915_v1  ;;  %v237_v8 = vld [vmem:[%s23263_s0 + $0x608] sm:$0xff]  ;;  %v250_v56 = vld [vmem:[%s23263_s0 + $0x670] sm:$0xff] }
 0x1bb   :  { %7112 = vmatprep.subr.bf16.mxu1 %v5621_v23  ;;  %23792 = vst [vmem:[#allocation142_spill] sm:$0xff] %v17925_v11  ;;  %v17933_v23 = vld [vmem:[%s23264_s1 + $0x1a8] sm:$0xff]  ;;  %v17969_v59 = vpack.c.bf16 %v250_v56, %v237_v8 }
 0x1bc   :  { %7044 = vmatmul.mubr.bf16.gmra.mrb[40].mxu1 %v17759_v20  ;;  %7236 = vmatpush1.bf16.msra.mxu0 %v12898_v3  ;;  %v17938_v3 = vld [vmem:[%s23264_s1 + $0x1b8] sm:$0xff]  ;;  %v864_v55 = vunpack.c.l.s8.bf16 %v17933_v23 }
 0x1bd   :  { %7237 = vmatprep.subr.bf16.mxu0 %v12907_v35  ;;  %7053 = vmatprep.mubr.bf16.mxu1 %v17762_v62  ;;  %v12923_v35 = vcombine.high %v856_v48, %v860_v15  ;;  %v868_v63 = vunpack.c.l.s8.bf16 %v17938_v3  ;;  %23794 = vst [vmem:[#allocation144_spill] sm:$0xff] %v17969_v59 }
 0x1be   :  { %7113 = vmatpush1.bf16.msra.mxu1 %v5618_v44  ;;  %v17959_v44 = vld [vmem:[%s23264_s1 + $0x1c8] sm:$0xff] }
 0x1bf   :  { %6283 = vmatmul.mubr.bf16.gmra.mrb[20].mxu0 %v17918_v17  ;;  %8008 = vmatprep.subr.bf16.mxu1 %v12829_v22  ;;  %v17964_v22 = vld [vmem:[%s23264_s1 + $0x1d8] sm:$0xff]  ;;  %v12931_v12 = vcombine.high %v864_v55, %v868_v63  ;;  %v872_v62 = vunpack.c.l.s8.bf16 %v17959_v44 }
 0x1c0   :  { %7238 = vmatpush1.bf16.msra.mxu0 %v12906_v0  ;;  %6292 = vmatprep.mubr.bf16.mxu0 %v17925_v11  ;;  %v17966_v0 = vpack.c.bf16 %v223_v43, %v210_v52  ;;  %v876_v20 = vunpack.c.l.s8.bf16 %v17964_v22  ;;  %v249_v52 = vld [vmem:[%s23263_s0 + $0x668] sm:$0xff] }
 0x1c1   :  { %7239 = vmatprep.subr.bf16.mxu0 %v12915_v51  ;;  %v12922_v51 = vcombine.low %v856_v48, %v860_v15  ;;  %v12930_v48 = vcombine.low %v864_v55, %v868_v63  ;;  %v236_v15 = vld [vmem:[%s23263_s0 + $0x600] sm:$0xff]  ;;  %v17997_v55 = vld [vmem:[%s23264_s1 + $0x208] sm:$0xff]  ;;  %v18002_v63 = vld [vmem:[%s23264_s1 + $0x218] sm:$0xff] }
 0x1c2   :  { %23793 = vst [vmem:[#allocation143_spill] sm:$0xff] %v17966_v0  ;;  %v12939_v43 = vcombine.high %v872_v62, %v876_v20  ;;  %v18004_v56 = vpack.c.bf16 %v249_v52, %v236_v15  ;;  %v18018_v15 = vld [vmem:[%s23264_s1 + $0x238] sm:$0xff] }
 0x1c3   :  { %v900_v52 = vunpack.c.l.s8.bf16 %v18018_v15 }
 0x1c4   :  { %7054 = vmatmul.mubr.bf16.gmra.mrb[44].mxu1 %v17816_v18  ;;  %7240 = vmatpush1.bf16.msra.mxu0 %v12914_v4  ;;  %v17982_v4 = vld [vmem:[%s23264_s1 + $0x1f8] sm:$0xff]  ;;  %23795 = vst [vmem:[#allocation145_spill] sm:$0xff] %v18004_v56  ;;  %v892_v18 = vunpack.c.l.s8.bf16 %v18002_v63 }
 0x1c5   :  { %7241 = vmatprep.subr.bf16.mxu0 %v12923_v35  ;;  %7063 = vmatprep.mubr.bf16.mxu1 %v17819_v36  ;;  %v880_v35 = vunpack.c.l.s8.bf16 %v17977_v61  ;;  %v884_v8 = vunpack.c.l.s8.bf16 %v17982_v4  ;;  %v888_v36 = vunpack.c.l.s8.bf16 %v17997_v55 }
 0x1c7   :  { %6293 = vmatmul.mubr.bf16.gmra.mrb[24].mxu0 %v17966_v0 }
 0x1c8   :  { %7242 = vmatpush1.bf16.msra.mxu0 %v12922_v51  ;;  %6302 = vmatprep.mubr.bf16.mxu0 %v17969_v59  ;;  %v12947_v51 = vcombine.high %v880_v35, %v884_v8 }
 0x1c9   :  { %7243 = vmatprep.subr.bf16.mxu0 %v12931_v12  ;;  %v12938_v12 = vcombine.low %v872_v62, %v876_v20  ;;  %v12946_v20 = vcombine.low %v880_v35, %v884_v8  ;;  %v12955_v62 = vcombine.high %v888_v36, %v892_v18  ;;  %v12954_v35 = vcombine.low %v888_v36, %v892_v18 }
 0x1cc   :  { %7064 = vmatmul.mubr.bf16.gmra.mrb[48].mxu1 %v17870_v7  ;;  %7244 = vmatpush1.bf16.msra.mxu0 %v12930_v48  ;;  %v896_v48 = vunpack.c.l.s8.bf16 %v18013_v19  ;;  %v18041_v7 = vld [vmem:[%s23264_s1 + $0x268] sm:$0xff] }
 0x1cd   :  { %7245 = vmatprep.subr.bf16.mxu0 %v12939_v43  ;;  %7073 = vmatprep.mubr.bf16.mxu1 %v17873_v28  ;;  %v18027_v43 = vld [vmem:[%s23264_s1 + $0x248] sm:$0xff]  ;;  %v18032_v28 = vld [vmem:[%s23264_s1 + $0x258] sm:$0xff] }
 0x1ce   :  { %v12963_v8 = vcombine.high %v896_v48, %v900_v52  ;;  %v12962_v36 = vcombine.low %v896_v48, %v900_v52 }
 0x1cf   :  { %6303 = vmatmul.mubr.bf16.gmra.mrb[28].mxu0 %v18004_v56 }
 0x1d0   :  { %7246 = vmatpush1.bf16.msra.mxu0 %v12938_v12  ;;  %7249 = vmatprep.mubr.bf16.mxu0 %v15495_v2  ;;  %v904_v12 = vunpack.c.l.s8.bf16 %v18027_v43  ;;  %v18046_v2 = vld [vmem:[%s23264_s1 + $0x278] sm:$0xff] }
 0x1d1   :  { %7247 = vmatprep.subr.bf16.mxu0 %v12947_v51  ;;  %v908_v51 = vunpack.c.l.s8.bf16 %v18032_v28 }
 0x1d3   :  { %v12971_v18 = vcombine.high %v904_v12, %v908_v51  ;;  %v12970_v48 = vcombine.low %v904_v12, %v908_v51 }
 0x1d4   :  { %7074 = vmatmul.mubr.bf16.gmra.mrb[52].mxu1 %v17918_v17  ;;  %7248 = vmatpush1.bf16.msra.mxu0 %v12946_v20  ;;  %v912_v20 = vunpack.c.l.s8.bf16 %v18041_v7  ;;  %v18060_v17 = vld [vmem:[%s23264_s1 + $0x298] sm:$0xff] }
 0x1d5   :  { %7330 = vmatprep.subr.bf16.mxu0 %v12955_v62  ;;  %7083 = vmatprep.mubr.bf16.mxu1 %v17925_v11  ;;  %v916_v62 = vunpack.c.l.s8.bf16 %v18046_v2  ;;  %v18055_v11 = vld [vmem:[%s23264_s1 + $0x288] sm:$0xff]  ;;  %23796 = vst [vmem:[#allocation146_spill] sm:$0xff] %v18060_v17 }
 0x1d7   :  { %7250 = vmatmul.mubr.bf16.vlgmr.msra.gmra.mrb[32].mxu0 %v15656_v45  ;;  %v12979_v52 = vcombine.high %v912_v20, %v916_v62  ;;  %v18074_v45 = vld [vmem:[%s23264_s1 + $0x2b8] sm:$0xff]  ;;  %v12978_v12 = vcombine.low %v912_v20, %v916_v62  ;;  %v23801_v62 = vmov 0  }
 0x1d8   :  { %7331 = vmatpush1.bf16.msra.mxu0 %v12954_v35  ;;  %7259 = vmatprep.mubr.bf16.mxu0 %v15666_v16  ;;  %v920_v35 = vunpack.c.l.s8.bf16 %v18055_v11  ;;  %v18069_v16 = vld [vmem:[%s23264_s1 + $0x2a8] sm:$0xff]  ;;  %23798 = vst [vmem:[#allocation148_spill] sm:$0xff] %v18074_v45 }
 0x1d9   :  { %7332 = vmatprep.subr.bf16.mxu0 %v12963_v8  ;;  %v924_v8 = vunpack.c.l.s8.bf16 %v18060_v17  ;;  %23797 = vst [vmem:[#allocation147_spill] sm:$0xff] %v18069_v16  ;;  %v777_v17 = vunpack.c.h.s8.bf16 %v17658_v34 }
 0x1db   :  { %v12987_v51 = vcombine.high %v920_v35, %v924_v8  ;;  %v12986_v20 = vcombine.low %v920_v35, %v924_v8  ;;  %v18104_v35 = vld [vmem:[%s23264_s1 + $0x2f8] sm:$0xff] }
 0x1dc   :  { %7084 = vmatmul.mubr.bf16.gmra.mrb[56].mxu1 %v17966_v0  ;;  %7333 = vmatpush1.bf16.msra.mxu0 %v12962_v36  ;;  %v928_v36 = vunpack.c.l.s8.bf16 %v18069_v16  ;;  %v18088_v0 = vld [vmem:[%s23264_s1 + $0x2d8] sm:$0xff]  ;;  %v18099_v16 = vld [vmem:[%s23264_s1 + $0x2e8] sm:$0xff] }
 0x1dd   :  { %7334 = vmatprep.subr.bf16.mxu0 %v12971_v18  ;;  %7093 = vmatprep.mubr.bf16.mxu1 %v17969_v59  ;;  %v932_v18 = vunpack.c.l.s8.bf16 %v18074_v45  ;;  %v18083_v59 = vld [vmem:[%s23264_s1 + $0x2c8] sm:$0xff]  ;;  %23800 = vst [vmem:[#allocation150_spill] sm:$0xff] %v18088_v0  ;;  %v773_v45 = vunpack.c.h.s8.bf16 %v17635_v14  ;;  %v23803_v14 = vunpack.c.h.s8.bf16 %v17610_v58  ;;  %v18124_v58 = vld [vmem:[%s23264_s1 + $0x318] sm:$0xff] }
 0x1de   :  { %23799 = vst [vmem:[#allocation149_spill] sm:$0xff] %v18083_v59 }
 0x1df   :  { %7260 = vmatmul.mubr.bf16.gmra.mrb[36].mxu0 %v15713_v47  ;;  %v769_v47 = vunpack.c.h.s8.bf16 %v17630_v9  ;;  %v12994_v8 = vcombine.low %v928_v36, %v932_v18  ;;  %v23802_v9 = vunpack.c.h.s8.bf16 %v17615_v32 }
 0x1e0   :  { %7335 = vmatpush1.bf16.msra.mxu0 %v12970_v48  ;;  %7269 = vmatprep.mubr.bf16.mxu0 %v15723_v31  ;;  %v12995_v48 = vcombine.high %v928_v36, %v932_v18  ;;  %v940_v31 = vunpack.c.l.s8.bf16 %v18088_v0  ;;  %v948_v0 = vunpack.c.l.s8.bf16 %v18104_v35  ;;  %v18119_v36 = vld [vmem:[%s23264_s1 + $0x308] sm:$0xff] }
 0x1e1   :  { %7336 = vmatprep.subr.bf16.mxu0 %v12979_v52  ;;  %v936_v52 = vunpack.c.l.s8.bf16 %v18083_v59  ;;  %v12837_v59 = vcombine.high %v769_v47, %v773_v45  ;;  %v12836_v34 = vcombine.low %v769_v47, %v773_v45  ;;  %v18141_v45 = vld [vmem:[%s23264_s1 + $0x338] sm:$0xff] }
 0x1e3   :  { %v13002_v32 = vcombine.low %v936_v52, %v940_v31 }
 0x1e4   :  { %7094 = vmatmul.mubr.bf16.gmra.mrb[60].mxu1 %v18004_v56  ;;  %7337 = vmatpush1.bf16.msra.mxu0 %v12978_v12  ;;  %v12828_v12 = vcombine.low %v23803_v14, %v23802_v9  ;;  %v944_v56 = vunpack.c.l.s8.bf16 %v18099_v16  ;;  %v785_v9 = vunpack.c.h.s8.bf16 %v17678_v21  ;;  %v789_v14 = vunpack.c.h.s8.bf16 %v17683_v49 }
 0x1e5   :  { %7338 = vmatprep.subr.bf16.mxu0 %v12987_v51  ;;  %7136 = vmatprep.mubr.bf16.mxu1 %v23801_v62  ;;  %v13003_v51 = vcombine.high %v936_v52, %v940_v31  ;;  %v18136_v31 = vld [vmem:[%s23264_s1 + $0x328] sm:$0xff]  ;;  %v964_v52 = vunpack.c.l.s8.bf16 %v18141_v45 }
 0x1e6   :  { %v13011_v18 = vcombine.high %v944_v56, %v948_v0  ;;  %v13010_v47 = vcombine.low %v944_v56, %v948_v0  ;;  %v18152_v0 = vld [vmem:[%s23264_s1 + $0x348] sm:$0xff] }
 0x1e7   :  { %7270 = vmatmul.mubr.bf16.gmra.mrb[40].mxu0 %v15770_v5  ;;  %v781_v5 = vunpack.c.h.s8.bf16 %v17663_v39  ;;  %v952_v39 = vunpack.c.l.s8.bf16 %v18119_v36 }
 0x1e8   :  { %7339 = vmatpush1.bf16.msra.mxu0 %v12986_v20  ;;  %7279 = vmatprep.mubr.bf16.mxu0 %v15774_v42  ;;  %v956_v20 = vunpack.c.l.s8.bf16 %v18124_v58  ;;  %v845_v42 = vunpack.c.h.s8.bf16 %v17868_v13  ;;  %v853_v13 = vunpack.c.h.s8.bf16 %v17886_v29 }
 0x1e9   :  { %7340 = vmatprep.subr.bf16.mxu0 %v12995_v48  ;;  %v12845_v48 = vcombine.high %v777_v17, %v781_v5  ;;  %v12844_v21 = vcombine.low %v777_v17, %v781_v5  ;;  %v18157_v5 = vld [vmem:[%s23264_s1 + $0x358] sm:$0xff] }
 0x1ea   :  { %v13019_v49 = vcombine.high %v952_v39, %v956_v20  ;;  %v13018_v17 = vcombine.low %v952_v39, %v956_v20  ;;  %v18169_v39 = vld [vmem:[%s23264_s1 + $0x368] sm:$0xff]  ;;  %v18174_v20 = vld [vmem:[%s23264_s1 + $0x378] sm:$0xff] }
 0x1ec   :  { %13638 = vmatmul.mubr.msk.bf16.vlgmr.msra.gmra.mrb[32].mxu1 %vm5582_vm2, %v15424_v33  ;;  %7341 = vmatpush1.bf16.msra.mxu0 %v12994_v8  ;;  %v12853_v8 = vcombine.high %v785_v9, %v789_v14 }
 0x1ed   :  { %8009 = vmatpush1.bf16.msra.mxu1 %v12828_v12  ;;  %7342 = vmatprep.subr.bf16.mxu0 %v13003_v51  ;;  %v793_v12 = vunpack.c.h.s8.bf16 %v17706_v60  ;;  %v797_v51 = vunpack.c.h.s8.bf16 %v17711_v6  ;;  %v12852_v60 = vcombine.low %v785_v9, %v789_v14  ;;  %v968_v6 = vunpack.c.l.s8.bf16 %v18152_v0 }
 0x1ee   :  { %8010 = vmatprep.subr.bf16.mxu1 %v12837_v59  ;;  %7146 = vmatprep.mubr.bf16.mxu1 %v23801_v62  ;;  %v960_v59 = vunpack.c.l.s8.bf16 %v18136_v31  ;;  %v976_v14 = vunpack.c.l.s8.bf16 %v18169_v39 }
 0x1ef   :  { %7280 = vmatmul.mubr.bf16.gmra.mrb[44].mxu0 %v15819_v24  ;;  %v841_v24 = vunpack.c.h.s8.bf16 %v17863_v25  ;;  %v849_v25 = vunpack.c.h.s8.bf16 %v17881_v10  ;;  %v18279_v10 = vld [vmem:[%s23264_s1 + $0x448] sm:$0xff] }
 0x1f0   :  { %7343 = vmatpush1.bf16.msra.mxu0 %v13002_v32  ;;  %7289 = vmatprep.mubr.bf16.mxu0 %v15822_v57  ;;  %v13027_v56 = vcombine.high %v960_v59, %v964_v52  ;;  %v972_v32 = vunpack.c.l.s8.bf16 %v18157_v5  ;;  %v13026_v9 = vcombine.low %v960_v59, %v964_v52  ;;  %v18185_v59 = vld [vmem:[%s23264_s1 + $0x388] sm:$0xff]  ;;  %v18190_v52 = vld [vmem:[%s23264_s1 + $0x398] sm:$0xff]  ;;  %23820 = vst [vmem:[#allocation154_spill] sm:$0xff] %v18279_v10 }
 0x1f1   :  { %8011 = vmatpush1.bf16.msra.mxu1 %v12836_v34  ;;  %7344 = vmatprep.subr.bf16.mxu0 %v13011_v18  ;;  %v12861_v34 = vcombine.high %v793_v12, %v797_v51  ;;  %v801_v18 = vunpack.c.h.s8.bf16 %v17726_v30  ;;  %v12860_v30 = vcombine.low %v793_v12, %v797_v51 }
 0x1f2   :  { %8012 = vmatprep.subr.bf16.mxu1 %v12845_v48  ;;  %v805_v48 = vunpack.c.h.s8.bf16 %v17731_v53  ;;  %v13035_v53 = vcombine.high %v968_v6, %v972_v32  ;;  %v13034_v12 = vcombine.low %v968_v6, %v972_v32  ;;  %v817_v32 = vunpack.c.h.s8.bf16 %v17770_v38 }
 0x1f4   :  { %13639 = vmatmul.mubr.msk.bf16.gmra.mrb[36].mxu1 %vm5582_vm2, %v15463_v54  ;;  %7345 = vmatpush1.bf16.msra.mxu0 %v13010_v47  ;;  %v980_v47 = vunpack.c.l.s8.bf16 %v18174_v20  ;;  %v23808_v54 = vld [vmem:[#allocation134_spill] sm:$0xff] }
 0x1f5   :  { %8013 = vmatpush1.bf16.msra.mxu1 %v12844_v21  ;;  %7346 = vmatprep.subr.bf16.mxu0 %v13019_v49  ;;  %v12869_v21 = vcombine.high %v801_v18, %v805_v48  ;;  %v809_v49 = vunpack.c.h.s8.bf16 %v17752_v26  ;;  %v12868_v26 = vcombine.low %v801_v18, %v805_v48  ;;  %v18212_v18 = vld [vmem:[%s23264_s1 + $0x3c8] sm:$0xff]  ;;  %v18217_v48 = vld [vmem:[%s23264_s1 + $0x3d8] sm:$0xff]  ;;  %v829_v33 = vunpack.c.h.s8.bf16 %v23808_v54 }
 0x1f6   :  { %8014 = vmatprep.subr.bf16.mxu1 %v12853_v8  ;;  %7156 = vmatprep.mubr.bf16.mxu1 %v23801_v62  ;;  %v813_v8 = vunpack.c.h.s8.bf16 %v17757_v40  ;;  %v13043_v51 = vcombine.high %v976_v14, %v980_v47  ;;  %v984_v40 = vunpack.c.l.s8.bf16 %v18185_v59  ;;  %23804 = vst [vmem:[#allocation151_spill] sm:$0xff] %v18217_v48  ;;  %v1000_v57 = vunpack.c.l.s8.bf16 %v18212_v18  ;;  %v18235_v54 = vld [vmem:[%s23264_s1 + $0x3f8] sm:$0xff] }
 0x1f7   :  { %7290 = vmatmul.mubr.bf16.gmra.mrb[48].mxu0 %v15867_v41  ;;  %23810 = vst [vmem:[#allocation134_spill] sm:$0xff] %v18235_v54 }
 0x1f8   :  { %7347 = vmatpush1.bf16.msra.mxu0 %v13018_v17  ;;  %7299 = vmatprep.mubr.bf16.mxu0 %v15870_v46  ;;  %v988_v17 = vunpack.c.l.s8.bf16 %v18190_v52  ;;  %v12877_v6 = vcombine.high %v809_v49, %v813_v8  ;;  %v12876_v46 = vcombine.low %v809_v49, %v813_v8  ;;  %v23811_v49 = vld [vmem:[#allocation10_spill] sm:$0xff] }
 0x1f9   :  { %8015 = vmatpush1.bf16.msra.mxu1 %v12852_v60  ;;  %7348 = vmatprep.subr.bf16.mxu0 %v13027_v56  ;;  %v18199_v60 = vld [vmem:[%s23264_s1 + $0x3a8] sm:$0xff]  ;;  %v18204_v56 = vld [vmem:[%s23264_s1 + $0x3b8] sm:$0xff] }
 0x1fa   :  { %8016 = vmatprep.subr.bf16.mxu1 %v12861_v34  ;;  %v821_v34 = vunpack.c.h.s8.bf16 %v17775_v50  ;;  %v992_v38 = vunpack.c.l.s8.bf16 %v18199_v60  ;;  %v996_v50 = vunpack.c.l.s8.bf16 %v18204_v56  ;;  %v13051_v41 = vcombine.high %v984_v40, %v988_v17 }
 0x1fc   :  { %13640 = vmatmul.mubr.msk.bf16.gmra.mrb[40].mxu1 %vm5582_vm2, %v15511_v27  ;;  %7349 = vmatpush1.bf16.msra.mxu0 %v13026_v9  ;;  %v23805_v9 = vld [vmem:[#allocation25_spill] sm:$0xff]  ;;  %v13059_v8 = vcombine.high %v992_v38, %v996_v50 }
 0x1fd   :  { %8017 = vmatpush1.bf16.msra.mxu1 %v12860_v30  ;;  %7350 = vmatprep.subr.bf16.mxu0 %v13035_v53  ;;  %v13042_v30 = vcombine.low %v976_v14, %v980_v47  ;;  %v23806_v53 = vld [vmem:[#allocation26_spill] sm:$0xff]  ;;  %v12885_v14 = vcombine.high %v817_v32, %v821_v34  ;;  %v13050_v47 = vcombine.low %v984_v40, %v988_v17 }
 0x1fe   :  { %8018 = vmatprep.subr.bf16.mxu1 %v12869_v21  ;;  %7166 = vmatprep.mubr.bf16.mxu1 %v23801_v62  ;;  %v23807_v21 = vld [vmem:[#allocation133_spill] sm:$0xff]  ;;  %v23813_v40 = vld [vmem:[#allocation138_spill] sm:$0xff] }
 0x1ff   :  { %7300 = vmatmul.mubr.bf16.gmra.mrb[52].mxu0 %v23805_v9  ;;  %v825_v27 = vunpack.c.h.s8.bf16 %v23807_v21  ;;  %v1004_v9 = vunpack.c.l.s8.bf16 %v18217_v48  ;;  %v837_v17 = vunpack.c.h.s8.bf16 %v23813_v40  ;;  %v13058_v21 = vcombine.low %v992_v38, %v996_v50  ;;  %v18259_v48 = vld [vmem:[%s23264_s1 + $0x428] sm:$0xff]  ;;  %v23819_v38 = vld [vmem:[#allocation28_spill] sm:$0xff] }
 0x200   :  { %7351 = vmatpush1.bf16.msra.mxu0 %v13034_v12  ;;  %7309 = vmatprep.mubr.bf16.mxu0 %v23806_v53  ;;  %v12884_v12 = vcombine.low %v817_v32, %v821_v34  ;;  %v18230_v53 = vld [vmem:[%s23264_s1 + $0x3e8] sm:$0xff]  ;;  %v18249_v34 = vld [vmem:[%s23264_s1 + $0x418] sm:$0xff]  ;;  %v1012_v40 = vunpack.c.l.s8.bf16 %v18235_v54  ;;  %23816 = vst [vmem:[#allocation152_spill] sm:$0xff] %v18259_v48 }
 0x201   :  { %8019 = vmatpush1.bf16.msra.mxu1 %v12868_v26  ;;  %7352 = vmatprep.subr.bf16.mxu0 %v13043_v51  ;;  %23809 = vst [vmem:[#allocation133_spill] sm:$0xff] %v18230_v53  ;;  %v12893_v26 = vcombine.high %v825_v27, %v829_v33  ;;  %v23812_v51 = vld [vmem:[#allocation137_spill] sm:$0xff]  ;;  %v18244_v32 = vld [vmem:[%s23264_s1 + $0x408] sm:$0xff]  ;;  %23815 = vst [vmem:[#allocation138_spill] sm:$0xff] %v18249_v34 }
 0x202   :  { %8020 = vmatprep.subr.bf16.mxu1 %v12877_v6  ;;  %v833_v6 = vunpack.c.h.s8.bf16 %v23812_v51  ;;  %23814 = vst [vmem:[#allocation137_spill] sm:$0xff] %v18244_v32  ;;  %v1008_v51 = vunpack.c.l.s8.bf16 %v18230_v53  ;;  %v1024_v53 = vunpack.c.l.s8.bf16 %v18259_v48  ;;  %v23856_v48 = vld [vmem:[#allocation33_spill] sm:$0xff] }
 0x204   :  { %13641 = vmatmul.mubr.msk.bf16.gmra.mrb[44].mxu1 %vm5582_vm2, %v23811_v49  ;;  %7353 = vmatpush1.bf16.msra.mxu0 %v13042_v30  ;;  %v12892_v30 = vcombine.low %v825_v27, %v829_v33  ;;  %v13067_v49 = vcombine.high %v1000_v57, %v1004_v9  ;;  %v18264_v33 = vld [vmem:[%s23264_s1 + $0x438] sm:$0xff]  ;;  %v23818_v27 = vld [vmem:[#allocation27_spill] sm:$0xff]  ;;  %v12901_v50 = vcombine.high %v833_v6, %v837_v17 }
 0x205   :  { %8021 = vmatpush1.bf16.msra.mxu1 %v12876_v46  ;;  %7354 = vmatprep.subr.bf16.mxu0 %v13051_v41  ;;  %23817 = vst [vmem:[#allocation153_spill] sm:$0xff] %v18264_v33  ;;  %v1016_v41 = vunpack.c.l.s8.bf16 %v18244_v32  ;;  %v1020_v46 = vunpack.c.l.s8.bf16 %v18249_v34  ;;  %v12900_v54 = vcombine.low %v833_v6, %v837_v17  ;;  %v857_v32 = vunpack.c.h.s8.bf16 %v17910_v37  ;;  %v18299_v17 = vld [vmem:[%s23264_s1 + $0x468] sm:$0xff] }
 0x206   :  { %8022 = vmatprep.subr.bf16.mxu1 %v12885_v14  ;;  %7176 = vmatprep.mubr.bf16.mxu1 %v23801_v62  ;;  %v13066_v14 = vcombine.low %v1000_v57, %v1004_v9  ;;  %v861_v34 = vunpack.c.h.s8.bf16 %v17915_v1  ;;  %v18284_v57 = vld [vmem:[%s23264_s1 + $0x458] sm:$0xff]  ;;  %v13075_v29 = vcombine.high %v1008_v51, %v1012_v40  ;;  %v12909_v9 = vcombine.high %v841_v24, %v845_v42 }
 0x207   :  { %7310 = vmatmul.mubr.bf16.gmra.mrb[56].mxu0 %v23818_v27  ;;  %v1028_v27 = vunpack.c.l.s8.bf16 %v18264_v33  ;;  %23821 = vst [vmem:[#allocation155_spill] sm:$0xff] %v18284_v57  ;;  %v18290_v37 = vcombine.high %v849_v25, %v853_v13  ;;  %v18292_v1 = vcombine.low %v1016_v41, %v1020_v46  ;;  %v18294_v6 = vcombine.low %v849_v25, %v853_v13  ;;  %v18320_v25 = vld [vmem:[%s23264_s1 + $0x498] sm:$0xff] }
 0x208   :  { %7355 = vmatpush1.bf16.msra.mxu0 %v13050_v47  ;;  %7319 = vmatprep.mubr.bf16.mxu0 %v23819_v38  ;;  %v13074_v47 = vcombine.low %v1008_v51, %v1012_v40  ;;  %23822 = vst [vmem:[#allocation156_spill] sm:$0xff] %v18299_v17  ;;  %v1036_v51 = vunpack.c.l.s8.bf16 %v18284_v57  ;;  %v865_v40 = vunpack.c.h.s8.bf16 %v17933_v23  ;;  %23826 = vst [vmem:[#allocation159_spill] sm:$0xff] %v18320_v25  ;;  %v1040_v23 = vunpack.c.l.s8.bf16 %v18299_v17 }
 0x209   :  { %8023 = vmatpush1.bf16.msra.mxu1 %v12884_v12  ;;  %7356 = vmatprep.subr.bf16.mxu0 %v13059_v8  ;;  %v18286_v12 = vcombine.low %v841_v24, %v845_v42  ;;  %v18288_v8 = vcombine.high %v1016_v41, %v1020_v46  ;;  %v23824_v42 = vld [vmem:[#allocation11_spill] sm:$0xff]  ;;  %v1032_v24 = vunpack.c.l.s8.bf16 %v18279_v10  ;;  %v869_v41 = vunpack.c.h.s8.bf16 %v17938_v3  ;;  %v18315_v46 = vld [vmem:[%s23264_s1 + $0x488] sm:$0xff] }
 0x20a   :  { %8024 = vmatprep.subr.bf16.mxu1 %v12893_v26  ;;  %v18304_v26 = vld [vmem:[%s23264_s1 + $0x478] sm:$0xff]  ;;  %23825 = vst [vmem:[#allocation158_spill] sm:$0xff] %v18315_v46  ;;  %v18324_v13 = vcombine.high %v857_v32, %v861_v34  ;;  %v873_v38 = vunpack.c.h.s8.bf16 %v17959_v44  ;;  %v877_v57 = vunpack.c.h.s8.bf16 %v17964_v22  ;;  %v881_v44 = vunpack.c.h.s8.bf16 %v17977_v61 }
 0x20b   :  { %23823 = vst [vmem:[#allocation157_spill] sm:$0xff] %v18304_v26  ;;  %v1044_v3 = vunpack.c.l.s8.bf16 %v18304_v26  ;;  %v885_v22 = vunpack.c.h.s8.bf16 %v17982_v4  ;;  %v23830_v26 = vld [vmem:[#allocation30_spill] sm:$0xff]  ;;  %v18349_v17 = vcombine.low %v857_v32, %v861_v34  ;;  %v18351_v10 = vcombine.high %v1032_v24, %v1036_v51  ;;  %v18367_v32 = vld [vmem:[%s23264_s1 + $0x4d8] sm:$0xff] }
 0x20c   :  { %13642 = vmatmul.mubr.msk.bf16.gmra.mrb[48].mxu1 %vm5582_vm2, %v23824_v42  ;;  %7357 = vmatpush1.bf16.msra.mxu0 %v13058_v21  ;;  %v18322_v21 = vcombine.high %v1024_v53, %v1028_v27  ;;  %v18326_v42 = vcombine.low %v1024_v53, %v1028_v27  ;;  %v18341_v53 = vld [vmem:[%s23264_s1 + $0x4b8] sm:$0xff]  ;;  %v1048_v27 = vunpack.c.l.s8.bf16 %v18315_v46  ;;  %v18353_v33 = vcombine.high %v865_v40, %v869_v41  ;;  %v18362_v4 = vld [vmem:[%s23264_s1 + $0x4c8] sm:$0xff] }
 0x20d   :  { %8025 = vmatpush1.bf16.msra.mxu1 %v12892_v30  ;;  %7358 = vmatprep.subr.bf16.mxu0 %v13067_v49  ;;  %v18336_v49 = vld [vmem:[%s23264_s1 + $0x4a8] sm:$0xff]  ;;  %23828 = vst [vmem:[#allocation161_spill] sm:$0xff] %v18341_v53  ;;  %v23829_v30 = vld [vmem:[#allocation29_spill] sm:$0xff]  ;;  %v1060_v46 = vunpack.c.l.s8.bf16 %v18341_v53  ;;  %v893_v61 = vunpack.c.h.s8.bf16 %v18002_v63  ;;  %23831 = vst [vmem:[#allocation162_spill] sm:$0xff] %v18362_v4  ;;  %v18371_v34 = vcombine.low %v865_v40, %v869_v41  ;;  %v1064_v40 = vunpack.c.l.s8.bf16 %v18362_v4 }
 0x20e   :  { %8026 = vmatprep.subr.bf16.mxu1 %v12901_v50  ;;  %7186 = vmatprep.mubr.bf16.mxu1 %v23801_v62  ;;  %23827 = vst [vmem:[#allocation160_spill] sm:$0xff] %v18336_v49  ;;  %v1052_v50 = vunpack.c.l.s8.bf16 %v18320_v25  ;;  %v889_v25 = vunpack.c.h.s8.bf16 %v17997_v55  ;;  %23832 = vst [vmem:[#allocation163_spill] sm:$0xff] %v18367_v32  ;;  %v18375_v55 = vcombine.high %v873_v38, %v877_v57  ;;  %v1068_v41 = vunpack.c.l.s8.bf16 %v18367_v32  ;;  %v23838_v32 = vld [vmem:[#allocation31_spill] sm:$0xff] }
 0x20f   :  { %7320 = vmatmul.mubr.bf16.gmra.mrb[60].mxu0 %v23829_v30  ;;  %v1056_v30 = vunpack.c.l.s8.bf16 %v18336_v49  ;;  %v18377_v63 = vcombine.low %v1040_v23, %v1044_v3  ;;  %v18383_v53 = vcombine.high %v881_v44, %v885_v22  ;;  %v23839_v49 = vld [vmem:[#allocation32_spill] sm:$0xff] }
 0x210   :  { %7359 = vmatpush1.bf16.msra.mxu0 %v13066_v14  ;;  %7362 = vmatprep.mubr.bf16.mxu0 %v23830_v26  ;;  %v18373_v14 = vcombine.high %v1040_v23, %v1044_v3  ;;  %v18381_v26 = vcombine.high %v1048_v27, %v1052_v50  ;;  %v18406_v23 = vld [vmem:[%s23264_s1 + $0x508] sm:$0xff]  ;;  %v18411_v3 = vld [vmem:[%s23264_s1 + $0x518] sm:$0xff] }
 0x211   :  { %8027 = vmatpush1.bf16.msra.mxu1 %v12900_v54  ;;  %7360 = vmatprep.subr.bf16.mxu0 %v13075_v29  ;;  %v18369_v54 = vcombine.low %v1032_v24, %v1036_v51  ;;  %v18379_v29 = vcombine.low %v873_v38, %v877_v57  ;;  %v18393_v24 = vld [vmem:[%s23264_s1 + $0x4f8] sm:$0xff]  ;;  %v18397_v38 = vcombine.low %v1048_v27, %v1052_v50  ;;  %v897_v50 = vunpack.c.h.s8.bf16 %v18013_v19 }
 0x212   :  { %8028 = vmatprep.subr.bf16.mxu1 %v12909_v9  ;;  %v18388_v9 = vld [vmem:[%s23264_s1 + $0x4e8] sm:$0xff]  ;;  %23834 = vst [vmem:[#allocation165_spill] sm:$0xff] %v18393_v24  ;;  %v23835_v51 = vld [vmem:[#allocation12_spill] sm:$0xff]  ;;  %v18399_v57 = vcombine.low %v881_v44, %v885_v22  ;;  %23836 = vst [vmem:[#allocation166_spill] sm:$0xff] %v18406_v23  ;;  %v18417_v27 = vcombine.high %v889_v25, %v893_v61  ;;  %v901_v44 = vunpack.c.h.s8.bf16 %v18018_v15  ;;  %v1080_v4 = vunpack.c.l.s8.bf16 %v18406_v23 }
 0x213   :  { %23833 = vst [vmem:[#allocation164_spill] sm:$0xff] %v18388_v9  ;;  %23837 = vst [vmem:[#allocation167_spill] sm:$0xff] %v18411_v3  ;;  %v1072_v22 = vunpack.c.l.s8.bf16 %v18388_v9  ;;  %v1084_v19 = vunpack.c.l.s8.bf16 %v18411_v3  ;;  %v913_v15 = vunpack.c.h.s8.bf16 %v18041_v7  ;;  %v18434_v9 = vcombine.low %v1056_v30, %v1060_v46 }
 0x214   :  { %13643 = vmatmul.mubr.msk.bf16.gmra.mrb[52].mxu1 %vm5582_vm2, %v23835_v51  ;;  %7361 = vmatpush1.bf16.msra.mxu0 %v13074_v47  ;;  %v18415_v47 = vcombine.high %v1056_v30, %v1060_v46  ;;  %v1076_v51 = vunpack.c.l.s8.bf16 %v18393_v24  ;;  %v18436_v24 = vcombine.low %v889_v25, %v893_v61  ;;  %v18446_v7 = vcombine.low %v897_v50, %v901_v44  ;;  %v18470_v30 = vld [vmem:[%s23264_s1 + $0x548] sm:$0xff]  ;;  %v18475_v61 = vld [vmem:[%s23264_s1 + $0x558] sm:$0xff] }
 0x215   :  { %8029 = vmatpush1.bf16.msra.mxu1 %v18286_v12  ;;  %7443 = vmatprep.subr.bf16.mxu0 %v18288_v8  ;;  %v905_v12 = vunpack.c.h.s8.bf16 %v18027_v43  ;;  %v909_v8 = vunpack.c.h.s8.bf16 %v18032_v28  ;;  %v18438_v43 = vcombine.high %v1064_v40, %v1068_v41  ;;  %v18442_v28 = vcombine.high %v897_v50, %v901_v44  ;;  %23842 = vst [vmem:[#allocation170_spill] sm:$0xff] %v18470_v30  ;;  %v18488_v50 = vld [vmem:[%s23264_s1 + $0x568] sm:$0xff]  ;;  %v18493_v44 = vld [vmem:[%s23264_s1 + $0x578] sm:$0xff] }
 0x216   :  { %8030 = vmatprep.subr.bf16.mxu1 %v18290_v37  ;;  %7196 = vmatprep.mubr.bf16.mxu1 %v23801_v62  ;;  %v917_v37 = vunpack.c.h.s8.bf16 %v18046_v2  ;;  %v18451_v2 = vld [vmem:[%s23264_s1 + $0x528] sm:$0xff]  ;;  %v18463_v25 = vcombine.low %v1072_v22, %v1076_v51  ;;  %23843 = vst [vmem:[#allocation171_spill] sm:$0xff] %v18475_v61  ;;  %23846 = vst [vmem:[#allocation174_spill] sm:$0xff] %v18488_v50  ;;  %v1104_v3 = vunpack.c.l.s8.bf16 %v18488_v50  ;;  %v1108_v23 = vunpack.c.l.s8.bf16 %v18493_v44 }
 0x217   :  { %7363 = vmatmul.mubr.bf16.vlgmr.msra.gmra.mrb[32].mxu0 %v23838_v32  ;;  %v18444_v32 = vcombine.low %v1064_v40, %v1068_v41  ;;  %23840 = vst [vmem:[#allocation168_spill] sm:$0xff] %v18451_v2  ;;  %v18461_v46 = vcombine.high %v905_v12, %v909_v8  ;;  %v18477_v40 = vcombine.high %v1080_v4, %v1084_v19  ;;  %23847 = vst [vmem:[#allocation175_spill] sm:$0xff] %v18493_v44 }
 0x218   :  { %7444 = vmatpush1.bf16.msra.mxu0 %v18292_v1  ;;  %7372 = vmatprep.mubr.bf16.mxu0 %v23839_v49  ;;  %v18456_v1 = vld [vmem:[%s23264_s1 + $0x538] sm:$0xff]  ;;  %v18481_v41 = vcombine.low %v1080_v4, %v1084_v19  ;;  %v1088_v4 = vunpack.c.l.s8.bf16 %v18451_v2  ;;  %v23849_v19 = vld [vmem:[#allocation146_spill] sm:$0xff] }
 0x219   :  { %8031 = vmatpush1.bf16.msra.mxu1 %v18294_v6  ;;  %7445 = vmatprep.subr.bf16.mxu0 %v18322_v21  ;;  %23841 = vst [vmem:[#allocation169_spill] sm:$0xff] %v18456_v1  ;;  %v18459_v6 = vcombine.high %v1072_v22, %v1076_v51  ;;  %v18465_v21 = vcombine.low %v905_v12, %v909_v8  ;;  %v23848_v22 = vld [vmem:[#allocation15_spill] sm:$0xff]  ;;  %v1092_v12 = vunpack.c.l.s8.bf16 %v18456_v1  ;;  %v921_v8 = vunpack.c.h.s8.bf16 %v18055_v11  ;;  %v18510_v49 = vld [vmem:[%s23264_s1 + $0x598] sm:$0xff] }
 0x21a   :  { %8032 = vmatprep.subr.bf16.mxu1 %v18324_v13  ;;  %v18479_v13 = vcombine.high %v913_v15, %v917_v37  ;;  %23844 = vst [vmem:[#allocation172_spill] sm:$0xff] %v18481_v41  ;;  %v18483_v51 = vcombine.low %v913_v15, %v917_v37  ;;  %v925_v15 = vunpack.c.h.s8.bf16 %v23849_v19  ;;  %v18505_v37 = vld [vmem:[%s23264_s1 + $0x588] sm:$0xff]  ;;  %23851 = vst [vmem:[#allocation176_spill] sm:$0xff] %v18510_v49  ;;  %v1100_v11 = vunpack.c.l.s8.bf16 %v18475_v61  ;;  %v23853_v1 = vld [vmem:[#allocation148_spill] sm:$0xff] }
 0x21b   :  { %23850 = vst [vmem:[#allocation146_spill] sm:$0xff] %v18505_v37  ;;  %v933_v2 = vunpack.c.h.s8.bf16 %v23853_v1  ;;  %v23855_v41 = vld [vmem:[#allocation150_spill] sm:$0xff]  ;;  %v1112_v61 = vunpack.c.l.s8.bf16 %v18505_v37  ;;  %v945_v1 = vunpack.c.h.s8.bf16 %v18099_v16  ;;  %v18531_v50 = vcombine.high %v1088_v4, %v1092_v12 }
 0x21c   :  { %23845 = vst [vmem:[#allocation173_spill] sm:$0xff] %v18483_v51  ;;  %13644 = vmatmul.mubr.msk.bf16.gmra.mrb[56].mxu1 %vm5582_vm2, %v23848_v22  ;;  %7446 = vmatpush1.bf16.msra.mxu0 %v18326_v42  ;;  %v1096_v42 = vunpack.c.l.s8.bf16 %v18470_v30  ;;  %v23852_v22 = vld [vmem:[#allocation147_spill] sm:$0xff]  ;;  %v23854_v51 = vld [vmem:[#allocation149_spill] sm:$0xff]  ;;  %v18533_v44 = vcombine.high %v921_v8, %v925_v15  ;;  %v18602_v37 = vld [vmem:[%s23264_s1 + $0x608] sm:$0xff] }
 0x21d   :  { %8033 = vmatpush1.bf16.msra.mxu1 %v18349_v17  ;;  %7447 = vmatprep.subr.bf16.mxu0 %v18351_v10  ;;  %v929_v19 = vunpack.c.h.s8.bf16 %v23852_v22  ;;  %v937_v17 = vunpack.c.h.s8.bf16 %v23854_v51  ;;  %v941_v10 = vunpack.c.h.s8.bf16 %v23855_v41  ;;  %v1116_v22 = vunpack.c.l.s8.bf16 %v18510_v49  ;;  %v23863_v49 = vld [vmem:[#allocation18_spill] sm:$0xff]  ;;  %23864 = vst [vmem:[#allocation178_spill] sm:$0xff] %v18602_v37  ;;  %v18607_v30 = vld [vmem:[%s23264_s1 + $0x618] sm:$0xff] }
 0x21e   :  { %8034 = vmatprep.subr.bf16.mxu1 %v18353_v33  ;;  %7206 = vmatprep.mubr.bf16.mxu1 %v23801_v62  ;;  %v949_v33 = vunpack.c.h.s8.bf16 %v18104_v35  ;;  %v23857_v62 = vld [vmem:[#allocation34_spill] sm:$0xff]  ;;  %v18535_v51 = vcombine.low %v1088_v4, %v1092_v12  ;;  %v18539_v41 = vcombine.low %v921_v8, %v925_v15  ;;  %v18560_v4 = vcombine.high %v1104_v3, %v1108_v23  ;;  %v18572_v15 = vld [vmem:[%s23264_s1 + $0x5d8] sm:$0xff] }
 0x21f   :  { %7373 = vmatmul.mubr.bf16.gmra.mrb[36].mxu0 %v23856_v48  ;;  %v18541_v48 = vcombine.high %v1096_v42, %v1100_v11  ;;  %v18543_v16 = vcombine.high %v929_v19, %v933_v2  ;;  %v18548_v35 = vld [vmem:[%s23264_s1 + $0x5a8] sm:$0xff]  ;;  %v18562_v12 = vcombine.high %v937_v17, %v941_v10  ;;  %23865 = vst [vmem:[#allocation179_spill] sm:$0xff] %v18607_v30 }
 0x220   :  { %7448 = vmatpush1.bf16.msra.mxu0 %v18369_v54  ;;  %7382 = vmatprep.mubr.bf16.mxu0 %v23857_v62  ;;  %23858 = vst [vmem:[#allocation147_spill] sm:$0xff] %v18548_v35  ;;  %v18553_v54 = vld [vmem:[%s23264_s1 + $0x5b8] sm:$0xff]  ;;  %v18567_v8 = vld [vmem:[%s23264_s1 + $0x5c8] sm:$0xff]  ;;  %v18574_v62 = vcombine.low %v1104_v3, %v1108_v23  ;;  %v1120_v23 = vunpack.c.l.s8.bf16 %v18548_v35  ;;  %v961_v35 = vunpack.c.h.s8.bf16 %v18136_v31 }
 0x221   :  { %8035 = vmatpush1.bf16.msra.mxu1 %v18371_v34  ;;  %7449 = vmatprep.subr.bf16.mxu0 %v18373_v14  ;;  %23859 = vst [vmem:[#allocation148_spill] sm:$0xff] %v18553_v54  ;;  %v18556_v34 = vcombine.low %v1096_v42, %v1100_v11  ;;  %v18558_v14 = vcombine.low %v929_v19, %v933_v2  ;;  %v18585_v11 = vld [vmem:[%s23264_s1 + $0x5e8] sm:$0xff]  ;;  %v18590_v19 = vld [vmem:[%s23264_s1 + $0x5f8] sm:$0xff]  ;;  %v1124_v3 = vunpack.c.l.s8.bf16 %v18553_v54 }
 0x222   :  { %8036 = vmatprep.subr.bf16.mxu1 %v18375_v55  ;;  %v18576_v55 = vcombine.low %v937_v17, %v941_v10  ;;  %v18578_v2 = vcombine.high %v1112_v61, %v1116_v22  ;;  %v18580_v42 = vcombine.high %v945_v1, %v949_v33  ;;  %23861 = vst [vmem:[#allocation150_spill] sm:$0xff] %v18585_v11  ;;  %23862 = vst [vmem:[#allocation177_spill] sm:$0xff] %v18590_v19  ;;  %v23866_v54 = vld [vmem:[#allocation8_spill] sm:$0xff] }
 0x223   :  { %v953_v17 = vunpack.c.h.s8.bf16 %v18119_v36  ;;  %v957_v10 = vunpack.c.h.s8.bf16 %v18124_v58  ;;  %v1128_v36 = vunpack.c.l.s8.bf16 %v18567_v8  ;;  %v1132_v58 = vunpack.c.l.s8.bf16 %v18572_v15 }
 0x224   :  { %23860 = vst [vmem:[#allocation149_spill] sm:$0xff] %v18580_v42  ;;  %13645 = vmatmul.mubr.msk.bf16.gmra.mrb[60].mxu1 %vm5582_vm2, %v23863_v49  ;;  %7450 = vmatpush1.bf16.msra.mxu0 %v18377_v63  ;;  %v18611_v63 = vcombine.low %v1112_v61, %v1116_v22  ;;  %v18613_v49 = vcombine.low %v945_v1, %v949_v33  ;;  %v965_v42 = vunpack.c.h.s8.bf16 %v18141_v45  ;;  %v23867_v61 = vld [vmem:[#allocation35_spill] sm:$0xff]  ;;  %v969_v22 = vunpack.c.h.s8.bf16 %v18152_v0 }
 0x225   :  { %8037 = vmatpush1.bf16.msra.mxu1 %v18379_v29  ;;  %7451 = vmatprep.subr.bf16.mxu0 %v18381_v26  ;;  %v1136_v29 = vunpack.c.l.s8.bf16 %v18585_v11  ;;  %v1140_v26 = vunpack.c.l.s8.bf16 %v18590_v19  ;;  %v973_v1 = vunpack.c.h.s8.bf16 %v18157_v5  ;;  %v1144_v33 = vunpack.c.l.s8.bf16 %v18602_v37  ;;  %v23883_v11 = vld [vmem:[#allocation151_spill] sm:$0xff] }
 0x226   :  { %8038 = vmatprep.subr.bf16.mxu1 %v18383_v53  ;;  %8040 = vmatprep.mubr.bf16.mxu1 %v23866_v54  ;;  %v1148_v53 = vunpack.c.l.s8.bf16 %v18607_v30  ;;  %v23868_v54 = vld [vmem:[#allocation36_spill] sm:$0xff]  ;;  %v18630_v31 = vcombine.high %v1120_v23, %v1124_v3  ;;  %v18632_v45 = vcombine.high %v953_v17, %v957_v10  ;;  %v977_v19 = vunpack.c.h.s8.bf16 %v18169_v39 }
 0x227   :  { %7383 = vmatmul.mubr.bf16.gmra.mrb[40].mxu0 %v23867_v61  ;;  %v981_v61 = vunpack.c.h.s8.bf16 %v18174_v20  ;;  %v18638_v0 = vcombine.low %v1120_v23, %v1124_v3  ;;  %v18640_v5 = vcombine.low %v953_v17, %v957_v10  ;;  %v18642_v30 = vcombine.high %v1128_v36, %v1132_v58  ;;  %v18661_v23 = vld [vmem:[%s23264_s1 + $0x638] sm:$0xff] }
 0x228   :  { %7452 = vmatpush1.bf16.msra.mxu0 %v18397_v38  ;;  %7392 = vmatprep.mubr.bf16.mxu0 %v23868_v54  ;;  %v18647_v38 = vld [vmem:[%s23264_s1 + $0x628] sm:$0xff]  ;;  %v18650_v39 = vcombine.high %v961_v35, %v965_v42  ;;  %v18652_v20 = vcombine.low %v1128_v36, %v1132_v58  ;;  %23870 = vst [vmem:[#allocation180_spill] sm:$0xff] %v18661_v23  ;;  %v23873_v36 = vld [vmem:[#allocation13_spill] sm:$0xff]  ;;  %v18698_v54 = vld [vmem:[%s23264_s1 + $0x678] sm:$0xff]  ;;  %v1001_v37 = vunpack.c.h.s8.bf16 %v18212_v18 }
 0x229   :  { %8039 = vmatpush1.bf16.msra.mxu1 %v18399_v57  ;;  %7453 = vmatprep.subr.bf16.mxu0 %v18415_v47  ;;  %23869 = vst [vmem:[#allocation8_spill] sm:$0xff] %v18647_v38  ;;  %v18654_v57 = vcombine.low %v961_v35, %v965_v42  ;;  %v18656_v47 = vcombine.high %v1136_v29, %v1140_v26  ;;  %v18674_v35 = vld [vmem:[%s23264_s1 + $0x648] sm:$0xff]  ;;  %v18679_v42 = vld [vmem:[%s23264_s1 + $0x658] sm:$0xff]  ;;  %23878 = vst [vmem:[#allocation186_spill] sm:$0xff] %v18698_v54 }
 0x22a   :  { %8121 = vmatprep.subr.bf16.mxu1 %v18417_v27  ;;  %v18663_v3 = vcombine.high %v969_v22, %v973_v1  ;;  %v18665_v17 = vcombine.low %v1136_v29, %v1140_v26  ;;  %v18667_v10 = vcombine.low %v969_v22, %v973_v1  ;;  %v18669_v27 = vcombine.high %v1144_v33, %v1148_v53  ;;  %v18693_v1 = vld [vmem:[%s23264_s1 + $0x668] sm:$0xff] }
 0x22b   :  { %23871 = vst [vmem:[#allocation181_spill] sm:$0xff] %v18674_v35  ;;  %23872 = vst [vmem:[#allocation182_spill] sm:$0xff] %v18679_v42  ;;  %v18683_v58 = vcombine.high %v977_v19, %v981_v61  ;;  %v18685_v29 = vcombine.low %v1144_v33, %v1148_v53  ;;  %v18687_v26 = vcombine.low %v977_v19, %v981_v61  ;;  %v1152_v22 = vunpack.c.l.s8.bf16 %v18647_v38  ;;  %v18708_v33 = vld [vmem:[%s23264_s1 + $0x688] sm:$0xff]  ;;  %v18713_v53 = vld [vmem:[%s23264_s1 + $0x698] sm:$0xff] }
 0x22c   :  { %8041 = vmatmul.mubr.bf16.vlgmr.msra.gmra.mrb[64].mxu1 %v23873_v36  ;;  %7454 = vmatpush1.bf16.msra.mxu0 %v18434_v9  ;;  %23877 = vst [vmem:[#allocation185_spill] sm:$0xff] %v18693_v1  ;;  %v1156_v9 = vunpack.c.l.s8.bf16 %v18661_v23  ;;  %v985_v19 = vunpack.c.h.s8.bf16 %v18185_v59  ;;  %v989_v61 = vunpack.c.h.s8.bf16 %v18190_v52  ;;  %23879 = vst [vmem:[#allocation187_spill] sm:$0xff] %v18708_v33  ;;  %v8804_v36 = vlaneseq  ;;  %v23882_v38 = vld [vmem:[#allocation37_spill] sm:$0xff] }
 0x22d   :  { %23874 = vst [vmem:[#allocation13_spill] sm:$0xff] %v18683_v58  ;;  %23875 = vst [vmem:[#allocation183_spill] sm:$0xff] %v18685_v29  ;;  %8122 = vmatpush1.bf16.msra.mxu1 %v18436_v24  ;;  %7455 = vmatprep.subr.bf16.mxu0 %v18438_v43  ;;  %v23881_v24 = vld [vmem:[#allocation14_spill] sm:$0xff]  ;;  %v1160_v43 = vunpack.c.l.s8.bf16 %v18674_v35  ;;  %v1164_v59 = vunpack.c.l.s8.bf16 %v18679_v42  ;;  %v993_v52 = vunpack.c.h.s8.bf16 %v18199_v60  ;;  %v997_v23 = vunpack.c.h.s8.bf16 %v18204_v56  ;;  %v23885_v35 = vld [vmem:[#allocation133_spill] sm:$0xff] }
 0x22e   :  { %23876 = vst [vmem:[#allocation184_spill] sm:$0xff] %v18687_v26  ;;  %23880 = vst [vmem:[#allocation188_spill] sm:$0xff] %v18713_v53  ;;  %8123 = vmatprep.subr.bf16.mxu1 %v18442_v28  ;;  %8050 = vmatprep.mubr.bf16.mxu1 %v23881_v24  ;;  %v1168_v26 = vunpack.c.l.s8.bf16 %v18693_v1  ;;  %v1172_v29 = vunpack.c.l.s8.bf16 %v18698_v54  ;;  %v1005_v28 = vunpack.c.h.s8.bf16 %v23883_v11  ;;  %v23884_v24 = vld [vmem:[#allocation38_spill] sm:$0xff]  ;;  %v1176_v42 = vunpack.c.l.s8.bf16 %v18708_v33  ;;  %v23911_v1 = vld [vmem:[#allocation153_spill] sm:$0xff] }
 0x22f   :  { %7393 = vmatmul.mubr.bf16.gmra.mrb[44].mxu0 %v23882_v38  ;;  %v1180_v60 = vunpack.c.l.s8.bf16 %v18713_v53  ;;  %v1009_v56 = vunpack.c.h.s8.bf16 %v23885_v35  ;;  %v23886_v58 = vld [vmem:[#allocation134_spill] sm:$0xff]  ;;  %v18734_v54 = vcombine.high %v1152_v22, %v1156_v9  ;;  %v18736_v18 = vcombine.high %v985_v19, %v989_v61  ;;  %v18750_v35 = vld [vmem:[%s23264_s1 + $0x6b8] sm:$0xff] }
 0x230   :  { %7456 = vmatpush1.bf16.msra.mxu0 %v18444_v32  ;;  %7402 = vmatprep.mubr.bf16.mxu0 %v23884_v24  ;;  %v1013_v38 = vunpack.c.h.s8.bf16 %v23886_v58  ;;  %v18738_v11 = vcombine.low %v1152_v22, %v1156_v9  ;;  %v18740_v32 = vshrl.u32 %v8804_v36, 7  ;;  %v18745_v24 = vld [vmem:[%s23264_s1 + $0x6a8] sm:$0xff]  ;;  %23889 = vst [vmem:[#allocation133_spill] sm:$0xff] %v18750_v35  ;;  %v18757_v58 = vcombine.high %v993_v52, %v997_v23 }
 0x231   :  { %8124 = vmatpush1.bf16.msra.mxu1 %v18446_v7  ;;  %7457 = vmatprep.subr.bf16.mxu0 %v18459_v6  ;;  %23888 = vst [vmem:[#allocation151_spill] sm:$0xff] %v18745_v24  ;;  %v18753_v7 = vcombine.low %v985_v19, %v989_v61  ;;  %v18755_v6 = vcombine.high %v1160_v43, %v1164_v59  ;;  %v13662_v9 = vld [vmem:[%s23270_s7 + $0x6] ss:$8 sm:$0xf] }
 0x232   :  { %23887 = vst [vmem:[#allocation14_spill] sm:$0xff] %v18740_v32  ;;  %8125 = vmatprep.subr.bf16.mxu1 %v18461_v46  ;;  %23890 = vst [vmem:[#allocation134_spill] sm:$0xff] %v18757_v58  ;;  %v18759_v22 = vcombine.low %v1160_v43, %v1164_v59  ;;  %v13663_v36 = vld [vmem:[%s23270_s7 + $0x6] ss:$8 sm:$0xf0]  ;;  %v18767_v53 = vcombine.low %v993_v52, %v997_v23  ;;  %v18769_v33 = vcombine.high %v1168_v26, %v1172_v29 }
 0x233   :  { %v18771_v46 = vcombine.high %v1001_v37, %v1005_v28  ;;  %v18773_v19 = vcombine.low %v1168_v26, %v1172_v29  ;;  %v8972_v61 = vld [vmem:[%s23270_s7] ss:$8 sm:$0xf]  ;;  %v18783_v23 = vcombine.low %v1001_v37, %v1005_v28  ;;  %v18785_v52 = vcombine.high %v1176_v42, %v1180_v60 }
 0x234   :  { %23891 = vst [vmem:[#allocation189_spill] sm:$0xff] %v18759_v22  ;;  %23892 = vst [vmem:[#allocation190_spill] sm:$0xff] %v18767_v53  ;;  %v8973_v43 = vld [vmem:[%s23270_s7] ss:$8 sm:$0xf0]  ;;  %7458 = vmatpush1.bf16.msra.mxu0 %v18463_v25  ;;  %v1184_v25 = vunpack.c.l.s8.bf16 %v18745_v24  ;;  %v1188_v37 = vunpack.c.l.s8.bf16 %v18750_v35  ;;  %v18825_v35 = vsub.s32 1, %v18740_v32  ;;  %v18834_v58 = vcombine.low %v1176_v42, %v1180_v60 }
 0x235   :  { %23893 = vst [vmem:[#allocation191_spill] sm:$0xff] %v18769_v33  ;;  %23894 = vst [vmem:[#allocation192_spill] sm:$0xff] %v18771_v46  ;;  %v23896_v59 = vld [vmem:[#allocation16_spill] sm:$0xff]  ;;  %v18787_v33 = vcombine.high %v1009_v56, %v1013_v38  ;;  %v18792_v29 = vld [vmem:[%s23264_s1 + $0x6c8] sm:$0xff]  ;;  %8126 = vmatpush1.bf16.msra.mxu1 %v18465_v21  ;;  %7459 = vmatprep.subr.bf16.mxu0 %v18477_v40  ;;  %v18817_v40 = vor.u32 %v13663_v36, %v13662_v9 }
 0x236   :  { %23895 = vst [vmem:[#allocation193_spill] sm:$0xff] %v18773_v19  ;;  %8051 = vmatmul.mubr.bf16.gmra.mrb[68].mxu1 %v23896_v59  ;;  %23897 = vst [vmem:[#allocation16_spill] sm:$0xff] %v18783_v23  ;;  %v18797_v26 = vld [vmem:[%s23264_s1 + $0x6d8] sm:$0xff]  ;;  %v23902_v28 = vld [vmem:[#allocation137_spill] sm:$0xff]  ;;  %8127 = vmatprep.subr.bf16.mxu1 %v18479_v13  ;;  %v1192_v46 = vunpack.c.l.s8.bf16 %v18792_v29  ;;  %v18857_v60 = vcombine.low %v1184_v25, %v1188_v37 }
 0x237   :  { %23898 = vst [vmem:[#allocation194_spill] sm:$0xff] %v18785_v52  ;;  %23899 = vst [vmem:[#allocation195_spill] sm:$0xff] %v18787_v33  ;;  %v1017_v59 = vunpack.c.h.s8.bf16 %v23902_v28  ;;  %v23903_v33 = vld [vmem:[#allocation138_spill] sm:$0xff]  ;;  %v18813_v19 = vld [vmem:[%s23264_s1 + $0x6f8] sm:$0xff]  ;;  %v18820_v28 = vsub.s32 0, %v18740_v32  ;;  %v1196_v53 = vunpack.c.l.s8.bf16 %v18797_v26 }
 0x238   :  { %23900 = vst [vmem:[#allocation196_spill] sm:$0xff] %v18792_v29  ;;  %23901 = vst [vmem:[#allocation197_spill] sm:$0xff] %v18797_v26  ;;  %v1021_v52 = vunpack.c.h.s8.bf16 %v23903_v33  ;;  %v18808_v23 = vld [vmem:[%s23264_s1 + $0x6e8] sm:$0xff]  ;;  %v23904_v21 = vld [vmem:[#allocation17_spill] sm:$0xff]  ;;  %v18822_v33 = vor.u32 %v8973_v43, %v8972_v61  ;;  %v18836_v61 = vcombine.low %v1009_v56, %v1013_v38  ;;  %v18842_v26 = vcombine.high %v1184_v25, %v1188_v37 }
 0x239   :  { %8060 = vmatprep.mubr.bf16.mxu1 %v23904_v21  ;;  %23905 = vst [vmem:[#allocation137_spill] sm:$0xff] %v18817_v40  ;;  %23906 = vst [vmem:[#allocation138_spill] sm:$0xff] %v18820_v28  ;;  %v23909_v24 = vld [vmem:[#allocation39_spill] sm:$0xff]  ;;  %v23910_v22 = vld [vmem:[#allocation152_spill] sm:$0xff]  ;;  %v1029_v21 = vunpack.c.h.s8.bf16 %v23911_v1  ;;  %v1200_v43 = vunpack.c.l.s8.bf16 %v18808_v23  ;;  %v18851_v38 = vrot.slane %v18817_v40, %v18820_v28  ;;  %v18863_v56 = vrot.slane %v18817_v40, %v18825_v35 }
 0x23a   :  { %23907 = vst [vmem:[#allocation17_spill] sm:$0xff] %v18822_v33  ;;  %23908 = vst [vmem:[#allocation198_spill] sm:$0xff] %v18825_v35  ;;  %7403 = vmatmul.mubr.bf16.gmra.mrb[48].mxu0 %v23909_v24  ;;  %v1025_v13 = vunpack.c.h.s8.bf16 %v23910_v22  ;;  %v23912_v9 = vld [vmem:[#allocation172_spill] sm:$0xff]  ;;  %v1204_v24 = vunpack.c.l.s8.bf16 %v18813_v19  ;;  %v23914_v32 = vld [vmem:[#allocation173_spill] sm:$0xff]  ;;  %v18844_v22 = vcombine.high %v1017_v59, %v1021_v52  ;;  %v18855_v42 = vrot.slane %v18822_v33, %v18820_v28 }
 0x23b   :  { %7460 = vmatpush1.bf16.msra.mxu0 %v23912_v9  ;;  %v23913_v36 = vld [vmem:[#allocation40_spill] sm:$0xff]  ;;  %8128 = vmatpush1.bf16.msra.mxu1 %v23914_v32  ;;  %v23915_v1 = vld [vmem:[#allocation154_spill] sm:$0xff]  ;;  %v23916_v29 = vld [vmem:[#allocation155_spill] sm:$0xff]  ;;  %23918 = vst [vmem:[#allocation153_spill] sm:$0xff] %v18863_v56  ;;  %v18867_v32 = vrot.slane %v18822_v33, %v18825_v35  ;;  %v18885_v37 = vcombine.low %v1192_v46, %v1196_v53 }
 0x23c   :  { %7412 = vmatprep.mubr.bf16.mxu0 %v23913_v36  ;;  %7461 = vmatprep.subr.bf16.mxu0 %v18531_v50  ;;  %v1033_v9 = vunpack.c.h.s8.bf16 %v23915_v1  ;;  %v1037_v36 = vunpack.c.h.s8.bf16 %v23916_v29  ;;  %23917 = vst [vmem:[#allocation152_spill] sm:$0xff] %v18855_v42  ;;  %v18859_v50 = vcombine.low %v1017_v59, %v1021_v52  ;;  %v18871_v29 = vcombine.high %v1025_v13, %v1029_v21  ;;  %v18876_v1 = vld [vmem:[%s23264_s1 + $0x708] sm:$0xff]  ;;  %v18881_v52 = vld [vmem:[%s23264_s1 + $0x718] sm:$0xff]  ;;  %v23923_v25 = vld [vmem:[#allocation19_spill] sm:$0xff] }
 0x23d   :  { %8129 = vmatprep.subr.bf16.mxu1 %v18533_v44  ;;  %23919 = vst [vmem:[#allocation172_spill] sm:$0xff] %v18867_v32  ;;  %v18869_v44 = vcombine.high %v1192_v46, %v1196_v53  ;;  %23921 = vst [vmem:[#allocation154_spill] sm:$0xff] %v18876_v1  ;;  %v18887_v59 = vcombine.low %v1025_v13, %v1029_v21  ;;  %v18889_v35 = vcombine.high %v1200_v43, %v1204_v24  ;;  %v18894_v28 = vld [vmem:[%s23264_s1 + $0x728] sm:$0xff]  ;;  %v18899_v32 = vld [vmem:[%s23264_s1 + $0x738] sm:$0xff] }
 0x23e   :  { %23920 = vst [vmem:[#allocation173_spill] sm:$0xff] %v18871_v29  ;;  %23922 = vst [vmem:[#allocation155_spill] sm:$0xff] %v18881_v52  ;;  %8061 = vmatmul.mubr.bf16.gmra.mrb[72].mxu1 %v23923_v25  ;;  %v18905_v53 = vcombine.low %v1200_v43, %v1204_v24  ;;  %v18907_v46 = vcombine.low %v1033_v9, %v1037_v36  ;;  %v18912_v13 = vld [vmem:[%s23264_s1 + $0x748] sm:$0xff]  ;;  %v18917_v21 = vld [vmem:[%s23264_s1 + $0x758] sm:$0xff]  ;;  %v1212_v24 = vunpack.c.l.s8.bf16 %v18881_v52 }
 0x23f   :  { %7462 = vmatpush1.bf16.msra.mxu0 %v18535_v51  ;;  %23924 = vst [vmem:[#allocation19_spill] sm:$0xff] %v18885_v37  ;;  %23925 = vst [vmem:[#allocation199_spill] sm:$0xff] %v18887_v59  ;;  %8130 = vmatpush1.bf16.msra.mxu1 %v18539_v41  ;;  %v18903_v51 = vcombine.high %v1033_v9, %v1037_v36  ;;  %v23934_v41 = vld [vmem:[#allocation20_spill] sm:$0xff]  ;;  %v23936_v9 = vld [vmem:[#allocation157_spill] sm:$0xff]  ;;  %v1224_v42 = vunpack.c.l.s8.bf16 %v18912_v13  ;;  %v1228_v29 = vunpack.c.l.s8.bf16 %v18917_v21 }
 0x240   :  { %23926 = vst [vmem:[#allocation200_spill] sm:$0xff] %v18889_v35  ;;  %23927 = vst [vmem:[#allocation201_spill] sm:$0xff] %v18894_v28  ;;  %7463 = vmatprep.subr.bf16.mxu0 %v18541_v48  ;;  %8131 = vmatprep.subr.bf16.mxu1 %v18543_v16  ;;  %v1208_v48 = vunpack.c.l.s8.bf16 %v18876_v1  ;;  %v23935_v36 = vld [vmem:[#allocation156_spill] sm:$0xff]  ;;  %v1045_v25 = vunpack.c.h.s8.bf16 %v23936_v9  ;;  %v23939_v16 = vld [vmem:[#allocation41_spill] sm:$0xff] }
 0x241   :  { %23928 = vst [vmem:[#allocation202_spill] sm:$0xff] %v18899_v32  ;;  %23929 = vst [vmem:[#allocation203_spill] sm:$0xff] %v18903_v51  ;;  %8070 = vmatprep.mubr.bf16.mxu1 %v23934_v41  ;;  %v1041_v43 = vunpack.c.h.s8.bf16 %v23935_v36  ;;  %v1216_v41 = vunpack.c.l.s8.bf16 %v18894_v28  ;;  %v1220_v51 = vunpack.c.l.s8.bf16 %v18899_v32  ;;  %v23940_v35 = vld [vmem:[#allocation158_spill] sm:$0xff]  ;;  %v23941_v59 = vld [vmem:[#allocation159_spill] sm:$0xff] }
 0x242   :  { %23930 = vst [vmem:[#allocation204_spill] sm:$0xff] %v18905_v53  ;;  %23931 = vst [vmem:[#allocation205_spill] sm:$0xff] %v18907_v46  ;;  %v18928_v46 = vld [vmem:[%s23264_s1 + $0x768] sm:$0xff]  ;;  %v18933_v53 = vld [vmem:[%s23264_s1 + $0x778] sm:$0xff]  ;;  %7413 = vmatmul.mubr.bf16.gmra.mrb[52].mxu0 %v23939_v16  ;;  %v1049_v36 = vunpack.c.h.s8.bf16 %v23940_v35  ;;  %v1053_v9 = vunpack.c.h.s8.bf16 %v23941_v59 }
 0x243   :  { %23932 = vst [vmem:[#allocation206_spill] sm:$0xff] %v18912_v13  ;;  %23933 = vst [vmem:[#allocation207_spill] sm:$0xff] %v18917_v21  ;;  %7464 = vmatpush1.bf16.msra.mxu0 %v18556_v34  ;;  %v23942_v37 = vld [vmem:[#allocation42_spill] sm:$0xff]  ;;  %v23943_v56 = vld [vmem:[#allocation160_spill] sm:$0xff]  ;;  %8132 = vmatpush1.bf16.msra.mxu1 %v18558_v14  ;;  %v1232_v35 = vunpack.c.l.s8.bf16 %v18928_v46  ;;  %v1236_v59 = vunpack.c.l.s8.bf16 %v18933_v53  ;;  %v18953_v13 = vcombine.high %v1208_v48, %v1212_v24 }
 0x244   :  { %23937 = vst [vmem:[#allocation20_spill] sm:$0xff] %v18928_v46  ;;  %23938 = vst [vmem:[#allocation156_spill] sm:$0xff] %v18933_v53  ;;  %7422 = vmatprep.mubr.bf16.mxu0 %v23942_v37  ;;  %v1057_v52 = vunpack.c.h.s8.bf16 %v23943_v56  ;;  %v23944_v1 = vld [vmem:[#allocation161_spill] sm:$0xff]  ;;  %7465 = vmatprep.subr.bf16.mxu0 %v18560_v4  ;;  %v23945_v32 = vld [vmem:[#allocation162_spill] sm:$0xff]  ;;  %v18955_v21 = vcombine.high %v1041_v43, %v1045_v25  ;;  %v18957_v56 = vcombine.low %v1208_v48, %v1212_v24 }
 0x245   :  { %v1061_v16 = vunpack.c.h.s8.bf16 %v23944_v1  ;;  %v1065_v34 = vunpack.c.h.s8.bf16 %v23945_v32  ;;  %v23946_v28 = vld [vmem:[#allocation163_spill] sm:$0xff]  ;;  %8133 = vmatprep.subr.bf16.mxu1 %v18562_v12  ;;  %v18959_v1 = vcombine.low %v1041_v43, %v1045_v25  ;;  %v18961_v14 = vcombine.high %v1216_v41, %v1220_v51  ;;  %v18972_v12 = vld [vmem:[%s23264_s1 + $0x788] sm:$0xff]  ;;  %v23954_v32 = vld [vmem:[#allocation21_spill] sm:$0xff] }
 0x246   :  { %v1069_v37 = vunpack.c.h.s8.bf16 %v23946_v28  ;;  %v18963_v4 = vcombine.high %v1049_v36, %v1053_v9  ;;  %v18965_v46 = vcombine.low %v1216_v41, %v1220_v51  ;;  %v18967_v53 = vcombine.low %v1049_v36, %v1053_v9  ;;  %23952 = vst [vmem:[#allocation162_spill] sm:$0xff] %v18972_v12  ;;  %v18977_v28 = vld [vmem:[%s23264_s1 + $0x798] sm:$0xff]  ;;  %8071 = vmatmul.mubr.bf16.gmra.mrb[76].mxu1 %v23954_v32  ;;  %v18990_v43 = vld [vmem:[%s23264_s1 + $0x7a8] sm:$0xff]  ;;  %v23963_v9 = vld [vmem:[#allocation149_spill] sm:$0xff] }
 0x247   :  { %23947 = vst [vmem:[#allocation157_spill] sm:$0xff] %v18959_v1  ;;  %23948 = vst [vmem:[#allocation158_spill] sm:$0xff] %v18961_v14  ;;  %7466 = vmatpush1.bf16.msra.mxu0 %v18574_v62  ;;  %v18981_v48 = vcombine.high %v1224_v42, %v1228_v29  ;;  %v18983_v51 = vcombine.high %v1057_v52, %v1061_v16  ;;  %v18985_v24 = vcombine.low %v1224_v42, %v1228_v29  ;;  %v18995_v25 = vld [vmem:[%s23264_s1 + $0x7b8] sm:$0xff]  ;;  %v19008_v29 = vld [vmem:[%s23264_s1 + $0x7c8] sm:$0xff] }
 0x248   :  { %23949 = vst [vmem:[#allocation159_spill] sm:$0xff] %v18963_v4  ;;  %23950 = vst [vmem:[#allocation160_spill] sm:$0xff] %v18965_v46  ;;  %8134 = vmatpush1.bf16.msra.mxu1 %v18576_v55  ;;  %7467 = vmatprep.subr.bf16.mxu0 %v18578_v2  ;;  %v18999_v62 = vcombine.low %v1057_v52, %v1061_v16  ;;  %v19001_v41 = vcombine.high %v1232_v35, %v1236_v59  ;;  %v19013_v36 = vld [vmem:[%s23264_s1 + $0x7d8] sm:$0xff]  ;;  %v23964_v55 = vld [vmem:[#allocation22_spill] sm:$0xff]  ;;  %v1240_v2 = vunpack.c.l.s8.bf16 %v18972_v12 }
 0x249   :  { %23951 = vst [vmem:[#allocation161_spill] sm:$0xff] %v18967_v53  ;;  %23953 = vst [vmem:[#allocation163_spill] sm:$0xff] %v18977_v28  ;;  %v19003_v42 = vcombine.high %v1065_v34, %v1069_v37  ;;  %8135 = vmatprep.subr.bf16.mxu1 %v23963_v9  ;;  %8080 = vmatprep.mubr.bf16.mxu1 %v23964_v55  ;;  %v1244_v52 = vunpack.c.l.s8.bf16 %v18977_v28  ;;  %v23965_v16 = vld [vmem:[#allocation164_spill] sm:$0xff]  ;;  %v23967_v9 = vld [vmem:[#allocation43_spill] sm:$0xff]  ;;  %v1248_v55 = vunpack.c.l.s8.bf16 %v18990_v43  ;;  %v1252_v28 = vunpack.c.l.s8.bf16 %v18995_v25 }
 0x24a   :  { %23955 = vst [vmem:[#allocation21_spill] sm:$0xff] %v18981_v48  ;;  %23956 = vst [vmem:[#allocation208_spill] sm:$0xff] %v18983_v51  ;;  %v1073_v32 = vunpack.c.h.s8.bf16 %v23965_v16  ;;  %7423 = vmatmul.mubr.bf16.gmra.mrb[56].mxu0 %v23967_v9  ;;  %v23968_v12 = vld [vmem:[#allocation166_spill] sm:$0xff]  ;;  %v23969_v51 = vld [vmem:[#allocation167_spill] sm:$0xff]  ;;  %v1256_v53 = vunpack.c.l.s8.bf16 %v19008_v29  ;;  %v1260_v46 = vunpack.c.l.s8.bf16 %v19013_v36 }
 0x24b   :  { %23957 = vst [vmem:[#allocation209_spill] sm:$0xff] %v18985_v24  ;;  %23958 = vst [vmem:[#allocation210_spill] sm:$0xff] %v18995_v25  ;;  %v19029_v24 = vld [vmem:[%s23264_s1 + $0x7f8] sm:$0xff]  ;;  %v1081_v16 = vunpack.c.h.s8.bf16 %v23968_v12  ;;  %7468 = vmatpush1.bf16.msra.mxu0 %v18611_v63  ;;  %v23972_v1 = vld [vmem:[#allocation169_spill] sm:$0xff]  ;;  %v19044_v25 = vcombine.low %v1232_v35, %v1236_v59  ;;  %v19046_v12 = vcombine.low %v1065_v34, %v1069_v37 }
 0x24c   :  { %23959 = vst [vmem:[#allocation211_spill] sm:$0xff] %v18999_v62  ;;  %23960 = vst [vmem:[#allocation212_spill] sm:$0xff] %v19001_v41  ;;  %v19024_v62 = vld [vmem:[%s23264_s1 + $0x7e8] sm:$0xff]  ;;  %v23970_v48 = vld [vmem:[#allocation44_spill] sm:$0xff]  ;;  %v1093_v9 = vunpack.c.h.s8.bf16 %v23972_v1  ;;  %8136 = vmatpush1.bf16.msra.mxu1 %v18613_v49  ;;  %7469 = vmatprep.subr.bf16.mxu0 %v18630_v31  ;;  %v19059_v49 = vcombine.high %v1248_v55, %v1252_v28  ;;  %v19063_v37 = vcombine.low %v1248_v55, %v1252_v28 }
 0x24d   :  { %23961 = vst [vmem:[#allocation213_spill] sm:$0xff] %v19003_v42  ;;  %23962 = vst [vmem:[#allocation214_spill] sm:$0xff] %v19013_v36  ;;  %v23966_v42 = vld [vmem:[#allocation165_spill] sm:$0xff]  ;;  %7432 = vmatprep.mubr.bf16.mxu0 %v23970_v48  ;;  %v23971_v4 = vld [vmem:[#allocation168_spill] sm:$0xff]  ;;  %v1264_v63 = vunpack.c.l.s8.bf16 %v19024_v62  ;;  %8137 = vmatprep.subr.bf16.mxu1 %v18632_v45  ;;  %v19051_v48 = vcombine.high %v1240_v2, %v1244_v52 }
 0x24e   :  { %v1077_v41 = vunpack.c.h.s8.bf16 %v23966_v42  ;;  %v1085_v42 = vunpack.c.h.s8.bf16 %v23969_v51  ;;  %v1089_v14 = vunpack.c.h.s8.bf16 %v23971_v4  ;;  %v1268_v51 = vunpack.c.l.s8.bf16 %v19029_v24  ;;  %23974 = vst [vmem:[#allocation22_spill] sm:$0xff] %v19063_v37  ;;  %v19070_v45 = vld [vmem:[%s23264_s1 + $0x808] sm:$0xff]  ;;  %v19075_v59 = vld [vmem:[%s23264_s1 + $0x818] sm:$0xff]  ;;  %v23977_v34 = vld [vmem:[#allocation23_spill] sm:$0xff] }
 0x24f   :  { %v19055_v4 = vcombine.low %v1240_v2, %v1244_v52  ;;  %23976 = vst [vmem:[#allocation165_spill] sm:$0xff] %v19075_v59  ;;  %8081 = vmatmul.mubr.bf16.gmra.mrb[80].mxu1 %v23977_v34  ;;  %7470 = vmatpush1.bf16.msra.mxu0 %v18638_v0  ;;  %v23980_v2 = vld [vmem:[#allocation170_spill] sm:$0xff]  ;;  %v19097_v0 = vcombine.low %v1256_v53, %v1260_v46 }
 0x250   :  { %v19053_v36 = vcombine.high %v1073_v32, %v1077_v41  ;;  %v19057_v1 = vcombine.low %v1073_v32, %v1077_v41  ;;  %v19061_v31 = vcombine.high %v1081_v16, %v1085_v42  ;;  %v19065_v35 = vcombine.low %v1081_v16, %v1085_v42  ;;  %v23981_v32 = vld [vmem:[#allocation171_spill] sm:$0xff]  ;;  %v19088_v16 = vld [vmem:[%s23264_s1 + $0x828] sm:$0xff]  ;;  %v19093_v42 = vld [vmem:[%s23264_s1 + $0x838] sm:$0xff]  ;;  %8138 = vmatpush1.bf16.msra.mxu1 %v18640_v5 }
 0x251   :  { %v19079_v41 = vcombine.high %v1256_v53, %v1260_v46  ;;  %v19081_v28 = vcombine.high %v1089_v14, %v1093_v9  ;;  %v1097_v52 = vunpack.c.h.s8.bf16 %v23980_v2  ;;  %v1101_v55 = vunpack.c.h.s8.bf16 %v23981_v32  ;;  %23982 = vst [vmem:[#allocation168_spill] sm:$0xff] %v19088_v16  ;;  %23983 = vst [vmem:[#allocation169_spill] sm:$0xff] %v19093_v42  ;;  %7471 = vmatprep.subr.bf16.mxu0 %v18642_v30  ;;  %v23987_v32 = vld [vmem:[#allocation24_spill] sm:$0xff]  ;;  %v19112_v30 = vld [vmem:[%s23264_s1 + $0x848] sm:$0xff] }
 0x252   :  { %23973 = vst [vmem:[#allocation149_spill] sm:$0xff] %v19061_v31  ;;  %23975 = vst [vmem:[#allocation164_spill] sm:$0xff] %v19065_v35  ;;  %v19099_v34 = vcombine.low %v1089_v14, %v1093_v9  ;;  %v19101_v2 = vcombine.high %v1264_v63, %v1268_v51  ;;  %8139 = vmatprep.subr.bf16.mxu1 %v18650_v39  ;;  %8090 = vmatprep.mubr.bf16.mxu1 %v23987_v32  ;;  %v23988_v35 = vld [vmem:[#allocation174_spill] sm:$0xff]  ;;  %v23989_v31 = vld [vmem:[#allocation175_spill] sm:$0xff]  ;;  %v1280_v46 = vunpack.c.l.s8.bf16 %v19088_v16 }
 0x253   :  { %23978 = vst [vmem:[#allocation166_spill] sm:$0xff] %v19079_v41  ;;  %23979 = vst [vmem:[#allocation167_spill] sm:$0xff] %v19081_v28  ;;  %v1272_v28 = vunpack.c.l.s8.bf16 %v19070_v45  ;;  %v1276_v41 = vunpack.c.l.s8.bf16 %v19075_v59  ;;  %v1105_v37 = vunpack.c.h.s8.bf16 %v23988_v35  ;;  %v1109_v5 = vunpack.c.h.s8.bf16 %v23989_v31  ;;  %v19117_v53 = vld [vmem:[%s23264_s1 + $0x858] sm:$0xff]  ;;  %v23990_v39 = vld [vmem:[#allocation45_spill] sm:$0xff]  ;;  %7472 = vmatpush1.bf16.msra.mxu0 %v18652_v20 }
 0x254   :  { %23984 = vst [vmem:[#allocation23_spill] sm:$0xff] %v19097_v0  ;;  %23985 = vst [vmem:[#allocation170_spill] sm:$0xff] %v19099_v34  ;;  %7433 = vmatmul.mubr.bf16.gmra.mrb[60].mxu0 %v23990_v39  ;;  %v1284_v14 = vunpack.c.l.s8.bf16 %v19093_v42  ;;  %v23991_v9 = vld [vmem:[#allocation146_spill] sm:$0xff]  ;;  %v23992_v32 = vld [vmem:[#allocation176_spill] sm:$0xff]  ;;  %v19126_v34 = vcombine.high %v1097_v52, %v1101_v55  ;;  %v19128_v0 = vcombine.low %v1264_v63, %v1268_v51  ;;  %8140 = vmatpush1.bf16.msra.mxu1 %v18654_v57 }
 0x255   :  { %23986 = vst [vmem:[#allocation171_spill] sm:$0xff] %v19101_v2  ;;  %v1113_v35 = vunpack.c.h.s8.bf16 %v23991_v9  ;;  %v1117_v31 = vunpack.c.h.s8.bf16 %v23992_v32  ;;  %v23993_v2 = vld [vmem:[#allocation46_spill] sm:$0xff]  ;;  %v19130_v59 = vcombine.low %v1097_v52, %v1101_v55  ;;  %7473 = vmatprep.subr.bf16.mxu0 %v18656_v47  ;;  %v1288_v39 = vunpack.c.l.s8.bf16 %v19112_v30  ;;  %v23995_v42 = vld [vmem:[#allocation147_spill] sm:$0xff]  ;;  %v23996_v16 = vld [vmem:[#allocation148_spill] sm:$0xff]  ;;  %8141 = vmatprep.subr.bf16.mxu1 %v18663_v3 }
 0x256   :  { %7475 = vmatprep.mubr.bf16.mxu0 %v23993_v2  ;;  %v1292_v9 = vunpack.c.l.s8.bf16 %v19117_v53  ;;  %v1121_v32 = vunpack.c.h.s8.bf16 %v23995_v42  ;;  %v1125_v20 = vunpack.c.h.s8.bf16 %v23996_v16  ;;  %v19141_v2 = vld [vmem:[%s23264_s1 + $0x868] sm:$0xff]  ;;  %v19146_v63 = vld [vmem:[%s23264_s1 + $0x878] sm:$0xff]  ;;  %v19149_v57 = vcombine.high %v1272_v28, %v1276_v41 }
 0x257   :  { %23994 = vst [vmem:[#allocation24_spill] sm:$0xff] %v19130_v59  ;;  %23997 = vst [vmem:[#allocation174_spill] sm:$0xff] %v19141_v2  ;;  %v19151_v47 = vcombine.high %v1105_v37, %v1109_v5  ;;  %v19153_v51 = vcombine.low %v1272_v28, %v1276_v41  ;;  %v19155_v52 = vcombine.low %v1105_v37, %v1109_v5  ;;  %v629_v3 = vld [vmem:[%s23264_s1 + $0x888] sm:$0xff]  ;;  %v24007_v41 = vld [vmem:[#allocation25_spill] sm:$0xff]  ;;  %7474 = vmatpush1.bf16.msra.mxu0 %v18665_v17 }
 0x258   :  { %23998 = vst [vmem:[#allocation175_spill] sm:$0xff] %v19146_v63  ;;  %23999 = vst [vmem:[#allocation146_spill] sm:$0xff] %v19149_v57  ;;  %v19157_v55 = vcombine.high %v1280_v46, %v1284_v14  ;;  %v19159_v16 = vcombine.high %v1113_v35, %v1117_v31  ;;  %v19161_v42 = vcombine.low %v1280_v46, %v1284_v14  ;;  %8091 = vmatmul.mubr.bf16.gmra.mrb[84].mxu1 %v24007_v41  ;;  %v633_v14 = vld [vmem:[%s23264_s1 + $0x8a8] sm:$0xff]  ;;  %v24023_v57 = vld [vmem:[#allocation180_spill] sm:$0xff] }
 0x259   :  { %24000 = vst [vmem:[#allocation176_spill] sm:$0xff] %v19151_v47  ;;  %24001 = vst [vmem:[#allocation147_spill] sm:$0xff] %v19153_v51  ;;  %v19163_v59 = vcombine.low %v1113_v35, %v1117_v31  ;;  %v631_v47 = vld [vmem:[%s23264_s1 + $0x898] sm:$0xff]  ;;  %v1296_v37 = vunpack.c.l.s8.bf16 %v19141_v2  ;;  %v1300_v28 = vunpack.c.l.s8.bf16 %v19146_v63  ;;  %v1129_v5 = vunpack.c.h.s8.bf16 %v18567_v8  ;;  %8142 = vmatpush1.bf16.msra.mxu1 %v18667_v10  ;;  %7556 = vmatprep.subr.bf16.mxu0 %v18669_v27  ;;  %v24011_v8 = vld [vmem:[#allocation13_spill] sm:$0xff] }
 0x25a   :  { %24002 = vst [vmem:[#allocation148_spill] sm:$0xff] %v19155_v52  ;;  %24003 = vst [vmem:[#allocation215_spill] sm:$0xff] %v19157_v55  ;;  %v1133_v46 = vunpack.c.h.s8.bf16 %v18572_v15  ;;  %v635_v35 = vld [vmem:[%s23264_s1 + $0x8b8] sm:$0xff]  ;;  %v19185_v17 = vcombine.high %v1288_v39, %v1292_v9  ;;  %v19187_v31 = vcombine.high %v1121_v32, %v1125_v20  ;;  %v19189_v41 = vcombine.low %v1288_v39, %v1292_v9  ;;  %v24012_v15 = vld [vmem:[#allocation26_spill] sm:$0xff] }
 0x25b   :  { %24004 = vst [vmem:[#allocation216_spill] sm:$0xff] %v19159_v16  ;;  %24005 = vst [vmem:[#allocation217_spill] sm:$0xff] %v19161_v42  ;;  %8143 = vmatprep.subr.bf16.mxu1 %v24011_v8  ;;  %8100 = vmatprep.mubr.bf16.mxu1 %v24012_v15  ;;  %v1308_v63 = vunpack.c.l.s8.bf16 %v631_v47  ;;  %v24013_v2 = vld [vmem:[#allocation150_spill] sm:$0xff]  ;;  %v24014_v16 = vld [vmem:[#allocation177_spill] sm:$0xff]  ;;  %v1312_v9 = vunpack.c.l.s8.bf16 %v633_v14  ;;  %v1316_v8 = vunpack.c.l.s8.bf16 %v635_v35 }
 0x25c   :  { %24006 = vst [vmem:[#allocation218_spill] sm:$0xff] %v19163_v59  ;;  %24008 = vst [vmem:[#allocation25_spill] sm:$0xff] %v19185_v17  ;;  %v1304_v59 = vunpack.c.l.s8.bf16 %v629_v3  ;;  %v1137_v42 = vunpack.c.h.s8.bf16 %v24013_v2  ;;  %v1141_v55 = vunpack.c.h.s8.bf16 %v24014_v16  ;;  %v637_v10 = vld [vmem:[%s23264_s1 + $0x8c8] sm:$0xff]  ;;  %v639_v27 = vld [vmem:[%s23264_s1 + $0x8d8] sm:$0xff]  ;;  %v19206_v16 = vcombine.low %v1121_v32, %v1125_v20 }
 0x25d   :  { %24009 = vst [vmem:[#allocation219_spill] sm:$0xff] %v19187_v31  ;;  %24010 = vst [vmem:[#allocation220_spill] sm:$0xff] %v19189_v41  ;;  %v24015_v39 = vld [vmem:[#allocation47_spill] sm:$0xff]  ;;  %v24016_v41 = vld [vmem:[#allocation178_spill] sm:$0xff]  ;;  %v19208_v17 = vcombine.high %v1296_v37, %v1300_v28  ;;  %v19210_v52 = vcombine.high %v1129_v5, %v1133_v46  ;;  %v1320_v14 = vunpack.c.l.s8.bf16 %v637_v10  ;;  %v1324_v35 = vunpack.c.l.s8.bf16 %v639_v27 }
 0x25e   :  { %7476 = vmatmul.mubr.bf16.vlgmr.msra.gmra.mrb[32].mxu0 %v24015_v39  ;;  %v1145_v15 = vunpack.c.h.s8.bf16 %v24016_v41  ;;  %v24017_v3 = vld [vmem:[#allocation179_spill] sm:$0xff]  ;;  %v24019_v2 = vld [vmem:[#allocation48_spill] sm:$0xff]  ;;  %v19223_v20 = vcombine.low %v1296_v37, %v1300_v28  ;;  %v19229_v10 = vcombine.high %v1137_v42, %v1141_v55  ;;  %v19231_v27 = vcombine.low %v1304_v59, %v1308_v63 }
 0x25f   :  { %v1149_v47 = vunpack.c.h.s8.bf16 %v24017_v3  ;;  %v24018_v31 = vld [vmem:[#allocation183_spill] sm:$0xff]  ;;  %7485 = vmatprep.mubr.bf16.mxu0 %v24019_v2  ;;  %24020 = vst [vmem:[#allocation13_spill] sm:$0xff] %v19210_v52  ;;  %v24021_v51 = vld [vmem:[#allocation184_spill] sm:$0xff]  ;;  %v1157_v3 = vunpack.c.h.s8.bf16 %v24023_v57  ;;  %v19233_v57 = vcombine.low %v1137_v42, %v1141_v55 }
 0x260   :  { %7557 = vmatpush1.bf16.msra.mxu0 %v24018_v31  ;;  %8144 = vmatpush1.bf16.msra.mxu1 %v24021_v51  ;;  %v24022_v39 = vld [vmem:[#allocation8_spill] sm:$0xff]  ;;  %v641_v31 = vld [vmem:[%s23264_s1 + $0x8e8] sm:$0xff]  ;;  %24024 = vst [vmem:[#allocation26_spill] sm:$0xff] %v19223_v20  ;;  %v19225_v51 = vcombine.low %v1129_v5, %v1133_v46  ;;  %24027 = vst [vmem:[#allocation178_spill] sm:$0xff] %v19229_v10 }
 0x261   :  { %7558 = vmatprep.subr.bf16.mxu0 %v18734_v54  ;;  %v1153_v41 = vunpack.c.h.s8.bf16 %v24022_v39  ;;  %v643_v32 = vld [vmem:[%s23264_s1 + $0x8f8] sm:$0xff]  ;;  %8145 = vmatprep.subr.bf16.mxu1 %v18736_v18  ;;  %v19227_v54 = vcombine.high %v1304_v59, %v1308_v63  ;;  %24028 = vst [vmem:[#allocation179_spill] sm:$0xff] %v19231_v27  ;;  %24029 = vst [vmem:[#allocation183_spill] sm:$0xff] %v19233_v57  ;;  %v19235_v39 = vcombine.high %v1312_v9, %v1316_v8  ;;  %v645_v18 = vld [vmem:[%s23264_s1 + $0x908] sm:$0xff] }
 0x262   :  { %24025 = vst [vmem:[#allocation150_spill] sm:$0xff] %v19225_v51  ;;  %v19237_v2 = vcombine.high %v1145_v15, %v1149_v47  ;;  %v647_v37 = vld [vmem:[%s23264_s1 + $0x918] sm:$0xff]  ;;  %v24032_v28 = vld [vmem:[#allocation27_spill] sm:$0xff]  ;;  %v19247_v59 = vcombine.low %v1312_v9, %v1316_v8  ;;  %v19249_v63 = vcombine.low %v1145_v15, %v1149_v47  ;;  %v1328_v55 = vunpack.c.l.s8.bf16 %v641_v31  ;;  %v649_v5 = vld [vmem:[%s23264_s1 + $0x928] sm:$0xff] }
 0x263   :  { %24026 = vst [vmem:[#allocation177_spill] sm:$0xff] %v19227_v54  ;;  %24030 = vst [vmem:[#allocation184_spill] sm:$0xff] %v19235_v39  ;;  %8101 = vmatmul.mubr.bf16.gmra.mrb[88].mxu1 %v24032_v28  ;;  %v1332_v42 = vunpack.c.l.s8.bf16 %v643_v32  ;;  %v651_v46 = vld [vmem:[%s23264_s1 + $0x938] sm:$0xff]  ;;  %v19259_v28 = vcombine.high %v1320_v14, %v1324_v35  ;;  %v24037_v9 = vld [vmem:[#allocation181_spill] sm:$0xff]  ;;  %v19282_v10 = vcombine.low %v1153_v41, %v1157_v3 }
 0x264   :  { %24031 = vst [vmem:[#allocation8_spill] sm:$0xff] %v19237_v2  ;;  %7559 = vmatpush1.bf16.msra.mxu0 %v18738_v11  ;;  %24033 = vst [vmem:[#allocation180_spill] sm:$0xff] %v19247_v59  ;;  %8146 = vmatpush1.bf16.msra.mxu1 %v18753_v7  ;;  %v19261_v11 = vcombine.high %v1153_v41, %v1157_v3  ;;  %v1161_v8 = vunpack.c.h.s8.bf16 %v24037_v9  ;;  %v24038_v15 = vld [vmem:[#allocation182_spill] sm:$0xff]  ;;  %v24040_v32 = vld [vmem:[#allocation28_spill] sm:$0xff]  ;;  %v1340_v59 = vunpack.c.l.s8.bf16 %v647_v37 }
 0x265   :  { %24034 = vst [vmem:[#allocation27_spill] sm:$0xff] %v19249_v63  ;;  %7560 = vmatprep.subr.bf16.mxu0 %v18755_v6  ;;  %24035 = vst [vmem:[#allocation221_spill] sm:$0xff] %v19259_v28  ;;  %v1165_v47 = vunpack.c.h.s8.bf16 %v24038_v15  ;;  %v24039_v31 = vld [vmem:[#allocation134_spill] sm:$0xff]  ;;  %8110 = vmatprep.mubr.bf16.mxu1 %v24040_v32  ;;  %v1336_v63 = vunpack.c.l.s8.bf16 %v645_v18  ;;  %v24041_v2 = vld [vmem:[#allocation185_spill] sm:$0xff]  ;;  %v1344_v15 = vunpack.c.l.s8.bf16 %v649_v5  ;;  %v19284_v54 = vcombine.high %v1328_v55, %v1332_v42 }
 0x266   :  { %24036 = vst [vmem:[#allocation222_spill] sm:$0xff] %v19261_v11  ;;  %8147 = vmatprep.subr.bf16.mxu1 %v24039_v31  ;;  %v1169_v39 = vunpack.c.h.s8.bf16 %v24041_v2  ;;  %v24042_v57 = vld [vmem:[#allocation186_spill] sm:$0xff]  ;;  %v655_v9 = vld [vmem:[%s23264_s1 + $0x958] sm:$0xff]  ;;  %v24043_v11 = vld [vmem:[#allocation49_spill] sm:$0xff]  ;;  %v1348_v31 = vunpack.c.l.s8.bf16 %v651_v46 }
 0x267   :  { %v1173_v7 = vunpack.c.h.s8.bf16 %v24042_v57  ;;  %v653_v6 = vld [vmem:[%s23264_s1 + $0x948] sm:$0xff]  ;;  %7486 = vmatmul.mubr.bf16.gmra.mrb[36].mxu0 %v24043_v11  ;;  %v24044_v28 = vld [vmem:[#allocation187_spill] sm:$0xff]  ;;  %v24045_v18 = vld [vmem:[#allocation188_spill] sm:$0xff]  ;;  %v19280_v57 = vcombine.low %v1320_v14, %v1324_v35  ;;  %v19288_v5 = vcombine.high %v1161_v8, %v1165_v47  ;;  %v19294_v14 = vcombine.low %v1161_v8, %v1165_v47 }
 0x268   :  { %v1177_v32 = vunpack.c.h.s8.bf16 %v24044_v28  ;;  %v1181_v37 = vunpack.c.h.s8.bf16 %v24045_v18  ;;  %v24046_v27 = vld [vmem:[#allocation189_spill] sm:$0xff]  ;;  %v24047_v2 = vld [vmem:[#allocation50_spill] sm:$0xff]  ;;  %v24049_v20 = vld [vmem:[#allocation191_spill] sm:$0xff]  ;;  %v1352_v11 = vunpack.c.l.s8.bf16 %v653_v6  ;;  %v1356_v18 = vunpack.c.l.s8.bf16 %v655_v9 }
 0x269   :  { %7561 = vmatpush1.bf16.msra.mxu0 %v24046_v27  ;;  %7495 = vmatprep.mubr.bf16.mxu0 %v24047_v2  ;;  %v24048_v51 = vld [vmem:[#allocation190_spill] sm:$0xff]  ;;  %v24051_v52 = vld [vmem:[#allocation192_spill] sm:$0xff]  ;;  %v19292_v27 = vcombine.low %v1328_v55, %v1332_v42  ;;  %v19296_v35 = vcombine.high %v1336_v63, %v1340_v59  ;;  %v19298_v41 = vcombine.high %v1169_v39, %v1173_v7  ;;  %v24058_v42 = vld [vmem:[#allocation29_spill] sm:$0xff] }
 0x26a   :  { %8148 = vmatpush1.bf16.msra.mxu1 %v24048_v51  ;;  %7562 = vmatprep.subr.bf16.mxu0 %v24049_v20  ;;  %v24050_v46 = vld [vmem:[#allocation14_spill] sm:$0xff]  ;;  %v19300_v3 = vcombine.low %v1336_v63, %v1340_v59  ;;  %v19302_v51 = vcombine.low %v1169_v39, %v1173_v7  ;;  %v19304_v20 = vcombine.high %v1344_v15, %v1348_v31  ;;  %v659_v55 = vld [vmem:[%s23264_s1 + $0x978] sm:$0xff]  ;;  %v24059_v8 = vld [vmem:[#allocation193_spill] sm:$0xff] }
 0x26b   :  { %v8814_v28 = vsub.s32 2, %v24050_v46  ;;  %8149 = vmatprep.subr.bf16.mxu1 %v24051_v52  ;;  %24052 = vst [vmem:[#allocation181_spill] sm:$0xff] %v19296_v35  ;;  %24053 = vst [vmem:[#allocation182_spill] sm:$0xff] %v19298_v41  ;;  %v19306_v2 = vcombine.high %v1177_v32, %v1181_v37  ;;  %v657_v52 = vld [vmem:[%s23264_s1 + $0x968] sm:$0xff]  ;;  %8111 = vmatmul.mubr.bf16.gmra.mrb[92].mxu1 %v24058_v42  ;;  %v19316_v59 = vcombine.low %v1344_v15, %v1348_v31  ;;  %v24061_v63 = vld [vmem:[#allocation151_spill] sm:$0xff] }
 0x26c   :  { %24054 = vst [vmem:[#allocation134_spill] sm:$0xff] %v19300_v3  ;;  %24055 = vst [vmem:[#allocation28_spill] sm:$0xff] %v19302_v51  ;;  %v8818_v39 = vsub.s32 3, %v24050_v46  ;;  %v1185_v47 = vunpack.c.h.s8.bf16 %v24061_v63  ;;  %v24062_v7 = vld [vmem:[#allocation133_spill] sm:$0xff]  ;;  %v661_v9 = vld [vmem:[%s23264_s1 + $0x988] sm:$0xff]  ;;  %v19329_v15 = vcombine.low %v1177_v32, %v1181_v37  ;;  %v1360_v46 = vunpack.c.l.s8.bf16 %v657_v52 }
 0x26d   :  { %24056 = vst [vmem:[#allocation185_spill] sm:$0xff] %v19304_v20  ;;  %24057 = vst [vmem:[#allocation186_spill] sm:$0xff] %v19306_v2  ;;  %7563 = vmatpush1.bf16.msra.mxu0 %v24059_v8  ;;  %v1189_v6 = vunpack.c.h.s8.bf16 %v24062_v7  ;;  %v663_v2 = vld [vmem:[%s23264_s1 + $0x998] sm:$0xff]  ;;  %v24064_v42 = vld [vmem:[#allocation194_spill] sm:$0xff]  ;;  %v19332_v31 = vrot.slane %v18817_v40, %v8814_v28  ;;  %v19334_v8 = vcombine.high %v1352_v11, %v1356_v18  ;;  %v1201_v37 = vunpack.c.h.s8.bf16 %v18808_v23 }
 0x26e   :  { %24060 = vst [vmem:[#allocation187_spill] sm:$0xff] %v19316_v59  ;;  %v24063_v20 = vld [vmem:[#allocation16_spill] sm:$0xff]  ;;  %7564 = vmatprep.subr.bf16.mxu0 %v24064_v42  ;;  %24065 = vst [vmem:[#allocation188_spill] sm:$0xff] %v19329_v15  ;;  %v24068_v63 = vld [vmem:[#allocation195_spill] sm:$0xff]  ;;  %v1364_v59 = vunpack.c.l.s8.bf16 %v659_v55  ;;  %v1368_v42 = vunpack.c.l.s8.bf16 %v661_v9  ;;  %v1372_v32 = vunpack.c.l.s8.bf16 %v663_v2  ;;  %v19355_v2 = vrot.slane %v18822_v33, %v8814_v28 }
 0x26f   :  { %8150 = vmatpush1.bf16.msra.mxu1 %v24063_v20  ;;  %24066 = vst [vmem:[#allocation189_spill] sm:$0xff] %v19332_v31  ;;  %24067 = vst [vmem:[#allocation190_spill] sm:$0xff] %v19334_v8  ;;  %v24069_v7 = vld [vmem:[#allocation30_spill] sm:$0xff]  ;;  %v24070_v51 = vld [vmem:[#allocation196_spill] sm:$0xff]  ;;  %v1205_v31 = vunpack.c.h.s8.bf16 %v18813_v19  ;;  %v19348_v52 = vcombine.high %v1185_v47, %v1189_v6  ;;  %v19358_v19 = vrot.slane %v18822_v33, %v8818_v39 }
 0x270   :  { %8151 = vmatprep.subr.bf16.mxu1 %v24068_v63  ;;  %8153 = vmatprep.mubr.bf16.mxu1 %v24069_v7  ;;  %v1193_v3 = vunpack.c.h.s8.bf16 %v24070_v51  ;;  %v24071_v41 = vld [vmem:[#allocation197_spill] sm:$0xff]  ;;  %v24072_v20 = vld [vmem:[#allocation51_spill] sm:$0xff]  ;;  %v24073_v8 = vld [vmem:[#allocation52_spill] sm:$0xff]  ;;  %v19346_v63 = vrot.slane %v18817_v40, %v8818_v39  ;;  %v19350_v51 = vcombine.low %v1352_v11, %v1356_v18  ;;  %24077 = vst [vmem:[#allocation193_spill] sm:$0xff] %v19355_v2  ;;  %v6234_v18 = vpop.f32.mrb[0].mxu0 }
 0x271   :  { %v1197_v35 = vunpack.c.h.s8.bf16 %v24071_v41  ;;  %7496 = vmatmul.mubr.bf16.gmra.mrb[40].mxu0 %v24072_v20  ;;  %24075 = vst [vmem:[#allocation192_spill] sm:$0xff] %v19348_v52  ;;  %24078 = vst [vmem:[#allocation151_spill] sm:$0xff] %v19358_v19  ;;  %v665_v23 = vld [vmem:[%s23264_s1 + $0x9a8] sm:$0xff]  ;;  %v667_v11 = vld [vmem:[%s23264_s1 + $0x9b8] sm:$0xff]  ;;  %v19373_v28 = vcombine.low %v1360_v46, %v1364_v59  ;;  %v19380_v9 = vcombine.high %v1201_v37, %v1205_v31 }
 0x272   :  { %7565 = vmatpush1.bf16.msra.mxu0 %v18834_v58  ;;  %7505 = vmatprep.mubr.bf16.mxu0 %v24073_v8  ;;  %24074 = vst [vmem:[#allocation191_spill] sm:$0xff] %v19346_v63  ;;  %24076 = vst [vmem:[#allocation29_spill] sm:$0xff] %v19350_v51  ;;  %v19360_v58 = vcombine.low %v1185_v47, %v1189_v6  ;;  %v24084_v55 = vld [vmem:[#allocation59_spill] sm:$0xff]  ;;  %v6236_v47 = vpop.f32.mrb[1].mxu0  ;;  %v19378_v6 = vcombine.high %v1368_v42, %v1372_v32  ;;  %v1376_v33 = vunpack.c.l.s8.bf16 %v665_v23  ;;  %v24091_v40 = vld [vmem:[#allocation61_spill] sm:$0xff] }
 0x273   :  { %8152 = vmatpush1.bf16.msra.mxu1 %v18836_v61  ;;  %7566 = vmatprep.subr.bf16.mxu0 %v18842_v26  ;;  %v19369_v26 = vcombine.high %v1360_v46, %v1364_v59  ;;  %v19371_v61 = vcombine.high %v1193_v3, %v1197_v35  ;;  %24082 = vst [vmem:[#allocation195_spill] sm:$0xff] %v19373_v28  ;;  %24086 = vst [vmem:[#allocation197_spill] sm:$0xff] %v19380_v9  ;;  %v671_v46 = vld [vmem:[%s23264_s1 + $0x9d8] sm:$0xff]  ;;  %v24152_v63 = vld [vmem:[#allocation209_spill] sm:$0xff] }
 0x274   :  { %24079 = vst [vmem:[#allocation133_spill] sm:$0xff] %v19360_v58  ;;  %8234 = vmatprep.subr.bf16.mxu1 %v18844_v22  ;;  %v19375_v41 = vcombine.low %v1193_v3, %v1197_v35  ;;  %v13984_v39 = vadd.f32 %v24084_v55, %v6234_v18  ;;  %24085 = vst [vmem:[#allocation196_spill] sm:$0xff] %v19378_v6  ;;  %v19382_v7 = vcombine.low %v1368_v42, %v1372_v32  ;;  %v669_v22 = vld [vmem:[%s23264_s1 + $0x9c8] sm:$0xff]  ;;  %v24088_v59 = vld [vmem:[#allocation60_spill] sm:$0xff]  ;;  %v6238_v18 = vpop.f32.mrb[2].mxu0 }
 0x275   :  { %24080 = vst [vmem:[#allocation16_spill] sm:$0xff] %v19369_v26  ;;  %24081 = vst [vmem:[#allocation194_spill] sm:$0xff] %v19371_v61  ;;  %v13985_v35 = vadd.f32 %v24088_v59, %v6236_v47  ;;  %v24089_v3 = vld [vmem:[#allocation31_spill] sm:$0xff]  ;;  %v19393_v55 = vcombine.low %v1201_v37, %v1205_v31  ;;  %v1380_v42 = vunpack.c.l.s8.bf16 %v667_v11  ;;  %v6240_v9 = vpop.f32.mrb[3].mxu0  ;;  %v24092_v6 = vld [vmem:[#allocation154_spill] sm:$0xff]  ;;  %v1384_v11 = vunpack.c.l.s8.bf16 %v669_v22 }
 0x276   :  { %24083 = vst [vmem:[#allocation30_spill] sm:$0xff] %v19375_v41  ;;  %24087 = vst [vmem:[#allocation51_spill] sm:$0xff] %v19382_v7  ;;  %8154 = vmatmul.mubr.bf16.vlgmr.msra.gmra.mrb[64].mxu1 %v24089_v3  ;;  %7567 = vmatpush1.bf16.msra.mxu0 %v18857_v60  ;;  %v8844_v32 = vmul.f32 %v13984_v39, %v18851_v38  ;;  %v13986_v7 = vadd.f32 %v24091_v40, %v6238_v18  ;;  %v1209_v47 = vunpack.c.h.s8.bf16 %v24092_v6  ;;  %v24093_v59 = vld [vmem:[#allocation155_spill] sm:$0xff]  ;;  %v24094_v41 = vld [vmem:[#allocation153_spill] sm:$0xff] }
 0x277   :  { %24090 = vst [vmem:[#allocation59_spill] sm:$0xff] %v19393_v55  ;;  %8235 = vmatpush1.bf16.msra.mxu1 %v18859_v50  ;;  %7568 = vmatprep.subr.bf16.mxu0 %v18869_v44  ;;  %v1213_v3 = vunpack.c.h.s8.bf16 %v24093_v59  ;;  %v8845_v28 = vmul.f32 %v13985_v35, %v24094_v41  ;;  %v24095_v60 = vld [vmem:[#allocation62_spill] sm:$0xff]  ;;  %v24096_v37 = vld [vmem:[#allocation173_spill] sm:$0xff]  ;;  %v24097_v23 = vld [vmem:[#allocation32_spill] sm:$0xff]  ;;  %v1388_v39 = vunpack.c.l.s8.bf16 %v671_v46  ;;  %v19414_v22 = vcombine.high %v1376_v33, %v1380_v42 }
 0x278   :  { %v13987_v31 = vadd.f32 %v24095_v60, %v6240_v9  ;;  %8236 = vmatprep.subr.bf16.mxu1 %v24096_v37  ;;  %8163 = vmatprep.mubr.bf16.mxu1 %v24097_v23  ;;  %v24098_v40 = vld [vmem:[#allocation152_spill] sm:$0xff]  ;;  %v8852_v50 = vmul.f32 %v13986_v7, %v18851_v38  ;;  %v24099_v55 = vld [vmem:[#allocation53_spill] sm:$0xff]  ;;  %v24101_v61 = vld [vmem:[#allocation202_spill] sm:$0xff]  ;;  %v19423_v59 = vcombine.low %v1376_v33, %v1380_v42 }
 0x279   :  { %v9016_v18 = vadd.f32 %v24098_v40, %v8844_v32  ;;  %7506 = vmatmul.mubr.bf16.gmra.mrb[44].mxu0 %v24099_v55  ;;  %v24100_v44 = vld [vmem:[#allocation201_spill] sm:$0xff]  ;;  %v24102_v19 = vld [vmem:[#allocation172_spill] sm:$0xff]  ;;  %v24103_v60 = vld [vmem:[#allocation19_spill] sm:$0xff]  ;;  %24105 = vst [vmem:[#allocation60_spill] sm:$0xff] %v19414_v22  ;;  %v19421_v6 = vcombine.high %v1209_v47, %v1213_v3  ;;  %v19429_v22 = vcombine.low %v1209_v47, %v1213_v3  ;;  %v24153_v8 = vunpack.c.h.s8.bf16 %v24101_v61 }
 0x27a   :  { %v9017_v35 = vadd.f32 %v24102_v19, %v8845_v28  ;;  %v8853_v9 = vmul.f32 %v13987_v31, %v24094_v41  ;;  %7569 = vmatpush1.bf16.msra.mxu0 %v24103_v60  ;;  %v24104_v37 = vld [vmem:[#allocation54_spill] sm:$0xff]  ;;  %v9024_v7 = vadd.f32 %v24098_v40, %v8852_v50  ;;  %v24107_v32 = vld [vmem:[#allocation199_spill] sm:$0xff]  ;;  %v24108_v23 = vld [vmem:[#allocation200_spill] sm:$0xff]  ;;  %24110 = vst [vmem:[#allocation154_spill] sm:$0xff] %v19423_v59  ;;  %v6244_v60 = vpop.f32.mrb[4].mxu0  ;;  %v24118_v33 = vunpack.c.h.s8.bf16 %v24100_v44 }
 0x27b   :  { %7515 = vmatprep.mubr.bf16.mxu0 %v24104_v37  ;;  %v19416_v46 = vmax.f32 %v9016_v18, 0.0  ;;  %8237 = vmatpush1.bf16.msra.mxu1 %v24107_v32  ;;  %24109 = vst [vmem:[#allocation61_spill] sm:$0xff] %v19421_v6  ;;  %v24112_v37 = vld [vmem:[#allocation203_spill] sm:$0xff]  ;;  %24113 = vst [vmem:[#allocation153_spill] sm:$0xff] %v19429_v22  ;;  %v19431_v18 = vcombine.high %v1384_v11, %v1388_v39  ;;  %v24116_v32 = vld [vmem:[#allocation65_spill] sm:$0xff]  ;;  %v24117_v6 = vunpack.c.h.s8.bf16 %v24101_v61 }
 0x27c   :  { %7570 = vmatprep.subr.bf16.mxu0 %v24108_v23  ;;  %v19425_v28 = vmax.f32 %v9017_v35, 0.0  ;;  %v9025_v31 = vadd.f32 %v24102_v19, %v8853_v9  ;;  %8238 = vmatprep.subr.bf16.mxu1 %v24112_v37  ;;  %v19433_v50 = vmax.f32 %v9024_v7, 0.0  ;;  %v13988_v55 = vadd.f32 %v24116_v32, %v6244_v60  ;;  %v6246_v23 = vpop.f32.mrb[5].mxu0  ;;  %v24122_v37 = vld [vmem:[#allocation66_spill] sm:$0xff]  ;;  %v24123_v60 = vld [vmem:[#allocation33_spill] sm:$0xff]  ;;  %v24141_v26 = vld [vmem:[#allocation72_spill] sm:$0xff] }
 0x27d   :  { %24106 = vst [vmem:[#allocation31_spill] sm:$0xff] %v19416_v46  ;;  %24114 = vst [vmem:[#allocation62_spill] sm:$0xff] %v19431_v18  ;;  %v19440_v42 = vcombine.high %v24118_v33, %v24117_v6  ;;  %v19442_v35 = vcombine.low %v1384_v11, %v1388_v39  ;;  %v9440_v9 = vmul.f32 %v19416_v46, %v19416_v46  ;;  %v6248_v32 = vpop.f32.mrb[6].mxu0  ;;  %v24124_v18 = vld [vmem:[#allocation204_spill] sm:$0xff]  ;;  %v24125_v33 = vld [vmem:[#allocation67_spill] sm:$0xff] }
 0x27e   :  { %24111 = vst [vmem:[#allocation155_spill] sm:$0xff] %v19425_v28  ;;  %24115 = vst [vmem:[#allocation173_spill] sm:$0xff] %v19433_v50  ;;  %v9441_v47 = vmul.f32 %v19425_v28, %v19425_v28  ;;  %v19448_v3 = vmax.f32 %v9025_v31, 0.0  ;;  %v13989_v7 = vadd.f32 %v24122_v37, %v6246_v23  ;;  %8164 = vmatmul.mubr.bf16.gmra.mrb[68].mxu1 %v24123_v60  ;;  %7571 = vmatpush1.bf16.msra.mxu0 %v24124_v18  ;;  %v6250_v31 = vpop.f32.mrb[7].mxu0  ;;  %v19463_v23 = vld [vmem:[%s23264_s1 + $0x9e8] sm:$0xff]  ;;  %v24151_v51 = vld [vmem:[#allocation208_spill] sm:$0xff] }
 0x27f   :  { %24119 = vst [vmem:[#allocation32_spill] sm:$0xff] %v19440_v42  ;;  %24120 = vst [vmem:[#allocation152_spill] sm:$0xff] %v19442_v35  ;;  %v9272_v6 = vadd.f32 %v19433_v50, %v19416_v46  ;;  %v9448_v11 = vmul.f32 %v19433_v50, %v19433_v50  ;;  %v8860_v39 = vmul.f32 %v13988_v55, %v18851_v38  ;;  %v24126_v42 = vld [vmem:[#allocation205_spill] sm:$0xff]  ;;  %v24127_v50 = vld [vmem:[#allocation68_spill] sm:$0xff]  ;;  %7572 = vmatprep.subr.bf16.mxu0 %v18953_v13 }
 0x280   :  { %24121 = vst [vmem:[#allocation201_spill] sm:$0xff] %v19448_v3  ;;  %v13990_v35 = vadd.f32 %v24125_v33, %v6248_v32  ;;  %8239 = vmatpush1.bf16.msra.mxu1 %v24126_v42  ;;  %v9293_v18 = vadd.f32 %v19448_v3, %v19425_v28  ;;  %v9449_v37 = vmul.f32 %v19448_v3, %v19448_v3  ;;  %v19475_v42 = vld [vmem:[%s23264_s1 + $0x9f8] sm:$0xff]  ;;  %v24128_v28 = vld [vmem:[#allocation55_spill] sm:$0xff]  ;;  %v24132_v3 = vld [vmem:[#allocation158_spill] sm:$0xff] }
 0x281   :  { %v8861_v60 = vmul.f32 %v13989_v7, %v24094_v41  ;;  %v13991_v55 = vadd.f32 %v24127_v50, %v6250_v31  ;;  %v9568_v32 = vadd.f32 %v9448_v11, %v9440_v9  ;;  %v9032_v33 = vadd.f32 %v24098_v40, %v8860_v39  ;;  %7516 = vmatmul.mubr.bf16.gmra.mrb[48].mxu0 %v24128_v28  ;;  %v19484_v50 = vld [vmem:[%s23264_s1 + $0xa08] sm:$0xff]  ;;  %v24131_v39 = vld [vmem:[#allocation157_spill] sm:$0xff] }
 0x282   :  { %v8868_v46 = vmul.f32 %v13990_v35, %v18851_v38  ;;  %8240 = vmatprep.subr.bf16.mxu1 %v18955_v21  ;;  %v9589_v13 = vadd.f32 %v9449_v37, %v9441_v47  ;;  %7573 = vmatpush1.bf16.msra.mxu0 %v18957_v56  ;;  %v24129_v9 = vld [vmem:[#allocation34_spill] sm:$0xff]  ;;  %v1392_v35 = vunpack.c.l.s8.bf16 %v19463_v23  ;;  %v1396_v47 = vunpack.c.l.s8.bf16 %v19475_v42  ;;  %v24136_v23 = vld [vmem:[#allocation56_spill] sm:$0xff] }
 0x283   :  { %v9033_v7 = vadd.f32 %v24102_v19, %v8861_v60  ;;  %v8869_v31 = vmul.f32 %v13991_v55, %v24094_v41  ;;  %8173 = vmatprep.mubr.bf16.mxu1 %v24129_v9  ;;  %v19491_v11 = vmax.f32 %v9032_v33, 0.0  ;;  %7574 = vmatprep.subr.bf16.mxu0 %v24132_v3  ;;  %v24133_v37 = vld [vmem:[#allocation206_spill] sm:$0xff]  ;;  %v6254_v55 = vpop.f32.mrb[8].mxu0  ;;  %v24135_v9 = vld [vmem:[#allocation159_spill] sm:$0xff]  ;;  %v1400_v3 = vunpack.c.l.s8.bf16 %v19484_v50 }
 0x284   :  { %v9040_v21 = vadd.f32 %v24098_v40, %v8868_v46  ;;  %8241 = vmatpush1.bf16.msra.mxu1 %v24131_v39  ;;  %v1225_v60 = vunpack.c.h.s8.bf16 %v24133_v37  ;;  %7525 = vmatprep.mubr.bf16.mxu0 %v24136_v23  ;;  %v24137_v33 = vld [vmem:[#allocation207_spill] sm:$0xff]  ;;  %v679_v46 = vld [vmem:[%s23264_s1 + $0xa18] sm:$0xff]  ;;  %v19577_v61 = vcombine.low %v1392_v35, %v1396_v47  ;;  %v24164_v15 = vld [vmem:[#allocation58_spill] sm:$0xff] }
 0x285   :  { %24130 = vst [vmem:[#allocation202_spill] sm:$0xff] %v19491_v11  ;;  %v19498_v22 = vmax.f32 %v9033_v7, 0.0  ;;  %v9041_v56 = vadd.f32 %v24102_v19, %v8869_v31  ;;  %8242 = vmatprep.subr.bf16.mxu1 %v24135_v9  ;;  %v1229_v59 = vunpack.c.h.s8.bf16 %v24137_v33  ;;  %v9273_v42 = vadd.f32 %v9272_v6, %v19491_v11  ;;  %v24139_v31 = vld [vmem:[#allocation71_spill] sm:$0xff]  ;;  %v6256_v9 = vpop.f32.mrb[9].mxu0 }
 0x286   :  { %v9456_v7 = vmul.f32 %v19491_v11, %v19491_v11  ;;  %v19511_v39 = vmax.f32 %v9040_v21, 0.0  ;;  %v19514_v37 = vadd.f32 %v24139_v31, %v6254_v55  ;;  %v19522_v50 = vadd.f32 %v24141_v26, %v6256_v9  ;;  %v24142_v6 = vld [vmem:[#allocation35_spill] sm:$0xff]  ;;  %v6258_v58 = vpop.f32.mrb[10].mxu0  ;;  %v24143_v11 = vld [vmem:[#allocation160_spill] sm:$0xff]  ;;  %v24144_v31 = vld [vmem:[#allocation161_spill] sm:$0xff] }
 0x287   :  { %24134 = vst [vmem:[#allocation172_spill] sm:$0xff] %v19498_v22  ;;  %v9294_v23 = vadd.f32 %v9293_v18, %v19498_v22  ;;  %v9457_v33 = vmul.f32 %v19498_v22, %v19498_v22  ;;  %v19519_v28 = vmax.f32 %v9041_v56, 0.0  ;;  %8174 = vmatmul.mubr.bf16.gmra.mrb[72].mxu1 %v24142_v6  ;;  %7575 = vmatpush1.bf16.msra.mxu0 %v24143_v11  ;;  %v6260_v22 = vpop.f32.mrb[11].mxu0  ;;  %v1404_v56 = vunpack.c.l.s8.bf16 %v679_v46  ;;  %v24145_v6 = vld [vmem:[#allocation21_spill] sm:$0xff] }
 0x288   :  { %24138 = vst [vmem:[#allocation19_spill] sm:$0xff] %v19511_v39  ;;  %v9569_v21 = vadd.f32 %v9568_v32, %v9456_v7  ;;  %v19527_v55 = vadd.f32 %v9273_v42, %v19511_v39  ;;  %v9464_v18 = vmul.f32 %v19511_v39, %v19511_v39  ;;  %8243 = vmatpush1.bf16.msra.mxu1 %v24144_v31  ;;  %v24146_v32 = vld [vmem:[#allocation20_spill] sm:$0xff]  ;;  %v681_v42 = vld [vmem:[%s23264_s1 + $0xa28] sm:$0xff]  ;;  %v24149_v39 = vld [vmem:[#allocation57_spill] sm:$0xff] }
 0x289   :  { %24140 = vst [vmem:[#allocation199_spill] sm:$0xff] %v19519_v28  ;;  %v9590_v2 = vadd.f32 %v9589_v13, %v9457_v33  ;;  %v19533_v26 = vadd.f32 %v9294_v23, %v19519_v28  ;;  %v9465_v9 = vmul.f32 %v19519_v28, %v19519_v28  ;;  %7576 = vmatprep.subr.bf16.mxu0 %v24145_v6  ;;  %v1233_v11 = vunpack.c.h.s8.bf16 %v24146_v32  ;;  %v683_v7 = vld [vmem:[%s23264_s1 + $0xa38] sm:$0xff]  ;;  %v24147_v13 = vld [vmem:[#allocation73_spill] sm:$0xff]  ;;  %v24148_v33 = vld [vmem:[#allocation74_spill] sm:$0xff] }
 0x28a   :  { %v19545_v46 = vadd.f32 %v9569_v21, %v9464_v18  ;;  %v19548_v23 = vadd.f32 %v24147_v13, %v6258_v58  ;;  %v19551_v31 = vadd.f32 %v24148_v33, %v6260_v22  ;;  %7526 = vmatmul.mubr.bf16.gmra.mrb[52].mxu0 %v24149_v39  ;;  %v24150_v6 = vld [vmem:[#allocation156_spill] sm:$0xff]  ;;  %8244 = vmatprep.subr.bf16.mxu1 %v24151_v51  ;;  %v24154_v21 = vunpack.c.h.s8.bf16 %v24100_v44  ;;  %v685_v22 = vld [vmem:[%s23264_s1 + $0xa48] sm:$0xff]  ;;  %v6264_v13 = vpop.f32.mrb[12].mxu0 }
 0x28b   :  { %v1237_v32 = vunpack.c.h.s8.bf16 %v24150_v6  ;;  %v19555_v28 = vadd.f32 %v9590_v2, %v9465_v9  ;;  %7577 = vmatpush1.bf16.msra.mxu0 %v24152_v63  ;;  %v19565_v58 = vcombine.high %v1392_v35, %v1396_v47  ;;  %v687_v2 = vld [vmem:[%s23264_s1 + $0xa58] sm:$0xff]  ;;  %v24157_v9 = vld [vmem:[#allocation211_spill] sm:$0xff]  ;;  %v19575_v63 = vcombine.high %v1225_v60, %v1229_v59  ;;  %v24160_v6 = vld [vmem:[#allocation213_spill] sm:$0xff]  ;;  %7535 = vmatprep.mubr.bf16.mxu0 %v24164_v15 }
 0x28c   :  { %v19563_v18 = vcombine.low %v24154_v21, %v24153_v8  ;;  %8245 = vmatpush1.bf16.msra.mxu1 %v24157_v9  ;;  %v24158_v51 = vld [vmem:[#allocation36_spill] sm:$0xff]  ;;  %v1408_v8 = vunpack.c.l.s8.bf16 %v681_v42  ;;  %v1412_v44 = vunpack.c.l.s8.bf16 %v683_v7  ;;  %v19581_v21 = vcombine.low %v1225_v60, %v1229_v59  ;;  %v24163_v9 = vld [vmem:[#allocation163_spill] sm:$0xff]  ;;  %v689_v59 = vld [vmem:[%s23264_s1 + $0xa68] sm:$0xff] }
 0x28d   :  { %24156 = vst [vmem:[#allocation203_spill] sm:$0xff] %v19565_v58  ;;  %8183 = vmatprep.mubr.bf16.mxu1 %v24158_v51  ;;  %v24159_v33 = vld [vmem:[#allocation212_spill] sm:$0xff]  ;;  %8246 = vmatprep.subr.bf16.mxu1 %v24160_v6  ;;  %v19583_v39 = vcombine.high %v1400_v3, %v1404_v56  ;;  %v24162_v58 = vld [vmem:[#allocation162_spill] sm:$0xff]  ;;  %v1245_v52 = vunpack.c.h.s8.bf16 %v24163_v9  ;;  %v6266_v51 = vpop.f32.mrb[13].mxu0  ;;  %v19588_v35 = vcombine.high %v1233_v11, %v1237_v32  ;;  %v1416_v42 = vunpack.c.l.s8.bf16 %v685_v22  ;;  %v24169_v15 = vld [vmem:[#allocation37_spill] sm:$0xff] }
 0x28e   :  { %24155 = vst [vmem:[#allocation200_spill] sm:$0xff] %v19563_v18  ;;  %7578 = vmatprep.subr.bf16.mxu0 %v24159_v33  ;;  %v1241_v18 = vunpack.c.h.s8.bf16 %v24162_v58  ;;  %v19590_v47 = vcombine.low %v1400_v3, %v1404_v56  ;;  %v1420_v7 = vunpack.c.l.s8.bf16 %v687_v2  ;;  %v691_v60 = vld [vmem:[%s23264_s1 + $0xa78] sm:$0xff]  ;;  %v24167_v58 = vld [vmem:[#allocation77_spill] sm:$0xff]  ;;  %v24168_v6 = vld [vmem:[#allocation78_spill] sm:$0xff]  ;;  %v6268_v3 = vpop.f32.mrb[14].mxu0  ;;  %v1249_v56 = vunpack.c.h.s8.bf16 %v18990_v43 }
 0x28f   :  { %24161 = vst [vmem:[#allocation65_spill] sm:$0xff] %v19583_v39  ;;  %24165 = vst [vmem:[#allocation66_spill] sm:$0xff] %v19588_v35  ;;  %v19599_v33 = vadd.f32 %v24167_v58, %v6264_v13  ;;  %v19602_v9 = vadd.f32 %v24168_v6, %v6266_v51  ;;  %8184 = vmatmul.mubr.bf16.gmra.mrb[76].mxu1 %v24169_v15  ;;  %v24170_v22 = vld [vmem:[#allocation210_spill] sm:$0xff]  ;;  %7579 = vmatpush1.bf16.msra.mxu0 %v19044_v25  ;;  %v6270_v39 = vpop.f32.mrb[15].mxu0  ;;  %v695_v43 = vld [vmem:[%s23264_s1 + $0xa98] sm:$0xff] }
 0x290   :  { %24166 = vst [vmem:[#allocation33_spill] sm:$0xff] %v19590_v47  ;;  %v1253_v2 = vunpack.c.h.s8.bf16 %v24170_v22  ;;  %v24171_v47 = vld [vmem:[#allocation79_spill] sm:$0xff]  ;;  %8247 = vmatpush1.bf16.msra.mxu1 %v19046_v12  ;;  %v19612_v13 = vcombine.low %v1233_v11, %v1237_v32  ;;  %v19614_v58 = vcombine.high %v1408_v8, %v1412_v44  ;;  %v693_v15 = vld [vmem:[%s23264_s1 + $0xa88] sm:$0xff]  ;;  %v24174_v51 = vld [vmem:[#allocation80_spill] sm:$0xff]  ;;  %7580 = vmatprep.subr.bf16.mxu0 %v19051_v48  ;;  %v1424_v12 = vunpack.c.l.s8.bf16 %v689_v59 }
 0x291   :  { %v19608_v35 = vadd.f32 %v24171_v47, %v6268_v3  ;;  %v19623_v47 = vadd.f32 %v24174_v51, %v6270_v39  ;;  %v19626_v25 = vcombine.high %v1241_v18, %v1245_v52  ;;  %v1428_v11 = vunpack.c.l.s8.bf16 %v691_v60  ;;  %v24176_v32 = vld [vmem:[#allocation63_spill] sm:$0xff]  ;;  %8248 = vmatprep.subr.bf16.mxu1 %v19053_v36  ;;  %v697_v36 = vld [vmem:[%s23264_s1 + $0xaa8] sm:$0xff] }
 0x292   :  { %24172 = vst [vmem:[#allocation204_spill] sm:$0xff] %v19612_v13  ;;  %24173 = vst [vmem:[#allocation67_spill] sm:$0xff] %v19614_v58  ;;  %7536 = vmatmul.mubr.bf16.gmra.mrb[56].mxu0 %v24176_v32  ;;  %v19629_v6 = vcombine.low %v1408_v8, %v1412_v44  ;;  %v19631_v3 = vcombine.low %v1241_v18, %v1245_v52  ;;  %v1257_v22 = vunpack.c.h.s8.bf16 %v19008_v29  ;;  %v24177_v58 = vld [vmem:[#allocation214_spill] sm:$0xff]  ;;  %v1432_v48 = vunpack.c.l.s8.bf16 %v693_v15  ;;  %v699_v18 = vld [vmem:[%s23264_s1 + $0xab8] sm:$0xff] }
 0x293   :  { %24175 = vst [vmem:[#allocation205_spill] sm:$0xff] %v19626_v25  ;;  %v1261_v13 = vunpack.c.h.s8.bf16 %v24177_v58  ;;  %v19636_v39 = vcombine.high %v1416_v42, %v1420_v7  ;;  %v19638_v51 = vcombine.high %v1249_v56, %v1253_v2  ;;  %v1436_v25 = vunpack.c.l.s8.bf16 %v695_v43  ;;  %7581 = vmatpush1.bf16.msra.mxu0 %v19055_v4  ;;  %v24180_v44 = vld [vmem:[#allocation38_spill] sm:$0xff]  ;;  %v24184_v58 = vld [vmem:[#allocation64_spill] sm:$0xff]  ;;  %v24187_v43 = vld [vmem:[#allocation39_spill] sm:$0xff] }
 0x294   :  { %v8876_v59 = vmul.f32 %v19514_v37, %v18851_v38  ;;  %8249 = vmatpush1.bf16.msra.mxu1 %v19057_v1  ;;  %v19644_v52 = vcombine.low %v1416_v42, %v1420_v7  ;;  %v19646_v29 = vcombine.low %v1249_v56, %v1253_v2  ;;  %v8877_v8 = vmul.f32 %v19522_v50, %v24094_v41  ;;  %v6274_v37 = vpop.f32.mrb[16].mxu0  ;;  %v24182_v7 = vld [vmem:[#allocation83_spill] sm:$0xff]  ;;  %v24183_v2 = vld [vmem:[#allocation149_spill] sm:$0xff] }
 0x295   :  { %8193 = vmatprep.mubr.bf16.mxu1 %v24180_v44  ;;  %7582 = vmatprep.subr.bf16.mxu0 %v19059_v49  ;;  %v19658_v4 = vcombine.high %v1424_v12, %v1428_v11  ;;  %v1265_v1 = vunpack.c.h.s8.bf16 %v19024_v62  ;;  %v1269_v42 = vunpack.c.h.s8.bf16 %v19029_v24  ;;  %v19663_v60 = vadd.f32 %v24182_v7, %v6274_v37  ;;  %v6276_v56 = vpop.f32.mrb[17].mxu0  ;;  %v701_v37 = vld [vmem:[%s23264_s1 + $0xac8] sm:$0xff]  ;;  %v703_v7 = vld [vmem:[%s23264_s1 + $0xad8] sm:$0xff] }
 0x296   :  { %24178 = vst [vmem:[#allocation68_spill] sm:$0xff] %v19644_v52  ;;  %24179 = vst [vmem:[#allocation34_spill] sm:$0xff] %v19646_v29  ;;  %8250 = vmatprep.subr.bf16.mxu1 %v24183_v2  ;;  %7545 = vmatprep.mubr.bf16.mxu0 %v24184_v58  ;;  %v19667_v50 = vcombine.high %v1257_v22, %v1261_v13  ;;  %v19669_v15 = vcombine.low %v1424_v12, %v1428_v11  ;;  %v6278_v49 = vpop.f32.mrb[18].mxu0  ;;  %v1440_v24 = vunpack.c.l.s8.bf16 %v697_v36  ;;  %v24190_v11 = vld [vmem:[#allocation84_spill] sm:$0xff]  ;;  %v24195_v29 = vld [vmem:[#allocation86_spill] sm:$0xff] }
 0x297   :  { %24181 = vst [vmem:[#allocation157_spill] sm:$0xff] %v19658_v4  ;;  %8194 = vmatmul.mubr.bf16.gmra.mrb[80].mxu1 %v24187_v43  ;;  %v19672_v44 = vcombine.low %v1257_v22, %v1261_v13  ;;  %v19674_v62 = vcombine.high %v1432_v48, %v1436_v25  ;;  %v1444_v4 = vunpack.c.l.s8.bf16 %v699_v18  ;;  %v9048_v12 = vadd.f32 %v24098_v40, %v8876_v59  ;;  %v24191_v43 = vld [vmem:[#allocation22_spill] sm:$0xff]  ;;  %v24192_v13 = vld [vmem:[#allocation164_spill] sm:$0xff]  ;;  %v6280_v22 = vpop.f32.mrb[19].mxu0  ;;  %v24193_v18 = vld [vmem:[#allocation165_spill] sm:$0xff] }
 0x298   :  { %24185 = vst [vmem:[#allocation158_spill] sm:$0xff] %v19667_v50  ;;  %24186 = vst [vmem:[#allocation206_spill] sm:$0xff] %v19669_v15  ;;  %v19684_v2 = vadd.f32 %v24190_v11, %v6276_v56  ;;  %7583 = vmatpush1.bf16.msra.mxu0 %v24191_v43  ;;  %8251 = vmatpush1.bf16.msra.mxu1 %v24192_v13  ;;  %v1273_v36 = vunpack.c.h.s8.bf16 %v19070_v45  ;;  %v24194_v15 = vld [vmem:[#allocation85_spill] sm:$0xff]  ;;  %v19695_v52 = vadd.f32 %v24195_v29, %v6280_v22  ;;  %v24196_v59 = vld [vmem:[#allocation166_spill] sm:$0xff] }
 0x299   :  { %24188 = vst [vmem:[#allocation159_spill] sm:$0xff] %v19672_v44  ;;  %24189 = vst [vmem:[#allocation207_spill] sm:$0xff] %v19674_v62  ;;  %v1277_v62 = vunpack.c.h.s8.bf16 %v24193_v18  ;;  %v9049_v44 = vadd.f32 %v24102_v19, %v8877_v8  ;;  %v19692_v50 = vadd.f32 %v24194_v15, %v6278_v49  ;;  %7584 = vmatprep.subr.bf16.mxu0 %v24196_v59  ;;  %v24198_v11 = vld [vmem:[#allocation69_spill] sm:$0xff]  ;;  %v1448_v45 = vunpack.c.l.s8.bf16 %v701_v37  ;;  %v705_v8 = vld [vmem:[%s23264_s1 + $0xae8] sm:$0xff] }
 0x29a   :  { %v19698_v56 = vcombine.high %v1265_v1, %v1269_v42  ;;  %7546 = vmatmul.mubr.bf16.gmra.mrb[60].mxu0 %v24198_v11  ;;  %v19701_v43 = vcombine.low %v1432_v48, %v1436_v25  ;;  %v19703_v13 = vcombine.low %v1265_v1, %v1269_v42  ;;  %v1452_v18 = vunpack.c.l.s8.bf16 %v703_v7  ;;  %v707_v29 = vld [vmem:[%s23264_s1 + $0xaf8] sm:$0xff]  ;;  %v24201_v25 = vld [vmem:[#allocation167_spill] sm:$0xff]  ;;  %v24203_v42 = vld [vmem:[#allocation169_spill] sm:$0xff] }
 0x29b   :  { %v8884_v15 = vmul.f32 %v19548_v23, %v18851_v38  ;;  %v8885_v49 = vmul.f32 %v19551_v31, %v24094_v41  ;;  %8252 = vmatprep.subr.bf16.mxu1 %v24201_v25  ;;  %v24202_v48 = vld [vmem:[#allocation168_spill] sm:$0xff]  ;;  %v1285_v37 = vunpack.c.h.s8.bf16 %v24203_v42  ;;  %v19718_v7 = vmax.f32 %v9048_v12, 0.0  ;;  %v24205_v22 = vld [vmem:[#allocation23_spill] sm:$0xff]  ;;  %v24206_v59 = vld [vmem:[#allocation170_spill] sm:$0xff]  ;;  %v6284_v31 = vpop.f32.mrb[20].mxu0 }
 0x29c   :  { %24197 = vst [vmem:[#allocation71_spill] sm:$0xff] %v19698_v56  ;;  %24199 = vst [vmem:[#allocation72_spill] sm:$0xff] %v19701_v43  ;;  %v1281_v1 = vunpack.c.h.s8.bf16 %v24202_v48  ;;  %7585 = vmatpush1.bf16.msra.mxu0 %v24205_v22  ;;  %8253 = vmatpush1.bf16.msra.mxu1 %v24206_v59  ;;  %v19724_v43 = vcombine.high %v1273_v36, %v1277_v62  ;;  %v19726_v23 = vcombine.low %v1440_v24, %v1444_v4  ;;  %v24209_v25 = vld [vmem:[#allocation40_spill] sm:$0xff]  ;;  %v24210_v48 = vld [vmem:[#allocation171_spill] sm:$0xff]  ;;  %v6286_v59 = vpop.f32.mrb[21].mxu0 }
 0x29d   :  { %24200 = vst [vmem:[#allocation35_spill] sm:$0xff] %v19703_v13  ;;  %24204 = vst [vmem:[#allocation160_spill] sm:$0xff] %v19718_v7  ;;  %v19722_v13 = vcombine.high %v1440_v24, %v1444_v4  ;;  %v19728_v56 = vmax.f32 %v9049_v44, 0.0  ;;  %8203 = vmatprep.mubr.bf16.mxu1 %v24209_v25  ;;  %7586 = vmatprep.subr.bf16.mxu0 %v24210_v48  ;;  %v19732_v42 = vcombine.low %v1273_v36, %v1277_v62  ;;  %v24211_v22 = vld [vmem:[#allocation89_spill] sm:$0xff]  ;;  %v24217_v48 = vld [vmem:[#allocation90_spill] sm:$0xff] }
 0x29e   :  { %24207 = vst [vmem:[#allocation161_spill] sm:$0xff] %v19724_v43  ;;  %v1456_v12 = vunpack.c.l.s8.bf16 %v705_v8  ;;  %v1460_v11 = vunpack.c.l.s8.bf16 %v707_v29  ;;  %v19735_v58 = vadd.f32 %v24211_v22, %v6284_v31  ;;  %8254 = vmatprep.subr.bf16.mxu1 %v19126_v34  ;;  %v24212_v43 = vld [vmem:[#allocation70_spill] sm:$0xff]  ;;  %v19739_v4 = vcombine.high %v1448_v45, %v1452_v18  ;;  %v24214_v36 = vld [vmem:[#allocation41_spill] sm:$0xff]  ;;  %v6288_v8 = vpop.f32.mrb[22].mxu0 }
 0x29f   :  { %24208 = vst [vmem:[#allocation21_spill] sm:$0xff] %v19728_v56  ;;  %7588 = vmatprep.mubr.bf16.mxu0 %v24212_v43  ;;  %v1289_v44 = vunpack.c.h.s8.bf16 %v19112_v30  ;;  %v1293_v24 = vunpack.c.h.s8.bf16 %v19117_v53  ;;  %v9056_v25 = vadd.f32 %v24098_v40, %v8884_v15  ;;  %v9057_v62 = vadd.f32 %v24102_v19, %v8885_v49  ;;  %8204 = vmatmul.mubr.bf16.gmra.mrb[84].mxu1 %v24214_v36  ;;  %v709_v34 = vld [vmem:[%s23264_s1 + $0xb08] sm:$0xff]  ;;  %v24218_v15 = vld [vmem:[#allocation91_spill] sm:$0xff]  ;;  %v24219_v49 = vld [vmem:[#allocation24_spill] sm:$0xff]  ;;  %v6290_v36 = vpop.f32.mrb[23].mxu0 }
 0x2a0   :  { %24213 = vst [vmem:[#allocation20_spill] sm:$0xff] %v19739_v4  ;;  %v19746_v29 = vcombine.high %v1281_v1, %v1285_v37  ;;  %v19748_v31 = vcombine.low %v1448_v45, %v1452_v18  ;;  %v9472_v30 = vmul.f32 %v19718_v7, %v19718_v7  ;;  %v19756_v53 = vadd.f32 %v24217_v48, %v6286_v59  ;;  %v24223_v48 = vld [vmem:[#allocation176_spill] sm:$0xff] }
 0x2a1   :  { %v19759_v22 = vadd.f32 %v24218_v15, %v6288_v8  ;;  %7587 = vmatpush1.bf16.msra.mxu0 %v19128_v0  ;;  %8255 = vmatpush1.bf16.msra.mxu1 %v24219_v49  ;;  %v9473_v45 = vmul.f32 %v19728_v56, %v19728_v56  ;;  %v8892_v18 = vmul.f32 %v19599_v33, %v18851_v38  ;;  %v711_v8 = vld [vmem:[%s23264_s1 + $0xb18] sm:$0xff]  ;;  %v1464_v33 = vunpack.c.l.s8.bf16 %v709_v34 }
 0x2a2   :  { %24215 = vst [vmem:[#allocation73_spill] sm:$0xff] %v19746_v29  ;;  %24216 = vst [vmem:[#allocation74_spill] sm:$0xff] %v19748_v31  ;;  %v24220_v31 = vld [vmem:[#allocation146_spill] sm:$0xff]  ;;  %v19768_v29 = vcombine.low %v1281_v1, %v1285_v37  ;;  %v19770_v59 = vcombine.high %v1456_v12, %v1460_v11  ;;  %v8893_v0 = vmul.f32 %v19602_v9, %v24094_v41  ;;  %8256 = vmatprep.subr.bf16.mxu1 %v24223_v48  ;;  %v24228_v37 = vld [vmem:[#allocation92_spill] sm:$0xff] }
 0x2a3   :  { %7669 = vmatprep.subr.bf16.mxu0 %v24220_v31  ;;  %v19778_v15 = vcombine.high %v1289_v44, %v1293_v24  ;;  %v19780_v49 = vcombine.low %v1456_v12, %v1460_v11  ;;  %v19782_v4 = vmax.f32 %v9056_v25, 0.0  ;;  %v19784_v1 = vmax.f32 %v9057_v62, 0.0  ;;  %v24231_v12 = vld [vmem:[#allocation147_spill] sm:$0xff]  ;;  %v24232_v25 = vld [vmem:[#allocation148_spill] sm:$0xff] }
 0x2a4   :  { %24221 = vst [vmem:[#allocation156_spill] sm:$0xff] %v19768_v29  ;;  %24222 = vst [vmem:[#allocation208_spill] sm:$0xff] %v19770_v59  ;;  %v19787_v31 = vadd.f32 %v24228_v37, %v6290_v36  ;;  %v24229_v59 = vld [vmem:[#allocation75_spill] sm:$0xff]  ;;  %v19790_v29 = vcombine.low %v1289_v44, %v1293_v24  ;;  %v9275_v9 = vadd.f32 %v19527_v55, %v19718_v7  ;;  %v1468_v62 = vunpack.c.l.s8.bf16 %v711_v8  ;;  %v6294_v24 = vpop.f32.mrb[24].mxu0  ;;  %v24233_v37 = vld [vmem:[#allocation42_spill] sm:$0xff] }
 0x2a5   :  { %24224 = vst [vmem:[#allocation209_spill] sm:$0xff] %v19778_v15  ;;  %24225 = vst [vmem:[#allocation211_spill] sm:$0xff] %v19780_v49  ;;  %7589 = vmatmul.mubr.bf16.vlgmr.msra.gmra.mrb[32].mxu0 %v24229_v59  ;;  %v9571_v48 = vadd.f32 %v19545_v46, %v9472_v30  ;;  %v9296_v11 = vadd.f32 %v19533_v26, %v19728_v56  ;;  %8257 = vmatpush1.bf16.msra.mxu1 %v24232_v25  ;;  %v24234_v55 = vld [vmem:[#allocation215_spill] sm:$0xff]  ;;  %v6296_v8 = vpop.f32.mrb[25].mxu0  ;;  %v24238_v25 = vld [vmem:[#allocation96_spill] sm:$0xff] }
 0x2a6   :  { %24226 = vst [vmem:[#allocation36_spill] sm:$0xff] %v19782_v4  ;;  %24227 = vst [vmem:[#allocation212_spill] sm:$0xff] %v19784_v1  ;;  %7670 = vmatpush1.bf16.msra.mxu0 %v24231_v12  ;;  %v9592_v34 = vadd.f32 %v19555_v28, %v9473_v45  ;;  %v9064_v36 = vadd.f32 %v24098_v40, %v8892_v18  ;;  %v8900_v44 = vmul.f32 %v19608_v35, %v18851_v38  ;;  %v24235_v30 = vld [vmem:[#allocation95_spill] sm:$0xff]  ;;  %v24236_v28 = vld [vmem:[#allocation216_spill] sm:$0xff] }
 0x2a7   :  { %24230 = vst [vmem:[#allocation213_spill] sm:$0xff] %v19790_v29  ;;  %8213 = vmatprep.mubr.bf16.mxu1 %v24233_v37  ;;  %7671 = vmatprep.subr.bf16.mxu0 %v24234_v55  ;;  %v9065_v46 = vadd.f32 %v24102_v19, %v8893_v0  ;;  %v8901_v26 = vmul.f32 %v19623_v47, %v24094_v41  ;;  %v24237_v45 = vld [vmem:[#allocation76_spill] sm:$0xff]  ;;  %v24239_v47 = vld [vmem:[#allocation43_spill] sm:$0xff]  ;;  %v24240_v55 = vld [vmem:[#allocation217_spill] sm:$0xff] }
 0x2a8   :  { %v19809_v12 = vadd.f32 %v24235_v30, %v6294_v24  ;;  %8258 = vmatprep.subr.bf16.mxu1 %v24236_v28  ;;  %7598 = vmatprep.mubr.bf16.mxu0 %v24237_v45  ;;  %v9480_v35 = vmul.f32 %v19782_v4, %v19782_v4  ;;  %v9481_v18 = vmul.f32 %v19784_v1, %v19784_v1  ;;  %v6298_v24 = vpop.f32.mrb[26].mxu0  ;;  %v24242_v7 = vld [vmem:[#allocation174_spill] sm:$0xff]  ;;  %v24243_v29 = vld [vmem:[#allocation175_spill] sm:$0xff] }
 0x2a9   :  { %v8908_v0 = vmul.f32 %v19663_v60, %v18851_v38  ;;  %v19820_v37 = vadd.f32 %v24238_v25, %v6296_v8  ;;  %8214 = vmatmul.mubr.bf16.gmra.mrb[88].mxu1 %v24239_v47  ;;  %v6300_v30 = vpop.f32.mrb[27].mxu0  ;;  %v19824_v28 = vcombine.high %v1464_v33, %v1468_v62  ;;  %v1297_v56 = vunpack.c.h.s8.bf16 %v24242_v7  ;;  %v24246_v47 = vld [vmem:[#allocation218_spill] sm:$0xff] }
 0x2aa   :  { %7672 = vmatpush1.bf16.msra.mxu0 %v24240_v55  ;;  %v1301_v49 = vunpack.c.h.s8.bf16 %v24243_v29  ;;  %v19828_v15 = vcombine.low %v1464_v33, %v1468_v62  ;;  %v9276_v45 = vadd.f32 %v9275_v9, %v19782_v4  ;;  %v19831_v60 = vmax.f32 %v9064_v36, 0.0  ;;  %8259 = vmatpush1.bf16.msra.mxu1 %v24246_v47  ;;  %v24247_v55 = vld [vmem:[#allocation25_spill] sm:$0xff]  ;;  %v19841_v7 = vld [vmem:[%s23264_s1 + $0xb28] sm:$0xff] }
 0x2ab   :  { %24241 = vst [vmem:[#allocation162_spill] sm:$0xff] %v19824_v28  ;;  %v9072_v8 = vadd.f32 %v24098_v40, %v8900_v44  ;;  %v8909_v25 = vmul.f32 %v19684_v2, %v24094_v41  ;;  %7673 = vmatprep.subr.bf16.mxu0 %v24247_v55  ;;  %v19843_v29 = vmax.f32 %v9065_v46, 0.0  ;;  %v9073_v33 = vadd.f32 %v24102_v19, %v8901_v26  ;;  %v24249_v9 = vld [vmem:[#allocation97_spill] sm:$0xff]  ;;  %v24250_v36 = vld [vmem:[#allocation98_spill] sm:$0xff]  ;;  %v24251_v2 = vld [vmem:[#allocation219_spill] sm:$0xff] }
 0x2ac   :  { %24244 = vst [vmem:[#allocation163_spill] sm:$0xff] %v19828_v15  ;;  %24245 = vst [vmem:[#allocation77_spill] sm:$0xff] %v19831_v60  ;;  %v19847_v62 = vadd.f32 %v24249_v9, %v6298_v24  ;;  %v19850_v44 = vadd.f32 %v24250_v36, %v6300_v30  ;;  %8260 = vmatprep.subr.bf16.mxu1 %v24251_v2  ;;  %v9572_v47 = vadd.f32 %v9571_v48, %v9480_v35  ;;  %v24252_v28 = vld [vmem:[#allocation81_spill] sm:$0xff]  ;;  %v24253_v24 = vld [vmem:[#allocation220_spill] sm:$0xff] }
 0x2ad   :  { %24248 = vst [vmem:[#allocation78_spill] sm:$0xff] %v19843_v29  ;;  %v9297_v55 = vadd.f32 %v9296_v11, %v19784_v1  ;;  %v9593_v4 = vadd.f32 %v9592_v34, %v9481_v18  ;;  %v9080_v15 = vadd.f32 %v24098_v40, %v8908_v0  ;;  %7599 = vmatmul.mubr.bf16.gmra.mrb[36].mxu0 %v24252_v28  ;;  %v24254_v30 = vld [vmem:[#allocation44_spill] sm:$0xff]  ;;  %v19868_v35 = vmax.f32 %v9072_v8, 0.0  ;;  %v24263_v1 = vld [vmem:[#allocation103_spill] sm:$0xff] }
 0x2ae   :  { %v8916_v46 = vmul.f32 %v19692_v50, %v18851_v38  ;;  %v8917_v26 = vmul.f32 %v19695_v52, %v24094_v41  ;;  %7674 = vmatpush1.bf16.msra.mxu0 %v24253_v24  ;;  %8223 = vmatprep.mubr.bf16.mxu1 %v24254_v30  ;;  %v19862_v9 = vcombine.high %v1297_v56, %v1301_v49  ;;  %v6304_v52 = vpop.f32.mrb[28].mxu0  ;;  %v19876_v18 = vld [vmem:[%s23264_s1 + $0xb38] sm:$0xff]  ;;  %v19881_v36 = vmax.f32 %v9073_v33, 0.0  ;;  %v24260_v24 = vld [vmem:[#allocation101_spill] sm:$0xff] }
 0x2af   :  { %v9277_v11 = vadd.f32 %v9276_v45, %v19831_v60  ;;  %v9488_v34 = vmul.f32 %v19831_v60, %v19831_v60  ;;  %24256 = vst [vmem:[#allocation210_spill] sm:$0xff] %v19868_v35  ;;  %v9081_v50 = vadd.f32 %v24102_v19, %v8909_v25  ;;  %8261 = vmatpush1.bf16.msra.mxu1 %v19206_v16  ;;  %v6306_v25 = vpop.f32.mrb[29].mxu0  ;;  %v24258_v16 = vld [vmem:[#allocation13_spill] sm:$0xff]  ;;  %v19886_v2 = vmax.f32 %v9080_v15, 0.0  ;;  %v24264_v15 = vld [vmem:[#allocation26_spill] sm:$0xff] }
 0x2b0   :  { %24255 = vst [vmem:[#allocation37_spill] sm:$0xff] %v19862_v9  ;;  %7675 = vmatprep.subr.bf16.mxu0 %v19208_v17  ;;  %v9298_v0 = vadd.f32 %v9297_v55, %v19843_v29  ;;  %v9489_v45 = vmul.f32 %v19843_v29, %v19843_v29  ;;  %24257 = vst [vmem:[#allocation79_spill] sm:$0xff] %v19881_v36  ;;  %v8924_v8 = vmul.f32 %v19735_v58, %v18851_v38  ;;  %v24261_v55 = vld [vmem:[#allocation102_spill] sm:$0xff]  ;;  %v24262_v60 = vld [vmem:[#allocation45_spill] sm:$0xff]  ;;  %v6308_v33 = vpop.f32.mrb[30].mxu0 }
 0x2b1   :  { %8262 = vmatprep.subr.bf16.mxu1 %v24258_v16  ;;  %24259 = vst [vmem:[#allocation80_spill] sm:$0xff] %v19886_v2  ;;  %v8925_v17 = vmul.f32 %v19756_v53, %v24094_v41  ;;  %v19891_v30 = vadd.f32 %v24260_v24, %v6304_v52  ;;  %v19894_v48 = vadd.f32 %v24261_v55, %v6306_v25  ;;  %v6310_v9 = vpop.f32.mrb[31].mxu0  ;;  %v24265_v53 = vld [vmem:[#allocation82_spill] sm:$0xff] }
 0x2b2   :  { %8224 = vmatmul.mubr.bf16.gmra.mrb[92].mxu1 %v24262_v60  ;;  %v9088_v29 = vadd.f32 %v24098_v40, %v8916_v46  ;;  %v9089_v58 = vadd.f32 %v24102_v19, %v8917_v26  ;;  %v19900_v16 = vadd.f32 %v24263_v1, %v6308_v33  ;;  %7676 = vmatpush1.bf16.msra.mxu0 %v24264_v15  ;;  %v19907_v60 = vmax.f32 %v9081_v50, 0.0  ;;  %v24267_v55 = vld [vmem:[#allocation150_spill] sm:$0xff]  ;;  %v24268_v46 = vld [vmem:[#allocation104_spill] sm:$0xff] }
 0x2b3   :  { %7608 = vmatprep.mubr.bf16.mxu0 %v24265_v53  ;;  %v9573_v24 = vadd.f32 %v9572_v47, %v9488_v34  ;;  %v9496_v25 = vmul.f32 %v19868_v35, %v19868_v35  ;;  %8263 = vmatpush1.bf16.msra.mxu1 %v24267_v55  ;;  %v19911_v26 = vadd.f32 %v24268_v46, %v6310_v9  ;;  %v24269_v53 = vld [vmem:[#allocation177_spill] sm:$0xff]  ;;  %v24270_v9 = vld [vmem:[#allocation87_spill] sm:$0xff] }
 0x2b4   :  { %24266 = vst [vmem:[#allocation63_spill] sm:$0xff] %v19907_v60  ;;  %v9594_v1 = vadd.f32 %v9593_v4, %v9489_v45  ;;  %v9497_v33 = vmul.f32 %v19881_v36, %v19881_v36  ;;  %v9096_v15 = vadd.f32 %v24098_v40, %v8924_v8  ;;  %7677 = vmatprep.subr.bf16.mxu0 %v24269_v53  ;;  %v19929_v53 = vmax.f32 %v9088_v29, 0.0  ;;  %v24274_v55 = vld [vmem:[#allocation179_spill] sm:$0xff]  ;;  %v19944_v29 = vld [vmem:[%s23264_s1 + $0x888] sm:$0xff] }
 0x2b5   :  { %v19917_v52 = vcombine.low %v1297_v56, %v1301_v49  ;;  %v9504_v47 = vmul.f32 %v19886_v2, %v19886_v2  ;;  %v9097_v34 = vadd.f32 %v24102_v19, %v8925_v17  ;;  %v8932_v50 = vmul.f32 %v19759_v22, %v18851_v38  ;;  %7609 = vmatmul.mubr.bf16.gmra.mrb[40].mxu0 %v24270_v9  ;;  %v24273_v49 = vld [vmem:[#allocation178_spill] sm:$0xff]  ;;  %v24275_v46 = vld [vmem:[#allocation183_spill] sm:$0xff] }
 0x2b6   :  { %v8933_v4 = vmul.f32 %v19787_v31, %v24094_v41  ;;  %v9278_v45 = vadd.f32 %v9277_v11, %v19868_v35  ;;  %v9299_v8 = vadd.f32 %v9298_v0, %v19881_v36  ;;  %24271 = vst [vmem:[#allocation214_spill] sm:$0xff] %v19929_v53  ;;  %v19931_v56 = vmax.f32 %v9089_v58, 0.0  ;;  %8264 = vmatprep.subr.bf16.mxu1 %v24273_v49  ;;  %v24276_v11 = vld [vmem:[#allocation46_spill] sm:$0xff] }
 0x2b7   :  { %7678 = vmatpush1.bf16.msra.mxu0 %v24274_v55  ;;  %v9574_v17 = vadd.f32 %v9573_v24, %v9496_v25  ;;  %v9505_v22 = vmul.f32 %v19907_v60, %v19907_v60  ;;  %v8940_v31 = vmul.f32 %v19809_v12, %v18851_v38  ;;  %8265 = vmatpush1.bf16.msra.mxu1 %v24275_v46  ;;  %v1305_v0 = vunpack.c.h.s8.bf16 %v19944_v29  ;;  %v24278_v12 = vld [vmem:[#allocation184_spill] sm:$0xff] }
 0x2b8   :  { %24272 = vst [vmem:[#allocation38_spill] sm:$0xff] %v19931_v56  ;;  %8266 = vmatprep.mubr.bf16.mxu1 %v24276_v11  ;;  %v9595_v58 = vadd.f32 %v9594_v1, %v9497_v33  ;;  %v9279_v24 = vadd.f32 %v9278_v45, %v19886_v2  ;;  %v19948_v25 = vmax.f32 %v9096_v15, 0.0  ;;  %v8941_v49 = vmul.f32 %v19820_v37, %v24094_v41  ;;  %v24279_v55 = vld [vmem:[#allocation8_spill] sm:$0xff]  ;;  %v24282_v15 = vld [vmem:[#allocation47_spill] sm:$0xff]  ;;  %v24286_v2 = vld [vmem:[#allocation222_spill] sm:$0xff] }
 0x2b9   :  { %7679 = vmatprep.subr.bf16.mxu0 %v24278_v12  ;;  %8347 = vmatprep.subr.bf16.mxu1 %v24279_v55  ;;  %v9575_v46 = vadd.f32 %v9574_v17, %v9504_v47  ;;  %v19954_v11 = vmax.f32 %v9097_v34, 0.0  ;;  %v9104_v35 = vadd.f32 %v24098_v40, %v8932_v50  ;;  %v9105_v36 = vadd.f32 %v24102_v19, %v8933_v4  ;;  %v24281_v29 = vld [vmem:[#allocation88_spill] sm:$0xff]  ;;  %v24284_v17 = vld [vmem:[#allocation27_spill] sm:$0xff]  ;;  %v24285_v12 = vld [vmem:[#allocation221_spill] sm:$0xff] }
 0x2ba   :  { %24277 = vst [vmem:[#allocation83_spill] sm:$0xff] %v19948_v25  ;;  %7618 = vmatprep.mubr.bf16.mxu0 %v24281_v29  ;;  %v9300_v1 = vadd.f32 %v9299_v8, %v19907_v60  ;;  %v9512_v33 = vmul.f32 %v19929_v53, %v19929_v53  ;;  %v9513_v37 = vmul.f32 %v19931_v56, %v19931_v56  ;;  %v24283_v45 = vld [vmem:[#allocation180_spill] sm:$0xff] }
 0x2bb   :  { %24280 = vst [vmem:[#allocation149_spill] sm:$0xff] %v19954_v11  ;;  %8267 = vmatmul.mubr.bf16.vlgmr.msra.gmra.mrb[64].mxu1 %v24282_v15  ;;  %7680 = vmatpush1.bf16.msra.mxu0 %v24283_v45  ;;  %v15133_v47 = vld [vmem:[%s23264_s1 + $0x898] sm:$0xff]  ;;  %v9596_v50 = vadd.f32 %v9595_v58, %v9505_v22  ;;  %v9112_v4 = vadd.f32 %v24098_v40, %v8940_v31  ;;  %v24287_v22 = vunpack.c.l.s8.bf16 %v19876_v18  ;;  %v24288_v31 = vunpack.c.l.s8.bf16 %v19841_v7 }
 0x2bc   :  { %v1309_v34 = vunpack.c.h.s8.bf16 %v15133_v47  ;;  %v8948_v8 = vmul.f32 %v19847_v62, %v18851_v38  ;;  %8348 = vmatpush1.bf16.msra.mxu1 %v24284_v17  ;;  %7681 = vmatprep.subr.bf16.mxu0 %v24285_v12  ;;  %v9520_v55 = vmul.f32 %v19948_v25, %v19948_v25  ;;  %v9113_v15 = vadd.f32 %v24102_v19, %v8941_v49  ;;  %v24291_v49 = vld [vmem:[#allocation93_spill] sm:$0xff] }
 0x2bd   :  { %v8949_v45 = vmul.f32 %v19850_v44, %v24094_v41  ;;  %8349 = vmatprep.subr.bf16.mxu1 %v24286_v2  ;;  %v19984_v58 = vcombine.high %v24288_v31, %v24287_v22  ;;  %v9280_v62 = vadd.f32 %v9279_v24, %v19929_v53  ;;  %v9521_v47 = vmul.f32 %v19954_v11, %v19954_v11  ;;  %v24292_v44 = vld [vmem:[#allocation48_spill] sm:$0xff]  ;;  %v24293_v22 = vld [vmem:[#allocation94_spill] sm:$0xff] }
 0x2be   :  { %v19989_v17 = vmax.f32 %v9104_v35, 0.0  ;;  %v19991_v12 = vmax.f32 %v9105_v36, 0.0  ;;  %7619 = vmatmul.mubr.bf16.gmra.mrb[44].mxu0 %v24291_v49  ;;  %8276 = vmatprep.mubr.bf16.mxu1 %v24292_v44  ;;  %v9576_v2 = vadd.f32 %v9575_v46, %v9512_v33  ;;  %v9301_v60 = vadd.f32 %v9300_v1, %v19931_v56  ;;  %v717_v46 = vld [vmem:[%s23264_s1 + $0xb48] sm:$0xff]  ;;  %v24341_v56 = vld [vmem:[#allocation107_spill] sm:$0xff] }
 0x2bf   :  { %7682 = vmatpush1.bf16.msra.mxu0 %v19280_v57  ;;  %7628 = vmatprep.mubr.bf16.mxu0 %v24293_v22  ;;  %v19998_v31 = vcombine.high %v1305_v0, %v1309_v34  ;;  %v9597_v24 = vadd.f32 %v9596_v50, %v9513_v37  ;;  %v9281_v53 = vadd.f32 %v9280_v62, %v19948_v25  ;;  %v20001_v35 = vmax.f32 %v9112_v4, 0.0  ;;  %v719_v50 = vld [vmem:[%s23264_s1 + $0xb58] sm:$0xff]  ;;  %v24355_v22 = vld [vmem:[#allocation153_spill] sm:$0xff]  ;;  %v24363_v49 = vld [vmem:[#allocation203_spill] sm:$0xff] }
 0x2c0   :  { %24289 = vst [vmem:[#allocation39_spill] sm:$0xff] %v19989_v17  ;;  %24290 = vst [vmem:[#allocation84_spill] sm:$0xff] %v19991_v12  ;;  %v9120_v36 = vadd.f32 %v24098_v40, %v8948_v8  ;;  %8350 = vmatpush1.bf16.msra.mxu1 %v19282_v10  ;;  %7683 = vmatprep.subr.bf16.mxu0 %v19284_v54  ;;  %v9577_v57 = vadd.f32 %v9576_v2, %v9520_v55  ;;  %v20010_v33 = vmax.f32 %v9113_v15, 0.0  ;;  %v24296_v55 = vld [vmem:[#allocation49_spill] sm:$0xff] }
 0x2c1   :  { %24294 = vst [vmem:[#allocation22_spill] sm:$0xff] %v20001_v35  ;;  %v9302_v1 = vadd.f32 %v9301_v60, %v19954_v11  ;;  %v9121_v37 = vadd.f32 %v24102_v19, %v8949_v45  ;;  %8351 = vmatprep.subr.bf16.mxu1 %v19288_v5  ;;  %v9598_v10 = vadd.f32 %v9597_v24, %v9521_v47  ;;  %v24297_v5 = vunpack.c.l.s8.bf16 %v19876_v18  ;;  %v24334_v11 = vld [vmem:[#allocation195_spill] sm:$0xff] }
 0x2c2   :  { %24295 = vst [vmem:[#allocation164_spill] sm:$0xff] %v20010_v33  ;;  %v9528_v54 = vmul.f32 %v19989_v17, %v19989_v17  ;;  %v9529_v4 = vmul.f32 %v19991_v12, %v19991_v12  ;;  %v8956_v60 = vmul.f32 %v19891_v30, %v18851_v38  ;;  %v8957_v8 = vmul.f32 %v19894_v48, %v24094_v41  ;;  %v24300_v48 = vld [vmem:[#allocation181_spill] sm:$0xff] }
 0x2c3   :  { %8277 = vmatmul.mubr.bf16.gmra.mrb[68].mxu1 %v24296_v55  ;;  %7684 = vmatpush1.bf16.msra.mxu0 %v19292_v27  ;;  %v24298_v15 = vunpack.c.l.s8.bf16 %v19841_v7  ;;  %v20033_v62 = vcombine.low %v1305_v0, %v1309_v34  ;;  %v1480_v47 = vunpack.c.l.s8.bf16 %v717_v46  ;;  %v9536_v44 = vmul.f32 %v20001_v35, %v20001_v35  ;;  %v15134_v27 = vld [vmem:[%s23264_s1 + $0x8a8] sm:$0xff] }
 0x2c4   :  { %v20037_v30 = vmax.f32 %v9120_v36, 0.0  ;;  %8352 = vmatpush1.bf16.msra.mxu1 %v19294_v14  ;;  %7685 = vmatprep.subr.bf16.mxu0 %v24300_v48  ;;  %v1484_v2 = vunpack.c.l.s8.bf16 %v719_v50  ;;  %v1313_v7 = vunpack.c.h.s8.bf16 %v15134_v27  ;;  %v9282_v18 = vadd.f32 %v9281_v53, %v19989_v17  ;;  %v24302_v36 = vld [vmem:[#allocation182_spill] sm:$0xff]  ;;  %v15135_v53 = vld [vmem:[%s23264_s1 + $0x8b8] sm:$0xff]  ;;  %v24328_v17 = vld [vmem:[#allocation151_spill] sm:$0xff] }
 0x2c5   :  { %v20031_v45 = vcombine.low %v24298_v15, %v24297_v5  ;;  %v9303_v0 = vadd.f32 %v9302_v1, %v19991_v12  ;;  %v9537_v34 = vmul.f32 %v20010_v33, %v20010_v33  ;;  %v20048_v24 = vmax.f32 %v9121_v37, 0.0  ;;  %8353 = vmatprep.subr.bf16.mxu1 %v24302_v36  ;;  %v24303_v14 = vld [vmem:[#allocation50_spill] sm:$0xff]  ;;  %v24304_v5 = vld [vmem:[#allocation99_spill] sm:$0xff]  ;;  %v24306_v36 = vld [vmem:[#allocation100_spill] sm:$0xff] }
 0x2c6   :  { %24299 = vst [vmem:[#allocation165_spill] sm:$0xff] %v20037_v30  ;;  %8286 = vmatprep.mubr.bf16.mxu1 %v24303_v14  ;;  %v9578_v46 = vadd.f32 %v9577_v57, %v9528_v54  ;;  %v9599_v50 = vadd.f32 %v9598_v10, %v9529_v4  ;;  %v9128_v55 = vadd.f32 %v24098_v40, %v8956_v60  ;;  %v1317_v1 = vunpack.c.h.s8.bf16 %v15135_v53  ;;  %v24305_v27 = vld [vmem:[#allocation134_spill] sm:$0xff]  ;;  %v723_v10 = vld [vmem:[%s23264_s1 + $0xb78] sm:$0xff] }
 0x2c7   :  { %24301 = vst [vmem:[#allocation85_spill] sm:$0xff] %v20048_v24  ;;  %7629 = vmatmul.mubr.bf16.gmra.mrb[48].mxu0 %v24304_v5  ;;  %v9283_v15 = vadd.f32 %v9282_v18, %v20001_v35  ;;  %v9304_v37 = vadd.f32 %v9303_v0, %v20010_v33  ;;  %v9129_v48 = vadd.f32 %v24102_v19, %v8957_v8  ;;  %v721_v57 = vld [vmem:[%s23264_s1 + $0xb68] sm:$0xff]  ;;  %v24307_v8 = vld [vmem:[#allocation28_spill] sm:$0xff]  ;;  %v24308_v18 = vld [vmem:[#allocation185_spill] sm:$0xff] }
 0x2c8   :  { %7686 = vmatpush1.bf16.msra.mxu0 %v24305_v27  ;;  %7638 = vmatprep.mubr.bf16.mxu0 %v24306_v36  ;;  %v9579_v54 = vadd.f32 %v9578_v46, %v9536_v44  ;;  %v9544_v4 = vmul.f32 %v20037_v30, %v20037_v30  ;;  %v8964_v60 = vmul.f32 %v19900_v16, %v18851_v38  ;;  %v24309_v27 = vld [vmem:[#allocation186_spill] sm:$0xff]  ;;  %v20081_v46 = vmax.f32 %v9128_v55, 0.0  ;;  %v24313_v33 = vld [vmem:[#allocation188_spill] sm:$0xff]  ;;  %v24346_v5 = vld [vmem:[#allocation61_spill] sm:$0xff] }
 0x2c9   :  { %8354 = vmatpush1.bf16.msra.mxu1 %v24307_v8  ;;  %7687 = vmatprep.subr.bf16.mxu0 %v24308_v18  ;;  %v9600_v0 = vadd.f32 %v9599_v50, %v9537_v34  ;;  %v9545_v14 = vmul.f32 %v20048_v24, %v20048_v24  ;;  %v8965_v53 = vmul.f32 %v19911_v26, %v24094_v41  ;;  %v1488_v38 = vunpack.c.l.s8.bf16 %v721_v57  ;;  %v24312_v34 = vld [vmem:[#allocation187_spill] sm:$0xff]  ;;  %v24314_v57 = vld [vmem:[#allocation190_spill] sm:$0xff]  ;;  %v24345_v36 = vld [vmem:[#allocation60_spill] sm:$0xff] }
 0x2ca   :  { %8355 = vmatprep.subr.bf16.mxu1 %v24309_v27  ;;  %v20079_v44 = vcombine.high %v1480_v47, %v1484_v2  ;;  %24310 = vst [vmem:[#allocation86_spill] sm:$0xff] %v20081_v46  ;;  %v20083_v35 = vcombine.high %v1313_v7, %v1317_v1  ;;  %v1492_v16 = vunpack.c.l.s8.bf16 %v723_v10  ;;  %v9284_v8 = vadd.f32 %v9283_v15, %v20037_v30  ;;  %v7138_v10 = vpop.f32.mrb[32].mxu1  ;;  %v24324_v30 = vld [vmem:[#allocation193_spill] sm:$0xff] }
 0x2cb   :  { %v20086_v18 = vmax.f32 %v9129_v48, 0.0  ;;  %8287 = vmatmul.mubr.bf16.gmra.mrb[72].mxu1 %v24072_v20  ;;  %v20090_v50 = vcombine.low %v1480_v47, %v1484_v2  ;;  %v20092_v41 = vcombine.low %v1313_v7, %v1317_v1  ;;  %v9580_v26 = vadd.f32 %v9579_v54, %v9544_v4  ;;  %v24315_v20 = vld [vmem:[#allocation192_spill] sm:$0xff]  ;;  %v15136_v47 = vld [vmem:[%s23264_s1 + $0x8c8] sm:$0xff]  ;;  %v24317_v1 = vld [vmem:[#allocation189_spill] sm:$0xff] }
 0x2cc   :  { %7688 = vmatpush1.bf16.msra.mxu0 %v24312_v34  ;;  %v9305_v55 = vadd.f32 %v9304_v37, %v20048_v24  ;;  %v9136_v27 = vadd.f32 %v24098_v40, %v8964_v60  ;;  %v9601_v15 = vadd.f32 %v9600_v0, %v9545_v14  ;;  %v9137_v48 = vadd.f32 %v24102_v19, %v8965_v53  ;;  %v24316_v34 = vld [vmem:[#allocation52_spill] sm:$0xff]  ;;  %v7140_v37 = vpop.f32.mrb[33].mxu1  ;;  %v24318_v54 = vld [vmem:[#allocation105_spill] sm:$0xff]  ;;  %v24320_v53 = vld [vmem:[#allocation191_spill] sm:$0xff] }
 0x2cd   :  { %24311 = vst [vmem:[#allocation166_spill] sm:$0xff] %v20086_v18  ;;  %8356 = vmatpush1.bf16.msra.mxu1 %v24313_v33  ;;  %7689 = vmatprep.subr.bf16.mxu0 %v24314_v57  ;;  %v1321_v2 = vunpack.c.h.s8.bf16 %v15136_v47  ;;  %v15137_v40 = vld [vmem:[%s23264_s1 + $0x8d8] sm:$0xff]  ;;  %v9552_v7 = vmul.f32 %v20081_v46, %v20081_v46  ;;  %v8846_v19 = vmul.f32 %v24317_v1, %v7138_v10  ;;  %v24322_v47 = vld [vmem:[#allocation106_spill] sm:$0xff] }
 0x2ce   :  { %8357 = vmatprep.subr.bf16.mxu1 %v24315_v20  ;;  %8296 = vmatprep.mubr.bf16.mxu1 %v24316_v34  ;;  %v1325_v33 = vunpack.c.h.s8.bf16 %v15137_v40  ;;  %v20111_v4 = vcombine.high %v1488_v38, %v1492_v16  ;;  %v20113_v60 = vcombine.low %v1488_v38, %v1492_v16  ;;  %v9285_v0 = vadd.f32 %v9284_v8, %v20081_v46  ;;  %v7142_v20 = vpop.f32.mrb[34].mxu1  ;;  %v24321_v34 = vld [vmem:[#allocation29_spill] sm:$0xff]  ;;  %v24326_v46 = vld [vmem:[#allocation16_spill] sm:$0xff] }
 0x2cf   :  { %7639 = vmatmul.mubr.bf16.gmra.mrb[52].mxu0 %v24318_v54  ;;  %v9553_v14 = vmul.f32 %v20086_v18, %v20086_v18  ;;  %v8847_v57 = vmul.f32 %v24320_v53, %v7140_v37  ;;  %v9306_v10 = vadd.f32 %v9305_v55, %v20086_v18  ;;  %v20122_v40 = vmax.f32 %v9136_v27, 0.0  ;;  %v24325_v16 = vld [vmem:[#allocation133_spill] sm:$0xff]  ;;  %v7144_v8 = vpop.f32.mrb[35].mxu1  ;;  %v20131_v37 = vld [vmem:[%s23264_s1 + $0xb88] sm:$0xff]  ;;  %v24344_v54 = vld [vmem:[#allocation59_spill] sm:$0xff] }
 0x2d0   :  { %24319 = vst [vmem:[#allocation167_spill] sm:$0xff] %v20113_v60  ;;  %7690 = vmatpush1.bf16.msra.mxu0 %v24321_v34  ;;  %7648 = vmatprep.mubr.bf16.mxu0 %v24322_v47  ;;  %v9018_v24 = vadd.f32 %v24324_v30, %v8846_v19  ;;  %v8854_v38 = vmul.f32 %v24317_v1, %v7142_v20  ;;  %v20133_v34 = vmax.f32 %v9137_v48, 0.0  ;;  %v24329_v18 = vld [vmem:[#allocation194_spill] sm:$0xff]  ;;  %v20143_v20 = vld [vmem:[%s23264_s1 + $0xb98] sm:$0xff] }
 0x2d1   :  { %24323 = vst [vmem:[#allocation168_spill] sm:$0xff] %v20122_v40  ;;  %8358 = vmatpush1.bf16.msra.mxu1 %v24325_v16  ;;  %7691 = vmatprep.subr.bf16.mxu0 %v24326_v46  ;;  %v9019_v55 = vadd.f32 %v24328_v17, %v8847_v57  ;;  %v8855_v27 = vmul.f32 %v24320_v53, %v7144_v8 }
 0x2d2   :  { %24327 = vst [vmem:[#allocation169_spill] sm:$0xff] %v20133_v34  ;;  %8359 = vmatprep.subr.bf16.mxu1 %v24329_v18  ;;  %v20138_v19 = vcombine.high %v1321_v2, %v1325_v33  ;;  %v9581_v46 = vadd.f32 %v9580_v26, %v9552_v7  ;;  %v20145_v16 = vmax.f32 %v9018_v24, 0.0  ;;  %v9026_v25 = vadd.f32 %v24324_v30, %v8854_v38  ;;  %v24333_v18 = vld [vmem:[#allocation53_spill] sm:$0xff]  ;;  %v7148_v38 = vpop.f32.mrb[36].mxu1 }
 0x2d3   :  { %v20148_v48 = vcombine.low %v1321_v2, %v1325_v33  ;;  %v9602_v12 = vadd.f32 %v9601_v15, %v9553_v14  ;;  %v20150_v57 = vmax.f32 %v9019_v55, 0.0  ;;  %v9027_v8 = vadd.f32 %v24328_v17, %v8855_v27  ;;  %8297 = vmatmul.mubr.bf16.gmra.mrb[76].mxu1 %v24333_v18  ;;  %v24336_v2 = vld [vmem:[#allocation30_spill] sm:$0xff]  ;;  %v24337_v15 = vld [vmem:[#allocation196_spill] sm:$0xff] }
 0x2d4   :  { %24330 = vst [vmem:[#allocation23_spill] sm:$0xff] %v20145_v16  ;;  %7692 = vmatpush1.bf16.msra.mxu0 %v24334_v11  ;;  %v20157_v47 = vadd.f32 %v9285_v0, %v20122_v40  ;;  %v9560_v24 = vmul.f32 %v20122_v40, %v20122_v40  ;;  %v20161_v26 = vmax.f32 %v9026_v25, 0.0  ;;  %v20167_v7 = vadd.f32 %v9306_v10, %v20133_v34  ;;  %v24339_v25 = vld [vmem:[#allocation197_spill] sm:$0xff]  ;;  %v24340_v55 = vld [vmem:[#allocation54_spill] sm:$0xff]  ;;  %v24342_v40 = vld [vmem:[#allocation51_spill] sm:$0xff] }
 0x2d5   :  { %24331 = vst [vmem:[#allocation170_spill] sm:$0xff] %v20148_v48  ;;  %24332 = vst [vmem:[#allocation40_spill] sm:$0xff] %v20150_v57  ;;  %8360 = vmatpush1.bf16.msra.mxu1 %v24336_v2  ;;  %7693 = vmatprep.subr.bf16.mxu0 %v24337_v15  ;;  %v9561_v11 = vmul.f32 %v20133_v34, %v20133_v34  ;;  %v9442_v0 = vmul.f32 %v20145_v16, %v20145_v16  ;;  %v20173_v14 = vmax.f32 %v9027_v8, 0.0  ;;  %v7150_v15 = vpop.f32.mrb[37].mxu1  ;;  %v24343_v34 = vld [vmem:[#allocation108_spill] sm:$0xff] }
 0x2d6   :  { %24335 = vst [vmem:[#allocation171_spill] sm:$0xff] %v20161_v26  ;;  %8361 = vmatprep.subr.bf16.mxu1 %v24339_v25  ;;  %8306 = vmatprep.mubr.bf16.mxu1 %v24340_v55  ;;  %v9443_v27 = vmul.f32 %v20150_v57, %v20150_v57  ;;  %v9314_v10 = vadd.f32 %v20161_v26, %v20145_v16  ;;  %v7152_v33 = vpop.f32.mrb[38].mxu1  ;;  %v24362_v48 = vld [vmem:[#allocation200_spill] sm:$0xff] }
 0x2d7   :  { %24338 = vst [vmem:[#allocation89_spill] sm:$0xff] %v20173_v14  ;;  %v9450_v18 = vmul.f32 %v20161_v26, %v20161_v26  ;;  %v8862_v2 = vmul.f32 %v24317_v1, %v7148_v38  ;;  %7649 = vmatmul.mubr.bf16.gmra.mrb[56].mxu0 %v24341_v56  ;;  %v9335_v8 = vadd.f32 %v20173_v14, %v20150_v57  ;;  %v7154_v56 = vpop.f32.mrb[39].mxu1 }
 0x2d8   :  { %v9451_v25 = vmul.f32 %v20173_v14, %v20173_v14  ;;  %v8863_v55 = vmul.f32 %v24320_v53, %v7150_v15  ;;  %7694 = vmatpush1.bf16.msra.mxu0 %v24342_v40  ;;  %7658 = vmatprep.mubr.bf16.mxu0 %v24343_v34  ;;  %v8870_v38 = vmul.f32 %v24317_v1, %v7152_v33  ;;  %v24347_v40 = vunpack.c.l.s8.bf16 %v20143_v20 }
 0x2d9   :  { %v9610_v16 = vadd.f32 %v9450_v18, %v9442_v0  ;;  %v9034_v26 = vadd.f32 %v24324_v30, %v8862_v2  ;;  %8362 = vmatpush1.bf16.msra.mxu1 %v24344_v54  ;;  %7695 = vmatprep.subr.bf16.mxu0 %v24345_v36  ;;  %v8871_v15 = vmul.f32 %v24320_v53, %v7154_v56  ;;  %v24348_v0 = vunpack.c.l.s8.bf16 %v20131_v37  ;;  %v20211_v36 = vld [vmem:[%s23264_s1 + $0x8e8] sm:$0xff]  ;;  %v20217_v56 = vld [vmem:[%s23264_s1 + $0x8f8] sm:$0xff] }
 0x2da   :  { %v9631_v57 = vadd.f32 %v9451_v25, %v9443_v27  ;;  %v9035_v14 = vadd.f32 %v24328_v17, %v8863_v55  ;;  %8363 = vmatprep.subr.bf16.mxu1 %v24346_v5  ;;  %v9042_v54 = vadd.f32 %v24324_v30, %v8870_v38  ;;  %v1333_v5 = vunpack.c.h.s8.bf16 %v20217_v56  ;;  %v24352_v38 = vld [vmem:[#allocation55_spill] sm:$0xff] }
 0x2db   :  { %v20203_v18 = vcombine.high %v24348_v0, %v24347_v40  ;;  %v20205_v2 = vmax.f32 %v9034_v26, 0.0  ;;  %v9287_v27 = vrot.slane %v20157_v47, 4  ;;  %v20221_v26 = vadd.f32 %v9581_v46, %v9560_v24  ;;  %8307 = vmatmul.mubr.bf16.gmra.mrb[80].mxu1 %v24352_v38  ;;  %v24353_v40 = vld [vmem:[#allocation154_spill] sm:$0xff] }
 0x2dc   :  { %v20223_v25 = vmax.f32 %v9035_v14, 0.0  ;;  %v9043_v55 = vadd.f32 %v24328_v17, %v8871_v15  ;;  %7696 = vmatpush1.bf16.msra.mxu0 %v24353_v40  ;;  %v9308_v0 = vrot.slane %v20167_v7, 4  ;;  %v20232_v56 = vmax.f32 %v9042_v54, 0.0  ;;  %v24356_v46 = vld [vmem:[#allocation62_spill] sm:$0xff]  ;;  %v7158_v40 = vpop.f32.mrb[40].mxu1 }
 0x2dd   :  { %24349 = vst [vmem:[#allocation70_spill] sm:$0xff] %v20203_v18  ;;  %24350 = vst [vmem:[#allocation41_spill] sm:$0xff] %v20205_v2  ;;  %v9315_v33 = vadd.f32 %v9314_v10, %v20205_v2  ;;  %v9458_v34 = vmul.f32 %v20205_v2, %v20205_v2  ;;  %8364 = vmatpush1.bf16.msra.mxu1 %v24355_v22  ;;  %7697 = vmatprep.subr.bf16.mxu0 %v24356_v46  ;;  %v24358_v10 = vld [vmem:[#allocation32_spill] sm:$0xff]  ;;  %v729_v22 = vld [vmem:[%s23264_s1 + $0xba8] sm:$0xff]  ;;  %v7160_v46 = vpop.f32.mrb[41].mxu1 }
 0x2de   :  { %24351 = vst [vmem:[#allocation90_spill] sm:$0xff] %v20223_v25  ;;  %24354 = vst [vmem:[#allocation91_spill] sm:$0xff] %v20232_v56  ;;  %v20236_v24 = vadd.f32 %v9602_v12, %v9561_v11  ;;  %v9336_v14 = vadd.f32 %v9335_v8, %v20223_v25  ;;  %v9459_v15 = vmul.f32 %v20223_v25, %v20223_v25  ;;  %v20241_v38 = vmax.f32 %v9043_v55, 0.0  ;;  %v24359_v18 = vld [vmem:[#allocation56_spill] sm:$0xff]  ;;  %v24360_v55 = vld [vmem:[#allocation109_spill] sm:$0xff] }
 0x2df   :  { %8365 = vmatprep.subr.bf16.mxu1 %v24358_v10  ;;  %8316 = vmatprep.mubr.bf16.mxu1 %v24359_v18  ;;  %v9611_v54 = vadd.f32 %v9610_v16, %v9458_v34  ;;  %v9316_v12 = vadd.f32 %v9315_v33, %v20232_v56  ;;  %v9466_v11 = vmul.f32 %v20232_v56, %v20232_v56  ;;  %v731_v10 = vld [vmem:[%s23264_s1 + $0xbb8] sm:$0xff]  ;;  %v7162_v33 = vpop.f32.mrb[42].mxu1 }
 0x2e0   :  { %24357 = vst [vmem:[#allocation24_spill] sm:$0xff] %v20241_v38  ;;  %v8878_v8 = vmul.f32 %v24317_v1, %v7158_v40  ;;  %7659 = vmatmul.mubr.bf16.gmra.mrb[60].mxu0 %v24360_v55  ;;  %v9632_v18 = vadd.f32 %v9631_v57, %v9459_v15  ;;  %v9337_v2 = vadd.f32 %v9336_v14, %v20241_v38  ;;  %v24361_v25 = vld [vmem:[#allocation152_spill] sm:$0xff]  ;;  %v7164_v60 = vpop.f32.mrb[43].mxu1  ;;  %v1504_v57 = vunpack.c.l.s8.bf16 %v729_v22 }
 0x2e1   :  { %v9467_v34 = vmul.f32 %v20241_v38, %v20241_v38  ;;  %v8879_v16 = vmul.f32 %v24320_v53, %v7160_v46  ;;  %7698 = vmatpush1.bf16.msra.mxu0 %v24361_v25  ;;  %v9612_v56 = vadd.f32 %v9611_v54, %v9466_v11  ;;  %v8886_v55 = vmul.f32 %v24317_v1, %v7162_v33  ;;  %v24364_v46 = vld [vmem:[#allocation110_spill] sm:$0xff] }
 0x2e2   :  { %v9050_v40 = vadd.f32 %v24324_v30, %v8878_v8  ;;  %8366 = vmatpush1.bf16.msra.mxu1 %v24362_v48  ;;  %7699 = vmatprep.subr.bf16.mxu0 %v24363_v49  ;;  %v8887_v38 = vmul.f32 %v24320_v53, %v7164_v60  ;;  %v1508_v25 = vunpack.c.l.s8.bf16 %v731_v10  ;;  %v9583_v54 = vrot.slane %v20221_v26, 4 }
 0x2e3   :  { %v9633_v14 = vadd.f32 %v9632_v18, %v9467_v34  ;;  %v9051_v15 = vadd.f32 %v24328_v17, %v8879_v16  ;;  %8367 = vmatprep.subr.bf16.mxu1 %v19575_v63  ;;  %7701 = vmatprep.mubr.bf16.mxu0 %v24364_v46  ;;  %v9058_v48 = vadd.f32 %v24324_v30, %v8886_v55  ;;  %v24366_v8 = vunpack.c.l.s8.bf16 %v20143_v20  ;;  %v24368_v34 = vld [vmem:[#allocation57_spill] sm:$0xff] }
 0x2e4   :  { %v20270_v11 = vmax.f32 %v9050_v40, 0.0  ;;  %v24367_v49 = vunpack.c.l.s8.bf16 %v20131_v37  ;;  %v9604_v18 = vrot.slane %v20236_v24, 4  ;;  %v9059_v63 = vadd.f32 %v24328_v17, %v8887_v38  ;;  %8317 = vmatmul.mubr.bf16.gmra.mrb[84].mxu1 %v24368_v34  ;;  %v24370_v55 = vld [vmem:[#allocation65_spill] sm:$0xff]  ;;  %v7168_v38 = vpop.f32.mrb[44].mxu1 }
 0x2e5   :  { %v20280_v60 = vmax.f32 %v9051_v15, 0.0  ;;  %7700 = vmatpush1.bf16.msra.mxu0 %v19577_v61  ;;  %v24369_v10 = vunpack.c.h.s8.bf16 %v20211_v36  ;;  %v9288_v20 = vadd.f32 %v9287_v27, %v20157_v47  ;;  %v9309_v37 = vadd.f32 %v9308_v0, %v20167_v7  ;;  %v24372_v15 = vld [vmem:[#allocation66_spill] sm:$0xff] }
 0x2e6   :  { %24365 = vst [vmem:[#allocation146_spill] sm:$0xff] %v20270_v11  ;;  %v20277_v22 = vcombine.low %v24367_v49, %v24366_v8  ;;  %8368 = vmatpush1.bf16.msra.mxu1 %v19581_v21  ;;  %7782 = vmatprep.subr.bf16.mxu0 %v24370_v55  ;;  %v24373_v61 = vld [vmem:[#allocation58_spill] sm:$0xff]  ;;  %v20299_v8 = vcombine.high %v1504_v57, %v1508_v25  ;;  %v15141_v21 = vld [vmem:[%s23264_s1 + $0x918] sm:$0xff]  ;;  %v20314_v49 = vmax.f32 %v9058_v48, 0.0  ;;  %v24376_v55 = vld [vmem:[#allocation111_spill] sm:$0xff] }
 0x2e7   :  { %v20287_v16 = vcombine.high %v24369_v10, %v1333_v5  ;;  %v24371_v33 = vmov %v24369_v10  ;;  %8369 = vmatprep.subr.bf16.mxu1 %v24372_v15  ;;  %8326 = vmatprep.mubr.bf16.mxu1 %v24373_v61  ;;  %v15140_v47 = vld [vmem:[%s23264_s1 + $0x908] sm:$0xff]  ;;  %v1341_v27 = vunpack.c.h.s8.bf16 %v15141_v21  ;;  %v20307_v36 = vcombine.low %v1504_v57, %v1508_v25  ;;  %v7170_v10 = vpop.f32.mrb[45].mxu1  ;;  %v24377_v15 = vld [vmem:[#allocation33_spill] sm:$0xff]  ;;  %v24378_v21 = vld [vmem:[#allocation204_spill] sm:$0xff] }
 0x2e8   :  { %v20295_v40 = vcombine.low %v24371_v33, %v1333_v5  ;;  %v1337_v7 = vunpack.c.h.s8.bf16 %v15140_v47  ;;  %v20310_v5 = vadd.f32 %v9583_v54, %v20221_v26  ;;  %v9474_v0 = vmul.f32 %v20270_v11, %v20270_v11  ;;  %24375 = vst [vmem:[#allocation92_spill] sm:$0xff] %v20314_v49  ;;  %7702 = vmatmul.mubr.bf16.vlgmr.msra.gmra.mrb[32].mxu0 %v24376_v55  ;;  %v7172_v54 = vpop.f32.mrb[46].mxu1 }
 0x2e9   :  { %24374 = vst [vmem:[#allocation176_spill] sm:$0xff] %v20307_v36  ;;  %v8894_v34 = vmul.f32 %v24317_v1, %v7168_v38  ;;  %v20319_v33 = vadd.f32 %v9604_v18, %v20236_v24  ;;  %v9475_v57 = vmul.f32 %v20280_v60, %v20280_v60  ;;  %v20323_v25 = vmax.f32 %v9059_v63, 0.0  ;;  %7783 = vmatpush1.bf16.msra.mxu0 %v24377_v15  ;;  %v7174_v24 = vpop.f32.mrb[47].mxu1  ;;  %v24379_v18 = vld [vmem:[#allocation67_spill] sm:$0xff]  ;;  %v24380_v15 = vld [vmem:[#allocation205_spill] sm:$0xff]  ;;  %v24381_v36 = vld [vmem:[#allocation112_spill] sm:$0xff] }
 0x2ea   :  { %v8895_v26 = vmul.f32 %v24320_v53, %v7170_v10  ;;  %v9289_v48 = vrot.slane %v9288_v20, 2  ;;  %v9317_v61 = vadd.f32 %v9316_v12, %v20270_v11  ;;  %v8902_v47 = vmul.f32 %v24317_v1, %v7172_v54  ;;  %8370 = vmatpush1.bf16.msra.mxu1 %v24378_v21  ;;  %7784 = vmatprep.subr.bf16.mxu0 %v24379_v18  ;;  %v24391_v11 = vld [vmem:[#allocation158_spill] sm:$0xff] }
 0x2eb   :  { %v9066_v38 = vadd.f32 %v24324_v30, %v8894_v34  ;;  %v9310_v55 = vrot.slane %v9309_v37, 2  ;;  %v9338_v63 = vadd.f32 %v9337_v2, %v20280_v60  ;;  %v8903_v46 = vmul.f32 %v24320_v53, %v7174_v24  ;;  %8371 = vmatprep.subr.bf16.mxu1 %v24380_v15  ;;  %7711 = vmatprep.mubr.bf16.mxu0 %v24381_v36  ;;  %v733_v2 = vld [vmem:[%s23264_s1 + $0xbc8] sm:$0xff] }
 0x2ec   :  { %v9067_v10 = vadd.f32 %v24328_v17, %v8895_v26  ;;  %v9613_v12 = vadd.f32 %v9612_v56, %v9474_v0  ;;  %v9482_v34 = vmul.f32 %v20314_v49, %v20314_v49  ;;  %v9074_v21 = vadd.f32 %v24324_v30, %v8902_v47  ;;  %8327 = vmatmul.mubr.bf16.gmra.mrb[88].mxu1 %v24176_v32  ;;  %v7178_v47 = vpop.f32.mrb[48].mxu1  ;;  %v24384_v32 = vld [vmem:[#allocation64_spill] sm:$0xff] }
 0x2ed   :  { %v20339_v54 = vmax.f32 %v9066_v38, 0.0  ;;  %v9634_v18 = vadd.f32 %v9633_v14, %v9475_v57  ;;  %v9483_v26 = vmul.f32 %v20323_v25, %v20323_v25  ;;  %v9075_v15 = vadd.f32 %v24328_v17, %v8903_v46  ;;  %7785 = vmatpush1.bf16.msra.mxu0 %v19629_v6  ;;  %8336 = vmatprep.mubr.bf16.mxu1 %v24384_v32  ;;  %v735_v6 = vld [vmem:[%s23264_s1 + $0xbd8] sm:$0xff] }
 0x2ee   :  { %v20347_v24 = vmax.f32 %v9067_v10, 0.0  ;;  %v20352_v56 = vadd.f32 %v9289_v48, %v9288_v20  ;;  %8372 = vmatpush1.bf16.msra.mxu1 %v19631_v3  ;;  %7786 = vmatprep.subr.bf16.mxu0 %v19636_v39  ;;  %v20356_v0 = vcombine.high %v1337_v7, %v1341_v27  ;;  %v20358_v14 = vcombine.low %v1337_v7, %v1341_v27  ;;  %v7180_v27 = vpop.f32.mrb[49].mxu1 }
 0x2ef   :  { %24382 = vst [vmem:[#allocation75_spill] sm:$0xff] %v20339_v54  ;;  %v20360_v57 = vadd.f32 %v9310_v55, %v9309_v37  ;;  %v9318_v38 = vadd.f32 %v9317_v61, %v20314_v49  ;;  %v9339_v46 = vadd.f32 %v9338_v63, %v20323_v25  ;;  %8373 = vmatprep.subr.bf16.mxu1 %v19638_v51  ;;  %v1512_v3 = vunpack.c.l.s8.bf16 %v733_v2  ;;  %v24386_v55 = vld [vmem:[#allocation113_spill] sm:$0xff]  ;;  %v7182_v10 = vpop.f32.mrb[50].mxu1 }
 0x2f0   :  { %24383 = vst [vmem:[#allocation147_spill] sm:$0xff] %v20347_v24  ;;  %v9614_v39 = vadd.f32 %v9613_v12, %v9482_v34  ;;  %v9490_v20 = vmul.f32 %v20339_v54, %v20339_v54  ;;  %v20371_v37 = vmax.f32 %v9074_v21, 0.0  ;;  %v8910_v7 = vmul.f32 %v24317_v1, %v7178_v47  ;;  %7712 = vmatmul.mubr.bf16.gmra.mrb[36].mxu0 %v24386_v55  ;;  %v24388_v12 = vld [vmem:[#allocation68_spill] sm:$0xff]  ;;  %v24389_v47 = vld [vmem:[#allocation34_spill] sm:$0xff]  ;;  %v7184_v32 = vpop.f32.mrb[51].mxu1 }
 0x2f1   :  { %v9635_v48 = vadd.f32 %v9634_v18, %v9483_v26  ;;  %v9491_v51 = vmul.f32 %v20347_v24, %v20347_v24  ;;  %v20377_v61 = vmax.f32 %v9075_v15, 0.0  ;;  %v8911_v63 = vmul.f32 %v24320_v53, %v7180_v27  ;;  %7787 = vmatpush1.bf16.msra.mxu0 %v24388_v12  ;;  %v24390_v18 = vld [vmem:[#allocation157_spill] sm:$0xff]  ;;  %v24416_v55 = vld [vmem:[#allocation208_spill] sm:$0xff] }
 0x2f2   :  { %24385 = vst [vmem:[#allocation148_spill] sm:$0xff] %v20371_v37  ;;  %v9319_v34 = vadd.f32 %v9318_v38, %v20339_v54  ;;  %v9082_v21 = vadd.f32 %v24324_v30, %v8910_v7  ;;  %v8918_v2 = vmul.f32 %v24317_v1, %v7182_v10  ;;  %8374 = vmatpush1.bf16.msra.mxu1 %v24389_v47  ;;  %v1516_v26 = vunpack.c.l.s8.bf16 %v735_v6  ;;  %v24392_v38 = vld [vmem:[#allocation114_spill] sm:$0xff] }
 0x2f3   :  { %24387 = vst [vmem:[#allocation42_spill] sm:$0xff] %v20377_v61  ;;  %7788 = vmatprep.subr.bf16.mxu0 %v24390_v18  ;;  %v9585_v15 = vrot.slane %v20310_v5, 2  ;;  %v9340_v49 = vadd.f32 %v9339_v46, %v20347_v24  ;;  %v9083_v27 = vadd.f32 %v24328_v17, %v8911_v63  ;;  %v8919_v12 = vmul.f32 %v24320_v53, %v7184_v32  ;;  %v24395_v32 = vld [vmem:[#allocation69_spill] sm:$0xff] }
 0x2f4   :  { %8375 = vmatprep.subr.bf16.mxu1 %v24391_v11  ;;  %7721 = vmatprep.mubr.bf16.mxu0 %v24392_v38  ;;  %v9615_v7 = vadd.f32 %v9614_v39, %v9490_v20  ;;  %v9498_v10 = vmul.f32 %v20371_v37, %v20371_v37  ;;  %v20394_v47 = vmax.f32 %v9082_v21, 0.0  ;;  %v9090_v6 = vadd.f32 %v24324_v30, %v8918_v2  ;;  %v24396_v11 = vld [vmem:[#allocation206_spill] sm:$0xff]  ;;  %v24397_v20 = vld [vmem:[#allocation159_spill] sm:$0xff] }
 0x2f5   :  { %v9636_v18 = vadd.f32 %v9635_v48, %v9491_v51  ;;  %v9499_v46 = vmul.f32 %v20377_v61, %v20377_v61  ;;  %v20399_v54 = vmax.f32 %v9083_v27, 0.0  ;;  %v9091_v63 = vadd.f32 %v24328_v17, %v8919_v12  ;;  %8337 = vmatmul.mubr.bf16.gmra.mrb[92].mxu1 %v24395_v32  ;;  %7789 = vmatpush1.bf16.msra.mxu0 %v24396_v11  ;;  %v24398_v21 = vld [vmem:[#allocation207_spill] sm:$0xff]  ;;  %v20412_v48 = vld [vmem:[%s23264_s1 + $0x928] sm:$0xff]  ;;  %v7188_v11 = vpop.f32.mrb[52].mxu1 }
 0x2f6   :  { %24393 = vst [vmem:[#allocation215_spill] sm:$0xff] %v20394_v47  ;;  %v9606_v39 = vrot.slane %v20319_v33, 2  ;;  %8376 = vmatpush1.bf16.msra.mxu1 %v24397_v20  ;;  %7790 = vmatprep.subr.bf16.mxu0 %v24398_v21  ;;  %v20407_v24 = vcombine.high %v1512_v3, %v1516_v26  ;;  %v20415_v2 = vcombine.low %v1512_v3, %v1516_v26  ;;  %v24399_v20 = vld [vmem:[#allocation71_spill] sm:$0xff]  ;;  %v20427_v21 = vld [vmem:[%s23264_s1 + $0x938] sm:$0xff] }
 0x2f7   :  { %24394 = vst [vmem:[#allocation95_spill] sm:$0xff] %v20399_v54  ;;  %v20418_v27 = vadd.f32 %v9585_v15, %v20310_v5  ;;  %v9320_v12 = vadd.f32 %v9319_v34, %v20371_v37  ;;  %v9341_v32 = vadd.f32 %v9340_v49, %v20377_v61  ;;  %8377 = vmatprep.subr.bf16.mxu1 %v24399_v20  ;;  %v20432_v15 = vmax.f32 %v9090_v6, 0.0  ;;  %v7190_v34 = vpop.f32.mrb[53].mxu1  ;;  %v24401_v51 = vld [vmem:[#allocation115_spill] sm:$0xff] }
 0x2f8   :  { %8379 = vmatprep.mubr.bf16.mxu1 %v24212_v43  ;;  %v9616_v26 = vadd.f32 %v9615_v7, %v9498_v10  ;;  %v9506_v5 = vmul.f32 %v20394_v47, %v20394_v47  ;;  %v8926_v49 = vmul.f32 %v24317_v1, %v7188_v11  ;;  %7722 = vmatmul.mubr.bf16.gmra.mrb[40].mxu0 %v24401_v51  ;;  %v20438_v37 = vmax.f32 %v9091_v63, 0.0  ;;  %v7192_v3 = vpop.f32.mrb[54].mxu1  ;;  %v24403_v7 = vld [vmem:[#allocation72_spill] sm:$0xff]  ;;  %v24404_v51 = vld [vmem:[#allocation35_spill] sm:$0xff]  ;;  %v24405_v10 = vld [vmem:[#allocation161_spill] sm:$0xff] }
 0x2f9   :  { %24400 = vst [vmem:[#allocation216_spill] sm:$0xff] %v20432_v15  ;;  %v9637_v20 = vadd.f32 %v9636_v18, %v9499_v46  ;;  %v9507_v43 = vmul.f32 %v20399_v54, %v20399_v54  ;;  %v8927_v61 = vmul.f32 %v24320_v53, %v7190_v34  ;;  %7791 = vmatpush1.bf16.msra.mxu0 %v24403_v7  ;;  %v7194_v18 = vpop.f32.mrb[55].mxu1  ;;  %v9312_v46 = vrot.slane %v20360_v57, 1 }
 0x2fa   :  { %24402 = vst [vmem:[#allocation96_spill] sm:$0xff] %v20438_v37  ;;  %v9321_v6 = vadd.f32 %v9320_v12, %v20394_v47  ;;  %v9098_v11 = vadd.f32 %v24324_v30, %v8926_v49  ;;  %v8934_v38 = vmul.f32 %v24317_v1, %v7192_v3  ;;  %8378 = vmatpush1.bf16.msra.mxu1 %v24404_v51  ;;  %v24406_v12 = vld [vmem:[#allocation116_spill] sm:$0xff] }
 0x2fb   :  { %7792 = vmatprep.subr.bf16.mxu0 %v19722_v13  ;;  %v9342_v63 = vadd.f32 %v9341_v32, %v20399_v54  ;;  %v9099_v34 = vadd.f32 %v24328_v17, %v8927_v61  ;;  %v8935_v7 = vmul.f32 %v24320_v53, %v7194_v18  ;;  %8460 = vmatprep.subr.bf16.mxu1 %v24405_v10 }
 0x2fc   :  { %7731 = vmatprep.mubr.bf16.mxu0 %v24406_v12  ;;  %v9617_v49 = vadd.f32 %v9616_v26, %v9506_v5  ;;  %v9514_v3 = vmul.f32 %v20432_v15, %v20432_v15  ;;  %v20456_v51 = vmax.f32 %v9098_v11, 0.0  ;;  %v9106_v13 = vadd.f32 %v24324_v30, %v8934_v38  ;;  %v24407_v38 = vld [vmem:[#allocation20_spill] sm:$0xff] }
 0x2fd   :  { %v9638_v47 = vadd.f32 %v9637_v20, %v9507_v43  ;;  %v9515_v32 = vmul.f32 %v20438_v37, %v20438_v37  ;;  %v20461_v54 = vmax.f32 %v9099_v34, 0.0  ;;  %v9107_v61 = vadd.f32 %v24328_v17, %v8935_v7  ;;  %8380 = vmatmul.mubr.bf16.vlgmr.msra.gmra.mrb[64].mxu1 %v24229_v59  ;;  %7793 = vmatpush1.bf16.msra.mxu0 %v19726_v23  ;;  %v24411_v34 = vld [vmem:[#allocation73_spill] sm:$0xff] }
 0x2fe   :  { %v9587_v26 = vrot.slane %v20418_v27, 1  ;;  %v9607_v5 = vadd.f32 %v9606_v39, %v20319_v33  ;;  %v9522_v10 = vmul.f32 %v20456_v51, %v20456_v51  ;;  %8461 = vmatpush1.bf16.msra.mxu1 %v19732_v42  ;;  %7794 = vmatprep.subr.bf16.mxu0 %v24407_v38  ;;  %v24408_v20 = vunpack.c.h.s8.bf16 %v20427_v21  ;;  %v7198_v39 = vpop.f32.mrb[56].mxu1  ;;  %v24412_v42 = vld [vmem:[#allocation76_spill] sm:$0xff] }
 0x2ff   :  { %v24409_v43 = vunpack.c.h.s8.bf16 %v20412_v48  ;;  %v9313_v59 = vadd.f32 %v9312_v46, %v20360_v57  ;;  %v9322_v23 = vadd.f32 %v9321_v6, %v20432_v15  ;;  %v9343_v18 = vadd.f32 %v9342_v63, %v20438_v37  ;;  %8462 = vmatprep.subr.bf16.mxu1 %v24411_v34  ;;  %8389 = vmatprep.mubr.bf16.mxu1 %v24412_v42  ;;  %v7200_v57 = vpop.f32.mrb[57].mxu1  ;;  %v24413_v46 = vld [vmem:[#allocation117_spill] sm:$0xff]  ;;  %v20494_v6 = vld [vmem:[%s23264_s1 + $0xbe8] sm:$0xff]  ;;  %v24415_v15 = vld [vmem:[#allocation156_spill] sm:$0xff] }
 0x300   :  { %v20481_v33 = vmax.f32 %v9106_v13, 0.0  ;;  %v9618_v7 = vadd.f32 %v9617_v49, %v9514_v3  ;;  %v9523_v38 = vmul.f32 %v20461_v54, %v20461_v54  ;;  %v20487_v12 = vmax.f32 %v9107_v61, 0.0  ;;  %7732 = vmatmul.mubr.bf16.gmra.mrb[44].mxu0 %v24413_v46  ;;  %v24414_v61 = vld [vmem:[#allocation74_spill] sm:$0xff] }
 0x301   :  { %v20476_v11 = vcombine.high %v24409_v43, %v24408_v20  ;;  %v8942_v20 = vmul.f32 %v24317_v1, %v7198_v39  ;;  %v9639_v63 = vadd.f32 %v9638_v47, %v9515_v32  ;;  %v9323_v13 = vadd.f32 %v9322_v23, %v20456_v51  ;;  %v7202_v43 = vpop.f32.mrb[58].mxu1  ;;  %7795 = vmatpush1.bf16.msra.mxu0 %v24414_v61 }
 0x302   :  { %24410 = vst [vmem:[#allocation43_spill] sm:$0xff] %v20481_v33  ;;  %v9344_v49 = vadd.f32 %v9343_v18, %v20461_v54  ;;  %v8943_v3 = vmul.f32 %v24320_v53, %v7200_v57  ;;  %v9608_v34 = vrot.slane %v9607_v5, 1  ;;  %v9619_v39 = vadd.f32 %v9618_v7, %v9522_v10  ;;  %8463 = vmatpush1.bf16.msra.mxu1 %v24415_v15  ;;  %v7204_v37 = vpop.f32.mrb[59].mxu1  ;;  %v24417_v18 = vld [vmem:[#allocation209_spill] sm:$0xff]  ;;  %v24418_v57 = vld [vmem:[#allocation118_spill] sm:$0xff] }
 0x303   :  { %v9114_v42 = vadd.f32 %v24324_v30, %v8942_v20  ;;  %v8950_v46 = vmul.f32 %v24317_v1, %v7202_v43  ;;  %7796 = vmatprep.subr.bf16.mxu0 %v24416_v55  ;;  %v9530_v47 = vmul.f32 %v20481_v33, %v20481_v33  ;;  %v8951_v23 = vmul.f32 %v24320_v53, %v7204_v37 }
 0x304   :  { %v9115_v32 = vadd.f32 %v24328_v17, %v8943_v3  ;;  %8464 = vmatprep.subr.bf16.mxu1 %v24417_v18  ;;  %7741 = vmatprep.mubr.bf16.mxu0 %v24418_v57  ;;  %v9640_v7 = vadd.f32 %v9639_v63, %v9523_v38  ;;  %v9531_v15 = vmul.f32 %v20487_v12, %v20487_v12  ;;  %v24419_v43 = vrot.slane %v20352_v56, 1  ;;  %v24420_v38 = vld [vmem:[#allocation211_spill] sm:$0xff] }
 0x305   :  { %v20513_v20 = vmax.f32 %v9114_v42, 0.0  ;;  %v9122_v55 = vadd.f32 %v24324_v30, %v8950_v46  ;;  %v20520_v37 = vadd.f32 %v9587_v26, %v20418_v27  ;;  %v9123_v18 = vadd.f32 %v24328_v17, %v8951_v23  ;;  %8390 = vmatmul.mubr.bf16.gmra.mrb[68].mxu1 %v24252_v28  ;;  %7797 = vmatpush1.bf16.msra.mxu0 %v24420_v38  ;;  %v24422_v27 = vld [vmem:[#allocation162_spill] sm:$0xff] }
 0x306   :  { %v9292_v3 = vadd.f32 %v24419_v43, %v20352_v56  ;;  %v20522_v61 = vmax.f32 %v9115_v32, 0.0  ;;  %v9609_v63 = vadd.f32 %v9608_v34, %v9607_v5  ;;  %v9324_v42 = vadd.f32 %v9323_v13, %v20481_v33  ;;  %v24421_v56 = vld [vmem:[#allocation213_spill] sm:$0xff]  ;;  %7798 = vmatprep.subr.bf16.mxu0 %v24422_v27  ;;  %v7208_v5 = vpop.f32.mrb[60].mxu1  ;;  %v24424_v13 = vld [vmem:[#allocation82_spill] sm:$0xff]  ;;  %v24428_v33 = vld [vmem:[#allocation163_spill] sm:$0xff] }
 0x307   :  { %v9538_v46 = vmul.f32 %v20513_v20, %v20513_v20  ;;  %v20530_v10 = vmax.f32 %v9122_v55, 0.0  ;;  %8465 = vmatpush1.bf16.msra.mxu1 %v24421_v56  ;;  %v9620_v26 = vadd.f32 %v9619_v39, %v9530_v47  ;;  %v9345_v32 = vadd.f32 %v9344_v49, %v20487_v12  ;;  %v24423_v34 = vld [vmem:[#allocation37_spill] sm:$0xff]  ;;  %8399 = vmatprep.mubr.bf16.mxu1 %v24424_v13  ;;  %v20544_v55 = vld [vmem:[%s23264_s1 + $0xbf8] sm:$0xff]  ;;  %v7210_v38 = vpop.f32.mrb[61].mxu1 }
 0x308   :  { %v9539_v28 = vmul.f32 %v20522_v61, %v20522_v61  ;;  %v20537_v23 = vmax.f32 %v9123_v18, 0.0  ;;  %8466 = vmatprep.subr.bf16.mxu1 %v24423_v34  ;;  %24425 = vst [vmem:[#allocation217_spill] sm:$0xff] %v20544_v55  ;;  %v20546_v43 = vmul.f32 0.0078125, %v9313_v59  ;;  %v9641_v39 = vadd.f32 %v9640_v7, %v9531_v15  ;;  %v24427_v18 = vld [vmem:[#allocation119_spill] sm:$0xff]  ;;  %v7212_v57 = vpop.f32.mrb[62].mxu1 }
 0x309   :  { %v9325_v49 = vadd.f32 %v9324_v42, %v20513_v20  ;;  %v8958_v47 = vmul.f32 %v24317_v1, %v7208_v5  ;;  %7742 = vmatmul.mubr.bf16.gmra.mrb[48].mxu0 %v24427_v18  ;;  %v9621_v56 = vadd.f32 %v9620_v26, %v9538_v46  ;;  %v9346_v27 = vadd.f32 %v9345_v32, %v20522_v61  ;;  %v7214_v42 = vpop.f32.mrb[63].mxu1 }
 0x30a   :  { %24426 = vst [vmem:[#allocation174_spill] sm:$0xff] %v20546_v43  ;;  %v9546_v34 = vmul.f32 %v20530_v10, %v20530_v10  ;;  %v8959_v13 = vmul.f32 %v24320_v53, %v7210_v38  ;;  %7799 = vmatpush1.bf16.msra.mxu0 %v24428_v33  ;;  %v9642_v59 = vadd.f32 %v9641_v39, %v9539_v28  ;;  %v1524_v46 = vunpack.c.l.s8.bf16 %v20544_v55  ;;  %v24430_v28 = vld [vmem:[#allocation120_spill] sm:$0xff] }
 0x30b   :  { %v9130_v7 = vadd.f32 %v24324_v30, %v8958_v47  ;;  %v8966_v15 = vmul.f32 %v24317_v1, %v7212_v57  ;;  %8467 = vmatpush1.bf16.msra.mxu1 %v19917_v52  ;;  %7800 = vmatprep.subr.bf16.mxu0 %v19984_v58  ;;  %v20561_v26 = vmul.f32 0.0078125, %v9292_v3  ;;  %v9547_v32 = vmul.f32 %v20537_v23, %v20537_v23 }
 0x30c   :  { %v9131_v5 = vadd.f32 %v24328_v17, %v8959_v13  ;;  %v8967_v33 = vmul.f32 %v24320_v53, %v7214_v42  ;;  %8468 = vmatprep.subr.bf16.mxu1 %v19998_v31  ;;  %7751 = vmatprep.mubr.bf16.mxu0 %v24430_v28  ;;  %v9745_v1 = vmul.f32 0.0078125, %v9609_v63  ;;  %v9326_v52 = vadd.f32 %v9325_v49, %v20530_v10 }
 0x30d   :  { %24429 = vst [vmem:[#allocation175_spill] sm:$0xff] %v20561_v26  ;;  %v20570_v57 = vmax.f32 %v9130_v7, 0.0  ;;  %v9138_v58 = vadd.f32 %v24324_v30, %v8966_v15  ;;  %v9753_v3 = vmul.f32 %v20546_v43, %v20546_v43  ;;  %v9347_v39 = vadd.f32 %v9346_v27, %v20537_v23  ;;  %8400 = vmatmul.mubr.bf16.gmra.mrb[72].mxu1 %v24270_v9 }
 0x30e   :  { %v20576_v47 = vmax.f32 %v9131_v5, 0.0  ;;  %v9139_v53 = vadd.f32 %v24328_v17, %v8967_v33  ;;  %7801 = vmatpush1.bf16.msra.mxu0 %v20031_v45  ;;  %v9622_v31 = vadd.f32 %v9621_v56, %v9546_v34  ;;  %v9643_v38 = vadd.f32 %v9642_v59, %v9547_v32  ;;  %8409 = vmatprep.mubr.bf16.mxu1 %v24281_v29  ;;  %v24431_v34 = vld [vmem:[#allocation121_spill] sm:$0xff]  ;;  %v24432_v29 = vld [vmem:[#allocation122_spill] sm:$0xff] }
 0x30f   :  { %v9327_v63 = vadd.f32 %v9326_v52, %v20570_v57  ;;  %v9554_v49 = vmul.f32 %v20570_v57, %v20570_v57  ;;  %v20584_v30 = vmax.f32 %v9138_v58, 0.0  ;;  %8469 = vmatpush1.bf16.msra.mxu1 %v20033_v62  ;;  %7802 = vmatprep.subr.bf16.mxu0 %v20079_v44  ;;  %v9752_v45 = vmul.f32 %v20561_v26, %v20561_v26 }
 0x310   :  { %v9348_v27 = vadd.f32 %v9347_v39, %v20576_v47  ;;  %v9555_v9 = vmul.f32 %v20576_v47, %v20576_v47  ;;  %v20591_v17 = vmax.f32 %v9139_v53, 0.0  ;;  %8470 = vmatprep.subr.bf16.mxu1 %v20083_v35  ;;  %v9744_v13 = vmul.f32 0.0078125, %v20520_v37 }
 0x311   :  { %v9623_v56 = vadd.f32 %v9622_v31, %v9554_v49  ;;  %v9328_v62 = vadd.f32 %v9327_v63, %v20584_v30  ;;  %v9562_v44 = vmul.f32 %v20584_v30, %v20584_v30  ;;  %7752 = vmatmul.mubr.bf16.gmra.mrb[52].mxu0 %v24431_v34  ;;  %v9761_v15 = vsub.f32 %v9745_v1, %v9753_v3 }
 0x312   :  { %v9644_v59 = vadd.f32 %v9643_v38, %v9555_v9  ;;  %v9349_v7 = vadd.f32 %v9348_v27, %v20591_v17  ;;  %v9563_v35 = vmul.f32 %v20591_v17, %v20591_v17  ;;  %7803 = vmatpush1.bf16.msra.mxu0 %v20090_v50  ;;  %7761 = vmatprep.mubr.bf16.mxu0 %v24432_v29  ;;  %v24433_v5 = vunpack.c.h.s8.bf16 %v20427_v21  ;;  %v15144_v50 = vld [vmem:[%s23264_s1 + $0x948] sm:$0xff]  ;;  %v24436_v38 = vld [vmem:[#allocation93_spill] sm:$0xff]  ;;  %v24437_v27 = vld [vmem:[#allocation167_spill] sm:$0xff] }
 0x313   :  { %v9329_v42 = vrot.slane %v9328_v62, 4  ;;  %v9624_v32 = vadd.f32 %v9623_v56, %v9562_v44  ;;  %8471 = vmatpush1.bf16.msra.mxu1 %v20092_v41  ;;  %7804 = vmatprep.subr.bf16.mxu0 %v20111_v4  ;;  %v24434_v37 = vunpack.c.h.s8.bf16 %v20412_v48  ;;  %v1353_v1 = vunpack.c.h.s8.bf16 %v15144_v50  ;;  %v15145_v41 = vld [vmem:[%s23264_s1 + $0x958] sm:$0xff] }
 0x314   :  { %v9350_v52 = vrot.slane %v9349_v7, 4  ;;  %v9645_v58 = vadd.f32 %v9644_v59, %v9563_v35  ;;  %8472 = vmatprep.subr.bf16.mxu1 %v20138_v19  ;;  %v1357_v4 = vunpack.c.h.s8.bf16 %v15145_v41  ;;  %v24435_v48 = vunpack.c.l.s8.bf16 %v20494_v6  ;;  %v15146_v19 = vld [vmem:[%s23264_s1 + $0x968] sm:$0xff]  ;;  %v15147_v9 = vld [vmem:[%s23264_s1 + $0x978] sm:$0xff]  ;;  %v24442_v41 = vld [vmem:[#allocation123_spill] sm:$0xff] }
 0x315   :  { %v20613_v33 = vcombine.low %v24434_v37, %v24433_v5  ;;  %v9330_v3 = vadd.f32 %v9329_v42, %v9328_v62  ;;  %v9625_v21 = vrot.slane %v9624_v32, 4  ;;  %v1361_v53 = vunpack.c.h.s8.bf16 %v15146_v19  ;;  %8410 = vmatmul.mubr.bf16.gmra.mrb[76].mxu1 %v24436_v38  ;;  %v24438_v35 = vld [vmem:[#allocation170_spill] sm:$0xff] }
 0x316   :  { %v20626_v39 = vcombine.high %v24435_v48, %v1524_v46  ;;  %v9760_v31 = vsub.f32 %v9744_v13, %v9752_v45  ;;  %v9351_v63 = vadd.f32 %v9350_v52, %v9349_v7  ;;  %v9646_v49 = vrot.slane %v9645_v58, 4  ;;  %7805 = vmatpush1.bf16.msra.mxu0 %v24437_v27  ;;  %v24439_v42 = vld [vmem:[#allocation70_spill] sm:$0xff] }
 0x317   :  { %v1365_v56 = vunpack.c.h.s8.bf16 %v15147_v9  ;;  %v9897_v62 = vadd.f32 1e-05, %v9761_v15  ;;  %v9331_v44 = vrot.slane %v9330_v3, 2  ;;  %v9626_v59 = vadd.f32 %v9625_v21, %v9624_v32  ;;  %8473 = vmatpush1.bf16.msra.mxu1 %v24438_v35  ;;  %7806 = vmatprep.subr.bf16.mxu0 %v24439_v42  ;;  %v24441_v37 = vld [vmem:[#allocation94_spill] sm:$0xff]  ;;  %v747_v42 = vld [vmem:[%s23264_s1 + $0xc38] sm:$0xff] }
 0x318   :  { %v24440_v45 = vmov %v24435_v48  ;;  %v9352_v7 = vrot.slane %v9351_v63, 2  ;;  %v9647_v5 = vadd.f32 %v9646_v49, %v9645_v58  ;;  %8474 = vmatprep.subr.bf16.mxu1 %v20287_v16  ;;  %8419 = vmatprep.mubr.bf16.mxu1 %v24441_v37  ;;  %v20646_v52 = vcombine.high %v1353_v1, %v1357_v4  ;;  %v15148_v21 = vld [vmem:[%s23264_s1 + $0x988] sm:$0xff]  ;;  %v15149_v58 = vld [vmem:[%s23264_s1 + $0x998] sm:$0xff]  ;;  %v24446_v37 = vld [vmem:[#allocation99_spill] sm:$0xff] }
 0x319   :  { %v20642_v13 = vcombine.low %v24440_v45, %v1524_v46  ;;  %v20648_v15 = vcombine.low %v1353_v1, %v1357_v4  ;;  %v9332_v32 = vadd.f32 %v9331_v44, %v9330_v3  ;;  %v9627_v50 = vrot.slane %v9626_v59, 2  ;;  %7762 = vmatmul.mubr.bf16.gmra.mrb[56].mxu0 %v24442_v41  ;;  %v24443_v1 = vld [vmem:[#allocation124_spill] sm:$0xff]  ;;  %v20674_v9 = vld [vmem:[%s23264_s1 + $0x9a8] sm:$0xff] }
 0x31a   :  { %v1369_v46 = vunpack.c.h.s8.bf16 %v15148_v21  ;;  %v1373_v16 = vunpack.c.h.s8.bf16 %v15149_v58  ;;  %v9896_v48 = vadd.f32 1e-05, %v9760_v31  ;;  %v9353_v19 = vadd.f32 %v9352_v7, %v9351_v63  ;;  %7807 = vmatpush1.bf16.msra.mxu0 %v20277_v22  ;;  %7771 = vmatprep.mubr.bf16.mxu0 %v24443_v1  ;;  %v20668_v31 = vld [vmem:[%s23264_s1 + $0xc08] sm:$0xff]  ;;  %v20709_v21 = vld [vmem:[%s23264_s1 + $0xc58] sm:$0xff] }
 0x31b   :  { %v9648_v49 = vrot.slane %v9647_v5, 2  ;;  %v20659_v4 = vcombine.high %v1361_v53, %v1365_v56  ;;  %15097 = vrsqrt.f32 %v9897_v62  ;;  %v9333_v3 = vrot.slane %v9332_v32, 1  ;;  %8475 = vmatpush1.bf16.msra.mxu1 %v20295_v40  ;;  %7808 = vmatprep.subr.bf16.mxu0 %v20299_v8  ;;  %24444 = vst [vmem:[#allocation218_spill] sm:$0xff] %v20668_v31  ;;  %v20680_v8 = vld [vmem:[%s23264_s1 + $0x9b8] sm:$0xff]  ;;  %v20701_v45 = vld [vmem:[%s23264_s1 + $0xc48] sm:$0xff] }
 0x31c   :  { %v9628_v38 = vadd.f32 %v9627_v50, %v9626_v59  ;;  %v20663_v27 = vcombine.low %v1361_v53, %v1365_v56  ;;  %v9354_v63 = vrot.slane %v9353_v19, 1  ;;  %8476 = vmatprep.subr.bf16.mxu1 %v20356_v0  ;;  %v23620_v40 = vunpack.c.h.s8.bf16 %v20674_v9  ;;  %v20686_v56 = vld [vmem:[%s23264_s1 + $0xc18] sm:$0xff]  ;;  %v745_v0 = vld [vmem:[%s23264_s1 + $0xc28] sm:$0xff] }
 0x31d   :  { %v9649_v22 = vadd.f32 %v9648_v49, %v9647_v5  ;;  %v23621_v53 = vunpack.c.h.s8.bf16 %v20680_v8  ;;  %24445 = vst [vmem:[#allocation25_spill] sm:$0xff] %v20686_v56  ;;  %v9334_v62 = vadd.f32 %v9333_v3, %v9332_v32  ;;  %v20691_v59 = vcombine.high %v1369_v46, %v1373_v16  ;;  %8420 = vmatmul.mubr.bf16.gmra.mrb[80].mxu1 %v24446_v37  ;;  %v24447_v32 = vld [vmem:[#allocation176_spill] sm:$0xff] }
 0x31e   :  { %v9629_v44 = vrot.slane %v9628_v38, 1  ;;  %v20693_v35 = vcombine.low %v1369_v46, %v1373_v16  ;;  %15099 = vrsqrt.f32 %v9896_v48  ;;  %v9355_v7 = vadd.f32 %v9354_v63, %v9353_v19  ;;  %7809 = vmatpush1.bf16.msra.mxu0 %v24447_v32  ;;  %v24448_v3 = vld [vmem:[#allocation100_spill] sm:$0xff] }
 0x31f   :  { %v9650_v5 = vrot.slane %v9649_v22, 1  ;;  %v1528_v50 = vunpack.c.l.s8.bf16 %v20668_v31  ;;  %v20711_v58 = vmul.f32 0.0078125, %v9334_v62  ;;  %8477 = vmatpush1.bf16.msra.mxu1 %v20358_v14  ;;  %7810 = vmatprep.subr.bf16.mxu0 %v20407_v24  ;;  %v1532_v16 = vunpack.c.l.s8.bf16 %v20686_v56  ;;  %v24449_v62 = vld [vmem:[#allocation125_spill] sm:$0xff]  ;;  %v24467_v31 = vld [vmem:[#allocation128_spill] sm:$0xff] }
 0x320   :  { %v9630_v46 = vadd.f32 %v9629_v44, %v9628_v38  ;;  %v1536_v48 = vunpack.c.l.s8.bf16 %v745_v0  ;;  %v20716_v49 = vmul.f32 0.0078125, %v9355_v7  ;;  %8478 = vmatprep.subr.bf16.mxu1 %v20476_v11  ;;  %8429 = vmatprep.mubr.bf16.mxu1 %v24448_v3  ;;  %v1540_v63 = vunpack.c.l.s8.bf16 %v747_v42 }
 0x321   :  { %v9651_v19 = vadd.f32 %v9650_v5, %v9649_v22  ;;  %v20725_v14 = vmul.f32 %v20711_v58, %v20711_v58  ;;  %7772 = vmatmul.mubr.bf16.gmra.mrb[60].mxu0 %v24449_v62  ;;  %v24450_v5 = vld [vmem:[#allocation126_spill] sm:$0xff]  ;;  %v20745_v32 = vcombine.high %v23620_v40, %v23621_v53  ;;  %v13594_v3 = vcombine.low %v1528_v50, %v1532_v16  ;;  %v24466_v62 = vld [vmem:[#allocation172_spill] sm:$0xff] }
 0x322   :  { %v20721_v38 = vmul.f32 0.0078125, %v9630_v46  ;;  %v20735_v11 = vmul.f32 %v20716_v49, %v20716_v49  ;;  %7811 = vmatpush1.bf16.msra.mxu0 %v20415_v2  ;;  %7814 = vmatprep.mubr.bf16.mxu0 %v24450_v5  ;;  %v1537_v24 = vunpack.c.h.s8.bf16 %v745_v0  ;;  %v1541_v7 = vunpack.c.h.s8.bf16 %v747_v42  ;;  %v24454_v0 = vld [vmem:[#allocation105_spill] sm:$0xff]  ;;  %v20774_v42 = vld [vmem:[%s23264_s1 + $0x9c8] sm:$0xff] }
 0x323   :  { %v20731_v44 = vmul.f32 0.0078125, %v9651_v19  ;;  %8479 = vmatpush1.bf16.msra.mxu1 %v20613_v33  ;;  %7812 = vmatprep.subr.bf16.mxu0 %v20626_v39  ;;  %v13595_v19 = vcombine.high %v1528_v50, %v1532_v16  ;;  %v1545_v37 = vunpack.c.h.s8.bf16 %v20701_v45  ;;  %v13603_v53 = vcombine.high %v1536_v48, %v1540_v63  ;;  %v20766_v50 = vld [vmem:[%s23264_s1 + $0xc68] sm:$0xff]  ;;  %v755_v16 = vld [vmem:[%s23264_s1 + $0xc78] sm:$0xff] }
 0x324   :  { %8480 = vmatprep.subr.bf16.mxu1 %v20646_v52  ;;  %v13602_v22 = vcombine.low %v1536_v48, %v1540_v63  ;;  %v24452_v46 = vunpack.c.l.s8.bf16 %v20709_v21  ;;  %v24453_v33 = vunpack.c.l.s8.bf16 %v20701_v45  ;;  %v1549_v52 = vunpack.c.h.s8.bf16 %v20709_v21  ;;  %v24458_v2 = vld [vmem:[#allocation106_spill] sm:$0xff] }
 0x325   :  { %v20755_v40 = vpop.eup %15097  ;;  %8430 = vmatmul.mubr.bf16.gmra.mrb[84].mxu1 %v24454_v0  ;;  %v20777_v48 = vcombine.high %v1537_v24, %v1541_v7  ;;  %v20779_v63 = vcombine.low %v1537_v24, %v1541_v7  ;;  %v20807_v0 = vld [vmem:[%s23264_s1 + $0xc88] sm:$0x55]  ;;  %v9785_v56 = vsub.f32 %v24466_v62, %v20546_v43 }
 0x326   :  { %24451 = vst [vmem:[#allocation97_spill] sm:$0xff] %v20755_v40  ;;  %v20761_v39 = vcombine.high %v24453_v33, %v24452_v46  ;;  %7813 = vmatpush1.bf16.msra.mxu0 %v20642_v13  ;;  %v24457_v46 = vld [vmem:[#allocation155_spill] sm:$0xff]  ;;  %8439 = vmatprep.mubr.bf16.mxu1 %v24458_v2  ;;  %v20788_v13 = vld [vmem:[%s23264_s1 + $0x9d8] sm:$0xff]  ;;  %v20794_v24 = vcombine.high %v1545_v37, %v1549_v52  ;;  %v1552_v2 = vunpack.c.l.s8.bf16 %v20766_v50 }
 0x327   :  { %24455 = vst [vmem:[#allocation98_spill] sm:$0xff] %v20777_v48  ;;  %24456 = vst [vmem:[#allocation219_spill] sm:$0xff] %v20779_v63  ;;  %v9769_v33 = vsub.f32 %v24457_v46, %v20546_v43  ;;  %8481 = vmatpush1.bf16.msra.mxu1 %v20648_v15  ;;  %v20796_v7 = vcombine.low %v1545_v37, %v1549_v52  ;;  %v24461_v46 = vld [vmem:[#allocation201_spill] sm:$0xff]  ;;  %7895 = vmatprep.subr.bf16.mxu0 %v13595_v19  ;;  %v1553_v37 = vunpack.c.h.s8.bf16 %v20766_v50 }
 0x328   :  { %24459 = vst [vmem:[#allocation81_spill] sm:$0xff] %v20794_v24  ;;  %v9777_v15 = vsub.f32 %v24461_v46, %v20546_v43  ;;  %v20800_v63 = vpop.eup %15099  ;;  %8482 = vmatprep.subr.bf16.mxu1 %v20659_v4  ;;  %v1557_v52 = vunpack.c.h.s8.bf16 %v755_v16  ;;  %v24464_v4 = vld [vmem:[#allocation31_spill] sm:$0xff]  ;;  %v24465_v24 = vld [vmem:[#allocation173_spill] sm:$0xff] }
 0x329   :  { %24460 = vst [vmem:[#allocation220_spill] sm:$0xff] %v20796_v7  ;;  %24462 = vst [vmem:[#allocation44_spill] sm:$0xff] %v20800_v63  ;;  %v20810_v48 = vmul.f32 %v20755_v40, %v9769_v33  ;;  %v24463_v7 = vld [vmem:[#allocation127_spill] sm:$0xff]  ;;  %v9768_v19 = vsub.f32 %v24464_v4, %v20561_v26  ;;  %v9776_v5 = vsub.f32 %v24465_v24, %v20561_v26  ;;  %v1556_v33 = vunpack.c.l.s8.bf16 %v755_v16 }
 0x32a   :  { %7815 = vmatmul.mubr.bf16.vlgmr.msra.gmra.mrb[32].mxu0 %v24463_v7  ;;  %v20815_v46 = vmul.f32 %v20755_v40, %v9777_v15  ;;  %v20824_v50 = vcombine.high %v1553_v37, %v1557_v52  ;;  %v20826_v55 = vcombine.low %v1553_v37, %v1557_v52  ;;  %v24468_v15 = vld [vmem:[#allocation199_spill] sm:$0xff]  ;;  %v1560_v4 = vunpack.c.l.s8.bf16 %v20807_v0 }
 0x32b   :  { %7824 = vmatprep.mubr.bf16.mxu0 %v24467_v31  ;;  %7896 = vmatpush1.bf16.msra.mxu0 %v13594_v3  ;;  %v9793_v7 = vsub.f32 %v24468_v15, %v20546_v43  ;;  %v20835_v62 = vmul.f32 %v20800_v63, %v9768_v19  ;;  %v20838_v3 = vmul.f32 %v20800_v63, %v9776_v5  ;;  %v24473_v52 = vld [vmem:[#allocation19_spill] sm:$0xff]  ;;  %v24474_v19 = vunpack.c.l.s8.bf16 %v20709_v21 }
 0x32c   :  { %8483 = vmatpush1.bf16.msra.mxu1 %v20663_v27  ;;  %7897 = vmatprep.subr.bf16.mxu0 %v13603_v53  ;;  %v20842_v16 = vmul.f32 %v20755_v40, %v9785_v56  ;;  %v24472_v27 = vld [vmem:[#allocation202_spill] sm:$0xff]  ;;  %v9792_v15 = vsub.f32 %v24473_v52, %v20561_v26  ;;  %v24475_v24 = vunpack.c.l.s8.bf16 %v20701_v45  ;;  %v24476_v43 = vld [vmem:[#allocation107_spill] sm:$0xff]  ;;  %v24479_v45 = vunpack.c.h.s8.bf16 %v20680_v8  ;;  %v24481_v52 = vld [vmem:[#allocation108_spill] sm:$0xff] }
 0x32d   :  { %24469 = vst [vmem:[#allocation13_spill] sm:$0xff] %v20835_v62  ;;  %8484 = vmatprep.subr.bf16.mxu1 %v20691_v59  ;;  %v20845_v37 = vmul.f32 %v20755_v40, %v9793_v7  ;;  %v9784_v53 = vsub.f32 %v24472_v27, %v20561_v26  ;;  %8440 = vmatmul.mubr.bf16.gmra.mrb[88].mxu1 %v24476_v43  ;;  %v24480_v21 = vunpack.c.h.s8.bf16 %v20674_v9  ;;  %v15154_v43 = vld [vmem:[%s23264_s1 + $0x9e8] sm:$0xff]  ;;  %v24483_v9 = vunpack.c.h.s8.bf16 %v20788_v13  ;;  %v24485_v56 = vld [vmem:[#allocation129_spill] sm:$0xff] }
 0x32e   :  { %24470 = vst [vmem:[#allocation101_spill] sm:$0xff] %v20842_v16  ;;  %v13610_v5 = vcombine.low %v24475_v24, %v24474_v19  ;;  %v20864_v27 = vmul.f32 %v20800_v63, %v9792_v15  ;;  %8449 = vmatprep.mubr.bf16.mxu1 %v24481_v52  ;;  %v13619_v19 = vcombine.high %v1552_v2, %v1556_v33  ;;  %v24490_v13 = vld [vmem:[#allocation109_spill] sm:$0xff] }
 0x32f   :  { %24471 = vst [vmem:[#allocation102_spill] sm:$0xff] %v20845_v37  ;;  %7898 = vmatpush1.bf16.msra.mxu0 %v13602_v22  ;;  %v20861_v7 = vmul.f32 %v20800_v63, %v9784_v53  ;;  %v13444_v24 = vcombine.low %v24480_v21, %v24479_v45  ;;  %v1393_v22 = vunpack.c.h.s8.bf16 %v15154_v43  ;;  %v15155_v53 = vld [vmem:[%s23264_s1 + $0x9f8] sm:$0xff]  ;;  %v24484_v45 = vunpack.c.h.s8.bf16 %v20774_v42 }
 0x330   :  { %24478 = vst [vmem:[#allocation103_spill] sm:$0xff] %v20864_v27  ;;  %8485 = vmatpush1.bf16.msra.mxu1 %v20693_v35  ;;  %v1397_v15 = vunpack.c.h.s8.bf16 %v15155_v53  ;;  %v24482_v35 = vsub.f32 %v20731_v44, %v20735_v11  ;;  %7899 = vmatprep.subr.bf16.mxu0 %v20761_v39  ;;  %v13627_v52 = vcombine.high %v1560_v4, %v1560_v4  ;;  %v24487_v11 = vld [vmem:[#allocation130_spill] sm:$0xff] }
 0x331   :  { %24477 = vst [vmem:[#allocation45_spill] sm:$0xff] %v20861_v7  ;;  %8486 = vmatprep.subr.bf16.mxu1 %v20745_v32  ;;  %v13453_v21 = vcombine.high %v24484_v45, %v24483_v9  ;;  %v24486_v53 = vsub.f32 %v20721_v38, %v20725_v14  ;;  %v13618_v32 = vcombine.low %v1552_v2, %v1556_v33  ;;  %v15156_v38 = vld [vmem:[%s23264_s1 + $0xa08] sm:$0xff]  ;;  %v15157_v2 = vld [vmem:[%s23264_s1 + $0xa18] sm:$0xff] }
 0x332   :  { %v9899_v8 = vadd.f32 1e-05, %v24482_v35  ;;  %7825 = vmatmul.mubr.bf16.gmra.mrb[36].mxu0 %v24485_v56  ;;  %v13626_v35 = vcombine.low %v1560_v4, %v1560_v4  ;;  %v24488_v39 = vmov %v24484_v45  ;;  %v13461_v59 = vcombine.high %v1393_v22, %v1397_v15  ;;  %v24489_v4 = vld [vmem:[#allocation5_spill] sm:$0xff] }
 0x333   :  { %v9898_v44 = vadd.f32 1e-05, %v24486_v53  ;;  %7834 = vmatprep.mubr.bf16.mxu0 %v24487_v11  ;;  %7900 = vmatpush1.bf16.msra.mxu0 %v13610_v5  ;;  %v13452_v45 = vcombine.low %v24488_v39, %v24483_v9  ;;  %v1401_v14 = vunpack.c.h.s8.bf16 %v15156_v38  ;;  %v1405_v33 = vunpack.c.h.s8.bf16 %v15157_v2  ;;  %v15158_v53 = vld [vmem:[%s23264_s1 + $0xa28] sm:$0xff]  ;;  %v15163_v2 = vld [vmem:[%s23264_s1 + $0xa78] sm:$0xff] }
 0x334   :  { %8487 = vmatpush1.bf16.msra.mxu1 %v13444_v24  ;;  %7901 = vmatprep.subr.bf16.mxu0 %v13619_v19  ;;  %15101 = vrsqrt.f32 %v9899_v8  ;;  %v5627_v5 = vand.u32 %v13627_v52, %v24489_v4  ;;  %v5624_v42 = vand.u32 %v13626_v35, %v24489_v4  ;;  %v13460_v24 = vcombine.low %v1393_v22, %v1397_v15  ;;  %v24491_v19 = vld [vmem:[#allocation110_spill] sm:$0xff]  ;;  %v15159_v52 = vld [vmem:[%s23264_s1 + $0xa38] sm:$0xff] }
 0x335   :  { %8488 = vmatprep.subr.bf16.mxu1 %v13453_v21  ;;  %15103 = vrsqrt.f32 %v9898_v44  ;;  %8450 = vmatmul.mubr.bf16.gmra.mrb[92].mxu1 %v24490_v13  ;;  %v14888_v8 = vld [vmem:[#allocation2 + $0x4] ss:$8 sps:$4 sm:$0xff]   ;;  %v13469_v21 = vcombine.high %v1401_v14, %v1405_v33  ;;  %v1409_v9 = vunpack.c.h.s8.bf16 %v15158_v53  ;;  %v1413_v44 = vunpack.c.h.s8.bf16 %v15159_v52  ;;  %v24493_v35 = vld [vmem:[#allocation132_spill] sm:$0xff] }
 0x336   :  { %8492 = vmatprep.mubr.bf16.mxu1 %v24491_v19  ;;  %v15161_v15 = vld [vmem:[%s23264_s1 + $0xa58] sm:$0xff]  ;;  %v13468_v13 = vcombine.low %v1401_v14, %v1405_v33  ;;  %v15164_v19 = vld [vmem:[%s23264_s1 + $0xa88] sm:$0xff] }
 0x337   :  { %7902 = vmatpush1.bf16.msra.mxu0 %v13618_v32  ;;  %v24492_v32 = vld [vmem:[#allocation131_spill] sm:$0xff]  ;;  %v1421_v39 = vunpack.c.h.s8.bf16 %v15161_v15  ;;  %v1433_v53 = vunpack.c.h.s8.bf16 %v15164_v19  ;;  %v15165_v52 = vld [vmem:[%s23264_s1 + $0xa98] sm:$0xff]  ;;  %v13477_v15 = vcombine.high %v1409_v9, %v1413_v44 }
 0x338   :  { %8489 = vmatpush1.bf16.msra.mxu1 %v13452_v45  ;;  %7903 = vmatprep.subr.bf16.mxu0 %v5627_v5  ;;  %v15162_v45 = vld [vmem:[%s23264_s1 + $0xa68] sm:$0xff]  ;;  %v1429_v5 = vunpack.c.h.s8.bf16 %v15163_v2  ;;  %v15167_v14 = vld [vmem:[%s23264_s1 + $0xab8] sm:$0xff] }
 0x339   :  { %8490 = vmatprep.subr.bf16.mxu1 %v13461_v59  ;;  %v15160_v59 = vld [vmem:[%s23264_s1 + $0xa48] sm:$0xff]  ;;  %v1425_v38 = vunpack.c.h.s8.bf16 %v15162_v45  ;;  %v1445_v33 = vunpack.c.h.s8.bf16 %v15167_v14 }
 0x33a   :  { %7835 = vmatmul.mubr.bf16.gmra.mrb[40].mxu0 %v24492_v32  ;;  %v1417_v22 = vunpack.c.h.s8.bf16 %v15160_v59  ;;  %v1437_v59 = vunpack.c.h.s8.bf16 %v15165_v52  ;;  %v15166_v45 = vld [vmem:[%s23264_s1 + $0xaa8] sm:$0xff]  ;;  %v24494_v52 = vld [vmem:[#allocation111_spill] sm:$0xff] }
 0x33b   :  { %7844 = vmatprep.mubr.bf16.mxu0 %v24493_v35  ;;  %7904 = vmatpush1.bf16.msra.mxu0 %v5624_v42  ;;  %v1441_v42 = vunpack.c.h.s8.bf16 %v15166_v45  ;;  %v13476_v45 = vcombine.low %v1409_v9, %v1413_v44  ;;  %v13493_v26 = vcombine.high %v1425_v38, %v1429_v5  ;;  %v13492_v14 = vcombine.low %v1425_v38, %v1429_v5  ;;  %v24496_v44 = vld [vmem:[#allocation89_spill] sm:$0xff]  ;;  %v24498_v5 = vld [vmem:[#allocation23_spill] sm:$0xff] }
 0x33c   :  { %8491 = vmatpush1.bf16.msra.mxu1 %v13460_v24  ;;  %10885 = vmatprep.subr.bf16.mxu0 %v14888_v8  ;;  %v15168_v24 = vld [vmem:[%s23264_s1 + $0xac8] sm:$0xff]  ;;  %v15169_v8 = vld [vmem:[%s23264_s1 + $0xad8] sm:$0xff]  ;;  %v13485_v43 = vcombine.high %v1417_v22, %v1421_v39  ;;  %v13484_v63 = vcombine.low %v1417_v22, %v1421_v39  ;;  %v20950_v7 = vcombine.high %v1433_v53, %v1437_v59  ;;  %v24497_v39 = vld [vmem:[#allocation135_spill] sm:$0xff] }
 0x33d   :  { %8573 = vmatprep.subr.bf16.mxu1 %v13469_v21  ;;  %v1449_v2 = vunpack.c.h.s8.bf16 %v15168_v24  ;;  %v1453_v21 = vunpack.c.h.s8.bf16 %v15169_v8  ;;  %v24495_v24 = vld [vmem:[#allocation40_spill] sm:$0xff]  ;;  %v20956_v8 = vcombine.low %v1433_v53, %v1437_v59  ;;  %v20958_v16 = vcombine.high %v1441_v42, %v1445_v33  ;;  %v24499_v53 = vld [vmem:[#allocation171_spill] sm:$0xff] }
 0x33e   :  { %v20946_v19 = vpop.eup %15101  ;;  %v9771_v27 = vsub.f32 %v24495_v24, %v20716_v49  ;;  %v20960_v9 = vcombine.low %v1441_v42, %v1445_v33  ;;  %v9779_v22 = vsub.f32 %v24496_v44, %v20716_v49  ;;  %v9778_v59 = vsub.f32 %v24499_v53, %v20711_v58  ;;  %v24502_v44 = vld [vmem:[#allocation24_spill] sm:$0xff]  ;;  %v24505_v53 = vld [vmem:[#allocation41_spill] sm:$0xff] }
 0x33f   :  { %8493 = vmatmul.mubr.bf16.vlgmr.msra.gmra.mrb[64].mxu1 %v24494_v52  ;;  %v20954_v40 = vpop.eup %15103  ;;  %v20975_v42 = vcombine.low %v1449_v2, %v1453_v21  ;;  %v24501_v52 = vld [vmem:[#allocation90_spill] sm:$0xff] }
 0x340   :  { %8574 = vmatpush1.bf16.msra.mxu1 %v13468_v13  ;;  %8502 = vmatprep.mubr.bf16.mxu1 %v24381_v36  ;;  %v20965_v36 = vcombine.high %v1449_v2, %v1453_v21  ;;  %v20968_v38 = vmul.f32 %v20946_v19, %v9771_v27  ;;  %v9770_v13 = vsub.f32 %v24498_v5, %v20711_v58  ;;  %v24506_v21 = vld [vmem:[#allocation91_spill] sm:$0xff] }
 0x341   :  { %8575 = vmatprep.subr.bf16.mxu1 %v13477_v15  ;;  %v24500_v15 = vld [vmem:[#allocation136_spill] sm:$0xff]  ;;  %v20978_v33 = vmul.f32 %v20946_v19, %v9779_v22  ;;  %v9787_v24 = vsub.f32 %v24501_v52, %v20716_v49  ;;  %v9795_v27 = vsub.f32 %v24502_v44, %v20716_v49  ;;  %v20988_v5 = vmul.f32 %v20954_v40, %v9778_v59 }
 0x342   :  { %7845 = vmatmul.mubr.bf16.gmra.mrb[44].mxu0 %v24497_v39  ;;  %v20985_v37 = vmul.f32 %v20954_v40, %v9770_v13  ;;  %v9786_v2 = vsub.f32 %v24505_v53, %v20711_v58  ;;  %v9794_v22 = vsub.f32 %v24506_v21, %v20711_v58  ;;  %v9803_v13 = vsub.f32 %v20280_v60, %v20716_v49  ;;  %v24513_v60 = vld [vmem:[#allocation146_spill] sm:$0xff] }
 0x343   :  { %7854 = vmatprep.mubr.bf16.mxu0 %v24500_v15  ;;  %24504 = vst [vmem:[#allocation150_spill] sm:$0xff] %v20988_v5  ;;  %v20997_v62 = vmul.f32 %v20946_v19, %v9787_v24  ;;  %v9811_v53 = vsub.f32 %v20323_v25, %v20716_v49  ;;  %v24511_v24 = vld [vmem:[#allocation113_spill] sm:$0xff]  ;;  %v9802_v59 = vsub.f32 %v24513_v60, %v20711_v58  ;;  %v21028_v25 = vld [vmem:[%s23264_s1 + $0xae8] sm:$0xff]  ;;  %v24517_v60 = vld [vmem:[#allocation147_spill] sm:$0xff] }
 0x344   :  { %8576 = vmatpush1.bf16.msra.mxu1 %v13476_v45  ;;  %24503 = vst [vmem:[#allocation26_spill] sm:$0xff] %v20985_v37  ;;  %v21000_v45 = vmul.f32 %v20946_v19, %v9795_v27  ;;  %v21007_v44 = vmul.f32 %v20954_v40, %v9786_v2  ;;  %v21018_v21 = vmul.f32 %v20946_v19, %v9803_v13  ;;  %v24514_v2 = vld [vmem:[#allocation92_spill] sm:$0xff]  ;;  %v24520_v13 = vld [vmem:[#allocation139_spill] sm:$0xff] }
 0x345   :  { %8577 = vmatprep.subr.bf16.mxu1 %v13485_v43  ;;  %24507 = vst [vmem:[#allocation104_spill] sm:$0xff] %v20997_v62  ;;  %v21010_v43 = vmul.f32 %v20954_v40, %v9794_v22  ;;  %v9810_v52 = vsub.f32 %v24514_v2, %v20711_v58  ;;  %v24515_v22 = vld [vmem:[#allocation114_spill] sm:$0xff]  ;;  %v21034_v27 = vmul.f32 %v20946_v19, %v9811_v53 }
 0x346   :  { %24508 = vst [vmem:[#allocation177_spill] sm:$0xff] %v21000_v45  ;;  %24509 = vst [vmem:[#allocation87_spill] sm:$0xff] %v21007_v44  ;;  %v9819_v62 = vsub.f32 %v24517_v60, %v20716_v49 }
 0x347   :  { %24510 = vst [vmem:[#allocation178_spill] sm:$0xff] %v21010_v43  ;;  %8503 = vmatmul.mubr.bf16.gmra.mrb[68].mxu1 %v24511_v24  ;;  %24512 = vst [vmem:[#allocation179_spill] sm:$0xff] %v21018_v21  ;;  %v21042_v2 = vmul.f32 %v20954_v40, %v9810_v52  ;;  %v24519_v24 = vld [vmem:[#allocation75_spill] sm:$0xff]  ;;  %v24523_v43 = vld [vmem:[#allocation140_spill] sm:$0xff] }
 0x348   :  { %8578 = vmatpush1.bf16.msra.mxu1 %v13484_v63  ;;  %8512 = vmatprep.mubr.bf16.mxu1 %v24515_v22  ;;  %24516 = vst [vmem:[#allocation183_spill] sm:$0xff] %v21034_v27  ;;  %v21039_v63 = vmul.f32 %v20954_v40, %v9802_v59  ;;  %v24518_v22 = vld [vmem:[#allocation42_spill] sm:$0xff]  ;;  %v9818_v37 = vsub.f32 %v24519_v24, %v20711_v58  ;;  %v24522_v52 = vld [vmem:[#allocation95_spill] sm:$0xff] }
 0x349   :  { %8579 = vmatprep.subr.bf16.mxu1 %v13493_v26  ;;  %v9827_v45 = vsub.f32 %v24518_v22, %v20716_v49  ;;  %v21052_v60 = vmul.f32 %v20946_v19, %v9819_v62  ;;  %v24521_v26 = vld [vmem:[#allocation148_spill] sm:$0xff]  ;;  %v9835_v44 = vsub.f32 %v24522_v52, %v20716_v49  ;;  %v24525_v21 = vld [vmem:[#allocation215_spill] sm:$0xff] }
 0x34a   :  { %7855 = vmatmul.mubr.bf16.gmra.mrb[48].mxu0 %v24520_v13  ;;  %v9826_v59 = vsub.f32 %v24521_v26, %v20711_v58  ;;  %v21065_v5 = vmul.f32 %v20954_v40, %v9818_v37  ;;  %v24524_v62 = vld [vmem:[#allocation96_spill] sm:$0xff]  ;;  %v9834_v27 = vsub.f32 %v24525_v21, %v20711_v58 }
 0x34b   :  { %7864 = vmatprep.mubr.bf16.mxu0 %v24523_v43  ;;  %v21062_v24 = vmul.f32 %v20946_v19, %v9827_v45  ;;  %v9843_v53 = vsub.f32 %v24524_v62, %v20716_v49  ;;  %v21073_v52 = vmul.f32 %v20946_v19, %v9835_v44  ;;  %v24526_v22 = vld [vmem:[#allocation216_spill] sm:$0xff]  ;;  %v9859_v44 = vsub.f32 %v20487_v12, %v20716_v49 }
 0x34c   :  { %8580 = vmatpush1.bf16.msra.mxu1 %v13492_v14  ;;  %v21070_v26 = vmul.f32 %v20954_v40, %v9826_v59  ;;  %v9842_v45 = vsub.f32 %v24526_v22, %v20711_v58  ;;  %v9851_v14 = vsub.f32 %v20461_v54, %v20716_v49  ;;  %v21092_v59 = vmul.f32 %v20954_v40, %v9834_v27  ;;  %v24529_v27 = vld [vmem:[#allocation43_spill] sm:$0xff]  ;;  %v24531_v54 = vld [vmem:[#allocation141_spill] sm:$0xff] }
 0x34d   :  { %8581 = vmatprep.subr.bf16.mxu1 %v20950_v7  ;;  %v21083_v62 = vmul.f32 %v20946_v19, %v9843_v53  ;;  %v9850_v22 = vsub.f32 %v20456_v51, %v20711_v58  ;;  %v24527_v53 = vld [vmem:[#allocation115_spill] sm:$0xff]  ;;  %v21106_v12 = vmul.f32 %v20946_v19, %v9859_v44  ;;  %v9858_v21 = vsub.f32 %v24529_v27, %v20711_v58  ;;  %v15171_v51 = vld [vmem:[%s23264_s1 + $0xaf8] sm:$0xff] }
 0x34e   :  { %v21095_v7 = vmul.f32 %v20954_v40, %v9842_v45  ;;  %v21103_v37 = vmul.f32 %v20946_v19, %v9851_v14  ;;  %v24530_v45 = vld [vmem:[#allocation116_spill] sm:$0xff]  ;;  %v9867_v44 = vsub.f32 %v20522_v61, %v20716_v49  ;;  %v9874_v61 = vsub.f32 %v20530_v10, %v20711_v58 }
 0x34f   :  { %8513 = vmatmul.mubr.bf16.gmra.mrb[72].mxu1 %v24527_v53  ;;  %v1461_v53 = vunpack.c.h.s8.bf16 %v15171_v51  ;;  %v21118_v14 = vmul.f32 %v20954_v40, %v9850_v22  ;;  %v21126_v27 = vmul.f32 %v20954_v40, %v9858_v21  ;;  %v9866_v51 = vsub.f32 %v20513_v20, %v20711_v58  ;;  %v24543_v20 = vld [vmem:[#allocation145_spill] sm:$0xff] }
 0x350   :  { %24528 = vst [vmem:[#allocation46_spill] sm:$0xff] %v21103_v37  ;;  %8582 = vmatpush1.bf16.msra.mxu1 %v20956_v8  ;;  %8522 = vmatprep.mubr.bf16.mxu1 %v24530_v45  ;;  %v9875_v45 = vsub.f32 %v20537_v23, %v20716_v49  ;;  %v21134_v22 = vmul.f32 %v20946_v19, %v9867_v44  ;;  %v24533_v23 = vld [vmem:[#allocation142_spill] sm:$0xff] }
 0x351   :  { %8583 = vmatprep.subr.bf16.mxu1 %v20958_v16  ;;  %v9883_v16 = vsub.f32 %v20576_v47, %v20716_v49  ;;  %v24532_v21 = vsub.f32 %v20591_v17, %v20716_v49  ;;  %v21153_v37 = vmul.f32 %v20954_v40, %v9866_v51  ;;  %v9882_v10 = vsub.f32 %v20570_v57, %v20711_v58  ;;  %v15172_v47 = vld [vmem:[%s23264_s1 + $0xb08] sm:$0xff] }
 0x352   :  { %7865 = vmatmul.mubr.bf16.gmra.mrb[52].mxu0 %v24531_v54  ;;  %v21150_v44 = vmul.f32 %v20946_v19, %v9875_v45  ;;  %v1465_v17 = vunpack.c.h.s8.bf16 %v15172_v47  ;;  %v21162_v49 = vmul.f32 %v20954_v40, %v9874_v61  ;;  %v24535_v45 = vsub.f32 %v20584_v30, %v20711_v58  ;;  %v15173_v47 = vld [vmem:[%s23264_s1 + $0xb18] sm:$0xff] }
 0x353   :  { %v21144_v8 = vmul.f32 %v20946_v19, %v24532_v21  ;;  %7874 = vmatprep.mubr.bf16.mxu0 %v24533_v23  ;;  %v21165_v21 = vmul.f32 %v20946_v19, %v9883_v16  ;;  %v24537_v57 = vunpack.c.h.s8.bf16 %v21028_v25  ;;  %v1469_v61 = vunpack.c.h.s8.bf16 %v15173_v47  ;;  %v24540_v19 = vld [vmem:[#allocation118_spill] sm:$0xff] }
 0x354   :  { %8584 = vmatpush1.bf16.msra.mxu1 %v20960_v9  ;;  %v21171_v51 = vmul.f32 %v20954_v40, %v24535_v45  ;;  %v21182_v16 = vmul.f32 %v20954_v40, %v9882_v10  ;;  %v15174_v10 = vld [vmem:[%s23264_s1 + $0xb28] sm:$0xff]  ;;  %v24541_v45 = vld [vmem:[#allocation143_spill] sm:$0xff] }
 0x355   :  { %24534 = vst [vmem:[#allocation184_spill] sm:$0xff] %v21165_v21  ;;  %8585 = vmatprep.subr.bf16.mxu1 %v20965_v36  ;;  %v13525_v9 = vcombine.high %v24537_v57, %v1461_v53  ;;  %v24539_v36 = vld [vmem:[#allocation117_spill] sm:$0xff]  ;;  %v13524_v47 = vcombine.low %v24537_v57, %v1461_v53  ;;  %v13533_v40 = vcombine.high %v1465_v17, %v1469_v61  ;;  %v1473_v30 = vunpack.c.h.s8.bf16 %v15174_v10  ;;  %v15177_v57 = vld [vmem:[%s23264_s1 + $0xb58] sm:$0xff]  ;;  %v24551_v21 = vld [vmem:[#allocation126_spill] sm:$0xff] }
 0x356   :  { %24536 = vst [vmem:[#allocation8_spill] sm:$0xff] %v21171_v51  ;;  %24538 = vst [vmem:[#allocation88_spill] sm:$0xff] %v21182_v16  ;;  %v13532_v25 = vcombine.low %v1465_v17, %v1469_v61  ;;  %v1485_v10 = vunpack.c.h.s8.bf16 %v15177_v57  ;;  %v15178_v61 = vld [vmem:[%s23264_s1 + $0xb68] sm:$0xff]  ;;  %v24544_v57 = vmov 0   ;;  %v24547_v51 = vld [vmem:[#allocation7_spill] sm:$0xff] }
 0x357   :  { %8523 = vmatmul.mubr.bf16.gmra.mrb[76].mxu1 %v24539_v36  ;;  %v15175_v36 = vld [vmem:[%s23264_s1 + $0xb38] sm:$0xff]  ;;  %v24545_v16 = vld [vmem:[#allocation6_spill] sm:$0xff] }
 0x358   :  { %8586 = vmatpush1.bf16.msra.mxu1 %v20975_v42  ;;  %8532 = vmatprep.mubr.bf16.mxu1 %v24540_v19  ;;  %v1477_v58 = vunpack.c.h.s8.bf16 %v15175_v36  ;;  %v24542_v42 = vld [vmem:[#allocation144_spill] sm:$0xff] }
 0x359   :  { %8587 = vmatprep.subr.bf16.mxu1 %v13525_v9  ;;  %v15176_v9 = vld [vmem:[%s23264_s1 + $0xb48] sm:$0xff] }
 0x35a   :  { %7875 = vmatmul.mubr.bf16.gmra.mrb[56].mxu0 %v24541_v45  ;;  %v13541_v53 = vcombine.high %v1473_v30, %v1477_v58  ;;  %v1481_v19 = vunpack.c.h.s8.bf16 %v15176_v9  ;;  %v13540_v36 = vcombine.low %v1473_v30, %v1477_v58  ;;  %v15180_v30 = vld [vmem:[%s23264_s1 + $0xb88] sm:$0xff] }
 0x35b   :  { %7884 = vmatprep.mubr.bf16.mxu0 %v24542_v42  ;;  %v1497_v58 = vunpack.c.h.s8.bf16 %v15180_v30  ;;  %v15183_v30 = vld [vmem:[%s23264_s1 + $0xbb8] sm:$0xff] }
 0x35c   :  { %8588 = vmatpush1.bf16.msra.mxu1 %v13524_v47  ;;  %v13549_v17 = vcombine.high %v1481_v19, %v1485_v10  ;;  %v1489_v47 = vunpack.c.h.s8.bf16 %v15178_v61  ;;  %v14886_v61 = vld [vmem:[#allocation2] ss:$8 sps:$4 sm:$0xff]  }
 0x35d   :  { %8589 = vmatprep.subr.bf16.mxu1 %v13533_v40  ;;  %v15179_v40 = vld [vmem:[%s23264_s1 + $0xb78] sm:$0xff] }
 0x35e   :  { %v1493_v9 = vunpack.c.h.s8.bf16 %v15179_v40 }
 0x35f   :  { %8533 = vmatmul.mubr.bf16.gmra.mrb[80].mxu1 %v24427_v18  ;;  %v13548_v18 = vcombine.low %v1481_v19, %v1485_v10  ;;  %v14891_v19 = vld [vmem:[#allocation2 + $0x14] ss:$8 sps:$4 sm:$0xff]  }
 0x360   :  { %8590 = vmatpush1.bf16.msra.mxu1 %v13532_v25  ;;  %8542 = vmatprep.mubr.bf16.mxu1 %v24430_v28  ;;  %v13557_v28 = vcombine.high %v1489_v47, %v1493_v9  ;;  %v15181_v25 = vld [vmem:[%s23264_s1 + $0xb98] sm:$0xff]  ;;  %v13556_v40 = vcombine.low %v1489_v47, %v1493_v9  ;;  %v14894_v47 = vld [vmem:[#allocation2 + $0x24] ss:$8 sps:$4 sm:$0xff]  }
 0x361   :  { %8591 = vmatprep.subr.bf16.mxu1 %v13541_v53  ;;  %v1501_v53 = vunpack.c.h.s8.bf16 %v15181_v25  ;;  %v1509_v25 = vunpack.c.h.s8.bf16 %v15183_v30 }
 0x362   :  { %7885 = vmatmul.mubr.bf16.gmra.mrb[60].mxu0 %v24543_v20 }
 0x363   :  { %7927 = vmatprep.mubr.bf16.mxu0 %v24544_v57  ;;  %v13565_v10 = vcombine.high %v1497_v58, %v1501_v53 }
 0x364   :  { %8592 = vmatpush1.bf16.msra.mxu1 %v13540_v36  ;;  %v15182_v36 = vld [vmem:[%s23264_s1 + $0xba8] sm:$0xff] }
 0x365   :  { %8593 = vmatprep.subr.bf16.mxu1 %v13549_v17  ;;  %v1505_v17 = vunpack.c.h.s8.bf16 %v15182_v36  ;;  %v15185_v36 = vld [vmem:[%s23264_s1 + $0xbd8] sm:$0xff] }
 0x366   :  { %v1517_v30 = vunpack.c.h.s8.bf16 %v15185_v36  ;;  %v14895_v36 = vld [vmem:[#allocation2 + $0x30] ss:$8 sps:$4 sm:$0xff]  }
 0x367   :  { %8543 = vmatmul.mubr.bf16.gmra.mrb[84].mxu1 %v24431_v34  ;;  %v14889_v34 = vld [vmem:[#allocation2 + $0x10] ss:$8 sps:$4 sm:$0xff]   ;;  %v13573_v9 = vcombine.high %v1505_v17, %v1509_v25 }
 0x368   :  { %8594 = vmatpush1.bf16.msra.mxu1 %v13548_v18  ;;  %8552 = vmatprep.mubr.bf16.mxu1 %v24432_v29  ;;  %v13564_v29 = vcombine.low %v1497_v58, %v1501_v53  ;;  %v15184_v18 = vld [vmem:[%s23264_s1 + $0xbc8] sm:$0xff]  ;;  %v13572_v58 = vcombine.low %v1505_v17, %v1509_v25  ;;  %v14897_v53 = vld [vmem:[#allocation2 + $0x34] ss:$8 sps:$4 sm:$0xff]  }
 0x369   :  { %8595 = vmatprep.subr.bf16.mxu1 %v13557_v28  ;;  %v1513_v28 = vunpack.c.h.s8.bf16 %v15184_v18  ;;  %v14900_v17 = vld [vmem:[#allocation2 + $0x44] ss:$8 sps:$4 sm:$0xff]  }
 0x36a   :  { %13646 = vmatmul.mubr.msk.bf16.vlgmr.msra.gmra.mrb[32].mxu0 %vm5582_vm2, %v24545_v16 }
 0x36b   :  { %10886 = vmatpush1.bf16.msra.mxu0 %v14886_v61  ;;  %7937 = vmatprep.mubr.bf16.mxu0 %v24544_v57  ;;  %v14892_v61 = vld [vmem:[#allocation2 + $0x20] ss:$8 sps:$4 sm:$0xff]  }
 0x36c   :  { %8596 = vmatpush1.bf16.msra.mxu1 %v13556_v40  ;;  %10887 = vmatprep.subr.bf16.mxu0 %v14891_v19  ;;  %v13581_v40 = vcombine.high %v1513_v28, %v1517_v30  ;;  %v1521_v19 = vunpack.c.h.s8.bf16 %v20494_v6  ;;  %v24550_v6 = vld [vmem:[#allocation125_spill] sm:$0xff] }
 0x36d   :  { %8597 = vmatprep.subr.bf16.mxu1 %v13565_v10  ;;  %v24546_v10 = vld [vmem:[#allocation217_spill] sm:$0xff] }
 0x36e   :  { %v1525_v18 = vunpack.c.h.s8.bf16 %v24546_v10  ;;  %v14903_v10 = vld [vmem:[#allocation2 + $0x54] ss:$8 sps:$4 sm:$0xff]  }
 0x36f   :  { %8553 = vmatmul.mubr.bf16.gmra.mrb[88].mxu1 %v24442_v41  ;;  %10888 = vmatpush1.bf16.msra.mxu0 %v14889_v34  ;;  %v13580_v41 = vcombine.low %v1513_v28, %v1517_v30  ;;  %v24548_v34 = vld [vmem:[#allocation218_spill] sm:$0xff]  ;;  %v24552_v28 = vld [vmem:[#allocation9_spill] sm:$0xff]  ;;  %v14901_v30 = vld [vmem:[#allocation2 + $0x50] ss:$8 sps:$4 sm:$0xff]  }
 0x370   :  { %8598 = vmatpush1.bf16.msra.mxu1 %v13564_v29  ;;  %10889 = vmatprep.subr.bf16.mxu0 %v14894_v47  ;;  %v13589_v25 = vcombine.high %v1521_v19, %v1525_v18  ;;  %v24549_v29 = vld [vmem:[#allocation25_spill] sm:$0xff] }
 0x371   :  { %8599 = vmatprep.subr.bf16.mxu1 %v13573_v9  ;;  %8562 = vmatprep.mubr.bf16.mxu1 %v24443_v1  ;;  %v1529_v1 = vunpack.c.h.s8.bf16 %v24548_v34  ;;  %v1533_v47 = vunpack.c.h.s8.bf16 %v24549_v29  ;;  %v14898_v9 = vld [vmem:[#allocation2 + $0x40] ss:$8 sps:$4 sm:$0xff]   ;;  %v14912_v34 = vld [vmem:[#allocation2 + $0x84] ss:$8 sps:$4 sm:$0xff]  }
 0x372   :  { %13647 = vmatmul.mubr.msk.bf16.gmra.mrb[36].mxu0 %vm5582_vm2, %v24547_v51  ;;  %v24557_v29 = vld [vmem:[#allocation81_spill] sm:$0xff] }
 0x373   :  { %10890 = vmatpush1.bf16.msra.mxu0 %v14892_v61  ;;  %7947 = vmatprep.mubr.bf16.mxu0 %v24544_v57  ;;  %v13588_v61 = vcombine.low %v1521_v19, %v1525_v18  ;;  %v14904_v19 = vld [vmem:[#allocation2 + $0x60] ss:$8 sps:$4 sm:$0xff]  }
 0x374   :  { %8600 = vmatpush1.bf16.msra.mxu1 %v13572_v58  ;;  %10891 = vmatprep.subr.bf16.mxu0 %v14897_v53  ;;  %v13597_v58 = vcombine.high %v1529_v1, %v1533_v47  ;;  %v13596_v53 = vcombine.low %v1529_v1, %v1533_v47  ;;  %v24554_v18 = vld [vmem:[#allocation98_spill] sm:$0xff]  ;;  %v24556_v1 = vld [vmem:[#allocation219_spill] sm:$0xff] }
 0x375   :  { %8601 = vmatprep.subr.bf16.mxu1 %v13581_v40  ;;  %v14906_v40 = vld [vmem:[#allocation2 + $0x64] ss:$8 sps:$4 sm:$0xff]  }
 0x377   :  { %8563 = vmatmul.mubr.bf16.gmra.mrb[92].mxu1 %v24550_v6  ;;  %10892 = vmatpush1.bf16.msra.mxu0 %v14895_v36  ;;  %v24553_v36 = vld [vmem:[#allocation127_spill] sm:$0xff] }
 0x378   :  { %8602 = vmatpush1.bf16.msra.mxu1 %v13580_v41  ;;  %10893 = vmatprep.subr.bf16.mxu0 %v14900_v17  ;;  %v24555_v41 = vld [vmem:[#allocation10_spill] sm:$0xff]  ;;  %v1561_v17 = vunpack.c.h.s8.bf16 %v20807_v0  ;;  %v14915_v6 = vld [vmem:[#allocation2 + $0x94] ss:$8 sps:$4 sm:$0xff]  }
 0x379   :  { %8603 = vmatprep.subr.bf16.mxu1 %v13589_v25  ;;  %8605 = vmatprep.mubr.bf16.mxu1 %v24551_v21  ;;  %v14909_v21 = vld [vmem:[#allocation2 + $0x74] ss:$8 sps:$4 sm:$0xff]   ;;  %v14907_v25 = vld [vmem:[#allocation2 + $0x70] ss:$8 sps:$4 sm:$0xff]  }
 0x37a   :  { %13648 = vmatmul.mubr.msk.bf16.gmra.mrb[40].mxu0 %vm5582_vm2, %v24552_v28  ;;  %v13629_v47 = vcombine.high %v1561_v17, %v1561_v17  ;;  %v24558_v0 = vld [vmem:[#allocation220_spill] sm:$0xff] }
 0x37b   :  { %10894 = vmatpush1.bf16.msra.mxu0 %v14898_v9  ;;  %7957 = vmatprep.mubr.bf16.mxu0 %v24544_v57  ;;  %v13628_v9 = vcombine.low %v1561_v17, %v1561_v17  ;;  %v14931_v17 = vld [vmem:[#allocation2 + $0xf0] ss:$8 sps:$4 sm:$0xff]  }
 0x37c   :  { %8604 = vmatpush1.bf16.msra.mxu1 %v13588_v61  ;;  %10895 = vmatprep.subr.bf16.mxu0 %v14903_v10  ;;  %v24559_v61 = vld [vmem:[#allocation11_spill] sm:$0xff]  ;;  %v5633_v10 = vand.u32 %v13629_v47, %v24489_v4  ;;  %v24567_v47 = vld [vmem:[#allocation101_spill] sm:$0xff] }
 0x37d   :  { %8686 = vmatprep.subr.bf16.mxu1 %v13597_v58  ;;  %v14913_v58 = vld [vmem:[#allocation2 + $0x90] ss:$8 sps:$4 sm:$0xff]  }
 0x37f   :  { %8606 = vmatmul.mubr.bf16.vlgmr.msra.gmra.mrb[64].mxu1 %v24553_v36  ;;  %10896 = vmatpush1.bf16.msra.mxu0 %v14901_v30  ;;  %v14916_v30 = vld [vmem:[#allocation2 + $0xa0] ss:$8 sps:$4 sm:$0xff]   ;;  %v14925_v36 = vld [vmem:[#allocation2 + $0xd0] ss:$8 sps:$4 sm:$0xff]  }
 0x380   :  { %8687 = vmatpush1.bf16.msra.mxu1 %v13596_v53  ;;  %10897 = vmatprep.subr.bf16.mxu0 %v14906_v40  ;;  %v24560_v53 = vld [vmem:[#allocation12_spill] sm:$0xff] }
 0x381   :  { %8615 = vmatprep.mubr.bf16.mxu1 %v24467_v31  ;;  %8688 = vmatprep.subr.bf16.mxu1 %v24554_v18  ;;  %v14910_v31 = vld [vmem:[#allocation2 + $0x80] ss:$8 sps:$4 sm:$0xff]   ;;  %v14919_v40 = vld [vmem:[#allocation2 + $0xb0] ss:$8 sps:$4 sm:$0xff]  }
 0x382   :  { %13649 = vmatmul.mubr.msk.bf16.gmra.mrb[44].mxu0 %vm5582_vm2, %v24555_v41  ;;  %v24562_v18 = vld [vmem:[#allocation18_spill] sm:$0xff] }
 0x383   :  { %10898 = vmatpush1.bf16.msra.mxu0 %v14904_v19  ;;  %7967 = vmatprep.mubr.bf16.mxu0 %v24544_v57  ;;  %v14930_v19 = vld [vmem:[#allocation2 + $0xe4] ss:$8 sps:$4 sm:$0xff]  }
 0x384   :  { %10899 = vmatprep.subr.bf16.mxu0 %v14909_v21  ;;  %8689 = vmatpush1.bf16.msra.mxu1 %v24556_v1  ;;  %v14928_v21 = vld [vmem:[#allocation2 + $0xe0] ss:$8 sps:$4 sm:$0xff]  }
 0x385   :  { %8690 = vmatprep.subr.bf16.mxu1 %v24557_v29  ;;  %v24566_v29 = vld [vmem:[#allocation102_spill] sm:$0xff] }
 0x387   :  { %8616 = vmatmul.mubr.bf16.gmra.mrb[68].mxu1 %v24485_v56  ;;  %10900 = vmatpush1.bf16.msra.mxu0 %v14907_v25  ;;  %v14918_v56 = vld [vmem:[#allocation2 + $0xa4] ss:$8 sps:$4 sm:$0xff]  }
 0x388   :  { %10901 = vmatprep.subr.bf16.mxu0 %v14912_v34  ;;  %8625 = vmatprep.mubr.bf16.mxu1 %v24487_v11  ;;  %v5630_v11 = vand.u32 %v13628_v9, %v24489_v4  ;;  %v14922_v4 = vld [vmem:[#allocation2 + $0xc0] ss:$8 sps:$4 sm:$0xff]   ;;  %v14936_v25 = vld [vmem:[#allocation2 + $0x104] ss:$8 sps:$4 sm:$0xff]  }
 0x389   :  { %8691 = vmatpush1.bf16.msra.mxu1 %v24558_v0  ;;  %v24564_v34 = vld [vmem:[#allocation13_spill] sm:$0xff] }
 0x38a   :  { %13650 = vmatmul.mubr.msk.bf16.gmra.mrb[48].mxu0 %vm5582_vm2, %v24559_v61  ;;  %8692 = vmatprep.subr.bf16.mxu1 %v20824_v50  ;;  %v14921_v50 = vld [vmem:[#allocation2 + $0xb4] ss:$8 sps:$4 sm:$0xff]   ;;  %v24565_v1 = vpack.c.bf16 %v20838_v3, %v24564_v34  ;;  %v14940_v3 = vld [vmem:[#allocation2 + $0x120] ss:$8 sps:$4 sm:$0xff]   ;;  %v14948_v34 = vld [vmem:[#allocation2 + $0x144] ss:$8 sps:$4 sm:$0xff]  }
 0x38b   :  { %10902 = vmatpush1.bf16.msra.mxu0 %v14910_v31  ;;  %7977 = vmatprep.mubr.bf16.mxu0 %v24544_v57  ;;  %v24568_v31 = vpack.c.bf16 %v24566_v29, %v24567_v47  ;;  %v14946_v47 = vld [vmem:[#allocation2 + $0x140] ss:$8 sps:$4 sm:$0xff]  }
 0x38c   :  { %10903 = vmatprep.subr.bf16.mxu0 %v14915_v6  ;;  %v24570_v6 = vld [vmem:[#allocation21_spill] sm:$0xff] }
 0x38d   :  { %8693 = vmatpush1.bf16.msra.mxu1 %v20826_v55  ;;  %v14924_v55 = vld [vmem:[#allocation2 + $0xc4] ss:$8 sps:$4 sm:$0xff]  }
 0x38e   :  { %8694 = vmatprep.subr.bf16.mxu1 %v5633_v10  ;;  %v14942_v10 = vld [vmem:[#allocation2 + $0x124] ss:$8 sps:$4 sm:$0xff]  }
 0x38f   :  { %8626 = vmatmul.mubr.bf16.gmra.mrb[72].mxu1 %v24492_v32  ;;  %10904 = vmatpush1.bf16.msra.mxu0 %v14913_v58  ;;  %v14927_v32 = vld [vmem:[#allocation2 + $0xd4] ss:$8 sps:$4 sm:$0xff]  }
 0x390   :  { %10905 = vmatprep.subr.bf16.mxu0 %v14918_v56  ;;  %8635 = vmatprep.mubr.bf16.mxu1 %v24493_v35  ;;  %v24561_v35 = vld [vmem:[#allocation15_spill] sm:$0xff] }
 0x391   :  { %8695 = vmatpush1.bf16.msra.mxu1 %v5630_v11  ;;  %v14945_v11 = vld [vmem:[#allocation2 + $0x134] ss:$8 sps:$4 sm:$0xff]  }
 0x392   :  { %13651 = vmatmul.mubr.msk.bf16.gmra.mrb[52].mxu0 %vm5582_vm2, %v24560_v53 }
 0x393   :  { %10906 = vmatpush1.bf16.msra.mxu0 %v14916_v30  ;;  %7987 = vmatprep.mubr.bf16.mxu0 %v24544_v57 }
 0x394   :  { %10907 = vmatprep.subr.bf16.mxu0 %v14921_v50  ;;  %v24573_v50 = vld [vmem:[#allocation103_spill] sm:$0xff] }
 0x397   :  { %8636 = vmatmul.mubr.bf16.gmra.mrb[76].mxu1 %v24497_v39  ;;  %10908 = vmatpush1.bf16.msra.mxu0 %v14919_v40  ;;  %v14933_v39 = vld [vmem:[#allocation2 + $0xf4] ss:$8 sps:$4 sm:$0xff]   ;;  %v24574_v40 = vld [vmem:[#allocation45_spill] sm:$0xff] }
 0x398   :  { %10909 = vmatprep.subr.bf16.mxu0 %v14924_v55  ;;  %8645 = vmatprep.mubr.bf16.mxu1 %v24500_v15  ;;  %v24563_v15 = vpack.c.bf16 %v20815_v46, %v20810_v48  ;;  %v14937_v48 = vld [vmem:[#allocation2 + $0x110] ss:$8 sps:$4 sm:$0xff]   ;;  %v24569_v46 = vld [vmem:[#allocation174_spill] sm:$0xff]  ;;  %v24575_v55 = vpack.c.bf16 %v24573_v50, %v24574_v40 }
 0x399   :  { %v9801_v0 = vsub.f32 %v24570_v6, %v24569_v46  ;;  %v14954_v40 = vld [vmem:[#allocation2 + $0x164] ss:$8 sps:$4 sm:$0xff]  }
 0x39a   :  { %13652 = vmatmul.mubr.msk.bf16.gmra.mrb[56].mxu0 %vm5582_vm2, %v24561_v35 }
 0x39b   :  { %10910 = vmatpush1.bf16.msra.mxu0 %v14922_v4  ;;  %7997 = vmatprep.mubr.bf16.mxu0 %v24544_v57  ;;  %v24576_v4 = vld [vmem:[#allocation175_spill] sm:$0xff] }
 0x39c   :  { %10911 = vmatprep.subr.bf16.mxu0 %v14927_v32  ;;  %v24577_v32 = vld [vmem:[#allocation160_spill] sm:$0xff] }
 0x39f   :  { %8646 = vmatmul.mubr.bf16.gmra.mrb[80].mxu1 %v24520_v13  ;;  %10912 = vmatpush1.bf16.msra.mxu0 %v14925_v36  ;;  %v14934_v13 = vld [vmem:[#allocation2 + $0x100] ss:$8 sps:$4 sm:$0xff]   ;;  %v9800_v36 = vsub.f32 %v24577_v32, %v24576_v4 }
 0x3a0   :  { %10913 = vmatprep.subr.bf16.mxu0 %v14930_v19  ;;  %8655 = vmatprep.mubr.bf16.mxu1 %v24523_v43  ;;  %v14939_v43 = vld [vmem:[#allocation2 + $0x114] ss:$8 sps:$4 sm:$0xff]  }
 0x3a1   :  { %v24578_v19 = vld [vmem:[#allocation36_spill] sm:$0xff] }
 0x3a2   :  { %13653 = vmatmul.mubr.msk.bf16.gmra.mrb[60].mxu0 %vm5582_vm2, %v24562_v18 }
 0x3a3   :  { %10914 = vmatpush1.bf16.msra.mxu0 %v14928_v21  ;;  %10917 = vmatprep.mubr.bf16.mxu0 %v24563_v15  ;;  %v9808_v21 = vsub.f32 %v24578_v19, %v24576_v4 }
 0x3a4   :  { %10915 = vmatprep.subr.bf16.mxu0 %v14933_v39  ;;  %v24579_v39 = vld [vmem:[#allocation78_spill] sm:$0xff] }
 0x3a5   :  { %v9817_v15 = vsub.f32 %v24579_v39, %v24569_v46  ;;  %v24586_v39 = vld [vmem:[#allocation80_spill] sm:$0xff] }
 0x3a7   :  { %8656 = vmatmul.mubr.bf16.gmra.mrb[84].mxu1 %v24531_v54  ;;  %10916 = vmatpush1.bf16.msra.mxu0 %v14931_v17  ;;  %v24571_v54 = vld [vmem:[#allocation212_spill] sm:$0xff] }
 0x3a8   :  { %10998 = vmatprep.subr.bf16.mxu0 %v14936_v25  ;;  %8665 = vmatprep.mubr.bf16.mxu1 %v24533_v23  ;;  %v9809_v9 = vsub.f32 %v24571_v54, %v24569_v46  ;;  %v24572_v23 = vld [vmem:[#allocation97_spill] sm:$0xff]  ;;  %v24581_v25 = vld [vmem:[#allocation44_spill] sm:$0xff] }
 0x3a9   :  { %v9945_v58 = vmul.f32 %v24572_v23, %v9801_v0  ;;  %v24582_v0 = vld [vmem:[#allocation77_spill] sm:$0xff] }
 0x3aa   :  { %10918 = vmatmul.mubr.bf16.vlgmr.msra.gmra.mrb[64].mxu0 %v24565_v1  ;;  %v9953_v56 = vmul.f32 %v24572_v23, %v9809_v9  ;;  %v9961_v1 = vmul.f32 %v24572_v23, %v9817_v15  ;;  %v9816_v54 = vsub.f32 %v24582_v0, %v24576_v4  ;;  %v24583_v9 = vld [vmem:[#allocation210_spill] sm:$0xff]  ;;  %v9832_v15 = vsub.f32 %v24586_v39, %v24576_v4 }
 0x3ab   :  { %10927 = vmatprep.mubr.bf16.mxu0 %v24568_v31  ;;  %10999 = vmatpush1.bf16.msra.mxu0 %v14934_v13  ;;  %v9944_v13 = vmul.f32 %v24581_v25, %v9800_v36  ;;  %v14952_v36 = vld [vmem:[#allocation2 + $0x160] ss:$8 sps:$4 sm:$0xff]  }
 0x3ac   :  { %11000 = vmatprep.subr.bf16.mxu0 %v14939_v43  ;;  %v10057_v30 = vpack.c.bf16 %v9953_v56, %v9945_v58  ;;  %v9952_v43 = vmul.f32 %v24581_v25, %v9808_v21  ;;  %v14949_v58 = vld [vmem:[#allocation2 + $0x150] ss:$8 sps:$4 sm:$0xff]   ;;  %v14957_v21 = vld [vmem:[#allocation2 + $0x174] ss:$8 sps:$4 sm:$0xff]   ;;  %v14958_v0 = vld [vmem:[#allocation2 + $0x180] ss:$8 sps:$4 sm:$0xff]  }
 0x3ae   :  { %v10056_v31 = vpack.c.bf16 %v9952_v43, %v9944_v13  ;;  %v14955_v13 = vld [vmem:[#allocation2 + $0x170] ss:$8 sps:$4 sm:$0xff]  }
 0x3af   :  { %8666 = vmatmul.mubr.bf16.gmra.mrb[88].mxu1 %v24541_v45  ;;  %11001 = vmatpush1.bf16.msra.mxu0 %v14937_v48  ;;  %v14943_v45 = vld [vmem:[#allocation2 + $0x130] ss:$8 sps:$4 sm:$0xff]   ;;  %v14951_v48 = vld [vmem:[#allocation2 + $0x154] ss:$8 sps:$4 sm:$0xff]  }
 0x3b0   :  { %11002 = vmatprep.subr.bf16.mxu0 %v14942_v10  ;;  %8675 = vmatprep.mubr.bf16.mxu1 %v24542_v42  ;;  %v24580_v42 = vld [vmem:[#allocation79_spill] sm:$0xff]  ;;  %v9824_v10 = vsub.f32 %v24583_v9, %v24576_v4 }
 0x3b1   :  { %v9825_v17 = vsub.f32 %v24580_v42, %v24569_v46  ;;  %v24587_v42 = vld [vmem:[#allocation214_spill] sm:$0xff]  ;;  %v14963_v9 = vld [vmem:[#allocation2 + $0x194] ss:$8 sps:$4 sm:$0xff]  }
 0x3b2   :  { %10928 = vmatmul.mubr.bf16.gmra.mrb[68].mxu0 %v24575_v55  ;;  %v9968_v50 = vmul.f32 %v24581_v25, %v9824_v10 }
 0x3b3   :  { %10937 = vmatprep.mubr.bf16.mxu0 %v10057_v30  ;;  %11003 = vmatpush1.bf16.msra.mxu0 %v14940_v3  ;;  %v9969_v29 = vmul.f32 %v24572_v23, %v9825_v17  ;;  %v24585_v3 = vld [vmem:[#allocation38_spill] sm:$0xff]  ;;  %v9960_v30 = vmul.f32 %v24581_v25, %v9816_v54  ;;  %v9840_v17 = vsub.f32 %v24587_v42, %v24576_v4 }
 0x3b4   :  { %11004 = vmatprep.subr.bf16.mxu0 %v14945_v11  ;;  %v9841_v11 = vsub.f32 %v24585_v3, %v24569_v46 }
 0x3b5   :  { %v10065_v6 = vpack.c.bf16 %v9969_v29, %v9961_v1  ;;  %v10064_v19 = vpack.c.bf16 %v9968_v50, %v9960_v30  ;;  %v9976_v29 = vmul.f32 %v24581_v25, %v9832_v15  ;;  %v24593_v50 = vld [vmem:[#allocation85_spill] sm:$0xff]  ;;  %v14969_v15 = vld [vmem:[#allocation2 + $0x1b4] ss:$8 sps:$4 sm:$0xff]  }
 0x3b6   :  { %v9985_v32 = vmul.f32 %v24572_v23, %v9841_v11  ;;  %v14961_v11 = vld [vmem:[#allocation2 + $0x190] ss:$8 sps:$4 sm:$0xff]  }
 0x3b7   :  { %8676 = vmatmul.mubr.bf16.gmra.mrb[92].mxu1 %v24543_v20  ;;  %11005 = vmatpush1.bf16.msra.mxu0 %v14943_v45  ;;  %v24584_v20 = vld [vmem:[#allocation63_spill] sm:$0xff] }
 0x3b8   :  { %11006 = vmatprep.subr.bf16.mxu0 %v14948_v34  ;;  %8718 = vmatprep.mubr.bf16.mxu1 %v24544_v57  ;;  %v9833_v56 = vsub.f32 %v24584_v20, %v24569_v46  ;;  %v24589_v34 = vld [vmem:[#allocation84_spill] sm:$0xff] }
 0x3b9   :  { %v9857_v1 = vsub.f32 %v24589_v34, %v24569_v46  ;;  %v14967_v34 = vld [vmem:[#allocation2 + $0x1b0] ss:$8 sps:$4 sm:$0xff]  }
 0x3ba   :  { %10938 = vmatmul.mubr.bf16.gmra.mrb[72].mxu0 %v10056_v31  ;;  %v9977_v55 = vmul.f32 %v24572_v23, %v9833_v56  ;;  %v14960_v31 = vld [vmem:[#allocation2 + $0x184] ss:$8 sps:$4 sm:$0xff]   ;;  %v24591_v56 = vld [vmem:[#allocation39_spill] sm:$0xff] }
 0x3bb   :  { %10947 = vmatprep.mubr.bf16.mxu0 %v10065_v6  ;;  %11007 = vmatpush1.bf16.msra.mxu0 %v14946_v47  ;;  %v9984_v47 = vmul.f32 %v24581_v25, %v9840_v17  ;;  %v10001_v6 = vmul.f32 %v24572_v23, %v9857_v1  ;;  %v9856_v3 = vsub.f32 %v24591_v56, %v24576_v4  ;;  %v24594_v17 = vld [vmem:[#allocation22_spill] sm:$0xff] }
 0x3bc   :  { %11008 = vmatprep.subr.bf16.mxu0 %v14951_v48  ;;  %v10073_v45 = vpack.c.bf16 %v9985_v32, %v9977_v55 }
 0x3bd   :  { %v10072_v54 = vpack.c.bf16 %v9984_v47, %v9976_v29  ;;  %v10000_v32 = vmul.f32 %v24581_v25, %v9856_v3  ;;  %v24597_v29 = vld [vmem:[#allocation169_spill] sm:$0xff]  ;;  %v24599_v3 = vld [vmem:[#allocation168_spill] sm:$0xff] }
 0x3be   :  { %v9889_v47 = vsub.f32 %v24597_v29, %v24569_v46  ;;  %v24614_v29 = vpack.c.bf16 %v21062_v24, %v21052_v60  ;;  %v24620_v24 = vpack.c.bf16 %v21126_v27, %v21118_v14  ;;  %v15003_v27 = vld [vmem:[#allocation2 + $0x270] ss:$8 sps:$4 sm:$0xff]  }
 0x3bf   :  { %13654 = vmatmul.mubr.msk.bf16.vlgmr.msra.gmra.mrb[64].mxu1 %vm5582_vm2, %v24545_v16  ;;  %11009 = vmatpush1.bf16.msra.mxu0 %v14949_v58  ;;  %v24588_v16 = vld [vmem:[#allocation149_spill] sm:$0xff]  ;;  %v24590_v58 = vld [vmem:[#allocation83_spill] sm:$0xff] }
 0x3c0   :  { %11010 = vmatprep.subr.bf16.mxu0 %v14954_v40  ;;  %8728 = vmatprep.mubr.bf16.mxu1 %v24544_v57  ;;  %v9849_v43 = vsub.f32 %v24588_v16, %v24569_v46  ;;  %v9848_v20 = vsub.f32 %v24590_v58, %v24576_v4  ;;  %v9873_v40 = vsub.f32 %v24593_v50, %v24569_v46  ;;  %v24595_v16 = vld [vmem:[#allocation165_spill] sm:$0xff] }
 0x3c1   :  { %v14976_v50 = vld [vmem:[#allocation2 + $0x1e0] ss:$8 sps:$4 sm:$0xff]  }
 0x3c2   :  { %10948 = vmatmul.mubr.bf16.gmra.mrb[76].mxu0 %v10064_v19  ;;  %v9993_v48 = vmul.f32 %v24572_v23, %v9849_v43  ;;  %v9992_v55 = vmul.f32 %v24581_v25, %v9848_v20  ;;  %v9872_v43 = vsub.f32 %v24595_v16, %v24576_v4  ;;  %v24598_v20 = vld [vmem:[#allocation86_spill] sm:$0xff]  ;;  %v24611_v16 = vld [vmem:[#allocation179_spill] sm:$0xff] }
 0x3c3   :  { %10957 = vmatprep.mubr.bf16.mxu0 %v10073_v45  ;;  %11011 = vmatpush1.bf16.msra.mxu0 %v14952_v36  ;;  %v14966_v36 = vld [vmem:[#allocation2 + $0x1a4] ss:$8 sps:$4 sm:$0xff]   ;;  %v14964_v45 = vld [vmem:[#allocation2 + $0x1a0] ss:$8 sps:$4 sm:$0xff]   ;;  %v9880_v56 = vsub.f32 %v24598_v20, %v24576_v4 }
 0x3c4   :  { %11012 = vmatprep.subr.bf16.mxu0 %v14957_v21  ;;  %v10081_v10 = vpack.c.bf16 %v10001_v6, %v9993_v48  ;;  %v10017_v21 = vmul.f32 %v24572_v23, %v9873_v40  ;;  %v10080_v39 = vpack.c.bf16 %v10000_v32, %v9992_v55  ;;  %v10016_v48 = vmul.f32 %v24581_v25, %v9872_v43  ;;  %v14972_v6 = vld [vmem:[#allocation2 + $0x1c4] ss:$8 sps:$4 sm:$0xff]   ;;  %v14981_v55 = vld [vmem:[#allocation2 + $0x1f4] ss:$8 sps:$4 sm:$0xff]   ;;  %v14979_v32 = vld [vmem:[#allocation2 + $0x1f0] ss:$8 sps:$4 sm:$0xff]  }
 0x3c5   :  { %v15020_v20 = vld [vmem:[#allocation2 + $0x2c4] ss:$8 sps:$4 sm:$0xff]  }
 0x3c7   :  { %13655 = vmatmul.mubr.msk.bf16.gmra.mrb[68].mxu1 %vm5582_vm2, %v24547_v51  ;;  %11013 = vmatpush1.bf16.msra.mxu0 %v14955_v13  ;;  %v24592_v51 = vld [vmem:[#allocation164_spill] sm:$0xff]  ;;  %v9864_v13 = vsub.f32 %v24594_v17, %v24576_v4 }
 0x3c8   :  { %11014 = vmatprep.subr.bf16.mxu0 %v14960_v31  ;;  %8738 = vmatprep.mubr.bf16.mxu1 %v24544_v57  ;;  %v9865_v30 = vsub.f32 %v24592_v51, %v24569_v46 }
 0x3c9   :  { %v10008_v31 = vmul.f32 %v24581_v25, %v9864_v13  ;;  %v24610_v13 = vld [vmem:[#allocation183_spill] sm:$0xff] }
 0x3ca   :  { %10958 = vmatmul.mubr.bf16.gmra.mrb[80].mxu0 %v10072_v54  ;;  %v10009_v19 = vmul.f32 %v24572_v23, %v9865_v30  ;;  %v10033_v54 = vmul.f32 %v24572_v23, %v9889_v47  ;;  %v14978_v30 = vld [vmem:[#allocation2 + $0x1e4] ss:$8 sps:$4 sm:$0xff]   ;;  %v24612_v43 = vpack.c.bf16 %v24610_v13, %v24611_v16  ;;  %v14994_v47 = vld [vmem:[#allocation2 + $0x240] ss:$8 sps:$4 sm:$0xff]  }
 0x3cb   :  { %10967 = vmatprep.mubr.bf16.mxu0 %v10081_v10  ;;  %11015 = vmatpush1.bf16.msra.mxu0 %v14958_v0  ;;  %v10088_v10 = vpack.c.bf16 %v10016_v48, %v10008_v31  ;;  %v14996_v31 = vld [vmem:[#allocation2 + $0x244] ss:$8 sps:$4 sm:$0xff]   ;;  %v24616_v48 = vpack.c.bf16 %v21083_v62, %v21073_v52  ;;  %v15000_v62 = vld [vmem:[#allocation2 + $0x260] ss:$8 sps:$4 sm:$0xff]  }
 0x3cc   :  { %11016 = vmatprep.subr.bf16.mxu0 %v14963_v9  ;;  %v10089_v42 = vpack.c.bf16 %v10017_v21, %v10009_v19  ;;  %v14970_v9 = vld [vmem:[#allocation2 + $0x1c0] ss:$8 sps:$4 sm:$0xff]   ;;  %v24605_v21 = vld [vmem:[#allocation104_spill] sm:$0xff]  ;;  %v15002_v52 = vld [vmem:[#allocation2 + $0x264] ss:$8 sps:$4 sm:$0xff]  }
 0x3cd   :  { %v24604_v19 = vld [vmem:[#allocation177_spill] sm:$0xff] }
 0x3cf   :  { %13656 = vmatmul.mubr.msk.bf16.gmra.mrb[72].mxu1 %vm5582_vm2, %v24552_v28  ;;  %11017 = vmatpush1.bf16.msra.mxu0 %v14961_v11  ;;  %v24596_v28 = vld [vmem:[#allocation166_spill] sm:$0xff]  ;;  %v9888_v11 = vsub.f32 %v24599_v3, %v24576_v4  ;;  %v24600_v4 = vpack.c.bf16 %v20978_v33, %v20968_v38  ;;  %v14985_v38 = vld [vmem:[#allocation2 + $0x210] ss:$8 sps:$4 sm:$0xff]   ;;  %v14987_v33 = vld [vmem:[#allocation2 + $0x214] ss:$8 sps:$4 sm:$0xff]  }
 0x3d0   :  { %11018 = vmatprep.subr.bf16.mxu0 %v14966_v36  ;;  %8748 = vmatprep.mubr.bf16.mxu1 %v24544_v57  ;;  %v9881_v1 = vsub.f32 %v24596_v28, %v24569_v46  ;;  %v14975_v46 = vld [vmem:[#allocation2 + $0x1d4] ss:$8 sps:$4 sm:$0xff]   ;;  %v14990_v28 = vld [vmem:[#allocation2 + $0x224] ss:$8 sps:$4 sm:$0xff]  }
 0x3d1   :  { %v10032_v51 = vmul.f32 %v24581_v25, %v9888_v11  ;;  %v15023_v3 = vld [vmem:[#allocation2 + $0x2d4] ss:$8 sps:$4 sm:$0xff]   ;;  %v15021_v11 = vld [vmem:[#allocation2 + $0x2d0] ss:$8 sps:$4 sm:$0xff]  }
 0x3d2   :  { %10968 = vmatmul.mubr.bf16.gmra.mrb[84].mxu0 %v10080_v39  ;;  %v10025_v0 = vmul.f32 %v24572_v23, %v9881_v1  ;;  %v14973_v23 = vld [vmem:[#allocation2 + $0x1d0] ss:$8 sps:$4 sm:$0xff]   ;;  %v14982_v39 = vld [vmem:[#allocation2 + $0x200] ss:$8 sps:$4 sm:$0xff]   ;;  %v24613_v1 = vpack.c.bf16 %v21042_v2, %v21039_v63  ;;  %v24617_v63 = vpack.c.bf16 %v21095_v7, %v21092_v59  ;;  %v15005_v59 = vld [vmem:[#allocation2 + $0x274] ss:$8 sps:$4 sm:$0xff]   ;;  %v24622_v7 = vpack.c.bf16 %v21162_v49, %v21153_v37 }
 0x3d3   :  { %10977 = vmatprep.mubr.bf16.mxu0 %v10089_v42  ;;  %11019 = vmatpush1.bf16.msra.mxu0 %v14964_v45  ;;  %v24606_v45 = vpack.c.bf16 %v24604_v19, %v24605_v21  ;;  %v24608_v42 = vld [vmem:[#allocation87_spill] sm:$0xff]  ;;  %v24618_v2 = vld [vmem:[#allocation46_spill] sm:$0xff] }
 0x3d4   :  { %11020 = vmatprep.subr.bf16.mxu0 %v14969_v15  ;;  %v10097_v58 = vpack.c.bf16 %v10033_v54, %v10025_v0  ;;  %v14984_v15 = vld [vmem:[#allocation2 + $0x204] ss:$8 sps:$4 sm:$0xff]   ;;  %v24619_v60 = vpack.c.bf16 %v21106_v12, %v24618_v2  ;;  %v24623_v12 = vld [vmem:[#allocation184_spill] sm:$0xff]  ;;  %v15012_v49 = vld [vmem:[#allocation2 + $0x2a0] ss:$8 sps:$4 sm:$0xff]  }
 0x3d5   :  { %v24624_v14 = vpack.c.bf16 %v21144_v8, %v24623_v12  ;;  %v15011_v0 = vld [vmem:[#allocation2 + $0x294] ss:$8 sps:$4 sm:$0xff]   ;;  %v15014_v37 = vld [vmem:[#allocation2 + $0x2a4] ss:$8 sps:$4 sm:$0xff]  }
 0x3d6   :  { %v24625_v54 = vld [vmem:[#allocation8_spill] sm:$0xff] }
 0x3d7   :  { %13657 = vmatmul.mubr.msk.bf16.gmra.mrb[76].mxu1 %vm5582_vm2, %v24555_v41  ;;  %11021 = vmatpush1.bf16.msra.mxu0 %v14967_v34  ;;  %v10024_v41 = vmul.f32 %v24581_v25, %v9880_v56  ;;  %v24602_v25 = vld [vmem:[#allocation26_spill] sm:$0xff]  ;;  %v15017_v8 = vld [vmem:[#allocation2 + $0x2b4] ss:$8 sps:$4 sm:$0xff]  }
 0x3d8   :  { %11022 = vmatprep.subr.bf16.mxu0 %v14972_v6  ;;  %8758 = vmatprep.mubr.bf16.mxu1 %v24544_v57  ;;  %v14988_v34 = vld [vmem:[#allocation2 + $0x220] ss:$8 sps:$4 sm:$0xff]   ;;  %v14999_v6 = vld [vmem:[#allocation2 + $0x254] ss:$8 sps:$4 sm:$0xff]  }
 0x3d9   :  { %v10096_v40 = vpack.c.bf16 %v10032_v51, %v10024_v41  ;;  %v15018_v56 = vld [vmem:[#allocation2 + $0x2c0] ss:$8 sps:$4 sm:$0xff]  }
 0x3da   :  { %10978 = vmatmul.mubr.bf16.gmra.mrb[88].mxu0 %v10088_v10  ;;  %v24628_v41 = vld [vmem:[#allocation14_spill] sm:$0xff] }
 0x3db   :  { %10987 = vmatprep.mubr.bf16.mxu0 %v10097_v58  ;;  %11023 = vmatpush1.bf16.msra.mxu0 %v14970_v9  ;;  %v24626_v9 = vld [vmem:[#allocation88_spill] sm:$0xff]  ;;  %v8822_v51 = vsub.s32 4, %v24628_v41 }
 0x3dc   :  { %11024 = vmatprep.subr.bf16.mxu0 %v14975_v46  ;;  %v24627_v10 = vpack.c.bf16 %v24625_v54, %v24626_v9  ;;  %v15009_v46 = vld [vmem:[#allocation2 + $0x290] ss:$8 sps:$4 sm:$0xff]  }
 0x3dd   :  { %v15015_v58 = vld [vmem:[#allocation2 + $0x2b0] ss:$8 sps:$4 sm:$0xff]  }
 0x3df   :  { %13658 = vmatmul.mubr.msk.bf16.gmra.mrb[80].mxu1 %vm5582_vm2, %v24559_v61  ;;  %11025 = vmatpush1.bf16.msra.mxu0 %v14973_v23  ;;  %v24601_v61 = vld [vmem:[#allocation150_spill] sm:$0xff] }
 0x3e0   :  { %11026 = vmatprep.subr.bf16.mxu0 %v14978_v30  ;;  %8768 = vmatprep.mubr.bf16.mxu1 %v24544_v57  ;;  %v24603_v36 = vpack.c.bf16 %v24601_v61, %v24602_v25  ;;  %v15026_v23 = vld [vmem:[#allocation2 + $0x2e4] ss:$8 sps:$4 sm:$0xff]   ;;  %v8826_v30 = vsub.s32 5, %v24628_v41 }
 0x3e1   :  { %v24630_v61 = vld [vmem:[#allocation17_spill] sm:$0xff] }
 0x3e2   :  { %10988 = vmatmul.mubr.bf16.gmra.mrb[92].mxu0 %v10096_v40  ;;  %v15029_v40 = vld [vmem:[#allocation2 + $0x2f4] ss:$8 sps:$4 sm:$0xff]   ;;  %v21459_v25 = vrot.slane %v24630_v61, %v8822_v51  ;;  %v21462_v21 = vrot.slane %v24630_v61, %v8826_v30 }
 0x3e3   :  { %11027 = vmatpush1.bf16.msra.mxu0 %v14976_v50  ;;  %11030 = vmatprep.mubr.bf16.mxu0 %v24600_v4  ;;  %v15024_v50 = vld [vmem:[#allocation2 + $0x2e0] ss:$8 sps:$4 sm:$0xff]  }
 0x3e4   :  { %11028 = vmatprep.subr.bf16.mxu0 %v14981_v55  ;;  %v24629_v55 = vld [vmem:[#allocation137_spill] sm:$0xff] }
 0x3e5   :  { %v21453_v4 = vrot.slane %v24629_v55, %v8822_v51 }
 0x3e7   :  { %13659 = vmatmul.mubr.msk.bf16.gmra.mrb[84].mxu1 %vm5582_vm2, %v24560_v53  ;;  %11029 = vmatpush1.bf16.msra.mxu0 %v14979_v32  ;;  %v24607_v53 = vld [vmem:[#allocation178_spill] sm:$0xff]  ;;  %v21456_v32 = vrot.slane %v24629_v55, %v8826_v30 }
 0x3e8   :  { %8778 = vmatprep.mubr.bf16.mxu1 %v24544_v57  ;;  %11111 = vmatprep.subr.bf16.mxu0 %v14984_v15  ;;  %v24609_v17 = vpack.c.bf16 %v24607_v53, %v24608_v42 }
 0x3ea   :  { %11031 = vmatmul.mubr.bf16.vlgmr.msra.gmra.mrb[64].mxu0 %v24603_v36  ;;  %v15027_v36 = vld [vmem:[#allocation2 + $0x2f0] ss:$8 sps:$4 sm:$0xff]  }
 0x3eb   :  { %11040 = vmatprep.mubr.bf16.mxu0 %v24606_v45  ;;  %11112 = vmatpush1.bf16.msra.mxu0 %v14982_v39 }
 0x3ec   :  { %11113 = vmatprep.subr.bf16.mxu0 %v14987_v33 }
 0x3ef   :  { %13660 = vmatmul.mubr.msk.bf16.gmra.mrb[88].mxu1 %vm5582_vm2, %v24561_v35  ;;  %11114 = vmatpush1.bf16.msra.mxu0 %v14985_v38  ;;  %v14993_v35 = vld [vmem:[#allocation2 + $0x234] ss:$8 sps:$4 sm:$0xff]  }
 0x3f0   :  { %8788 = vmatprep.mubr.bf16.mxu1 %v24544_v57  ;;  %11115 = vmatprep.subr.bf16.mxu0 %v14990_v28  ;;  %v14991_v57 = vld [vmem:[#allocation2 + $0x230] ss:$8 sps:$4 sm:$0xff]  }
 0x3f2   :  { %11041 = vmatmul.mubr.bf16.gmra.mrb[68].mxu0 %v24609_v17 }
 0x3f3   :  { %11050 = vmatprep.mubr.bf16.mxu0 %v24612_v43  ;;  %11116 = vmatpush1.bf16.msra.mxu0 %v14988_v34 }
 0x3f4   :  { %11117 = vmatprep.subr.bf16.mxu0 %v14993_v35 }
 0x3f7   :  { %13661 = vmatmul.mubr.msk.bf16.gmra.mrb[92].mxu1 %vm5582_vm2, %v24562_v18  ;;  %11118 = vmatpush1.bf16.msra.mxu0 %v14991_v57  ;;  %v24615_v18 = vpack.c.bf16 %v21070_v26, %v21065_v5  ;;  %v24621_v5 = vpack.c.bf16 %v21150_v44, %v21134_v22  ;;  %v14997_v26 = vld [vmem:[#allocation2 + $0x250] ss:$8 sps:$4 sm:$0xff]   ;;  %v15008_v22 = vld [vmem:[#allocation2 + $0x284] ss:$8 sps:$4 sm:$0xff]   ;;  %v15006_v44 = vld [vmem:[#allocation2 + $0x280] ss:$8 sps:$4 sm:$0xff]  }
 0x3f8   :  { %11119 = vmatprep.subr.bf16.mxu0 %v14996_v31  ;;  %v15032_v57 = vld [vmem:[#allocation2 + $0x304] ss:$8 sps:$4 sm:$0xff]  }
 0x3fa   :  { %11051 = vmatmul.mubr.bf16.gmra.mrb[72].mxu0 %v24613_v1 }
 0x3fb   :  { %11060 = vmatprep.mubr.bf16.mxu0 %v24614_v29  ;;  %11120 = vmatpush1.bf16.msra.mxu0 %v14994_v47 }
 0x3fc   :  { %11121 = vmatprep.subr.bf16.mxu0 %v14999_v6 }
 0x3ff   :  { %11122 = vmatpush1.bf16.msra.mxu0 %v14997_v26 }
 0x400   :  { %11123 = vmatprep.subr.bf16.mxu0 %v15002_v52 }
 0x402   :  { %11061 = vmatmul.mubr.bf16.gmra.mrb[76].mxu0 %v24615_v18 }
 0x403   :  { %11070 = vmatprep.mubr.bf16.mxu0 %v24616_v48  ;;  %11124 = vmatpush1.bf16.msra.mxu0 %v15000_v62 }
 0x404   :  { %11125 = vmatprep.subr.bf16.mxu0 %v15005_v59 }
 0x407   :  { %11126 = vmatpush1.bf16.msra.mxu0 %v15003_v27 }
 0x408   :  { %11127 = vmatprep.subr.bf16.mxu0 %v15008_v22 }
 0x40a   :  { %11071 = vmatmul.mubr.bf16.gmra.mrb[80].mxu0 %v24617_v63 }
 0x40b   :  { %11080 = vmatprep.mubr.bf16.mxu0 %v24619_v60  ;;  %11128 = vmatpush1.bf16.msra.mxu0 %v15006_v44 }
 0x40c   :  { %11129 = vmatprep.subr.bf16.mxu0 %v15011_v0 }
 0x40f   :  { %11130 = vmatpush1.bf16.msra.mxu0 %v15009_v46 }
 0x410   :  { %11131 = vmatprep.subr.bf16.mxu0 %v15014_v37 }
 0x412   :  { %11081 = vmatmul.mubr.bf16.gmra.mrb[84].mxu0 %v24620_v24 }
 0x413   :  { %11090 = vmatprep.mubr.bf16.mxu0 %v24621_v5  ;;  %11132 = vmatpush1.bf16.msra.mxu0 %v15012_v49 }
 0x414   :  { %11133 = vmatprep.subr.bf16.mxu0 %v15017_v8 }
 0x417   :  { %11134 = vmatpush1.bf16.msra.mxu0 %v15015_v58 }
 0x418   :  { %11135 = vmatprep.subr.bf16.mxu0 %v15020_v20 }
 0x41a   :  { %11091 = vmatmul.mubr.bf16.gmra.mrb[88].mxu0 %v24622_v7 }
 0x41b   :  { %11100 = vmatprep.mubr.bf16.mxu0 %v24624_v14  ;;  %11136 = vmatpush1.bf16.msra.mxu0 %v15018_v56 }
 0x41c   :  { %11137 = vmatprep.subr.bf16.mxu0 %v15023_v3 }
 0x41f   :  { %11138 = vmatpush1.bf16.msra.mxu0 %v15021_v11 }
 0x420   :  { %11139 = vmatprep.subr.bf16.mxu0 %v15026_v23 }
 0x422   :  { %11101 = vmatmul.mubr.bf16.gmra.mrb[92].mxu0 %v24627_v10 }
 0x423   :  { %11140 = vmatpush1.bf16.msra.mxu0 %v15024_v50 }
 0x424   :  { %11141 = vmatprep.subr.bf16.mxu0 %v15029_v40 }
 0x427   :  { %11142 = vmatpush1.bf16.msra.mxu0 %v15027_v36 }
 0x428   :  { %11224 = vmatprep.subr.bf16.mxu0 %v15032_v57 }
 0x43d   :  { %v7929_v19 = vpop.f32.mrb[32].mxu0 }
 0x43e   :  { %v8848_v45 = vmul.f32 %v21453_v4, %v7929_v19  ;;  %v7931_v39 = vpop.f32.mrb[33].mxu0 }
 0x43f   :  { %v8849_v15 = vmul.f32 %v21456_v32, %v7931_v39  ;;  %v7933_v38 = vpop.f32.mrb[34].mxu0 }
 0x440   :  { %v9020_v33 = vadd.f32 %v21459_v25, %v8848_v45  ;;  %v8856_v53 = vmul.f32 %v21453_v4, %v7933_v38  ;;  %v7935_v42 = vpop.f32.mrb[35].mxu0 }
 0x441   :  { %v9021_v17 = vadd.f32 %v21462_v21, %v8849_v15  ;;  %v8857_v13 = vmul.f32 %v21456_v32, %v7935_v42 }
 0x442   :  { %v21470_v16 = vmax.f32 %v9020_v33, 0.0  ;;  %v9028_v43 = vadd.f32 %v21459_v25, %v8856_v53 }
 0x443   :  { %v21473_v34 = vmax.f32 %v9021_v17, 0.0  ;;  %v9029_v28 = vadd.f32 %v21462_v21, %v8857_v13 }
 0x444   :  { %v21476_v35 = vmax.f32 %v9028_v43, 0.0  ;;  %v9444_v47 = vmul.f32 %v21470_v16, %v21470_v16 }
 0x445   :  { %v21478_v1 = vmax.f32 %v9029_v28, 0.0  ;;  %v7939_v29 = vpop.f32.mrb[36].mxu0  ;;  %v9445_v2 = vmul.f32 %v21473_v34, %v21473_v34 }
 0x446   :  { %v9356_v31 = vadd.f32 %v21476_v35, %v21470_v16  ;;  %v9452_v18 = vmul.f32 %v21476_v35, %v21476_v35  ;;  %v8864_v48 = vmul.f32 %v21453_v4, %v7939_v29  ;;  %v7941_v63 = vpop.f32.mrb[37].mxu0 }
 0x447   :  { %v9377_v60 = vadd.f32 %v21478_v1, %v21473_v34  ;;  %v9453_v24 = vmul.f32 %v21478_v1, %v21478_v1  ;;  %v8865_v5 = vmul.f32 %v21456_v32, %v7941_v63  ;;  %v7943_v26 = vpop.f32.mrb[38].mxu0 }
 0x448   :  { %v9652_v6 = vadd.f32 %v9452_v18, %v9444_v47  ;;  %v9036_v52 = vadd.f32 %v21459_v25, %v8864_v48  ;;  %v8872_v62 = vmul.f32 %v21453_v4, %v7943_v26  ;;  %v7945_v59 = vpop.f32.mrb[39].mxu0 }
 0x449   :  { %v9673_v7 = vadd.f32 %v9453_v24, %v9445_v2  ;;  %v9037_v12 = vadd.f32 %v21462_v21, %v8865_v5  ;;  %v8873_v14 = vmul.f32 %v21456_v32, %v7945_v59 }
 0x44a   :  { %v21498_v27 = vmax.f32 %v9036_v52, 0.0  ;;  %v9044_v22 = vadd.f32 %v21459_v25, %v8872_v62 }
 0x44b   :  { %v21501_v44 = vmax.f32 %v9037_v12, 0.0  ;;  %v9045_v0 = vadd.f32 %v21462_v21, %v8873_v14 }
 0x44c   :  { %v9357_v54 = vadd.f32 %v9356_v31, %v21498_v27  ;;  %v9460_v9 = vmul.f32 %v21498_v27, %v21498_v27  ;;  %v21507_v10 = vmax.f32 %v9044_v22, 0.0 }
 0x44d   :  { %v9378_v46 = vadd.f32 %v9377_v60, %v21501_v44  ;;  %v9461_v37 = vmul.f32 %v21501_v44, %v21501_v44  ;;  %v21512_v49 = vmax.f32 %v9045_v0, 0.0  ;;  %v7949_v8 = vpop.f32.mrb[40].mxu0 }
 0x44e   :  { %v9653_v58 = vadd.f32 %v9652_v6, %v9460_v9  ;;  %v9358_v20 = vadd.f32 %v9357_v54, %v21507_v10  ;;  %v9468_v56 = vmul.f32 %v21507_v10, %v21507_v10  ;;  %v8880_v3 = vmul.f32 %v21453_v4, %v7949_v8  ;;  %v7951_v11 = vpop.f32.mrb[41].mxu0 }
 0x44f   :  { %v9674_v23 = vadd.f32 %v9673_v7, %v9461_v37  ;;  %v9379_v51 = vadd.f32 %v9378_v46, %v21512_v49  ;;  %v9469_v30 = vmul.f32 %v21512_v49, %v21512_v49  ;;  %v8881_v50 = vmul.f32 %v21456_v32, %v7951_v11  ;;  %v7953_v40 = vpop.f32.mrb[42].mxu0 }
 0x450   :  { %v9654_v36 = vadd.f32 %v9653_v58, %v9468_v56  ;;  %v9052_v19 = vadd.f32 %v21459_v25, %v8880_v3  ;;  %v8888_v45 = vmul.f32 %v21453_v4, %v7953_v40  ;;  %v7955_v39 = vpop.f32.mrb[43].mxu0 }
 0x451   :  { %v9675_v15 = vadd.f32 %v9674_v23, %v9469_v30  ;;  %v9053_v38 = vadd.f32 %v21462_v21, %v8881_v50  ;;  %v8889_v33 = vmul.f32 %v21456_v32, %v7955_v39 }
 0x452   :  { %v21526_v53 = vmax.f32 %v9052_v19, 0.0  ;;  %v9060_v42 = vadd.f32 %v21459_v25, %v8888_v45 }
 0x453   :  { %v21529_v17 = vmax.f32 %v9053_v38, 0.0  ;;  %v9061_v13 = vadd.f32 %v21462_v21, %v8889_v33 }
 0x454   :  { %v9359_v43 = vadd.f32 %v9358_v20, %v21526_v53  ;;  %v9476_v28 = vmul.f32 %v21526_v53, %v21526_v53  ;;  %v21535_v57 = vmax.f32 %v9060_v42, 0.0 }
 0x455   :  { %v9380_v29 = vadd.f32 %v9379_v51, %v21529_v17  ;;  %v9477_v47 = vmul.f32 %v21529_v17, %v21529_v17  ;;  %v21540_v31 = vmax.f32 %v9061_v13, 0.0  ;;  %v7959_v18 = vpop.f32.mrb[44].mxu0 }
 0x456   :  { %v9655_v48 = vadd.f32 %v9654_v36, %v9476_v28  ;;  %v9360_v63 = vadd.f32 %v9359_v43, %v21535_v57  ;;  %v9484_v2 = vmul.f32 %v21535_v57, %v21535_v57  ;;  %v8896_v60 = vmul.f32 %v21453_v4, %v7959_v18  ;;  %v7961_v24 = vpop.f32.mrb[45].mxu0 }
 0x457   :  { %v9676_v5 = vadd.f32 %v9675_v15, %v9477_v47  ;;  %v9381_v26 = vadd.f32 %v9380_v29, %v21540_v31  ;;  %v9485_v6 = vmul.f32 %v21540_v31, %v21540_v31  ;;  %v8897_v52 = vmul.f32 %v21456_v32, %v7961_v24  ;;  %v7963_v62 = vpop.f32.mrb[46].mxu0 }
 0x458   :  { %v9656_v59 = vadd.f32 %v9655_v48, %v9484_v2  ;;  %v9068_v7 = vadd.f32 %v21459_v25, %v8896_v60  ;;  %v8904_v12 = vmul.f32 %v21453_v4, %v7963_v62  ;;  %v7965_v14 = vpop.f32.mrb[47].mxu0 }
 0x459   :  { %v9677_v22 = vadd.f32 %v9676_v5, %v9485_v6  ;;  %v9069_v0 = vadd.f32 %v21462_v21, %v8897_v52  ;;  %v8905_v54 = vmul.f32 %v21456_v32, %v7965_v14 }
 0x45a   :  { %v21554_v9 = vmax.f32 %v9068_v7, 0.0  ;;  %v9076_v46 = vadd.f32 %v21459_v25, %v8904_v12 }
 0x45b   :  { %v21557_v37 = vmax.f32 %v9069_v0, 0.0  ;;  %v9077_v8 = vadd.f32 %v21462_v21, %v8905_v54 }
 0x45c   :  { %v9361_v58 = vadd.f32 %v9360_v63, %v21554_v9  ;;  %v9492_v20 = vmul.f32 %v21554_v9, %v21554_v9  ;;  %v21563_v56 = vmax.f32 %v9076_v46, 0.0 }
 0x45d   :  { %v9382_v3 = vadd.f32 %v9381_v26, %v21557_v37  ;;  %v9493_v11 = vmul.f32 %v21557_v37, %v21557_v37  ;;  %v21568_v23 = vmax.f32 %v9077_v8, 0.0  ;;  %v7969_v51 = vpop.f32.mrb[48].mxu0 }
 0x45e   :  { %v9657_v30 = vadd.f32 %v9656_v59, %v9492_v20  ;;  %v9362_v50 = vadd.f32 %v9361_v58, %v21563_v56  ;;  %v9500_v40 = vmul.f32 %v21563_v56, %v21563_v56  ;;  %v8912_v36 = vmul.f32 %v21453_v4, %v7969_v51  ;;  %v7971_v19 = vpop.f32.mrb[49].mxu0 }
 0x45f   :  { %v9678_v45 = vadd.f32 %v9677_v22, %v9493_v11  ;;  %v9383_v39 = vadd.f32 %v9382_v3, %v21568_v23  ;;  %v9501_v15 = vmul.f32 %v21568_v23, %v21568_v23  ;;  %v8913_v38 = vmul.f32 %v21456_v32, %v7971_v19  ;;  %v7973_v33 = vpop.f32.mrb[50].mxu0 }
 0x460   :  { %v9658_v42 = vadd.f32 %v9657_v30, %v9500_v40  ;;  %v9084_v13 = vadd.f32 %v21459_v25, %v8912_v36  ;;  %v8920_v43 = vmul.f32 %v21453_v4, %v7973_v33  ;;  %v7975_v28 = vpop.f32.mrb[51].mxu0 }
 0x461   :  { %v9679_v29 = vadd.f32 %v9678_v45, %v9501_v15  ;;  %v9085_v47 = vadd.f32 %v21462_v21, %v8913_v38  ;;  %v8921_v18 = vmul.f32 %v21456_v32, %v7975_v28 }
 0x462   :  { %v21582_v48 = vmax.f32 %v9084_v13, 0.0  ;;  %v9092_v63 = vadd.f32 %v21459_v25, %v8920_v43 }
 0x463   :  { %v21585_v2 = vmax.f32 %v9085_v47, 0.0  ;;  %v9093_v60 = vadd.f32 %v21462_v21, %v8921_v18 }
 0x464   :  { %v9363_v24 = vadd.f32 %v9362_v50, %v21582_v48  ;;  %v9508_v5 = vmul.f32 %v21582_v48, %v21582_v48  ;;  %v21591_v26 = vmax.f32 %v9092_v63, 0.0 }
 0x465   :  { %v9384_v6 = vadd.f32 %v9383_v39, %v21585_v2  ;;  %v9509_v52 = vmul.f32 %v21585_v2, %v21585_v2  ;;  %v21596_v62 = vmax.f32 %v9093_v60, 0.0  ;;  %v7979_v59 = vpop.f32.mrb[52].mxu0 }
 0x466   :  { %v9659_v7 = vadd.f32 %v9658_v42, %v9508_v5  ;;  %v9364_v12 = vadd.f32 %v9363_v24, %v21591_v26  ;;  %v9516_v14 = vmul.f32 %v21591_v26, %v21591_v26  ;;  %v8928_v22 = vmul.f32 %v21453_v4, %v7979_v59  ;;  %v7981_v0 = vpop.f32.mrb[53].mxu0 }
 0x467   :  { %v9680_v54 = vadd.f32 %v9679_v29, %v9509_v52  ;;  %v9385_v46 = vadd.f32 %v9384_v6, %v21596_v62  ;;  %v9517_v8 = vmul.f32 %v21596_v62, %v21596_v62  ;;  %v8929_v58 = vmul.f32 %v21456_v32, %v7981_v0  ;;  %v7983_v20 = vpop.f32.mrb[54].mxu0 }
 0x468   :  { %v9660_v3 = vadd.f32 %v9659_v7, %v9516_v14  ;;  %v9100_v11 = vadd.f32 %v21459_v25, %v8928_v22  ;;  %v8936_v51 = vmul.f32 %v21453_v4, %v7983_v20  ;;  %v7985_v30 = vpop.f32.mrb[55].mxu0 }
 0x469   :  { %v9681_v50 = vadd.f32 %v9680_v54, %v9517_v8  ;;  %v9101_v40 = vadd.f32 %v21462_v21, %v8929_v58  ;;  %v8937_v36 = vmul.f32 %v21456_v32, %v7985_v30 }
 0x46a   :  { %v21610_v19 = vmax.f32 %v9100_v11, 0.0  ;;  %v9108_v45 = vadd.f32 %v21459_v25, %v8936_v51 }
 0x46b   :  { %v21613_v39 = vmax.f32 %v9101_v40, 0.0  ;;  %v9109_v15 = vadd.f32 %v21462_v21, %v8937_v36 }
 0x46c   :  { %v9365_v38 = vadd.f32 %v9364_v12, %v21610_v19  ;;  %v9524_v33 = vmul.f32 %v21610_v19, %v21610_v19  ;;  %v21619_v42 = vmax.f32 %v9108_v45, 0.0 }
 0x46d   :  { %v9386_v13 = vadd.f32 %v9385_v46, %v21613_v39  ;;  %v9525_v43 = vmul.f32 %v21613_v39, %v21613_v39  ;;  %v21624_v28 = vmax.f32 %v9109_v15, 0.0  ;;  %v7989_v29 = vpop.f32.mrb[56].mxu0 }
 0x46e   :  { %v9661_v47 = vadd.f32 %v9660_v3, %v9524_v33  ;;  %v9366_v18 = vadd.f32 %v9365_v38, %v21619_v42  ;;  %v9532_v63 = vmul.f32 %v21619_v42, %v21619_v42  ;;  %v8944_v60 = vmul.f32 %v21453_v4, %v7989_v29  ;;  %v7991_v24 = vpop.f32.mrb[57].mxu0 }
 0x46f   :  { %v9682_v5 = vadd.f32 %v9681_v50, %v9525_v43  ;;  %v9387_v6 = vadd.f32 %v9386_v13, %v21624_v28  ;;  %v9533_v52 = vmul.f32 %v21624_v28, %v21624_v28  ;;  %v8945_v59 = vmul.f32 %v21456_v32, %v7991_v24  ;;  %v7993_v7 = vpop.f32.mrb[58].mxu0 }
 0x470   :  { %v9662_v12 = vadd.f32 %v9661_v47, %v9532_v63  ;;  %v9116_v14 = vadd.f32 %v21459_v25, %v8944_v60  ;;  %v8952_v22 = vmul.f32 %v21453_v4, %v7993_v7  ;;  %v7995_v0 = vpop.f32.mrb[59].mxu0 }
 0x471   :  { %v9683_v54 = vadd.f32 %v9682_v5, %v9533_v52  ;;  %v9117_v46 = vadd.f32 %v21462_v21, %v8945_v59  ;;  %v8953_v8 = vmul.f32 %v21456_v32, %v7995_v0 }
 0x472   :  { %v21638_v58 = vmax.f32 %v9116_v14, 0.0  ;;  %v9124_v20 = vadd.f32 %v21459_v25, %v8952_v22 }
 0x473   :  { %v21641_v3 = vmax.f32 %v9117_v46, 0.0  ;;  %v9125_v11 = vadd.f32 %v21462_v21, %v8953_v8 }
 0x474   :  { %v9367_v51 = vadd.f32 %v9366_v18, %v21638_v58  ;;  %v9540_v30 = vmul.f32 %v21638_v58, %v21638_v58  ;;  %v21647_v50 = vmax.f32 %v9124_v20, 0.0 }
 0x475   :  { %v9388_v40 = vadd.f32 %v9387_v6, %v21641_v3  ;;  %v9541_v36 = vmul.f32 %v21641_v3, %v21641_v3  ;;  %v21652_v45 = vmax.f32 %v9125_v11, 0.0  ;;  %v7999_v15 = vpop.f32.mrb[60].mxu0 }
 0x476   :  { %v9663_v38 = vadd.f32 %v9662_v12, %v9540_v30  ;;  %v9368_v33 = vadd.f32 %v9367_v51, %v21647_v50  ;;  %v9548_v13 = vmul.f32 %v21647_v50, %v21647_v50  ;;  %v8960_v43 = vmul.f32 %v21453_v4, %v7999_v15  ;;  %v8001_v29 = vpop.f32.mrb[61].mxu0 }
 0x477   :  { %v9684_v47 = vadd.f32 %v9683_v54, %v9541_v36  ;;  %v9389_v18 = vadd.f32 %v9388_v40, %v21652_v45  ;;  %v9549_v63 = vmul.f32 %v21652_v45, %v21652_v45  ;;  %v8961_v60 = vmul.f32 %v21456_v32, %v8001_v29  ;;  %v8003_v24 = vpop.f32.mrb[62].mxu0 }
 0x478   :  { %v9664_v5 = vadd.f32 %v9663_v38, %v9548_v13  ;;  %v9132_v6 = vadd.f32 %v21459_v25, %v8960_v43  ;;  %v8968_v52 = vmul.f32 %v21453_v4, %v8003_v24  ;;  %v8005_v59 = vpop.f32.mrb[63].mxu0 }
 0x479   :  { %v9685_v7 = vadd.f32 %v9684_v47, %v9549_v63  ;;  %v9133_v12 = vadd.f32 %v21462_v21, %v8961_v60  ;;  %v8969_v14 = vmul.f32 %v21456_v32, %v8005_v59 }
 0x47a   :  { %v21666_v22 = vmax.f32 %v9132_v6, 0.0  ;;  %v9140_v0 = vadd.f32 %v21459_v25, %v8968_v52 }
 0x47b   :  { %v21669_v54 = vmax.f32 %v9133_v12, 0.0  ;;  %v9141_v46 = vadd.f32 %v21462_v21, %v8969_v14 }
 0x47c   :  { %v9369_v8 = vadd.f32 %v9368_v33, %v21666_v22  ;;  %v9556_v20 = vmul.f32 %v21666_v22, %v21666_v22  ;;  %v21675_v4 = vmax.f32 %v9140_v0, 0.0 }
 0x47d   :  { %v9390_v11 = vadd.f32 %v9389_v18, %v21669_v54  ;;  %v9557_v32 = vmul.f32 %v21669_v54, %v21669_v54  ;;  %v21680_v51 = vmax.f32 %v9141_v46, 0.0  ;;  %v8830_v46 = vsub.s32 6, %v24628_v41 }
 0x47e   :  { %v9665_v30 = vadd.f32 %v9664_v5, %v9556_v20  ;;  %v9370_v25 = vadd.f32 %v9369_v8, %v21675_v4  ;;  %v9564_v21 = vmul.f32 %v21675_v4, %v21675_v4 }
 0x47f   :  { %v9686_v40 = vadd.f32 %v9685_v7, %v9557_v32  ;;  %v9391_v36 = vadd.f32 %v9390_v11, %v21680_v51  ;;  %v9565_v15 = vmul.f32 %v21680_v51, %v21680_v51  ;;  %v8834_v11 = vsub.s32 7, %v24628_v41 }
 0x480   :  { %v9371_v38 = vrot.slane %v9370_v25, 4  ;;  %v9666_v33 = vadd.f32 %v9665_v30, %v9564_v21 }
 0x481   :  { %v9392_v13 = vrot.slane %v9391_v36, 4  ;;  %v9687_v43 = vadd.f32 %v9686_v40, %v9565_v15  ;;  %v21693_v15 = vrot.slane %v24629_v55, %v8830_v46  ;;  %v21704_v41 = vrot.slane %v24630_v61, %v8834_v11 }
 0x482   :  { %v9372_v29 = vadd.f32 %v9371_v38, %v9370_v25  ;;  %v9667_v47 = vrot.slane %v9666_v33, 4  ;;  %v21696_v38 = vrot.slane %v24630_v61, %v8830_v46 }
 0x483   :  { %v9393_v18 = vadd.f32 %v9392_v13, %v9391_v36  ;;  %v9688_v63 = vrot.slane %v9687_v43, 4 }
 0x484   :  { %v9373_v60 = vrot.slane %v9372_v29, 2  ;;  %v9668_v24 = vadd.f32 %v9667_v47, %v9666_v33 }
 0x485   :  { %v9394_v5 = vrot.slane %v9393_v18, 2  ;;  %v9689_v6 = vadd.f32 %v9688_v63, %v9687_v43  ;;  %v21701_v43 = vrot.slane %v24629_v55, %v8834_v11 }
 0x486   :  { %v9374_v52 = vadd.f32 %v9373_v60, %v9372_v29  ;;  %v9669_v59 = vrot.slane %v9668_v24, 2 }
 0x487   :  { %v9395_v7 = vadd.f32 %v9394_v5, %v9393_v18  ;;  %v9690_v12 = vrot.slane %v9689_v6, 2 }
 0x488   :  { %v9375_v14 = vrot.slane %v9374_v52, 1  ;;  %v9670_v0 = vadd.f32 %v9669_v59, %v9668_v24 }
 0x489   :  { %v9396_v8 = vrot.slane %v9395_v7, 1  ;;  %v9691_v20 = vadd.f32 %v9690_v12, %v9689_v6 }
 0x48a   :  { %v9376_v32 = vadd.f32 %v9375_v14, %v9374_v52  ;;  %v9671_v30 = vrot.slane %v9670_v0, 1 }
 0x48b   :  { %v9397_v25 = vadd.f32 %v9396_v8, %v9395_v7  ;;  %v9692_v21 = vrot.slane %v9691_v20, 1 }
 0x48c   :  { %v9672_v40 = vadd.f32 %v9671_v30, %v9670_v0  ;;  %v21690_v36 = vmul.f32 0.0078125, %v9376_v32 }
 0x48d   :  { %v9693_v33 = vadd.f32 %v9692_v21, %v9691_v20  ;;  %v21698_v13 = vmul.f32 0.0078125, %v9397_v25 }
 0x48e   :  { %v9748_v29 = vmul.f32 0.0078125, %v9672_v40  ;;  %v9756_v47 = vmul.f32 %v21690_v36, %v21690_v36  ;;  %v9772_v63 = vsub.f32 %v21470_v16, %v21690_v36  ;;  %v9780_v52 = vsub.f32 %v21476_v35, %v21690_v36 }
 0x48f   :  { %v9749_v60 = vmul.f32 0.0078125, %v9693_v33  ;;  %v9757_v24 = vmul.f32 %v21698_v13, %v21698_v13 }
 0x490   :  { %v9764_v5 = vsub.f32 %v9748_v29, %v9756_v47 }
 0x491   :  { %v9765_v7 = vsub.f32 %v9749_v60, %v9757_v24 }
 0x492   :  { %v9900_v46 = vadd.f32 1e-05, %v9764_v5  ;;  %v8720_v8 = vpop.f32.mrb[64].mxu1 }
 0x493   :  { %v9901_v30 = vadd.f32 1e-05, %v9765_v7  ;;  %v8850_v25 = vmul.f32 %v21693_v15, %v8720_v8  ;;  %v8722_v21 = vpop.f32.mrb[65].mxu1 }
 0x494   :  { %15105 = vrsqrt.f32 %v9900_v46  ;;  %v8851_v29 = vmul.f32 %v21701_v43, %v8722_v21  ;;  %v8724_v47 = vpop.f32.mrb[66].mxu1 }
 0x495   :  { %15107 = vrsqrt.f32 %v9901_v30  ;;  %v9022_v5 = vadd.f32 %v21696_v38, %v8850_v25  ;;  %v8858_v7 = vmul.f32 %v21693_v15, %v8724_v47  ;;  %v8726_v8 = vpop.f32.mrb[67].mxu1 }
 0x496   :  { %v9023_v46 = vadd.f32 %v21704_v41, %v8851_v29  ;;  %v8859_v21 = vmul.f32 %v21701_v43, %v8726_v8 }
 0x497   :  { %v21756_v24 = vmax.f32 %v9022_v5, 0.0  ;;  %v9030_v30 = vadd.f32 %v21696_v38, %v8858_v7 }
 0x498   :  { %v21763_v18 = vmax.f32 %v9023_v46, 0.0  ;;  %v9031_v29 = vadd.f32 %v21704_v41, %v8859_v21 }
 0x499   :  { %v9446_v5 = vmul.f32 %v21756_v24, %v21756_v24  ;;  %v21772_v7 = vmax.f32 %v9030_v30, 0.0 }
 0x49a   :  { %v9447_v21 = vmul.f32 %v21763_v18, %v21763_v18  ;;  %v21780_v47 = vmax.f32 %v9031_v29, 0.0  ;;  %v8730_v8 = vpop.f32.mrb[68].mxu1 }
 0x49b   :  { %v9398_v30 = vadd.f32 %v21772_v7, %v21756_v24  ;;  %v9454_v25 = vmul.f32 %v21772_v7, %v21772_v7  ;;  %v8866_v46 = vmul.f32 %v21693_v15, %v8730_v8  ;;  %v8732_v33 = vpop.f32.mrb[69].mxu1 }
 0x49c   :  { %v9419_v40 = vadd.f32 %v21780_v47, %v21763_v18  ;;  %v9455_v60 = vmul.f32 %v21780_v47, %v21780_v47  ;;  %v8867_v55 = vmul.f32 %v21701_v43, %v8732_v33  ;;  %v8734_v32 = vpop.f32.mrb[70].mxu1 }
 0x49d   :  { %v9694_v20 = vadd.f32 %v9454_v25, %v9446_v5  ;;  %v9038_v0 = vadd.f32 %v21696_v38, %v8866_v46  ;;  %v8874_v8 = vmul.f32 %v21693_v15, %v8734_v32  ;;  %v8736_v14 = vpop.f32.mrb[71].mxu1 }
 0x49e   :  { %v21804_v12 = vpop.eup %15105  ;;  %v9715_v59 = vadd.f32 %v9455_v60, %v9447_v21  ;;  %v9039_v6 = vadd.f32 %v21704_v41, %v8867_v55  ;;  %v8875_v33 = vmul.f32 %v21701_v43, %v8736_v14  ;;  %v24634_v21 = vsub.f32 %v21478_v1, %v21698_v13  ;;  %v15030_v1 = vld [vmem:[#allocation2 + $0x300] ss:$8 sps:$4 sm:$0xff]  }
 0x49f   :  { %v21810_v11 = vpop.eup %15107  ;;  %v21812_v25 = vmax.f32 %v9038_v0, 0.0  ;;  %v9046_v32 = vadd.f32 %v21696_v38, %v8874_v8  ;;  %v9916_v5 = vmul.f32 %v21804_v12, %v9772_v63  ;;  %v9924_v55 = vmul.f32 %v21804_v12, %v9780_v52 }
 0x4a0   :  { %v21823_v14 = vmax.f32 %v9039_v6, 0.0  ;;  %v9047_v60 = vadd.f32 %v21704_v41, %v8875_v33  ;;  %v24633_v0 = vsub.f32 %v21473_v34, %v21698_v13  ;;  %v9925_v16 = vmul.f32 %v21810_v11, %v24634_v21 }
 0x4a1   :  { %24631 = vst [vmem:[#allocation47_spill] sm:$0xff] %v21812_v25  ;;  %v9399_v63 = vadd.f32 %v9398_v30, %v21812_v25  ;;  %v9462_v35 = vmul.f32 %v21812_v25, %v21812_v25  ;;  %v21837_v52 = vmax.f32 %v9046_v32, 0.0  ;;  %v10044_v6 = vpack.c.bf16 %v9924_v55, %v9916_v5  ;;  %v15035_v5 = vld [vmem:[#allocation2 + $0x314] ss:$8 sps:$4 sm:$0xff]  }
 0x4a2   :  { %24632 = vst [vmem:[#allocation180_spill] sm:$0xff] %v21823_v14  ;;  %v9917_v46 = vmul.f32 %v21810_v11, %v24633_v0  ;;  %v9420_v8 = vadd.f32 %v9419_v40, %v21823_v14  ;;  %v9463_v34 = vmul.f32 %v21823_v14, %v21823_v14  ;;  %v21842_v33 = vmax.f32 %v9047_v60, 0.0  ;;  %v8740_v0 = vpop.f32.mrb[72].mxu1 }
 0x4a3   :  { %24635 = vst [vmem:[#allocation27_spill] sm:$0xff] %v21837_v52  ;;  %v9695_v29 = vadd.f32 %v9694_v20, %v9462_v35  ;;  %v9400_v21 = vadd.f32 %v9399_v63, %v21837_v52  ;;  %v9470_v30 = vmul.f32 %v21837_v52, %v21837_v52  ;;  %v8882_v32 = vmul.f32 %v21693_v15, %v8740_v0  ;;  %v8742_v25 = vpop.f32.mrb[73].mxu1 }
 0x4a4   :  { %v10045_v61 = vpack.c.bf16 %v9925_v16, %v9917_v46  ;;  %v9716_v55 = vadd.f32 %v9715_v59, %v9463_v34  ;;  %v9421_v40 = vadd.f32 %v9420_v8, %v21842_v33  ;;  %v9471_v60 = vmul.f32 %v21842_v33, %v21842_v33  ;;  %v8744_v46 = vpop.f32.mrb[74].mxu1 }
 0x4a5   :  { %v8883_v14 = vmul.f32 %v21701_v43, %v8742_v25  ;;  %v9696_v20 = vadd.f32 %v9695_v29, %v9470_v30  ;;  %v9054_v16 = vadd.f32 %v21696_v38, %v8882_v32  ;;  %v8890_v63 = vmul.f32 %v21693_v15, %v8744_v46  ;;  %v8746_v35 = vpop.f32.mrb[75].mxu1  ;;  %v15033_v25 = vld [vmem:[#allocation2 + $0x310] ss:$8 sps:$4 sm:$0xff]  }
 0x4a6   :  { %11143 = vmatprep.mubr.bf16.mxu0 %v10045_v61  ;;  %v24636_v0 = vsub.f32 %v21501_v44, %v21698_v13  ;;  %v9717_v8 = vadd.f32 %v9716_v55, %v9471_v60  ;;  %v8891_v52 = vmul.f32 %v21701_v43, %v8746_v35  ;;  %v24637_v61 = vsub.f32 %v21512_v49, %v21698_v13  ;;  %v15038_v49 = vld [vmem:[#allocation2 + $0x324] ss:$8 sps:$4 sm:$0xff]  }
 0x4a7   :  { %11144 = vmatmul.mubr.bf16.vlgmr.msra.gmra.mrb[64].mxu0 %v10044_v6  ;;  %v9055_v34 = vadd.f32 %v21704_v41, %v8883_v14  ;;  %v21864_v30 = vmax.f32 %v9054_v16, 0.0  ;;  %v9062_v6 = vadd.f32 %v21696_v38, %v8890_v63  ;;  %v24638_v44 = vsub.f32 %v21498_v27, %v21690_v36 }
 0x4a8   :  { %v9933_v59 = vmul.f32 %v21810_v11, %v24636_v0  ;;  %v9941_v29 = vmul.f32 %v21810_v11, %v24637_v61  ;;  %11225 = vmatpush1.bf16.msra.mxu0 %v15030_v1  ;;  %v24639_v14 = vsub.f32 %v21507_v10, %v21690_v36  ;;  %v9063_v1 = vadd.f32 %v21704_v41, %v8891_v52  ;;  %v15036_v61 = vld [vmem:[#allocation2 + $0x320] ss:$8 sps:$4 sm:$0xff]  }
 0x4a9   :  { %v9932_v32 = vmul.f32 %v21804_v12, %v24638_v44  ;;  %11226 = vmatprep.subr.bf16.mxu0 %v15035_v5  ;;  %v21875_v60 = vmax.f32 %v9055_v34, 0.0  ;;  %v24640_v16 = vsub.f32 %v21529_v17, %v21698_v13  ;;  %v9401_v27 = vadd.f32 %v9400_v21, %v21864_v30 }
 0x4aa   :  { %v9940_v55 = vmul.f32 %v21804_v12, %v24639_v14  ;;  %v10053_v46 = vpack.c.bf16 %v9941_v29, %v9933_v59  ;;  %v9478_v35 = vmul.f32 %v21864_v30, %v21864_v30  ;;  %v21885_v10 = vmax.f32 %v9062_v6, 0.0  ;;  %v8750_v59 = vpop.f32.mrb[76].mxu1  ;;  %v15041_v14 = vld [vmem:[#allocation2 + $0x334] ss:$8 sps:$4 sm:$0xff]  }
 0x4ab   :  { %v9949_v63 = vmul.f32 %v21810_v11, %v24640_v16  ;;  %v9422_v5 = vadd.f32 %v9421_v40, %v21875_v60  ;;  %v9479_v34 = vmul.f32 %v21875_v60, %v21875_v60  ;;  %v21890_v52 = vmax.f32 %v9063_v1, 0.0 }
 0x4ac   :  { %v10052_v0 = vpack.c.bf16 %v9940_v55, %v9932_v32  ;;  %11153 = vmatprep.mubr.bf16.mxu0 %v10053_v46  ;;  %v24641_v17 = vsub.f32 %v21540_v31, %v21698_v13  ;;  %11227 = vmatpush1.bf16.msra.mxu0 %v15033_v25  ;;  %v9697_v29 = vadd.f32 %v9696_v20, %v9478_v35  ;;  %v8752_v32 = vpop.f32.mrb[77].mxu1 }
 0x4ad   :  { %v9402_v6 = vadd.f32 %v9401_v27, %v21885_v10  ;;  %v9486_v40 = vmul.f32 %v21885_v10, %v21885_v10  ;;  %v8898_v44 = vmul.f32 %v21693_v15, %v8750_v59  ;;  %11228 = vmatprep.subr.bf16.mxu0 %v15038_v49  ;;  %v9718_v55 = vadd.f32 %v9717_v8, %v9479_v34  ;;  %v8754_v46 = vpop.f32.mrb[78].mxu1 }
 0x4ae   :  { %v9957_v21 = vmul.f32 %v21810_v11, %v24641_v17  ;;  %v9423_v1 = vadd.f32 %v9422_v5, %v21890_v52  ;;  %v9487_v31 = vmul.f32 %v21890_v52, %v21890_v52  ;;  %v8899_v25 = vmul.f32 %v21701_v43, %v8752_v32  ;;  %v8756_v35 = vpop.f32.mrb[79].mxu1  ;;  %v15039_v32 = vld [vmem:[#allocation2 + $0x330] ss:$8 sps:$4 sm:$0xff]  }
 0x4af   :  { %v9698_v20 = vadd.f32 %v9697_v29, %v9486_v40  ;;  %v9070_v16 = vadd.f32 %v21696_v38, %v8898_v44  ;;  %v8906_v27 = vmul.f32 %v21693_v15, %v8754_v46  ;;  %11154 = vmatmul.mubr.bf16.gmra.mrb[68].mxu0 %v10052_v0  ;;  %v8907_v8 = vmul.f32 %v21701_v43, %v8756_v35 }
 0x4b0   :  { %v10061_v59 = vpack.c.bf16 %v9957_v21, %v9949_v63  ;;  %v9719_v17 = vadd.f32 %v9718_v55, %v9487_v31  ;;  %v9071_v49 = vadd.f32 %v21704_v41, %v8899_v25  ;;  %v24642_v5 = vsub.f32 %v21526_v53, %v21690_v36  ;;  %11229 = vmatpush1.bf16.msra.mxu0 %v15036_v61  ;;  %v15044_v53 = vld [vmem:[#allocation2 + $0x344] ss:$8 sps:$4 sm:$0xff]  }
 0x4b1   :  { %v21912_v29 = vmax.f32 %v9070_v16, 0.0  ;;  %v9078_v40 = vadd.f32 %v21696_v38, %v8906_v27  ;;  %v24643_v63 = vsub.f32 %v21535_v57, %v21690_v36  ;;  %v24644_v21 = vsub.f32 %v21557_v37, %v21698_v13  ;;  %11230 = vmatprep.subr.bf16.mxu0 %v15041_v14 }
 0x4b2   :  { %v9948_v34 = vmul.f32 %v21804_v12, %v24642_v5  ;;  %11163 = vmatprep.mubr.bf16.mxu0 %v10061_v59  ;;  %v21923_v55 = vmax.f32 %v9071_v49, 0.0  ;;  %v9079_v61 = vadd.f32 %v21704_v41, %v8907_v8  ;;  %v24645_v31 = vsub.f32 %v21568_v23, %v21698_v13  ;;  %v8760_v49 = vpop.f32.mrb[80].mxu1 }
 0x4b3   :  { %v9956_v0 = vmul.f32 %v21804_v12, %v24643_v63  ;;  %v9965_v44 = vmul.f32 %v21810_v11, %v24644_v21  ;;  %v24646_v57 = vsub.f32 %v21554_v9, %v21690_v36  ;;  %v9403_v37 = vadd.f32 %v9402_v6, %v21912_v29  ;;  %v8762_v63 = vpop.f32.mrb[81].mxu1 }
 0x4b4   :  { %v9973_v25 = vmul.f32 %v21810_v11, %v24645_v31  ;;  %v9494_v14 = vmul.f32 %v21912_v29, %v21912_v29  ;;  %v21939_v16 = vmax.f32 %v9078_v40, 0.0  ;;  %v9424_v35 = vadd.f32 %v9423_v1, %v21923_v55  ;;  %11231 = vmatpush1.bf16.msra.mxu0 %v15039_v32  ;;  %v8764_v32 = vpop.f32.mrb[82].mxu1 }
 0x4b5   :  { %v21934_v46 = vmul.f32 %v21804_v12, %v24646_v57  ;;  %v10060_v27 = vpack.c.bf16 %v9956_v0, %v9948_v34  ;;  %v9495_v23 = vmul.f32 %v21923_v55, %v21923_v55  ;;  %v21944_v59 = vmax.f32 %v9079_v61, 0.0  ;;  %v15042_v34 = vld [vmem:[#allocation2 + $0x340] ss:$8 sps:$4 sm:$0xff]   ;;  %11232 = vmatprep.subr.bf16.mxu0 %v15044_v53  ;;  %v8766_v57 = vpop.f32.mrb[83].mxu1 }
 0x4b6   :  { %v10069_v9 = vpack.c.bf16 %v9973_v25, %v9965_v44  ;;  %v9699_v8 = vadd.f32 %v9698_v20, %v9494_v14  ;;  %v9404_v5 = vadd.f32 %v9403_v37, %v21939_v16  ;;  %v9502_v6 = vmul.f32 %v21939_v16, %v21939_v16  ;;  %v15047_v20 = vld [vmem:[#allocation2 + $0x354] ss:$8 sps:$4 sm:$0xff]  }
 0x4b7   :  { %v8914_v40 = vmul.f32 %v21693_v15, %v8760_v49  ;;  %v9720_v1 = vadd.f32 %v9719_v17, %v9495_v23  ;;  %v9425_v0 = vadd.f32 %v9424_v35, %v21944_v59  ;;  %v9503_v21 = vmul.f32 %v21944_v59, %v21944_v59  ;;  %11164 = vmatmul.mubr.bf16.gmra.mrb[72].mxu0 %v10060_v27 }
 0x4b8   :  { %v8915_v44 = vmul.f32 %v21701_v43, %v8762_v63  ;;  %v9700_v61 = vadd.f32 %v9699_v8, %v9502_v6  ;;  %v8922_v25 = vmul.f32 %v21693_v15, %v8764_v32  ;;  %v24647_v53 = vsub.f32 %v21563_v56, %v21690_v36  ;;  %11173 = vmatprep.mubr.bf16.mxu0 %v10069_v9  ;;  %v15045_v63 = vld [vmem:[#allocation2 + $0x350] ss:$8 sps:$4 sm:$0xff]  }
 0x4b9   :  { %v9086_v31 = vadd.f32 %v21696_v38, %v8914_v40  ;;  %v9721_v37 = vadd.f32 %v9720_v1, %v9503_v21  ;;  %v8923_v35 = vmul.f32 %v21701_v43, %v8766_v57  ;;  %v24648_v23 = vsub.f32 %v21585_v2, %v21698_v13  ;;  %11233 = vmatpush1.bf16.msra.mxu0 %v15042_v34 }
 0x4ba   :  { %v9972_v17 = vmul.f32 %v21804_v12, %v24647_v53  ;;  %v9087_v14 = vadd.f32 %v21704_v41, %v8915_v44  ;;  %v9094_v27 = vadd.f32 %v21696_v38, %v8922_v25  ;;  %v24649_v56 = vsub.f32 %v21596_v62, %v21698_v13  ;;  %11234 = vmatprep.subr.bf16.mxu0 %v15047_v20  ;;  %v15050_v62 = vld [vmem:[#allocation2 + $0x364] ss:$8 sps:$4 sm:$0xff]  }
 0x4bb   :  { %v9981_v49 = vmul.f32 %v21810_v11, %v24648_v23  ;;  %v21966_v8 = vmax.f32 %v9086_v31, 0.0  ;;  %v9095_v9 = vadd.f32 %v21704_v41, %v8923_v35  ;;  %v24650_v2 = vsub.f32 %v21582_v48, %v21690_v36 }
 0x4bc   :  { %v10068_v6 = vpack.c.bf16 %v9972_v17, %v21934_v46  ;;  %v9989_v40 = vmul.f32 %v21810_v11, %v24649_v56  ;;  %v21974_v1 = vmax.f32 %v9087_v14, 0.0  ;;  %v24651_v46 = vsub.f32 %v21591_v26, %v21690_v36  ;;  %v8770_v26 = vpop.f32.mrb[84].mxu1 }
 0x4bd   :  { %v21981_v21 = vmul.f32 %v21804_v12, %v24650_v2  ;;  %v9405_v34 = vadd.f32 %v9404_v5, %v21966_v8  ;;  %v9510_v32 = vmul.f32 %v21966_v8, %v21966_v8  ;;  %v21992_v31 = vmax.f32 %v9094_v27, 0.0  ;;  %v8772_v23 = vpop.f32.mrb[85].mxu1  ;;  %11235 = vmatpush1.bf16.msra.mxu0 %v15045_v63 }
 0x4be   :  { %v21987_v44 = vmul.f32 %v21804_v12, %v24651_v46  ;;  %v10077_v25 = vpack.c.bf16 %v9989_v40, %v9981_v49  ;;  %v9426_v48 = vadd.f32 %v9425_v0, %v21974_v1  ;;  %v9511_v57 = vmul.f32 %v21974_v1, %v21974_v1  ;;  %v15048_v0 = vld [vmem:[#allocation2 + $0x360] ss:$8 sps:$4 sm:$0xff]   ;;  %11236 = vmatprep.subr.bf16.mxu0 %v15050_v62 }
 0x4bf   :  { %v21997_v53 = vmax.f32 %v9095_v9, 0.0  ;;  %v9701_v17 = vadd.f32 %v9700_v61, %v9510_v32  ;;  %v9406_v5 = vadd.f32 %v9405_v34, %v21992_v31  ;;  %v9518_v14 = vmul.f32 %v21992_v31, %v21992_v31  ;;  %v8774_v9 = vpop.f32.mrb[86].mxu1  ;;  %v15053_v61 = vld [vmem:[#allocation2 + $0x374] ss:$8 sps:$4 sm:$0xff]   ;;  %11174 = vmatmul.mubr.bf16.gmra.mrb[76].mxu0 %v10068_v6 }
 0x4c0   :  { %v10076_v20 = vpack.c.bf16 %v21987_v44, %v21981_v21  ;;  %v8930_v35 = vmul.f32 %v21693_v15, %v8770_v26  ;;  %v9722_v49 = vadd.f32 %v9721_v37, %v9511_v57  ;;  %v8931_v40 = vmul.f32 %v21701_v43, %v8772_v23  ;;  %v8776_v32 = vpop.f32.mrb[87].mxu1  ;;  %11183 = vmatprep.mubr.bf16.mxu0 %v10077_v25 }
 0x4c1   :  { %v9427_v27 = vadd.f32 %v9426_v48, %v21997_v53  ;;  %v9519_v56 = vmul.f32 %v21997_v53, %v21997_v53  ;;  %v9702_v2 = vadd.f32 %v9701_v17, %v9518_v14  ;;  %v8938_v34 = vmul.f32 %v21693_v15, %v8774_v9  ;;  %11237 = vmatpush1.bf16.msra.mxu0 %v15048_v0 }
 0x4c2   :  { %v9102_v46 = vadd.f32 %v21696_v38, %v8930_v35  ;;  %v24652_v37 = vsub.f32 %v21613_v39, %v21698_v13  ;;  %v9103_v57 = vadd.f32 %v21704_v41, %v8931_v40  ;;  %v8939_v26 = vmul.f32 %v21701_v43, %v8776_v32  ;;  %11238 = vmatprep.subr.bf16.mxu0 %v15053_v61 }
 0x4c3   :  { %v9723_v48 = vadd.f32 %v9722_v49, %v9519_v56  ;;  %v24653_v62 = vsub.f32 %v21624_v28, %v21698_v13  ;;  %v9110_v6 = vadd.f32 %v21696_v38, %v8938_v34  ;;  %v24654_v39 = vsub.f32 %v21610_v19, %v21690_v36  ;;  %v15051_v28 = vld [vmem:[#allocation2 + $0x370] ss:$8 sps:$4 sm:$0xff]  }
 0x4c4   :  { %v9997_v63 = vmul.f32 %v21810_v11, %v24652_v37  ;;  %v22021_v14 = vmax.f32 %v9102_v46, 0.0  ;;  %v24655_v23 = vsub.f32 %v21619_v42, %v21690_v36  ;;  %v22036_v49 = vmax.f32 %v9103_v57, 0.0  ;;  %v15056_v46 = vld [vmem:[#allocation2 + $0x384] ss:$8 sps:$4 sm:$0xff]   ;;  %v8780_v57 = vpop.f32.mrb[88].mxu1 }
 0x4c5   :  { %v10005_v17 = vmul.f32 %v21810_v11, %v24653_v62  ;;  %v22028_v35 = vmul.f32 %v21804_v12, %v24654_v39  ;;  %v9111_v56 = vadd.f32 %v21704_v41, %v8939_v26  ;;  %v24656_v9 = vsub.f32 %v21641_v3, %v21698_v13  ;;  %11239 = vmatpush1.bf16.msra.mxu0 %v15051_v28  ;;  %v15054_v39 = vld [vmem:[#allocation2 + $0x380] ss:$8 sps:$4 sm:$0xff]  }
 0x4c6   :  { %v22034_v25 = vmul.f32 %v21804_v12, %v24655_v23  ;;  %v9407_v42 = vadd.f32 %v9406_v5, %v22021_v14  ;;  %v9526_v34 = vmul.f32 %v22021_v14, %v22021_v14  ;;  %v22048_v0 = vmax.f32 %v9110_v6, 0.0  ;;  %v8782_v6 = vpop.f32.mrb[89].mxu1  ;;  %11240 = vmatprep.subr.bf16.mxu0 %v15056_v46 }
 0x4c7   :  { %v10085_v40 = vpack.c.bf16 %v10005_v17, %v9997_v63  ;;  %v22043_v19 = vmul.f32 %v21810_v11, %v24656_v9  ;;  %v9428_v37 = vadd.f32 %v9427_v27, %v22036_v49  ;;  %v9527_v3 = vmul.f32 %v22036_v49, %v22036_v49  ;;  %11184 = vmatmul.mubr.bf16.gmra.mrb[80].mxu0 %v10076_v20 }
 0x4c8   :  { %v22055_v63 = vmax.f32 %v9111_v56, 0.0  ;;  %v24657_v61 = vsub.f32 %v21652_v45, %v21698_v13  ;;  %v9703_v26 = vadd.f32 %v9702_v2, %v9526_v34  ;;  %v9408_v62 = vadd.f32 %v9407_v42, %v22048_v0  ;;  %v15059_v2 = vld [vmem:[#allocation2 + $0x394] ss:$8 sps:$4 sm:$0xff]  }
 0x4c9   :  { %v9534_v17 = vmul.f32 %v22048_v0, %v22048_v0  ;;  %v8946_v27 = vmul.f32 %v21693_v15, %v8780_v57  ;;  %v9724_v23 = vadd.f32 %v9723_v48, %v9527_v3  ;;  %v8947_v9 = vmul.f32 %v21701_v43, %v8782_v6  ;;  %11193 = vmatprep.mubr.bf16.mxu0 %v10085_v40 }
 0x4ca   :  { %v22061_v5 = vmul.f32 %v21810_v11, %v24657_v61  ;;  %v9429_v56 = vadd.f32 %v9428_v37, %v22055_v63  ;;  %v9535_v45 = vmul.f32 %v22055_v63, %v22055_v63  ;;  %v8784_v61 = vpop.f32.mrb[90].mxu1  ;;  %v24658_v46 = vsub.f32 %v21638_v58, %v21690_v36  ;;  %11241 = vmatpush1.bf16.msra.mxu0 %v15054_v39  ;;  %v15057_v58 = vld [vmem:[#allocation2 + $0x390] ss:$8 sps:$4 sm:$0xff]  }
 0x4cb   :  { %v9704_v42 = vadd.f32 %v9703_v26, %v9534_v17  ;;  %v9118_v34 = vadd.f32 %v21696_v38, %v8946_v27  ;;  %v8954_v32 = vmul.f32 %v21693_v15, %v8784_v61  ;;  %v8786_v57 = vpop.f32.mrb[91].mxu1  ;;  %v9119_v37 = vadd.f32 %v21704_v41, %v8947_v9  ;;  %11242 = vmatprep.subr.bf16.mxu0 %v15059_v2 }
 0x4cc   :  { %v10093_v48 = vpack.c.bf16 %v22061_v5, %v22043_v19  ;;  %v9725_v28 = vadd.f32 %v9724_v23, %v9535_v45  ;;  %v8955_v3 = vmul.f32 %v21701_v43, %v8786_v57  ;;  %v22084_v26 = vmul.f32 %v21804_v12, %v24658_v46  ;;  %v15062_v23 = vld [vmem:[#allocation2 + $0x3a4] ss:$8 sps:$4 sm:$0xff]   ;;  %v8790_v61 = vpop.f32.mrb[92].mxu1 }
 0x4cd   :  { %v22086_v17 = vmax.f32 %v9118_v34, 0.0  ;;  %v9126_v21 = vadd.f32 %v21696_v38, %v8954_v32  ;;  %v24659_v44 = vsub.f32 %v21647_v50, %v21690_v36  ;;  %v24660_v19 = vsub.f32 %v21669_v54, %v21698_v13 }
 0x4ce   :  { %v22101_v5 = vmax.f32 %v9119_v37, 0.0  ;;  %v9127_v27 = vadd.f32 %v21704_v41, %v8955_v3  ;;  %v24661_v32 = vsub.f32 %v21680_v51, %v21698_v13  ;;  %v24662_v6 = vsub.f32 %v21666_v22, %v21690_v36  ;;  %v8792_v3 = vpop.f32.mrb[93].mxu1  ;;  %11243 = vmatpush1.bf16.msra.mxu0 %v15057_v58 }
 0x4cf   :  { %v22093_v20 = vmul.f32 %v21804_v12, %v24659_v44  ;;  %v22099_v40 = vmul.f32 %v21810_v11, %v24660_v19  ;;  %v9409_v39 = vadd.f32 %v9408_v62, %v22086_v17  ;;  %v9542_v45 = vmul.f32 %v22086_v17, %v22086_v17  ;;  %11244 = vmatprep.subr.bf16.mxu0 %v15062_v23 }
 0x4d0   :  { %v22108_v50 = vmul.f32 %v21810_v11, %v24661_v32  ;;  %v22114_v54 = vmul.f32 %v21804_v12, %v24662_v6  ;;  %v22119_v9 = vmax.f32 %v9126_v21, 0.0  ;;  %v9430_v13 = vadd.f32 %v9429_v56, %v22101_v5  ;;  %v15060_v56 = vld [vmem:[#allocation2 + $0x3a0] ss:$8 sps:$4 sm:$0xff]  }
 0x4d1   :  { %v10092_v51 = vpack.c.bf16 %v22093_v20, %v22084_v26  ;;  %v9543_v22 = vmul.f32 %v22101_v5, %v22101_v5  ;;  %v22126_v11 = vmax.f32 %v9127_v27, 0.0  ;;  %v9705_v62 = vadd.f32 %v9704_v42, %v9542_v45  ;;  %v8794_v20 = vpop.f32.mrb[94].mxu1  ;;  %v15065_v42 = vld [vmem:[#allocation2 + $0x3b4] ss:$8 sps:$4 sm:$0xff]  }
 0x4d2   :  { %v10101_v2 = vpack.c.bf16 %v22108_v50, %v22099_v40  ;;  %v9410_v34 = vadd.f32 %v9409_v39, %v22119_v9  ;;  %v9550_v57 = vmul.f32 %v22119_v9, %v22119_v9  ;;  %v8962_v37 = vmul.f32 %v21693_v15, %v8790_v61  ;;  %v8796_v32 = vpop.f32.mrb[95].mxu1  ;;  %11245 = vmatpush1.bf16.msra.mxu0 %v15060_v56  ;;  %v15071_v56 = vld [vmem:[#allocation2 + $0x3d4] ss:$8 sps:$4 sm:$0xff]  }
 0x4d3   :  { %v9726_v46 = vadd.f32 %v9725_v28, %v9543_v22  ;;  %v9431_v26 = vadd.f32 %v9430_v13, %v22126_v11  ;;  %v9551_v21 = vmul.f32 %v22126_v11, %v22126_v11  ;;  %v8963_v44 = vmul.f32 %v21701_v43, %v8792_v3  ;;  %11246 = vmatprep.subr.bf16.mxu0 %v15065_v42 }
 0x4d4   :  { %v9706_v19 = vadd.f32 %v9705_v62, %v9550_v57  ;;  %v9134_v40 = vadd.f32 %v21696_v38, %v8962_v37  ;;  %v8970_v27 = vmul.f32 %v21693_v15, %v8794_v20  ;;  %v24663_v58 = vpack.c.bf16 %v22034_v25, %v22028_v35  ;;  %v15063_v35 = vld [vmem:[#allocation2 + $0x3b0] ss:$8 sps:$4 sm:$0xff]  }
 0x4d5   :  { %v24664_v28 = vsub.f32 %v21675_v4, %v21690_v36  ;;  %v9727_v6 = vadd.f32 %v9726_v46, %v9551_v21  ;;  %v9135_v39 = vadd.f32 %v21704_v41, %v8963_v44  ;;  %v8971_v23 = vmul.f32 %v21701_v43, %v8796_v32  ;;  %v15068_v36 = vld [vmem:[#allocation2 + $0x3c4] ss:$8 sps:$4 sm:$0xff]  }
 0x4d6   :  { %11194 = vmatmul.mubr.bf16.gmra.mrb[84].mxu0 %v24663_v58  ;;  %v22149_v45 = vmax.f32 %v9134_v40, 0.0  ;;  %v9142_v15 = vadd.f32 %v21696_v38, %v8970_v27  ;;  %v15074_v32 = vld [vmem:[#allocation2 + $0x3e4] ss:$8 sps:$4 sm:$0xff]  }
 0x4d7   :  { %v10036_v50 = vmul.f32 %v21804_v12, %v24664_v28  ;;  %11203 = vmatprep.mubr.bf16.mxu0 %v10093_v48  ;;  %v22153_v25 = vmax.f32 %v9135_v39, 0.0  ;;  %v9143_v4 = vadd.f32 %v21704_v41, %v8971_v23  ;;  %11247 = vmatpush1.bf16.msra.mxu0 %v15063_v35 }
 0x4d8   :  { %v9411_v12 = vadd.f32 %v9410_v34, %v22149_v45  ;;  %v9558_v43 = vmul.f32 %v22149_v45, %v22149_v45  ;;  %v22159_v48 = vmax.f32 %v9142_v15, 0.0  ;;  %v15066_v34 = vld [vmem:[#allocation2 + $0x3c0] ss:$8 sps:$4 sm:$0xff]   ;;  %11248 = vmatprep.subr.bf16.mxu0 %v15068_v36 }
 0x4d9   :  { %v10100_v13 = vpack.c.bf16 %v10036_v50, %v22114_v54  ;;  %v9432_v22 = vadd.f32 %v9431_v26, %v22153_v25  ;;  %v9559_v38 = vmul.f32 %v22153_v25, %v22153_v25  ;;  %v22164_v54 = vmax.f32 %v9143_v4, 0.0  ;;  %v15072_v15 = vld [vmem:[#allocation2 + $0x3e0] ss:$8 sps:$4 sm:$0xff]  }
 0x4da   :  { %v9707_v61 = vadd.f32 %v9706_v19, %v9558_v43  ;;  %v9412_v62 = vadd.f32 %v9411_v12, %v22159_v48  ;;  %v9566_v41 = vmul.f32 %v22159_v48, %v22159_v48  ;;  %v15069_v19 = vld [vmem:[#allocation2 + $0x3d0] ss:$8 sps:$4 sm:$0xff]  }
 0x4db   :  { %v9728_v57 = vadd.f32 %v9727_v6, %v9559_v38  ;;  %v9433_v37 = vadd.f32 %v9432_v22, %v22164_v54  ;;  %v9567_v3 = vmul.f32 %v22164_v54, %v22164_v54  ;;  %11249 = vmatpush1.bf16.msra.mxu0 %v15066_v34 }
 0x4dc   :  { %v9413_v46 = vrot.slane %v9412_v62, 4  ;;  %v9708_v26 = vadd.f32 %v9707_v61, %v9566_v41  ;;  %11250 = vmatprep.subr.bf16.mxu0 %v15071_v56  ;;  %v15075_v61 = vld [vmem:[#allocation2 + $0x3f0] ss:$8 sps:$4 sm:$0xff]  }
 0x4dd   :  { %v9434_v21 = vrot.slane %v9433_v37, 4  ;;  %v9729_v44 = vadd.f32 %v9728_v57, %v9567_v3 }
 0x4de   :  { %11204 = vmatmul.mubr.bf16.gmra.mrb[88].mxu0 %v10092_v51  ;;  %v9414_v20 = vadd.f32 %v9413_v46, %v9412_v62  ;;  %v9709_v42 = vrot.slane %v9708_v26, 4 }
 0x4df   :  { %11213 = vmatprep.mubr.bf16.mxu0 %v10101_v2  ;;  %v9435_v40 = vadd.f32 %v9434_v21, %v9433_v37  ;;  %v9730_v27 = vrot.slane %v9729_v44, 4  ;;  %11251 = vmatpush1.bf16.msra.mxu0 %v15069_v19  ;;  %v15077_v2 = vld [vmem:[#allocation2 + $0x3f4] ss:$8 sps:$4 sm:$0xff]  }
 0x4e0   :  { %v9415_v58 = vrot.slane %v9414_v20, 2  ;;  %v9710_v28 = vadd.f32 %v9709_v42, %v9708_v26  ;;  %11252 = vmatprep.subr.bf16.mxu0 %v15074_v32  ;;  %v24665_v32 = vld [vmem:[#allocation180_spill] sm:$0xff] }
 0x4e1   :  { %v9436_v50 = vrot.slane %v9435_v40, 2  ;;  %v9731_v6 = vadd.f32 %v9730_v27, %v9729_v44 }
 0x4e2   :  { %v9416_v39 = vadd.f32 %v9415_v58, %v9414_v20  ;;  %v9711_v23 = vrot.slane %v9710_v28, 2 }
 0x4e3   :  { %v9437_v51 = vadd.f32 %v9436_v50, %v9435_v40  ;;  %v9732_v35 = vrot.slane %v9731_v6, 2  ;;  %11253 = vmatpush1.bf16.msra.mxu0 %v15072_v15  ;;  %v24666_v50 = vld [vmem:[#allocation27_spill] sm:$0xff] }
 0x4e4   :  { %v9417_v4 = vrot.slane %v9416_v39, 1  ;;  %v9712_v36 = vadd.f32 %v9711_v23, %v9710_v28  ;;  %11254 = vmatprep.subr.bf16.mxu0 %v15077_v2 }
 0x4e5   :  { %v9438_v12 = vrot.slane %v9437_v51, 1  ;;  %v9733_v43 = vadd.f32 %v9732_v35, %v9731_v6 }
 0x4e6   :  { %11214 = vmatmul.mubr.bf16.gmra.mrb[92].mxu0 %v10100_v13  ;;  %v9418_v22 = vadd.f32 %v9417_v4, %v9416_v39  ;;  %v9713_v38 = vrot.slane %v9712_v36, 1 }
 0x4e7   :  { %v9439_v62 = vadd.f32 %v9438_v12, %v9437_v51  ;;  %v9734_v41 = vrot.slane %v9733_v43, 1  ;;  %11255 = vmatpush1.bf16.msra.mxu0 %v15075_v61 }
 0x4e8   :  { %v9714_v34 = vadd.f32 %v9713_v38, %v9712_v36  ;;  %v22172_v57 = vmul.f32 0.0078125, %v9418_v22 }
 0x4e9   :  { %v9735_v37 = vadd.f32 %v9734_v41, %v9733_v43  ;;  %v22174_v3 = vmul.f32 0.0078125, %v9439_v62 }
 0x4ea   :  { %v9750_v56 = vmul.f32 0.0078125, %v9714_v34  ;;  %v9758_v46 = vmul.f32 %v22172_v57, %v22172_v57  ;;  %v9894_v13 = vsub.f32 %v22159_v48, %v22172_v57  ;;  %v9774_v26 = vsub.f32 %v21756_v24, %v22172_v57  ;;  %v15078_v48 = vld [vmem:[%s23266_s3 + $0x40] sm:$0xff]  }
 0x4eb   :  { %v9751_v21 = vmul.f32 0.0078125, %v9735_v37  ;;  %v9759_v44 = vmul.f32 %v22174_v3, %v22174_v3  ;;  %v9895_v20 = vsub.f32 %v22164_v54, %v22174_v3  ;;  %v9775_v42 = vsub.f32 %v21763_v18, %v22174_v3  ;;  %v15079_v54 = vld [vmem:[%s23266_s3] sm:$0xff]   ;;  %13836 = vmatprep.subr.bf16.mxu1 %v15078_v48 }
 0x4ec   :  { %v9766_v19 = vsub.f32 %v9750_v56, %v9758_v46  ;;  %v9783_v40 = vsub.f32 %v21780_v47, %v22174_v3  ;;  %v9782_v27 = vsub.f32 %v21772_v7, %v22172_v57  ;;  %v9791_v24 = vsub.f32 %v24665_v32, %v22174_v3  ;;  %13837 = vmatpush3.bf16.msra.mxu1 %v15079_v54 }
 0x4ed   :  { %v9767_v58 = vsub.f32 %v9751_v21, %v9759_v44  ;;  %v9799_v28 = vsub.f32 %v21842_v33, %v22174_v3  ;;  %v9798_v6 = vsub.f32 %v24666_v50, %v22172_v57  ;;  %v9807_v18 = vsub.f32 %v21875_v60, %v22174_v3 }
 0x4ee   :  { %v9902_v39 = vadd.f32 1e-05, %v9766_v19  ;;  %v9815_v47 = vsub.f32 %v21890_v52, %v22174_v3  ;;  %v9806_v7 = vsub.f32 %v21864_v30, %v22172_v57  ;;  %v9814_v15 = vsub.f32 %v21885_v10, %v22172_v57 }
 0x4ef   :  { %v9903_v23 = vadd.f32 1e-05, %v9767_v58  ;;  %v9823_v33 = vsub.f32 %v21923_v55, %v22174_v3  ;;  %v9831_v51 = vsub.f32 %v21944_v59, %v22174_v3  ;;  %v9822_v60 = vsub.f32 %v21912_v29, %v22172_v57 }
 0x4f0   :  { %15109 = vrsqrt.f32 %v9902_v39  ;;  %v9830_v52 = vsub.f32 %v21939_v16, %v22172_v57  ;;  %v9839_v30 = vsub.f32 %v21974_v1, %v22174_v3  ;;  %v9847_v10 = vsub.f32 %v21997_v53, %v22174_v3 }
 0x4f1   :  { %15111 = vrsqrt.f32 %v9903_v23  ;;  %v9838_v55 = vsub.f32 %v21966_v8, %v22172_v57  ;;  %v9846_v59 = vsub.f32 %v21992_v31, %v22172_v57  ;;  %v9855_v35 = vsub.f32 %v22036_v49, %v22174_v3 }
 0x4f2   :  { %v9863_v29 = vsub.f32 %v22055_v63, %v22174_v3  ;;  %v9854_v16 = vsub.f32 %v22021_v14, %v22172_v57  ;;  %v9862_v1 = vsub.f32 %v22048_v0, %v22172_v57  ;;  %v9871_v53 = vsub.f32 %v22101_v5, %v22174_v3  ;;  %v24667_v0 = vld [vmem:[#allocation47_spill] sm:$0xff] }
 0x4f3   :  { %v9879_v8 = vsub.f32 %v22126_v11, %v22174_v3  ;;  %v9870_v31 = vsub.f32 %v22086_v17, %v22172_v57  ;;  %v9878_v49 = vsub.f32 %v22119_v9, %v22172_v57  ;;  %v9887_v63 = vsub.f32 %v22153_v25, %v22174_v3  ;;  %v15081_v3 = vld [vmem:[%s23266_s3 + $0x8] sm:$0xff]  }
 0x4f4   :  { %v9886_v14 = vsub.f32 %v22149_v45, %v22172_v57  ;;  %v9790_v2 = vsub.f32 %v24667_v0, %v22172_v57  ;;  %v15080_v57 = vld [vmem:[%s23266_s3 + $0x48] sm:$0xff]   ;;  %v15090_v0 = vld [vmem:[%s23266_s3 + $0x70] sm:$0xff]  }
 0x4f5   :  { %13838 = vmatprep.subr.bf16.mxu1 %v15080_v57 }
 0x4f6   :  { %13839 = vmatpush3.bf16.msra.mxu1 %v15081_v3 }
 0x4fa   :  { %v15110_v4 = vpop.eup %15109 }
 0x4fb   :  { %v15112_v5 = vpop.eup %15111  ;;  %v9918_v36 = vmul.f32 %v15110_v4, %v9774_v26  ;;  %v9926_v12 = vmul.f32 %v15110_v4, %v9782_v27  ;;  %v9934_v11 = vmul.f32 %v15110_v4, %v9790_v2  ;;  %v9942_v43 = vmul.f32 %v15110_v4, %v9798_v6  ;;  %v15091_v2 = vld [vmem:[%s23266_s3 + $0x30] sm:$0xff]  }
 0x4fc   :  { %v9919_v22 = vmul.f32 %v15112_v5, %v9775_v42  ;;  %v9927_v17 = vmul.f32 %v15112_v5, %v9783_v40  ;;  %v9935_v38 = vmul.f32 %v15112_v5, %v9791_v24  ;;  %v9943_v61 = vmul.f32 %v15112_v5, %v9799_v28 }
 0x4fd   :  { %v10046_v9 = vpack.c.bf16 %v9926_v12, %v9918_v36  ;;  %v10054_v62 = vpack.c.bf16 %v9942_v43, %v9934_v11  ;;  %v9951_v41 = vmul.f32 %v15112_v5, %v9807_v18  ;;  %v9959_v25 = vmul.f32 %v15112_v5, %v9815_v47  ;;  %v13664_v36 = vld [vmem:[%s23270_s7 + $0x1] ss:$8 sm:$0x3] }
 0x4fe   :  { %v10047_v34 = vpack.c.bf16 %v9927_v17, %v9919_v22  ;;  %v10055_v37 = vpack.c.bf16 %v9943_v61, %v9935_v38  ;;  %v9950_v45 = vmul.f32 %v15110_v4, %v9806_v7  ;;  %v9958_v56 = vmul.f32 %v15110_v4, %v9814_v15  ;;  %v24668_v12 = vld [vmem:[#allocation138_spill] sm:$0xff] }
 0x4ff   :  { %v10063_v46 = vpack.c.bf16 %v9959_v25, %v9951_v41  ;;  %v9967_v21 = vmul.f32 %v15112_v5, %v9823_v33  ;;  %v9975_v44 = vmul.f32 %v15112_v5, %v9831_v51  ;;  %v9966_v19 = vmul.f32 %v15110_v4, %v9822_v60  ;;  %v24669_v43 = vld [vmem:[#allocation198_spill] sm:$0xff] }
 0x500   :  { %11256 = vmatprep.mubr.bf16.mxu0 %v10047_v34  ;;  %v10062_v26 = vpack.c.bf16 %v9958_v56, %v9950_v45  ;;  %v9974_v27 = vmul.f32 %v15110_v4, %v9830_v52  ;;  %v9983_v32 = vmul.f32 %v15112_v5, %v9839_v30  ;;  %v9991_v42 = vmul.f32 %v15112_v5, %v9847_v10 }
 0x501   :  { %11257 = vmatmul.mubr.bf16.vlgmr.msra.gmra.mrb[64].mxu0 %v10046_v9  ;;  %v10071_v40 = vpack.c.bf16 %v9975_v44, %v9967_v21  ;;  %v9982_v24 = vmul.f32 %v15110_v4, %v9838_v55  ;;  %v9990_v58 = vmul.f32 %v15110_v4, %v9846_v59  ;;  %v9999_v28 = vmul.f32 %v15112_v5, %v9855_v35 }
 0x502   :  { %11266 = vmatprep.mubr.bf16.mxu0 %v10055_v37  ;;  %v10070_v50 = vpack.c.bf16 %v9974_v27, %v9966_v19  ;;  %v10079_v6 = vpack.c.bf16 %v9991_v42, %v9983_v32  ;;  %v10007_v39 = vmul.f32 %v15112_v5, %v9863_v29  ;;  %v9998_v18 = vmul.f32 %v15110_v4, %v9854_v16 }
 0x503   :  { %v10078_v47 = vpack.c.bf16 %v9990_v58, %v9982_v24  ;;  %v10006_v7 = vmul.f32 %v15110_v4, %v9862_v1  ;;  %v10015_v23 = vmul.f32 %v15112_v5, %v9871_v53  ;;  %v10023_v15 = vmul.f32 %v15112_v5, %v9879_v8  ;;  %v15084_v53 = vld [vmem:[%s23266_s3 + $0x58] sm:$0xff]  }
 0x504   :  { %v10087_v33 = vpack.c.bf16 %v10007_v39, %v9999_v28  ;;  %v10014_v51 = vmul.f32 %v15110_v4, %v9870_v31  ;;  %v10022_v60 = vmul.f32 %v15110_v4, %v9878_v49  ;;  %v10031_v52 = vmul.f32 %v15112_v5, %v9887_v63  ;;  %v15085_v8 = vld [vmem:[%s23266_s3 + $0x18] sm:$0xff]   ;;  %v15086_v31 = vld [vmem:[%s23266_s3 + $0x60] sm:$0xff]   ;;  %v15088_v63 = vld [vmem:[%s23266_s3 + $0x68] sm:$0xff]  }
 0x505   :  { %v10086_v30 = vpack.c.bf16 %v10006_v7, %v9998_v18  ;;  %v10095_v10 = vpack.c.bf16 %v10023_v15, %v10015_v23  ;;  %v10039_v55 = vmul.f32 %v15112_v5, %v9895_v20  ;;  %v10030_v59 = vmul.f32 %v15110_v4, %v9886_v14  ;;  %v15083_v20 = vld [vmem:[%s23266_s3 + $0x10] sm:$0xff]   ;;  %v15087_v49 = vld [vmem:[%s23266_s3 + $0x20] sm:$0xff]   ;;  %v15089_v14 = vld [vmem:[%s23266_s3 + $0x28] sm:$0xff]  }
 0x506   :  { %v10094_v35 = vpack.c.bf16 %v10022_v60, %v10014_v51  ;;  %v10038_v29 = vmul.f32 %v15110_v4, %v9894_v13  ;;  %v15082_v13 = vld [vmem:[%s23266_s3 + $0x50] sm:$0xff]   ;;  %v15092_v4 = vld [vmem:[%s23266_s3 + $0x78] sm:$0xff]   ;;  %v22302_v11 = vrot.slane %v13664_v36, %v24668_v12  ;;  %v22305_v22 = vrot.slane %v13664_v36, %v24669_v43 }
 0x507   :  { %v10103_v16 = vpack.c.bf16 %v10039_v55, %v10031_v52  ;;  %13840 = vmatprep.subr.bf16.mxu1 %v15082_v13  ;;  %v15093_v5 = vld [vmem:[%s23266_s3 + $0x38] sm:$0xff]  }
 0x508   :  { %v10102_v1 = vpack.c.bf16 %v10038_v29, %v10030_v59  ;;  %13841 = vmatpush3.bf16.msra.mxu1 %v15083_v20 }
 0x509   :  { %11267 = vmatmul.mubr.bf16.gmra.mrb[68].mxu0 %v10054_v62  ;;  %13842 = vmatprep.subr.bf16.mxu1 %v15084_v53 }
 0x50a   :  { %11276 = vmatprep.mubr.bf16.mxu0 %v10063_v46 }
 0x50c   :  { %13843 = vmatpush3.bf16.msra.mxu1 %v15085_v8 }
 0x50d   :  { %13844 = vmatprep.subr.bf16.mxu1 %v15086_v31 }
 0x510   :  { %13845 = vmatpush3.bf16.msra.mxu1 %v15087_v49 }
 0x511   :  { %11277 = vmatmul.mubr.bf16.gmra.mrb[72].mxu0 %v10062_v26  ;;  %13846 = vmatprep.subr.bf16.mxu1 %v15088_v63 }
 0x512   :  { %11286 = vmatprep.mubr.bf16.mxu0 %v10071_v40 }
 0x514   :  { %13847 = vmatpush3.bf16.msra.mxu1 %v15089_v14 }
 0x515   :  { %13848 = vmatprep.subr.bf16.mxu1 %v15090_v0 }
 0x518   :  { %13849 = vmatpush3.bf16.msra.mxu1 %v15091_v2 }
 0x519   :  { %11287 = vmatmul.mubr.bf16.gmra.mrb[76].mxu0 %v10070_v50  ;;  %13850 = vmatprep.subr.bf16.mxu1 %v15092_v4 }
 0x51a   :  { %11296 = vmatprep.mubr.bf16.mxu0 %v10079_v6 }
 0x51c   :  { %13851 = vmatpush3.bf16.msra.mxu1 %v15093_v5 }
 0x521   :  { %11297 = vmatmul.mubr.bf16.gmra.mrb[80].mxu0 %v10078_v47 }
 0x522   :  { %11306 = vmatprep.mubr.bf16.mxu0 %v10087_v33 }
 0x529   :  { %11307 = vmatmul.mubr.bf16.gmra.mrb[84].mxu0 %v10086_v30 }
 0x52a   :  { %11316 = vmatprep.mubr.bf16.mxu0 %v10095_v10 }
 0x531   :  { %11317 = vmatmul.mubr.bf16.gmra.mrb[88].mxu0 %v10094_v35 }
 0x532   :  { %11326 = vmatprep.mubr.bf16.mxu0 %v10103_v16 }
 0x539   :  { %11327 = vmatmul.mubr.bf16.gmra.mrb[92].mxu0 %v10102_v1 }
 0x5d4   :  { %v11258_v17 = vpop.f32.mrb[64].mxu0 }
 0x5d5   :  { %v14016_v38 = vadd.f32 %v11258_v17, %v22302_v11  ;;  %v11260_v61 = vpop.f32.mrb[65].mxu0 }
 0x5d6   :  { %v14017_v9 = vadd.f32 %v11260_v61, %v22305_v22  ;;  %v11262_v62 = vpop.f32.mrb[66].mxu0 }
 0x5d7   :  { %v22309_v41 = vmax.f32 %v14016_v38, 0.0  ;;  %v14018_v25 = vadd.f32 %v11262_v62, %v22302_v11  ;;  %v11264_v34 = vpop.f32.mrb[67].mxu0 }
 0x5d8   :  { %v22312_v37 = vmax.f32 %v14017_v9, 0.0  ;;  %v14019_v45 = vadd.f32 %v11264_v34, %v22305_v22 }
 0x5d9   :  { %v22315_v56 = vmax.f32 %v14018_v25, 0.0  ;;  %v11411_v21 = vmul.f32 %v22309_v41, %v22309_v41 }
 0x5da   :  { %v22317_v46 = vmax.f32 %v14019_v45, 0.0  ;;  %v11412_v26 = vmul.f32 %v22312_v37, %v22312_v37 }
 0x5db   :  { %v11369_v44 = vadd.f32 %v22315_v56, %v22309_v41  ;;  %v11413_v19 = vmul.f32 %v22315_v56, %v22315_v56 }
 0x5dc   :  { %v11390_v27 = vadd.f32 %v22317_v46, %v22312_v37  ;;  %v11414_v32 = vmul.f32 %v22317_v46, %v22317_v46  ;;  %v11268_v42 = vpop.f32.mrb[68].mxu0 }
 0x5dd   :  { %v11443_v40 = vadd.f32 %v11413_v19, %v11411_v21  ;;  %v14020_v24 = vadd.f32 %v11268_v42, %v22302_v11  ;;  %v11270_v58 = vpop.f32.mrb[69].mxu0 }
 0x5de   :  { %v11464_v28 = vadd.f32 %v11414_v32, %v11412_v26  ;;  %v14021_v50 = vadd.f32 %v11270_v58, %v22305_v22  ;;  %v11272_v6 = vpop.f32.mrb[70].mxu0 }
 0x5df   :  { %v22333_v39 = vmax.f32 %v14020_v24, 0.0  ;;  %v14022_v18 = vadd.f32 %v11272_v6, %v22302_v11  ;;  %v11274_v47 = vpop.f32.mrb[71].mxu0 }
 0x5e0   :  { %v22336_v7 = vmax.f32 %v14021_v50, 0.0  ;;  %v14023_v23 = vadd.f32 %v11274_v47, %v22305_v22 }
 0x5e1   :  { %v11370_v15 = vadd.f32 %v11369_v44, %v22333_v39  ;;  %v11415_v33 = vmul.f32 %v22333_v39, %v22333_v39  ;;  %v22342_v51 = vmax.f32 %v14022_v18, 0.0 }
 0x5e2   :  { %v11391_v60 = vadd.f32 %v11390_v27, %v22336_v7  ;;  %v11416_v52 = vmul.f32 %v22336_v7, %v22336_v7  ;;  %v22347_v30 = vmax.f32 %v14023_v23, 0.0 }
 0x5e3   :  { %v11444_v10 = vadd.f32 %v11443_v40, %v11415_v33  ;;  %v11371_v55 = vadd.f32 %v11370_v15, %v22342_v51  ;;  %v11417_v59 = vmul.f32 %v22342_v51, %v22342_v51 }
 0x5e4   :  { %v11465_v35 = vadd.f32 %v11464_v28, %v11416_v52  ;;  %v11392_v29 = vadd.f32 %v11391_v60, %v22347_v30  ;;  %v11418_v16 = vmul.f32 %v22347_v30, %v22347_v30  ;;  %v11278_v1 = vpop.f32.mrb[72].mxu0 }
 0x5e5   :  { %v11445_v48 = vadd.f32 %v11444_v10, %v11417_v59  ;;  %v14024_v54 = vadd.f32 %v11278_v1, %v22302_v11  ;;  %v11280_v57 = vpop.f32.mrb[73].mxu0 }
 0x5e6   :  { %v11466_v3 = vadd.f32 %v11465_v35, %v11418_v16  ;;  %v14025_v13 = vadd.f32 %v11280_v57, %v22305_v22  ;;  %v11282_v20 = vpop.f32.mrb[74].mxu0 }
 0x5e7   :  { %v22357_v53 = vmax.f32 %v14024_v54, 0.0  ;;  %v14026_v8 = vadd.f32 %v11282_v20, %v22302_v11  ;;  %v11284_v31 = vpop.f32.mrb[75].mxu0 }
 0x5e8   :  { %v22360_v49 = vmax.f32 %v14025_v13, 0.0  ;;  %v14027_v63 = vadd.f32 %v11284_v31, %v22305_v22 }
 0x5e9   :  { %v11372_v14 = vadd.f32 %v11371_v55, %v22357_v53  ;;  %v11419_v0 = vmul.f32 %v22357_v53, %v22357_v53  ;;  %v22366_v2 = vmax.f32 %v14026_v8, 0.0 }
 0x5ea   :  { %v11393_v4 = vadd.f32 %v11392_v29, %v22360_v49  ;;  %v11420_v5 = vmul.f32 %v22360_v49, %v22360_v49  ;;  %v22371_v36 = vmax.f32 %v14027_v63, 0.0 }
 0x5eb   :  { %v11446_v12 = vadd.f32 %v11445_v48, %v11419_v0  ;;  %v11373_v43 = vadd.f32 %v11372_v14, %v22366_v2  ;;  %v11421_v17 = vmul.f32 %v22366_v2, %v22366_v2 }
 0x5ec   :  { %v11467_v38 = vadd.f32 %v11466_v3, %v11420_v5  ;;  %v11394_v61 = vadd.f32 %v11393_v4, %v22371_v36  ;;  %v11422_v9 = vmul.f32 %v22371_v36, %v22371_v36  ;;  %v11288_v62 = vpop.f32.mrb[76].mxu0 }
 0x5ed   :  { %v11447_v25 = vadd.f32 %v11446_v12, %v11421_v17  ;;  %v14028_v34 = vadd.f32 %v11288_v62, %v22302_v11  ;;  %v11290_v45 = vpop.f32.mrb[77].mxu0 }
 0x5ee   :  { %v11468_v21 = vadd.f32 %v11467_v38, %v11422_v9  ;;  %v14029_v44 = vadd.f32 %v11290_v45, %v22305_v22  ;;  %v11292_v19 = vpop.f32.mrb[78].mxu0 }
 0x5ef   :  { %v22381_v26 = vmax.f32 %v14028_v34, 0.0  ;;  %v14030_v27 = vadd.f32 %v11292_v19, %v22302_v11  ;;  %v11294_v32 = vpop.f32.mrb[79].mxu0 }
 0x5f0   :  { %v22384_v42 = vmax.f32 %v14029_v44, 0.0  ;;  %v14031_v40 = vadd.f32 %v11294_v32, %v22305_v22 }
 0x5f1   :  { %v11374_v24 = vadd.f32 %v11373_v43, %v22381_v26  ;;  %v11423_v58 = vmul.f32 %v22381_v26, %v22381_v26  ;;  %v22390_v28 = vmax.f32 %v14030_v27, 0.0 }
 0x5f2   :  { %v11395_v50 = vadd.f32 %v11394_v61, %v22384_v42  ;;  %v11424_v6 = vmul.f32 %v22384_v42, %v22384_v42  ;;  %v22395_v18 = vmax.f32 %v14031_v40, 0.0 }
 0x5f3   :  { %v11448_v47 = vadd.f32 %v11447_v25, %v11423_v58  ;;  %v11375_v23 = vadd.f32 %v11374_v24, %v22390_v28  ;;  %v11425_v15 = vmul.f32 %v22390_v28, %v22390_v28 }
 0x5f4   :  { %v11469_v33 = vadd.f32 %v11468_v21, %v11424_v6  ;;  %v11396_v60 = vadd.f32 %v11395_v50, %v22395_v18  ;;  %v11426_v52 = vmul.f32 %v22395_v18, %v22395_v18  ;;  %v11298_v10 = vpop.f32.mrb[80].mxu0 }
 0x5f5   :  { %v11449_v55 = vadd.f32 %v11448_v47, %v11425_v15  ;;  %v14032_v59 = vadd.f32 %v11298_v10, %v22302_v11  ;;  %v11300_v35 = vpop.f32.mrb[81].mxu0 }
 0x5f6   :  { %v11470_v29 = vadd.f32 %v11469_v33, %v11426_v52  ;;  %v14033_v16 = vadd.f32 %v11300_v35, %v22305_v22  ;;  %v11302_v1 = vpop.f32.mrb[82].mxu0 }
 0x5f7   :  { %v22405_v48 = vmax.f32 %v14032_v59, 0.0  ;;  %v14034_v54 = vadd.f32 %v11302_v1, %v22302_v11  ;;  %v11304_v57 = vpop.f32.mrb[83].mxu0 }
 0x5f8   :  { %v22408_v3 = vmax.f32 %v14033_v16, 0.0  ;;  %v14035_v13 = vadd.f32 %v11304_v57, %v22305_v22 }
 0x5f9   :  { %v11376_v20 = vadd.f32 %v11375_v23, %v22405_v48  ;;  %v11427_v8 = vmul.f32 %v22405_v48, %v22405_v48  ;;  %v22414_v31 = vmax.f32 %v14034_v54, 0.0 }
 0x5fa   :  { %v11397_v63 = vadd.f32 %v11396_v60, %v22408_v3  ;;  %v11428_v14 = vmul.f32 %v22408_v3, %v22408_v3  ;;  %v22419_v0 = vmax.f32 %v14035_v13, 0.0 }
 0x5fb   :  { %v11450_v4 = vadd.f32 %v11449_v55, %v11427_v8  ;;  %v11377_v5 = vadd.f32 %v11376_v20, %v22414_v31  ;;  %v11429_v12 = vmul.f32 %v22414_v31, %v22414_v31 }
 0x5fc   :  { %v11471_v43 = vadd.f32 %v11470_v29, %v11428_v14  ;;  %v11398_v17 = vadd.f32 %v11397_v63, %v22419_v0  ;;  %v11430_v38 = vmul.f32 %v22419_v0, %v22419_v0  ;;  %v11308_v61 = vpop.f32.mrb[84].mxu0 }
 0x5fd   :  { %v11451_v9 = vadd.f32 %v11450_v4, %v11429_v12  ;;  %v14036_v62 = vadd.f32 %v11308_v61, %v22302_v11  ;;  %v11310_v25 = vpop.f32.mrb[85].mxu0 }
 0x5fe   :  { %v11472_v34 = vadd.f32 %v11471_v43, %v11430_v38  ;;  %v14037_v45 = vadd.f32 %v11310_v25, %v22305_v22  ;;  %v11312_v21 = vpop.f32.mrb[86].mxu0 }
 0x5ff   :  { %v22429_v44 = vmax.f32 %v14036_v62, 0.0  ;;  %v14038_v19 = vadd.f32 %v11312_v21, %v22302_v11  ;;  %v11314_v27 = vpop.f32.mrb[87].mxu0 }
 0x600   :  { %v22432_v32 = vmax.f32 %v14037_v45, 0.0  ;;  %v14039_v40 = vadd.f32 %v11314_v27, %v22305_v22 }
 0x601   :  { %v11378_v24 = vadd.f32 %v11377_v5, %v22429_v44  ;;  %v11431_v58 = vmul.f32 %v22429_v44, %v22429_v44  ;;  %v22438_v50 = vmax.f32 %v14038_v19, 0.0 }
 0x602   :  { %v11399_v6 = vadd.f32 %v11398_v17, %v22432_v32  ;;  %v11432_v47 = vmul.f32 %v22432_v32, %v22432_v32  ;;  %v22443_v23 = vmax.f32 %v14039_v40, 0.0 }
 0x603   :  { %v11452_v15 = vadd.f32 %v11451_v9, %v11431_v58  ;;  %v11379_v33 = vadd.f32 %v11378_v24, %v22438_v50  ;;  %v11433_v60 = vmul.f32 %v22438_v50, %v22438_v50 }
 0x604   :  { %v11473_v52 = vadd.f32 %v11472_v34, %v11432_v47  ;;  %v11400_v10 = vadd.f32 %v11399_v6, %v22443_v23  ;;  %v11434_v55 = vmul.f32 %v22443_v23, %v22443_v23  ;;  %v11318_v59 = vpop.f32.mrb[88].mxu0 }
 0x605   :  { %v11453_v35 = vadd.f32 %v11452_v15, %v11433_v60  ;;  %v14040_v29 = vadd.f32 %v11318_v59, %v22302_v11  ;;  %v11320_v16 = vpop.f32.mrb[89].mxu0 }
 0x606   :  { %v11474_v1 = vadd.f32 %v11473_v52, %v11434_v55  ;;  %v14041_v54 = vadd.f32 %v11320_v16, %v22305_v22  ;;  %v11322_v57 = vpop.f32.mrb[90].mxu0 }
 0x607   :  { %v22453_v13 = vmax.f32 %v14040_v29, 0.0  ;;  %v14042_v20 = vadd.f32 %v11322_v57, %v22302_v11  ;;  %v11324_v8 = vpop.f32.mrb[91].mxu0 }
 0x608   :  { %v22456_v63 = vmax.f32 %v14041_v54, 0.0  ;;  %v14043_v14 = vadd.f32 %v11324_v8, %v22305_v22 }
 0x609   :  { %v11380_v4 = vadd.f32 %v11379_v33, %v22453_v13  ;;  %v11435_v5 = vmul.f32 %v22453_v13, %v22453_v13  ;;  %v22462_v12 = vmax.f32 %v14042_v20, 0.0 }
 0x60a   :  { %v11401_v43 = vadd.f32 %v11400_v10, %v22456_v63  ;;  %v11436_v17 = vmul.f32 %v22456_v63, %v22456_v63  ;;  %v22467_v38 = vmax.f32 %v14043_v14, 0.0 }
 0x60b   :  { %v11454_v61 = vadd.f32 %v11453_v35, %v11435_v5  ;;  %v11381_v9 = vadd.f32 %v11380_v4, %v22462_v12  ;;  %v11437_v62 = vmul.f32 %v22462_v12, %v22462_v12 }
 0x60c   :  { %v11475_v25 = vadd.f32 %v11474_v1, %v11436_v17  ;;  %v11402_v34 = vadd.f32 %v11401_v43, %v22467_v38  ;;  %v11438_v45 = vmul.f32 %v22467_v38, %v22467_v38  ;;  %v11328_v21 = vpop.f32.mrb[92].mxu0 }
 0x60d   :  { %v11455_v19 = vadd.f32 %v11454_v61, %v11437_v62  ;;  %v14044_v27 = vadd.f32 %v11328_v21, %v22302_v11  ;;  %v11330_v40 = vpop.f32.mrb[93].mxu0 }
 0x60e   :  { %v11476_v24 = vadd.f32 %v11475_v25, %v11438_v45  ;;  %v14045_v58 = vadd.f32 %v11330_v40, %v22305_v22  ;;  %v11332_v6 = vpop.f32.mrb[94].mxu0 }
 0x60f   :  { %v22477_v47 = vmax.f32 %v14044_v27, 0.0  ;;  %v14046_v15 = vadd.f32 %v11332_v6, %v22302_v11  ;;  %v11334_v33 = vpop.f32.mrb[95].mxu0 }
 0x610   :  { %v22480_v60 = vmax.f32 %v14045_v58, 0.0  ;;  %v14047_v52 = vadd.f32 %v11334_v33, %v22305_v22 }
 0x611   :  { %v11382_v10 = vadd.f32 %v11381_v9, %v22477_v47  ;;  %v11439_v55 = vmul.f32 %v22477_v47, %v22477_v47  ;;  %v22486_v59 = vmax.f32 %v14046_v15, 0.0 }
 0x612   :  { %v11403_v35 = vadd.f32 %v11402_v34, %v22480_v60  ;;  %v11440_v29 = vmul.f32 %v22480_v60, %v22480_v60  ;;  %v22491_v16 = vmax.f32 %v14047_v52, 0.0 }
 0x613   :  { %v11456_v11 = vadd.f32 %v11455_v19, %v11439_v55  ;;  %v11383_v1 = vadd.f32 %v11382_v10, %v22486_v59  ;;  %v11441_v22 = vmul.f32 %v22486_v59, %v22486_v59 }
 0x614   :  { %v11477_v54 = vadd.f32 %v11476_v24, %v11440_v29  ;;  %v11404_v57 = vadd.f32 %v11403_v35, %v22491_v16  ;;  %v11442_v20 = vmul.f32 %v22491_v16, %v22491_v16 }
 0x615   :  { %v11384_v8 = vrot.slane %v11383_v1, 4  ;;  %v11457_v14 = vadd.f32 %v11456_v11, %v11441_v22 }
 0x616   :  { %v11405_v4 = vrot.slane %v11404_v57, 4  ;;  %v11478_v5 = vadd.f32 %v11477_v54, %v11442_v20 }
 0x617   :  { %v11385_v43 = vadd.f32 %v11384_v8, %v11383_v1  ;;  %v11458_v17 = vrot.slane %v11457_v14, 4 }
 0x618   :  { %v11406_v61 = vadd.f32 %v11405_v4, %v11404_v57  ;;  %v11479_v9 = vrot.slane %v11478_v5, 4 }
 0x619   :  { %v11386_v62 = vrot.slane %v11385_v43, 2  ;;  %v11459_v25 = vadd.f32 %v11458_v17, %v11457_v14 }
 0x61a   :  { %v11407_v34 = vrot.slane %v11406_v61, 2  ;;  %v11480_v45 = vadd.f32 %v11479_v9, %v11478_v5 }
 0x61b   :  { %v11387_v21 = vadd.f32 %v11386_v62, %v11385_v43  ;;  %v11460_v19 = vrot.slane %v11459_v25, 2 }
 0x61c   :  { %v11408_v27 = vadd.f32 %v11407_v34, %v11406_v61  ;;  %v11481_v40 = vrot.slane %v11480_v45, 2 }
 0x61d   :  { %v11388_v24 = vrot.slane %v11387_v21, 1  ;;  %v11461_v58 = vadd.f32 %v11460_v19, %v11459_v25 }
 0x61e   :  { %v11409_v6 = vrot.slane %v11408_v27, 1  ;;  %v11482_v15 = vadd.f32 %v11481_v40, %v11480_v45 }
 0x61f   :  { %v11389_v33 = vadd.f32 %v11388_v24, %v11387_v21  ;;  %v11462_v52 = vrot.slane %v11461_v58, 1 }
 0x620   :  { %v11410_v10 = vadd.f32 %v11409_v6, %v11408_v27  ;;  %v11483_v55 = vrot.slane %v11482_v15, 1 }
 0x621   :  { %v11463_v35 = vadd.f32 %v11462_v52, %v11461_v58  ;;  %v22499_v29 = vmul.f32 0.0078125, %v11389_v33 }
 0x622   :  { %v11484_v11 = vadd.f32 %v11483_v55, %v11482_v15  ;;  %v22501_v1 = vmul.f32 0.0078125, %v11410_v10 }
 0x623   :  { %v11487_v22 = vmul.f32 0.0078125, %v11463_v35  ;;  %v11489_v54 = vmul.f32 %v22499_v29, %v22499_v29  ;;  %v11523_v57 = vsub.f32 %v22486_v59, %v22499_v29  ;;  %v11493_v20 = vsub.f32 %v22309_v41, %v22499_v29  ;;  %v15094_v59 = vld [vmem:[%s23267_s4] sm:$0xff]  }
 0x624   :  { %v11488_v8 = vmul.f32 0.0078125, %v11484_v11  ;;  %v11490_v14 = vmul.f32 %v22501_v1, %v22501_v1  ;;  %v11524_v4 = vsub.f32 %v22491_v16, %v22501_v1  ;;  %v11494_v5 = vsub.f32 %v22312_v37, %v22501_v1  ;;  %13928 = vmatprep.subr.bf16.mxu1 %v15094_v59  ;;  %v15095_v16 = vld [vmem:[%s23267_s4 + $0x8] sm:$0xff]  }
 0x625   :  { %v11491_v43 = vsub.f32 %v11487_v22, %v11489_v54  ;;  %v11496_v17 = vsub.f32 %v22317_v46, %v22501_v1  ;;  %v11495_v61 = vsub.f32 %v22315_v56, %v22499_v29  ;;  %v11498_v41 = vsub.f32 %v22336_v7, %v22501_v1 }
 0x626   :  { %v11492_v9 = vsub.f32 %v11488_v8, %v11490_v14  ;;  %v11500_v62 = vsub.f32 %v22347_v30, %v22501_v1  ;;  %v11499_v25 = vsub.f32 %v22342_v51, %v22499_v29  ;;  %v11502_v37 = vsub.f32 %v22360_v49, %v22501_v1 }
 0x627   :  { %v11525_v34 = vadd.f32 1e-05, %v11491_v43  ;;  %v11504_v46 = vsub.f32 %v22371_v36, %v22501_v1  ;;  %v11501_v56 = vsub.f32 %v22357_v53, %v22499_v29  ;;  %v11503_v7 = vsub.f32 %v22366_v2, %v22499_v29 }
 0x628   :  { %v11526_v45 = vadd.f32 1e-05, %v11492_v9  ;;  %v11506_v30 = vsub.f32 %v22384_v42, %v22501_v1  ;;  %v11508_v51 = vsub.f32 %v22395_v18, %v22501_v1  ;;  %v11505_v49 = vsub.f32 %v22381_v26, %v22499_v29 }
 0x629   :  { %15113 = vrsqrt.f32 %v11525_v34  ;;  %v11507_v36 = vsub.f32 %v22390_v28, %v22499_v29  ;;  %v11510_v53 = vsub.f32 %v22408_v3, %v22501_v1  ;;  %v11512_v2 = vsub.f32 %v22419_v0, %v22501_v1 }
 0x62a   :  { %15115 = vrsqrt.f32 %v11526_v45  ;;  %v11509_v42 = vsub.f32 %v22405_v48, %v22499_v29  ;;  %v11511_v18 = vsub.f32 %v22414_v31, %v22499_v29  ;;  %v11514_v21 = vsub.f32 %v22432_v32, %v22501_v1 }
 0x62b   :  { %v11516_v26 = vsub.f32 %v22443_v23, %v22501_v1  ;;  %v11513_v28 = vsub.f32 %v22429_v44, %v22499_v29  ;;  %v11515_v3 = vsub.f32 %v22438_v50, %v22499_v29  ;;  %v11518_v0 = vsub.f32 %v22456_v63, %v22501_v1 }
 0x62c   :  { %v11520_v48 = vsub.f32 %v22467_v38, %v22501_v1  ;;  %v11517_v31 = vsub.f32 %v22453_v13, %v22499_v29  ;;  %v11519_v32 = vsub.f32 %v22462_v12, %v22499_v29  ;;  %v11522_v23 = vsub.f32 %v22480_v60, %v22501_v1  ;;  %v22586_v1 = vld [vmem:[%s23270_s7 + $0x2] ss:$0 sm:$0xff] }
 0x62d   :  { %v11521_v44 = vsub.f32 %v22477_v47, %v22499_v29  ;;  %v11497_v50 = vsub.f32 %v22333_v39, %v22499_v29 }
 0x633   :  { %v15114_v19 = vpop.eup %15113 }
 0x634   :  { %v15116_v63 = vpop.eup %15115  ;;  %v11529_v27 = vmul.f32 %v15114_v19, %v11493_v20  ;;  %v11531_v40 = vmul.f32 %v15114_v19, %v11495_v61  ;;  %v11533_v38 = vmul.f32 %v15114_v19, %v11497_v50  ;;  %v11535_v24 = vmul.f32 %v15114_v19, %v11499_v25 }
 0x635   :  { %v11530_v58 = vmul.f32 %v15116_v63, %v11494_v5  ;;  %v11532_v13 = vmul.f32 %v15116_v63, %v11496_v17  ;;  %v11534_v6 = vmul.f32 %v15116_v63, %v11498_v41  ;;  %v11536_v15 = vmul.f32 %v15116_v63, %v11500_v62 }
 0x636   :  { %v11561_v12 = vpack.c.bf16 %v11531_v40, %v11529_v27  ;;  %v11563_v33 = vpack.c.bf16 %v11535_v24, %v11533_v38  ;;  %v11538_v52 = vmul.f32 %v15116_v63, %v11502_v37  ;;  %v11540_v60 = vmul.f32 %v15116_v63, %v11504_v46 }
 0x637   :  { %v11562_v10 = vpack.c.bf16 %v11532_v13, %v11530_v58  ;;  %v11564_v55 = vpack.c.bf16 %v11536_v15, %v11534_v6  ;;  %v11537_v47 = vmul.f32 %v15114_v19, %v11501_v56  ;;  %v11539_v35 = vmul.f32 %v15114_v19, %v11503_v7 }
 0x638   :  { %v11566_v11 = vpack.c.bf16 %v11540_v60, %v11538_v52  ;;  %v11542_v39 = vmul.f32 %v15116_v63, %v11506_v30  ;;  %v11544_v22 = vmul.f32 %v15116_v63, %v11508_v51  ;;  %v11541_v54 = vmul.f32 %v15114_v19, %v11505_v49 }
 0x639   :  { %11738 = vmatprep.mubr.bf16.mxu1 %v11562_v10  ;;  %v11565_v20 = vpack.c.bf16 %v11539_v35, %v11537_v47  ;;  %v11543_v8 = vmul.f32 %v15114_v19, %v11507_v36  ;;  %v11546_v14 = vmul.f32 %v15116_v63, %v11510_v53  ;;  %v11548_v5 = vmul.f32 %v15116_v63, %v11512_v2 }
 0x63a   :  { %11739 = vmatmul.mubr.bf16.vlgmr.msra.gmra.mrb[96].mxu1 %v11561_v12  ;;  %v11568_v43 = vpack.c.bf16 %v11544_v22, %v11542_v39  ;;  %v11545_v17 = vmul.f32 %v15114_v19, %v11509_v42  ;;  %v11547_v61 = vmul.f32 %v15114_v19, %v11511_v18  ;;  %v11550_v41 = vmul.f32 %v15116_v63, %v11514_v21 }
 0x63b   :  { %11746 = vmatprep.mubr.bf16.mxu1 %v11564_v55  ;;  %v11567_v9 = vpack.c.bf16 %v11543_v8, %v11541_v54  ;;  %v11570_v62 = vpack.c.bf16 %v11548_v5, %v11546_v14  ;;  %v11552_v25 = vmul.f32 %v15116_v63, %v11516_v26  ;;  %v11549_v34 = vmul.f32 %v15114_v19, %v11513_v28 }
 0x63c   :  { %v11569_v37 = vpack.c.bf16 %v11547_v61, %v11545_v17  ;;  %v11551_v46 = vmul.f32 %v15114_v19, %v11515_v3  ;;  %v11554_v56 = vmul.f32 %v15116_v63, %v11518_v0  ;;  %v11556_v45 = vmul.f32 %v15116_v63, %v11520_v48  ;;  %13929 = vmatpush3.bf16.msra.mxu1 %v15094_v59 }
 0x63d   :  { %v11572_v7 = vpack.c.bf16 %v11552_v25, %v11550_v41  ;;  %v11553_v30 = vmul.f32 %v15114_v19, %v11517_v31  ;;  %v11555_v51 = vmul.f32 %v15114_v19, %v11519_v32  ;;  %v11558_v49 = vmul.f32 %v15116_v63, %v11522_v23  ;;  %13930 = vmatprep.subr.bf16.mxu1 %v15095_v16 }
 0x63e   :  { %v11571_v36 = vpack.c.bf16 %v11551_v46, %v11549_v34  ;;  %v11574_v53 = vpack.c.bf16 %v11556_v45, %v11554_v56  ;;  %v11560_v2 = vmul.f32 %v15116_v63, %v11524_v4  ;;  %v11557_v42 = vmul.f32 %v15114_v19, %v11521_v44 }
 0x63f   :  { %v11573_v18 = vpack.c.bf16 %v11555_v51, %v11553_v30  ;;  %v11559_v21 = vmul.f32 %v15114_v19, %v11523_v57 }
 0x640   :  { %v11576_v26 = vpack.c.bf16 %v11560_v2, %v11558_v49  ;;  %13931 = vmatpush3.bf16.msra.mxu1 %v15095_v16 }
 0x641   :  { %v11575_v28 = vpack.c.bf16 %v11559_v21, %v11557_v42 }
 0x642   :  { %11747 = vmatmul.mubr.bf16.gmra.mrb[100].mxu1 %v11563_v33 }
 0x643   :  { %11754 = vmatprep.mubr.bf16.mxu1 %v11566_v11 }
 0x64a   :  { %11755 = vmatmul.mubr.bf16.gmra.mrb[104].mxu1 %v11565_v20 }
 0x64b   :  { %11762 = vmatprep.mubr.bf16.mxu1 %v11568_v43 }
 0x652   :  { %11763 = vmatmul.mubr.bf16.gmra.mrb[108].mxu1 %v11567_v9 }
 0x653   :  { %11770 = vmatprep.mubr.bf16.mxu1 %v11570_v62 }
 0x65a   :  { %11771 = vmatmul.mubr.bf16.gmra.mrb[112].mxu1 %v11569_v37 }
 0x65b   :  { %11778 = vmatprep.mubr.bf16.mxu1 %v11572_v7 }
 0x662   :  { %11779 = vmatmul.mubr.bf16.gmra.mrb[116].mxu1 %v11571_v36 }
 0x663   :  { %11786 = vmatprep.mubr.bf16.mxu1 %v11574_v53 }
 0x66a   :  { %11787 = vmatmul.mubr.bf16.gmra.mrb[120].mxu1 %v11573_v18 }
 0x66b   :  { %11794 = vmatprep.mubr.bf16.mxu1 %v11576_v26 }
 0x672   :  { %11795 = vmatmul.mubr.bf16.gmra.mrb[124].mxu1 %v11575_v28 }
 0x70d   :  { %v13852_v29 = vpop.f32.mrb[96].mxu1 }
 0x70e   :  { %v13853_v57 = vpop.f32.mrb[97].mxu1 }
 0x70f   :  { %v13854_v4 = vadd.f32 %v13853_v57, %v13852_v29  ;;  %v13855_v3 = vpop.f32.mrb[98].mxu1 }
 0x710   :  { %v13856_v0 = vpop.f32.mrb[99].mxu1 }
 0x711   :  { %v11741_v48 = vadd.f32 %v13854_v4, %v22586_v1  ;;  %v13857_v31 = vadd.f32 %v13856_v0, %v13855_v3 }
 0x713   :  { %v22589_v32 = vmax.f32 %v11741_v48, 0.0  ;;  %v11744_v23 = vadd.f32 %v13857_v31, %v22586_v1 }
 0x715   :  { %v11857_v44 = vmul.f32 %v22589_v32, %v22589_v32  ;;  %v22594_v50 = vmax.f32 %v11744_v23, 0.0  ;;  %v13858_v19 = vpop.f32.mrb[100].mxu1  ;;  %v11820_v27 = vsel %vm11819_vm3, %v22589_v32, 0.0 }
 0x716   :  { %v13859_v63 = vpop.f32.mrb[101].mxu1 }
 0x717   :  { %v11821_v40 = vsel %vm11819_vm3, %v22594_v50, 0.0  ;;  %v11858_v38 = vmul.f32 %v22594_v50, %v22594_v50  ;;  %v13860_v24 = vadd.f32 %v13859_v63, %v13858_v19  ;;  %v13861_v58 = vpop.f32.mrb[102].mxu1  ;;  %v11873_v15 = vsel %vm11819_vm3, %v11857_v44, 0.0 }
 0x718   :  { %v11822_v13 = vadd.f32 %v11821_v40, %v11820_v27  ;;  %v13862_v6 = vpop.f32.mrb[103].mxu1 }
 0x719   :  { %v11874_v12 = vsel %vm11819_vm3, %v11858_v38, 0.0  ;;  %v11749_v33 = vadd.f32 %v13860_v24, %v22586_v1  ;;  %v13863_v52 = vadd.f32 %v13862_v6, %v13861_v58 }
 0x71a   :  { %v11875_v60 = vadd.f32 %v11874_v12, %v11873_v15 }
 0x71b   :  { %v22605_v10 = vmax.f32 %v11749_v33, 0.0  ;;  %v11752_v55 = vadd.f32 %v13863_v52, %v22586_v1 }
 0x71d   :  { %v11823_v47 = vsel %vm11819_vm3, %v22605_v10, 0.0  ;;  %v11859_v35 = vmul.f32 %v22605_v10, %v22605_v10  ;;  %v22612_v11 = vmax.f32 %v11752_v55, 0.0  ;;  %v13864_v39 = vpop.f32.mrb[104].mxu1 }
 0x71e   :  { %v11824_v22 = vadd.f32 %v11823_v47, %v11822_v13  ;;  %v13865_v54 = vpop.f32.mrb[105].mxu1 }
 0x71f   :  { %v11876_v20 = vsel %vm11819_vm3, %v11859_v35, 0.0  ;;  %v11825_v8 = vsel %vm11819_vm3, %v22612_v11, 0.0  ;;  %v11860_v14 = vmul.f32 %v22612_v11, %v22612_v11  ;;  %v13866_v5 = vadd.f32 %v13865_v54, %v13864_v39  ;;  %v13867_v43 = vpop.f32.mrb[106].mxu1 }
 0x720   :  { %v11877_v17 = vadd.f32 %v11876_v20, %v11875_v60  ;;  %v11826_v61 = vadd.f32 %v11825_v8, %v11824_v22  ;;  %v13868_v41 = vpop.f32.mrb[107].mxu1 }
 0x721   :  { %v11878_v9 = vsel %vm11819_vm3, %v11860_v14, 0.0  ;;  %v11757_v62 = vadd.f32 %v13866_v5, %v22586_v1  ;;  %v13869_v25 = vadd.f32 %v13868_v41, %v13867_v43 }
 0x722   :  { %v11879_v34 = vadd.f32 %v11878_v9, %v11877_v17 }
 0x723   :  { %v22621_v37 = vmax.f32 %v11757_v62, 0.0  ;;  %v11760_v46 = vadd.f32 %v13869_v25, %v22586_v1 }
 0x725   :  { %v11827_v56 = vsel %vm11819_vm3, %v22621_v37, 0.0  ;;  %v11861_v45 = vmul.f32 %v22621_v37, %v22621_v37  ;;  %v22628_v7 = vmax.f32 %v11760_v46, 0.0  ;;  %v13870_v30 = vpop.f32.mrb[108].mxu1 }
 0x726   :  { %v11828_v51 = vadd.f32 %v11827_v56, %v11826_v61  ;;  %v13871_v49 = vpop.f32.mrb[109].mxu1 }
 0x727   :  { %v11880_v36 = vsel %vm11819_vm3, %v11861_v45, 0.0  ;;  %v11829_v53 = vsel %vm11819_vm3, %v22628_v7, 0.0  ;;  %v11862_v2 = vmul.f32 %v22628_v7, %v22628_v7  ;;  %v13872_v42 = vadd.f32 %v13871_v49, %v13870_v30  ;;  %v13873_v18 = vpop.f32.mrb[110].mxu1 }
 0x728   :  { %v11881_v21 = vadd.f32 %v11880_v36, %v11879_v34  ;;  %v11830_v26 = vadd.f32 %v11829_v53, %v11828_v51  ;;  %v13874_v28 = vpop.f32.mrb[111].mxu1 }
 0x729   :  { %v11882_v59 = vsel %vm11819_vm3, %v11862_v2, 0.0  ;;  %v11765_v16 = vadd.f32 %v13872_v42, %v22586_v1  ;;  %v13875_v29 = vadd.f32 %v13874_v28, %v13873_v18 }
 0x72a   :  { %v11883_v57 = vadd.f32 %v11882_v59, %v11881_v21 }
 0x72b   :  { %v22637_v4 = vmax.f32 %v11765_v16, 0.0  ;;  %v11768_v3 = vadd.f32 %v13875_v29, %v22586_v1 }
 0x72d   :  { %v11831_v0 = vsel %vm11819_vm3, %v22637_v4, 0.0  ;;  %v11863_v48 = vmul.f32 %v22637_v4, %v22637_v4  ;;  %v22644_v31 = vmax.f32 %v11768_v3, 0.0  ;;  %v13876_v23 = vpop.f32.mrb[112].mxu1 }
 0x72e   :  { %v11832_v44 = vadd.f32 %v11831_v0, %v11830_v26  ;;  %v13877_v19 = vpop.f32.mrb[113].mxu1 }
 0x72f   :  { %v11884_v63 = vsel %vm11819_vm3, %v11863_v48, 0.0  ;;  %v11833_v27 = vsel %vm11819_vm3, %v22644_v31, 0.0  ;;  %v11864_v40 = vmul.f32 %v22644_v31, %v22644_v31  ;;  %v13878_v38 = vadd.f32 %v13877_v19, %v13876_v23  ;;  %v13879_v24 = vpop.f32.mrb[114].mxu1 }
 0x730   :  { %v11885_v58 = vadd.f32 %v11884_v63, %v11883_v57  ;;  %v11834_v13 = vadd.f32 %v11833_v27, %v11832_v44  ;;  %v13880_v6 = vpop.f32.mrb[115].mxu1 }
 0x731   :  { %v11886_v15 = vsel %vm11819_vm3, %v11864_v40, 0.0  ;;  %v11773_v12 = vadd.f32 %v13878_v38, %v22586_v1  ;;  %v13881_v33 = vadd.f32 %v13880_v6, %v13879_v24 }
 0x732   :  { %v11887_v52 = vadd.f32 %v11886_v15, %v11885_v58 }
 0x733   :  { %v22653_v60 = vmax.f32 %v11773_v12, 0.0  ;;  %v11776_v55 = vadd.f32 %v13881_v33, %v22586_v1 }
 0x735   :  { %v11835_v47 = vsel %vm11819_vm3, %v22653_v60, 0.0  ;;  %v11865_v35 = vmul.f32 %v22653_v60, %v22653_v60  ;;  %v22660_v39 = vmax.f32 %v11776_v55, 0.0  ;;  %v13882_v22 = vpop.f32.mrb[116].mxu1 }
 0x736   :  { %v11836_v54 = vadd.f32 %v11835_v47, %v11834_v13  ;;  %v13883_v20 = vpop.f32.mrb[117].mxu1 }
 0x737   :  { %v11888_v8 = vsel %vm11819_vm3, %v11865_v35, 0.0  ;;  %v11837_v14 = vsel %vm11819_vm3, %v22660_v39, 0.0  ;;  %v11866_v5 = vmul.f32 %v22660_v39, %v22660_v39  ;;  %v13884_v43 = vadd.f32 %v13883_v20, %v13882_v22  ;;  %v13885_v17 = vpop.f32.mrb[118].mxu1 }
 0x738   :  { %v11889_v61 = vadd.f32 %v11888_v8, %v11887_v52  ;;  %v11838_v41 = vadd.f32 %v11837_v14, %v11836_v54  ;;  %v13886_v9 = vpop.f32.mrb[119].mxu1 }
 0x739   :  { %v11890_v62 = vsel %vm11819_vm3, %v11866_v5, 0.0  ;;  %v11781_v25 = vadd.f32 %v13884_v43, %v22586_v1  ;;  %v13887_v34 = vadd.f32 %v13886_v9, %v13885_v17 }
 0x73a   :  { %v11891_v46 = vadd.f32 %v11890_v62, %v11889_v61 }
 0x73b   :  { %v22669_v56 = vmax.f32 %v11781_v25, 0.0  ;;  %v11784_v45 = vadd.f32 %v13887_v34, %v22586_v1 }
 0x73d   :  { %v11839_v30 = vsel %vm11819_vm3, %v22669_v56, 0.0  ;;  %v11867_v51 = vmul.f32 %v22669_v56, %v22669_v56  ;;  %v22676_v49 = vmax.f32 %v11784_v45, 0.0  ;;  %v13888_v36 = vpop.f32.mrb[120].mxu1 }
 0x73e   :  { %v11840_v53 = vadd.f32 %v11839_v30, %v11838_v41  ;;  %v13889_v2 = vpop.f32.mrb[121].mxu1 }
 0x73f   :  { %v11892_v42 = vsel %vm11819_vm3, %v11867_v51, 0.0  ;;  %v11841_v18 = vsel %vm11819_vm3, %v22676_v49, 0.0  ;;  %v11868_v21 = vmul.f32 %v22676_v49, %v22676_v49  ;;  %v13890_v26 = vadd.f32 %v13889_v2, %v13888_v36  ;;  %v13891_v28 = vpop.f32.mrb[122].mxu1 }
 0x740   :  { %v11893_v59 = vadd.f32 %v11892_v42, %v11891_v46  ;;  %v11842_v16 = vadd.f32 %v11841_v18, %v11840_v53  ;;  %v13892_v29 = vpop.f32.mrb[123].mxu1 }
 0x741   :  { %v11894_v57 = vsel %vm11819_vm3, %v11868_v21, 0.0  ;;  %v11789_v3 = vadd.f32 %v13890_v26, %v22586_v1  ;;  %v13893_v0 = vadd.f32 %v13892_v29, %v13891_v28 }
 0x742   :  { %v11895_v48 = vadd.f32 %v11894_v57, %v11893_v59 }
 0x743   :  { %v22685_v23 = vmax.f32 %v11789_v3, 0.0  ;;  %v11792_v44 = vadd.f32 %v13893_v0, %v22586_v1 }
 0x745   :  { %v11843_v19 = vsel %vm11819_vm3, %v22685_v23, 0.0  ;;  %v11869_v63 = vmul.f32 %v22685_v23, %v22685_v23  ;;  %v22692_v27 = vmax.f32 %v11792_v44, 0.0  ;;  %v13894_v40 = vpop.f32.mrb[124].mxu1 }
 0x746   :  { %v11844_v38 = vadd.f32 %v11843_v19, %v11842_v16  ;;  %v13895_v24 = vpop.f32.mrb[125].mxu1 }
 0x747   :  { %v11896_v58 = vsel %vm11819_vm3, %v11869_v63, 0.0  ;;  %v11845_v13 = vsel %vm11819_vm3, %v22692_v27, 0.0  ;;  %v11870_v6 = vmul.f32 %v22692_v27, %v22692_v27  ;;  %v13896_v15 = vadd.f32 %v13895_v24, %v13894_v40  ;;  %v13897_v12 = vpop.f32.mrb[126].mxu1 }
 0x748   :  { %v11897_v33 = vadd.f32 %v11896_v58, %v11895_v48  ;;  %v11846_v52 = vadd.f32 %v11845_v13, %v11844_v38  ;;  %v13898_v55 = vpop.f32.mrb[127].mxu1 }
 0x749   :  { %v11898_v47 = vsel %vm11819_vm3, %v11870_v6, 0.0  ;;  %v11797_v35 = vadd.f32 %v13896_v15, %v22586_v1  ;;  %v13899_v22 = vadd.f32 %v13898_v55, %v13897_v12 }
 0x74a   :  { %v11899_v54 = vadd.f32 %v11898_v47, %v11897_v33 }
 0x74b   :  { %v22701_v20 = vmax.f32 %v11797_v35, 0.0  ;;  %v11800_v8 = vadd.f32 %v13899_v22, %v22586_v1 }
 0x74d   :  { %v11847_v14 = vsel %vm11819_vm3, %v22701_v20, 0.0  ;;  %v11871_v5 = vmul.f32 %v22701_v20, %v22701_v20  ;;  %v22708_v43 = vmax.f32 %v11800_v8, 0.0 }
 0x74e   :  { %v11848_v17 = vadd.f32 %v11847_v14, %v11846_v52 }
 0x74f   :  { %v11900_v61 = vsel %vm11819_vm3, %v11871_v5, 0.0  ;;  %v11849_v41 = vsel %vm11819_vm3, %v22708_v43, 0.0  ;;  %v11872_v9 = vmul.f32 %v22708_v43, %v22708_v43 }
 0x750   :  { %v11901_v62 = vadd.f32 %v11900_v61, %v11899_v54  ;;  %v11850_v25 = vadd.f32 %v11849_v41, %v11848_v17  ;;  %v15096_v41 = vld [vmem:[%s23268_s5] sm:$0xff]  }
 0x751   :  { %v11902_v1 = vsel %vm11819_vm3, %v11872_v9, 0.0  ;;  %13948 = vmatprep.subr.bf16.mxu1 %v15096_v41  ;;  %v22746_v9 = vld [vmem:[%s23270_s7 + $0x3] ss:$0 sm:$0xff] }
 0x752   :  { %v11851_v34 = vrot.slane %v11850_v25, 4  ;;  %v11903_v46 = vadd.f32 %v11902_v1, %v11901_v62 }
 0x754   :  { %v11852_v45 = vadd.f32 %v11851_v34, %v11850_v25  ;;  %v11904_v30 = vrot.slane %v11903_v46, 4 }
 0x756   :  { %v11853_v51 = vrot.slane %v11852_v45, 2  ;;  %v11905_v36 = vadd.f32 %v11904_v30, %v11903_v46 }
 0x758   :  { %v11854_v53 = vadd.f32 %v11853_v51, %v11852_v45  ;;  %v11906_v2 = vrot.slane %v11905_v36, 2 }
 0x75a   :  { %v11855_v42 = vrot.slane %v11854_v53, 1  ;;  %v11907_v18 = vadd.f32 %v11906_v2, %v11905_v36 }
 0x75c   :  { %v11856_v21 = vadd.f32 %v11855_v42, %v11854_v53  ;;  %v11908_v26 = vrot.slane %v11907_v18, 1 }
 0x75e   :  { %v11909_v28 = vadd.f32 %v11908_v26, %v11907_v18  ;;  %v11910_v59 = vmul.f32 0.0078125, %v11856_v21 }
 0x760   :  { %v11911_v16 = vmul.f32 0.0078125, %v11909_v28  ;;  %v11912_v29 = vmul.f32 %v11910_v59, %v11910_v59  ;;  %v11929_v57 = vsub.f32 %v22708_v43, %v11910_v59  ;;  %v11914_v3 = vsub.f32 %v22589_v32, %v11910_v59 }
 0x761   :  { %v11915_v0 = vsub.f32 %v22594_v50, %v11910_v59  ;;  %v11916_v48 = vsub.f32 %v22605_v10, %v11910_v59  ;;  %v11917_v44 = vsub.f32 %v22612_v11, %v11910_v59  ;;  %v11918_v19 = vsub.f32 %v22621_v37, %v11910_v59 }
 0x762   :  { %v11913_v63 = vsub.f32 %v11911_v16, %v11912_v29  ;;  %v11919_v40 = vsub.f32 %v22628_v7, %v11910_v59  ;;  %v11920_v38 = vsub.f32 %v22637_v4, %v11910_v59  ;;  %v11921_v24 = vsub.f32 %v22644_v31, %v11910_v59 }
 0x763   :  { %v11922_v58 = vsub.f32 %v22653_v60, %v11910_v59  ;;  %v11923_v13 = vsub.f32 %v22660_v39, %v11910_v59  ;;  %v11924_v32 = vsub.f32 %v22669_v56, %v11910_v59  ;;  %v11925_v50 = vsub.f32 %v22676_v49, %v11910_v59 }
 0x764   :  { %v11930_v10 = vadd.f32 1e-05, %v11913_v63  ;;  %v11926_v11 = vsub.f32 %v22685_v23, %v11910_v59  ;;  %v11927_v37 = vsub.f32 %v22692_v27, %v11910_v59  ;;  %v11928_v6 = vsub.f32 %v22701_v20, %v11910_v59 }
 0x766   :  { %15117 = vrsqrt.f32 %v11930_v10 }
 0x770   :  { %v15118_v7 = vpop.eup %15117 }
 0x771   :  { %v11932_v4 = vmul.f32 %v15118_v7, %v11914_v3  ;;  %v11933_v15 = vmul.f32 %v15118_v7, %v11915_v0  ;;  %v11934_v31 = vmul.f32 %v15118_v7, %v11916_v48  ;;  %v11935_v12 = vmul.f32 %v15118_v7, %v11917_v44 }
 0x772   :  { %v11936_v60 = vmul.f32 %v15118_v7, %v11918_v19  ;;  %v11937_v33 = vmul.f32 %v15118_v7, %v11919_v40  ;;  %v11938_v39 = vmul.f32 %v15118_v7, %v11920_v38  ;;  %v11939_v52 = vmul.f32 %v15118_v7, %v11921_v24 }
 0x773   :  { %v11948_v56 = vpack.c.bf16 %v11933_v15, %v11932_v4  ;;  %v11949_v55 = vpack.c.bf16 %v11935_v12, %v11934_v31  ;;  %v11940_v49 = vmul.f32 %v15118_v7, %v11922_v58  ;;  %v11941_v47 = vmul.f32 %v15118_v7, %v11923_v13 }
 0x774   :  { %v11950_v35 = vpack.c.bf16 %v11937_v33, %v11936_v60  ;;  %v11951_v23 = vpack.c.bf16 %v11939_v52, %v11938_v39  ;;  %v11942_v22 = vmul.f32 %v15118_v7, %v11924_v32  ;;  %v11943_v27 = vmul.f32 %v15118_v7, %v11925_v50 }
 0x775   :  { %13932 = vmatprep.mubr.msk.bf16.mxu1 %vm11819_vm3, %v11948_v56  ;;  %v11952_v54 = vpack.c.bf16 %v11941_v47, %v11940_v49  ;;  %v11944_v20 = vmul.f32 %v15118_v7, %v11926_v11  ;;  %v11945_v8 = vmul.f32 %v15118_v7, %v11927_v37  ;;  %v11946_v14 = vmul.f32 %v15118_v7, %v11928_v6 }
 0x776   :  { %13933 = vmatmul.mubr.msk.bf16.vlgmr.msra.gmra.mrb[128].mxu1 %vm11819_vm3, %v11949_v55  ;;  %v11953_v5 = vpack.c.bf16 %v11943_v27, %v11942_v22  ;;  %v11947_v43 = vmul.f32 %v15118_v7, %v11929_v57 }
 0x777   :  { %13936 = vmatprep.mubr.msk.bf16.mxu1 %vm11819_vm3, %v11950_v35  ;;  %v11954_v17 = vpack.c.bf16 %v11945_v8, %v11944_v20  ;;  %13949 = vmatpush3.bf16.msra.mxu1 %v15096_v41 }
 0x778   :  { %v11955_v61 = vpack.c.bf16 %v11947_v43, %v11946_v14 }
 0x77e   :  { %13937 = vmatmul.mubr.msk.bf16.gmra.mrb[132].mxu1 %vm11819_vm3, %v11951_v23 }
 0x77f   :  { %13940 = vmatprep.mubr.msk.bf16.mxu1 %vm11819_vm3, %v11952_v54 }
 0x786   :  { %13941 = vmatmul.mubr.msk.bf16.gmra.mrb[136].mxu1 %vm11819_vm3, %v11953_v5 }
 0x787   :  { %13944 = vmatprep.mubr.msk.bf16.mxu1 %vm11819_vm3, %v11954_v17 }
 0x78e   :  { %13945 = vmatmul.mubr.msk.bf16.gmra.mrb[140].mxu1 %vm11819_vm3, %v11955_v61 }
 0x849   :  { %v13934_v62 = vpop.f32.mrb[128].mxu1 }
 0x84a   :  { %v12040_v25 = vadd.f32 %v13934_v62, %v22746_v9  ;;  %v12031_v1 = vpop.f32.mrb[129].mxu1 }
 0x84b   :  { %v12032_v34 = vadd.f32 %v12031_v1, %v22746_v9  ;;  %v13935_v46 = vpop.f32.mrb[130].mxu1 }
 0x84c   :  { %v22750_v45 = vmax.f32 %v12040_v25, 0.0  ;;  %v12043_v30 = vadd.f32 %v13935_v46, %v22746_v9  ;;  %v12034_v51 = vpop.f32.mrb[131].mxu1 }
 0x84d   :  { %v22753_v36 = vmax.f32 %v12032_v34, 0.0  ;;  %v12035_v53 = vadd.f32 %v12034_v51, %v22746_v9 }
 0x84e   :  { %v22758_v42 = vmax.f32 %v12043_v30, 0.0  ;;  %v12150_v21 = vmul.f32 %v22750_v45, %v22750_v45  ;;  %v12114_v29 = vsel %vm12110_vm4, %v22750_v45, 0.0 }
 0x84f   :  { %v12148_v2 = vmul.f32 %v22753_v36, %v22753_v36  ;;  %v22760_v18 = vmax.f32 %v12035_v53, 0.0  ;;  %v12111_v26 = vsel %vm12110_vm4, %v22753_v36, 0.0 }
 0x850   :  { %v12151_v44 = vmul.f32 %v22758_v42, %v22758_v42  ;;  %v12167_v38 = vsel %vm12110_vm4, %v12150_v21, 0.0  ;;  %v12116_v50 = vsel %vm12110_vm4, %v22758_v42, 0.0 }
 0x851   :  { %v12112_v28 = vsel %vm12110_vm4, %v22760_v18, 0.0  ;;  %v12149_v59 = vmul.f32 %v22760_v18, %v22760_v18  ;;  %v13938_v16 = vpop.f32.mrb[132].mxu1  ;;  %v12164_v48 = vsel %vm12110_vm4, %v12148_v2, 0.0 }
 0x852   :  { %v12113_v57 = vadd.f32 %v12112_v28, %v12111_v26  ;;  %v12056_v3 = vadd.f32 %v13938_v16, %v22746_v9  ;;  %v12047_v0 = vpop.f32.mrb[133].mxu1  ;;  %v12169_v4 = vsel %vm12110_vm4, %v12151_v44, 0.0 }
 0x853   :  { %v12165_v19 = vsel %vm12110_vm4, %v12149_v59, 0.0  ;;  %v12048_v63 = vadd.f32 %v12047_v0, %v22746_v9  ;;  %v13939_v40 = vpop.f32.mrb[134].mxu1 }
 0x854   :  { %v12115_v24 = vadd.f32 %v12114_v29, %v12113_v57  ;;  %v12166_v58 = vadd.f32 %v12165_v19, %v12164_v48  ;;  %v12059_v13 = vadd.f32 %v13939_v40, %v22746_v9  ;;  %v12050_v32 = vpop.f32.mrb[135].mxu1  ;;  %v22782_v10 = vmax.f32 %v12056_v3, 0.0 }
 0x855   :  { %v22784_v11 = vmax.f32 %v12048_v63, 0.0  ;;  %v12051_v37 = vadd.f32 %v12050_v32, %v22746_v9 }
 0x856   :  { %v12168_v6 = vadd.f32 %v12167_v38, %v12166_v58  ;;  %v12117_v7 = vadd.f32 %v12116_v50, %v12115_v24  ;;  %v22794_v39 = vmax.f32 %v12059_v13, 0.0  ;;  %v12154_v52 = vmul.f32 %v22782_v10, %v22782_v10 }
 0x857   :  { %v12118_v15 = vsel %vm12110_vm4, %v22784_v11, 0.0  ;;  %v12152_v31 = vmul.f32 %v22784_v11, %v22784_v11  ;;  %v22792_v12 = vmax.f32 %v12051_v37, 0.0  ;;  %v12122_v54 = vsel %vm12110_vm4, %v22782_v10, 0.0 }
 0x858   :  { %v12119_v60 = vadd.f32 %v12118_v15, %v12117_v7  ;;  %v12170_v33 = vadd.f32 %v12169_v4, %v12168_v6  ;;  %v12155_v14 = vmul.f32 %v22794_v39, %v22794_v39  ;;  %v12124_v41 = vsel %vm12110_vm4, %v22794_v39, 0.0 }
 0x859   :  { %v12171_v56 = vsel %vm12110_vm4, %v12152_v31, 0.0  ;;  %v12120_v55 = vsel %vm12110_vm4, %v22792_v12, 0.0  ;;  %v13942_v49 = vpop.f32.mrb[136].mxu1  ;;  %v12153_v23 = vmul.f32 %v22792_v12, %v22792_v12  ;;  %v12175_v34 = vsel %vm12110_vm4, %v12154_v52, 0.0 }
 0x85a   :  { %v12172_v47 = vadd.f32 %v12171_v56, %v12170_v33  ;;  %v12121_v35 = vadd.f32 %v12120_v55, %v12119_v60  ;;  %v12072_v22 = vadd.f32 %v13942_v49, %v22746_v9  ;;  %v12063_v27 = vpop.f32.mrb[137].mxu1  ;;  %v12177_v26 = vsel %vm12110_vm4, %v12155_v14, 0.0 }
 0x85b   :  { %v12064_v20 = vadd.f32 %v12063_v27, %v22746_v9  ;;  %v13943_v8 = vpop.f32.mrb[138].mxu1  ;;  %v12173_v43 = vsel %vm12110_vm4, %v12153_v23, 0.0 }
 0x85c   :  { %v12123_v5 = vadd.f32 %v12122_v54, %v12121_v35  ;;  %v12075_v17 = vadd.f32 %v13943_v8, %v22746_v9  ;;  %v12066_v61 = vpop.f32.mrb[139].mxu1  ;;  %v12174_v62 = vadd.f32 %v12173_v43, %v12172_v47  ;;  %v22817_v46 = vmax.f32 %v12072_v22, 0.0 }
 0x85d   :  { %v22813_v25 = vmax.f32 %v12064_v20, 0.0  ;;  %v12067_v1 = vadd.f32 %v12066_v61, %v22746_v9 }
 0x85e   :  { %v12125_v30 = vadd.f32 %v12124_v41, %v12123_v5  ;;  %v12176_v51 = vadd.f32 %v12175_v34, %v12174_v62  ;;  %v22826_v59 = vmax.f32 %v12075_v17, 0.0  ;;  %v12158_v48 = vmul.f32 %v22817_v46, %v22817_v46 }
 0x85f   :  { %v12126_v53 = vsel %vm12110_vm4, %v22813_v25, 0.0  ;;  %v12156_v2 = vmul.f32 %v22813_v25, %v22813_v25  ;;  %v22823_v21 = vmax.f32 %v12067_v1, 0.0  ;;  %v12130_v40 = vsel %vm12110_vm4, %v22817_v46, 0.0 }
 0x860   :  { %v12127_v28 = vadd.f32 %v12126_v53, %v12125_v30  ;;  %v12178_v16 = vadd.f32 %v12177_v26, %v12176_v51  ;;  %v12159_v32 = vmul.f32 %v22826_v59, %v22826_v59  ;;  %v12132_v7 = vsel %vm12110_vm4, %v22826_v59, 0.0 }
 0x861   :  { %v12179_v29 = vsel %vm12110_vm4, %v12156_v2, 0.0  ;;  %v12128_v57 = vsel %vm12110_vm4, %v22823_v21, 0.0  ;;  %v12157_v3 = vmul.f32 %v22823_v21, %v22823_v21  ;;  %v13946_v0 = vpop.f32.mrb[140].mxu1  ;;  %v12183_v60 = vsel %vm12110_vm4, %v12158_v48, 0.0 }
 0x862   :  { %v12129_v44 = vadd.f32 %v12128_v57, %v12127_v28  ;;  %v12088_v19 = vadd.f32 %v13946_v0, %v22746_v9  ;;  %v12079_v63 = vpop.f32.mrb[141].mxu1  ;;  %v12180_v38 = vadd.f32 %v12179_v29, %v12178_v16  ;;  %v12185_v35 = vsel %vm12110_vm4, %v12159_v32, 0.0 }
 0x863   :  { %v12181_v24 = vsel %vm12110_vm4, %v12157_v3, 0.0  ;;  %v12080_v58 = vadd.f32 %v12079_v63, %v22746_v9  ;;  %v13947_v13 = vpop.f32.mrb[142].mxu1 }
 0x864   :  { %v12131_v50 = vadd.f32 %v12130_v40, %v12129_v44  ;;  %v12091_v37 = vadd.f32 %v13947_v13, %v22746_v9  ;;  %v12082_v6 = vpop.f32.mrb[143].mxu1  ;;  %v12182_v4 = vadd.f32 %v12181_v24, %v12180_v38  ;;  %v22849_v33 = vmax.f32 %v12088_v19, 0.0 }
 0x865   :  { %v22845_v15 = vmax.f32 %v12080_v58, 0.0  ;;  %v12083_v31 = vadd.f32 %v12082_v6, %v22746_v9 }
 0x866   :  { %v12133_v52 = vadd.f32 %v12132_v7, %v12131_v50  ;;  %v12184_v56 = vadd.f32 %v12183_v60, %v12182_v4  ;;  %v22856_v22 = vmax.f32 %v12091_v37, 0.0  ;;  %v12162_v8 = vmul.f32 %v22849_v33, %v22849_v33 }
 0x867   :  { %v12134_v55 = vsel %vm12110_vm4, %v22845_v15, 0.0  ;;  %v12160_v49 = vmul.f32 %v22845_v15, %v22845_v15  ;;  %v12107_v47 = vmax.f32 %v12083_v31, 0.0  ;;  %v12138_v5 = vsel %vm12110_vm4, %v22849_v33, 0.0 }
 0x868   :  { %v12135_v23 = vadd.f32 %v12134_v55, %v12133_v52  ;;  %v12186_v27 = vadd.f32 %v12185_v35, %v12184_v56  ;;  %v12163_v61 = vmul.f32 %v22856_v22, %v22856_v22  ;;  %v12140_v62 = vsel %vm12110_vm4, %v22856_v22, 0.0 }
 0x869   :  { %v12187_v9 = vsel %vm12110_vm4, %v12160_v49, 0.0  ;;  %v12136_v54 = vsel %vm12110_vm4, %v12107_v47, 0.0  ;;  %v12161_v20 = vmul.f32 %v12107_v47, %v12107_v47  ;;  %v12191_v34 = vsel %vm12110_vm4, %v12162_v8, 0.0 }
 0x86a   :  { %v12137_v14 = vadd.f32 %v12136_v54, %v12135_v23  ;;  %v12188_v43 = vadd.f32 %v12187_v9, %v12186_v27  ;;  %v12193_v53 = vsel %vm12110_vm4, %v12163_v61, 0.0 }
 0x86b   :  { %v12189_v17 = vsel %vm12110_vm4, %v12161_v20, 0.0 }
 0x86c   :  { %v12139_v41 = vadd.f32 %v12138_v5, %v12137_v14  ;;  %v12190_v1 = vadd.f32 %v12189_v17, %v12188_v43 }
 0x86e   :  { %v12141_v30 = vadd.f32 %v12140_v62, %v12139_v41  ;;  %v12192_v51 = vadd.f32 %v12191_v34, %v12190_v1  ;;  %v12530_v1 = vld [vmem:[%s23269_s6] sm:$0x3] }
 0x86f   :  { %14880 = vmatprep.subr.msk.bf16.mxu1 %vm5608_vm1, %v12530_v1  ;;  %v12557_v34 = vsel %vm5608_vm1, %v12530_v1, 0 }
 0x870   :  { %v12142_v2 = vrot.slane %v12141_v30, 4  ;;  %v12194_v26 = vadd.f32 %v12193_v53, %v12192_v51 }
 0x872   :  { %v12143_v28 = vadd.f32 %v12142_v2, %v12141_v30  ;;  %v12195_v16 = vrot.slane %v12194_v26, 4  ;;  %v22902_v30 = vld [vmem:[%s23270_s7 + $0x4] ss:$0 sm:$0xff] }
 0x874   :  { %v12144_v29 = vrot.slane %v12143_v28, 2  ;;  %v12196_v57 = vadd.f32 %v12195_v16, %v12194_v26 }
 0x876   :  { %v12145_v3 = vadd.f32 %v12144_v29, %v12143_v28  ;;  %v12197_v0 = vrot.slane %v12196_v57, 2 }
 0x878   :  { %v12146_v48 = vrot.slane %v12145_v3, 1  ;;  %v12198_v44 = vadd.f32 %v12197_v0, %v12196_v57 }
 0x87a   :  { %v12147_v19 = vadd.f32 %v12146_v48, %v12145_v3  ;;  %v12199_v63 = vrot.slane %v12198_v44, 1 }
 0x87c   :  { %v12201_v40 = vmul.f32 0.0078125, %v12147_v19  ;;  %v12200_v38 = vadd.f32 %v12199_v63, %v12198_v44 }
 0x87e   :  { %v12203_v24 = vmul.f32 %v12201_v40, %v12201_v40  ;;  %v12218_v58 = vsub.f32 %v12107_v47, %v12201_v40  ;;  %v12205_v13 = vsub.f32 %v22753_v36, %v12201_v40  ;;  %v12206_v32 = vsub.f32 %v22760_v18, %v12201_v40 }
 0x87f   :  { %v12202_v50 = vmul.f32 0.0078125, %v12200_v38  ;;  %v12207_v37 = vsub.f32 %v22750_v45, %v12201_v40  ;;  %v12208_v6 = vsub.f32 %v22758_v42, %v12201_v40  ;;  %v12209_v7 = vsub.f32 %v22784_v11, %v12201_v40 }
 0x880   :  { %v12210_v4 = vsub.f32 %v22792_v12, %v12201_v40  ;;  %v12211_v31 = vsub.f32 %v22782_v10, %v12201_v40  ;;  %v12212_v60 = vsub.f32 %v22794_v39, %v12201_v40  ;;  %v12213_v52 = vsub.f32 %v22813_v25, %v12201_v40 }
 0x881   :  { %v12204_v56 = vsub.f32 %v12202_v50, %v12203_v24  ;;  %v12214_v36 = vsub.f32 %v22823_v21, %v12201_v40  ;;  %v12215_v18 = vsub.f32 %v22817_v46, %v12201_v40  ;;  %v12216_v55 = vsub.f32 %v22826_v59, %v12201_v40 }
 0x882   :  { %v12217_v45 = vsub.f32 %v22845_v15, %v12201_v40  ;;  %v12219_v42 = vsub.f32 %v22849_v33, %v12201_v40  ;;  %v12220_v11 = vsub.f32 %v22856_v22, %v12201_v40 }
 0x883   :  { %v12221_v12 = vadd.f32 1e-05, %v12204_v56 }
 0x885   :  { %15119 = vrsqrt.f32 %v12221_v12 }
 0x88f   :  { %v15120_v10 = vpop.eup %15119 }
 0x890   :  { %v12236_v49 = vmul.f32 %v15120_v10, %v12218_v58  ;;  %v12223_v39 = vmul.f32 %v15120_v10, %v12205_v13  ;;  %v12224_v47 = vmul.f32 %v15120_v10, %v12206_v32  ;;  %v12225_v25 = vmul.f32 %v15120_v10, %v12207_v37 }
 0x891   :  { %v12226_v35 = vmul.f32 %v15120_v10, %v12208_v6  ;;  %v12227_v23 = vmul.f32 %v15120_v10, %v12209_v7  ;;  %v12228_v21 = vmul.f32 %v15120_v10, %v12210_v4  ;;  %v12229_v27 = vmul.f32 %v15120_v10, %v12211_v31 }
 0x892   :  { %v12239_v46 = vpack.c.bf16 %v12224_v47, %v12223_v39  ;;  %v12230_v9 = vmul.f32 %v15120_v10, %v12212_v60  ;;  %v12231_v59 = vmul.f32 %v15120_v10, %v12213_v52  ;;  %v12232_v54 = vmul.f32 %v15120_v10, %v12214_v36 }
 0x893   :  { %v12240_v15 = vpack.c.bf16 %v12226_v35, %v12225_v25  ;;  %v12241_v20 = vpack.c.bf16 %v12228_v21, %v12227_v23  ;;  %v12233_v33 = vmul.f32 %v15120_v10, %v12215_v18  ;;  %v12234_v8 = vmul.f32 %v15120_v10, %v12216_v55 }
 0x894   :  { %13950 = vmatprep.mubr.msk.bf16.mxu1 %vm12110_vm4, %v12239_v46  ;;  %v12242_v22 = vpack.c.bf16 %v12230_v9, %v12229_v27  ;;  %v12243_v14 = vpack.c.bf16 %v12232_v54, %v12231_v59  ;;  %v12235_v5 = vmul.f32 %v15120_v10, %v12217_v45  ;;  %v12237_v43 = vmul.f32 %v15120_v10, %v12219_v42 }
 0x895   :  { %13951 = vmatmul.mubr.msk.bf16.vlgmr.msra.gmra.mrb[144].mxu1 %vm12110_vm4, %v12240_v15  ;;  %v12244_v17 = vpack.c.bf16 %v12234_v8, %v12233_v33  ;;  %v12238_v61 = vmul.f32 %v15120_v10, %v12220_v11 }
 0x896   :  { %13954 = vmatprep.mubr.msk.bf16.mxu1 %vm12110_vm4, %v12241_v20  ;;  %v12245_v41 = vpack.c.bf16 %v12236_v49, %v12235_v5  ;;  %13967 = vmatpush3.bf16.msra.mxu1 %v12557_v34 }
 0x897   :  { %v12246_v62 = vpack.c.bf16 %v12238_v61, %v12237_v43 }
 0x89d   :  { %13955 = vmatmul.mubr.msk.bf16.gmra.mrb[148].mxu1 %vm12110_vm4, %v12242_v22 }
 0x89e   :  { %13958 = vmatprep.mubr.msk.bf16.mxu1 %vm12110_vm4, %v12243_v14 }
 0x8a5   :  { %13959 = vmatmul.mubr.msk.bf16.gmra.mrb[152].mxu1 %vm12110_vm4, %v12244_v17 }
 0x8a6   :  { %13962 = vmatprep.mubr.msk.bf16.mxu1 %vm12110_vm4, %v12245_v41 }
 0x8ad   :  { %13963 = vmatmul.mubr.msk.bf16.gmra.mrb[156].mxu1 %vm12110_vm4, %v12246_v62 }
 0x968   :  { %v13952_v51 = vpop.f32.mrb[144].mxu1 }
 0x969   :  { %v12323_v53 = vadd.f32 %v13952_v51, %v22902_v30  ;;  %v12314_v2 = vpop.f32.mrb[145].mxu1 }
 0x96a   :  { %v12315_v26 = vadd.f32 %v12314_v2, %v22902_v30  ;;  %v13953_v28 = vpop.f32.mrb[146].mxu1 }
 0x96b   :  { %v22906_v16 = vmax.f32 %v12323_v53, 0.0  ;;  %v12326_v29 = vadd.f32 %v13953_v28, %v22902_v30  ;;  %v12317_v57 = vpop.f32.mrb[147].mxu1 }
 0x96c   :  { %v22909_v3 = vmax.f32 %v12315_v26, 0.0  ;;  %v12318_v0 = vadd.f32 %v12317_v57, %v22902_v30 }
 0x96d   :  { %v22914_v44 = vmax.f32 %v12326_v29, 0.0  ;;  %v12433_v63 = vmul.f32 %v22906_v16, %v22906_v16  ;;  %v12397_v13 = vsel %vm12393_vm5, %v22906_v16, 0.0 }
 0x96e   :  { %v12431_v48 = vmul.f32 %v22909_v3, %v22909_v3  ;;  %v22916_v19 = vmax.f32 %v12318_v0, 0.0  ;;  %v12394_v40 = vsel %vm12393_vm5, %v22909_v3, 0.0 }
 0x96f   :  { %v12434_v7 = vmul.f32 %v22914_v44, %v22914_v44  ;;  %v12450_v52 = vsel %vm12393_vm5, %v12433_v63, 0.0  ;;  %v12399_v45 = vsel %vm12393_vm5, %v22914_v44, 0.0 }
 0x970   :  { %v12395_v38 = vsel %vm12393_vm5, %v22916_v19, 0.0  ;;  %v12432_v24 = vmul.f32 %v22916_v19, %v22916_v19  ;;  %v13956_v58 = vpop.f32.mrb[148].mxu1  ;;  %v12447_v6 = vsel %vm12393_vm5, %v12431_v48, 0.0 }
 0x971   :  { %v12396_v32 = vadd.f32 %v12395_v38, %v12394_v40  ;;  %v12339_v50 = vadd.f32 %v13956_v58, %v22902_v30  ;;  %v12330_v37 = vpop.f32.mrb[149].mxu1  ;;  %v12452_v39 = vsel %vm12393_vm5, %v12434_v7, 0.0 }
 0x972   :  { %v12448_v4 = vsel %vm12393_vm5, %v12432_v24, 0.0  ;;  %v12331_v31 = vadd.f32 %v12330_v37, %v22902_v30  ;;  %v13957_v60 = vpop.f32.mrb[150].mxu1 }
 0x973   :  { %v12398_v56 = vadd.f32 %v12397_v13, %v12396_v32  ;;  %v12449_v36 = vadd.f32 %v12448_v4, %v12447_v6  ;;  %v12342_v18 = vadd.f32 %v13957_v60, %v22902_v30  ;;  %v12333_v55 = vpop.f32.mrb[151].mxu1  ;;  %v22938_v42 = vmax.f32 %v12339_v50, 0.0 }
 0x974   :  { %v22940_v11 = vmax.f32 %v12331_v31, 0.0  ;;  %v12334_v12 = vadd.f32 %v12333_v55, %v22902_v30 }
 0x975   :  { %v12451_v10 = vadd.f32 %v12450_v52, %v12449_v36  ;;  %v12400_v49 = vadd.f32 %v12399_v45, %v12398_v56  ;;  %v22950_v27 = vmax.f32 %v12342_v18, 0.0  ;;  %v12437_v46 = vmul.f32 %v22938_v42, %v22938_v42 }
 0x976   :  { %v12401_v47 = vsel %vm12393_vm5, %v22940_v11, 0.0  ;;  %v12435_v25 = vmul.f32 %v22940_v11, %v22940_v11  ;;  %v22948_v35 = vmax.f32 %v12334_v12, 0.0  ;;  %v12405_v14 = vsel %vm12393_vm5, %v22938_v42, 0.0 }
 0x977   :  { %v12402_v23 = vadd.f32 %v12401_v47, %v12400_v49  ;;  %v12453_v21 = vadd.f32 %v12452_v39, %v12451_v10  ;;  %v12438_v17 = vmul.f32 %v22950_v27, %v22950_v27  ;;  %v12407_v34 = vsel %vm12393_vm5, %v22950_v27, 0.0 }
 0x978   :  { %v12454_v9 = vsel %vm12393_vm5, %v12435_v25, 0.0  ;;  %v12403_v59 = vsel %vm12393_vm5, %v22948_v35, 0.0  ;;  %v13960_v54 = vpop.f32.mrb[152].mxu1  ;;  %v12436_v33 = vmul.f32 %v22948_v35, %v22948_v35  ;;  %v12458_v26 = vsel %vm12393_vm5, %v12437_v46, 0.0 }
 0x979   :  { %v12455_v15 = vadd.f32 %v12454_v9, %v12453_v21  ;;  %v12404_v20 = vadd.f32 %v12403_v59, %v12402_v23  ;;  %v12355_v8 = vadd.f32 %v13960_v54, %v22902_v30  ;;  %v12346_v22 = vpop.f32.mrb[153].mxu1  ;;  %v12460_v40 = vsel %vm12393_vm5, %v12438_v17, 0.0 }
 0x97a   :  { %v12347_v5 = vadd.f32 %v12346_v22, %v22902_v30  ;;  %v13961_v43 = vpop.f32.mrb[154].mxu1  ;;  %v12456_v41 = vsel %vm12393_vm5, %v12436_v33, 0.0 }
 0x97b   :  { %v12406_v61 = vadd.f32 %v12405_v14, %v12404_v20  ;;  %v12358_v62 = vadd.f32 %v13961_v43, %v22902_v30  ;;  %v12349_v1 = vpop.f32.mrb[155].mxu1  ;;  %v12457_v51 = vadd.f32 %v12456_v41, %v12455_v15  ;;  %v22973_v28 = vmax.f32 %v12355_v8, 0.0 }
 0x97c   :  { %v22969_v53 = vmax.f32 %v12347_v5, 0.0  ;;  %v12350_v2 = vadd.f32 %v12349_v1, %v22902_v30 }
 0x97d   :  { %v12408_v29 = vadd.f32 %v12407_v34, %v12406_v61  ;;  %v12459_v57 = vadd.f32 %v12458_v26, %v12457_v51  ;;  %v22982_v24 = vmax.f32 %v12358_v62, 0.0  ;;  %v12441_v6 = vmul.f32 %v22973_v28, %v22973_v28 }
 0x97e   :  { %v12409_v0 = vsel %vm12393_vm5, %v22969_v53, 0.0  ;;  %v12439_v48 = vmul.f32 %v22969_v53, %v22969_v53  ;;  %v22979_v63 = vmax.f32 %v12350_v2, 0.0  ;;  %v12413_v60 = vsel %vm12393_vm5, %v22973_v28, 0.0 }
 0x97f   :  { %v12410_v38 = vadd.f32 %v12409_v0, %v12408_v29  ;;  %v12461_v58 = vadd.f32 %v12460_v40, %v12459_v57  ;;  %v12442_v55 = vmul.f32 %v22982_v24, %v22982_v24  ;;  %v12415_v49 = vsel %vm12393_vm5, %v22982_v24, 0.0 }
 0x980   :  { %v12462_v13 = vsel %vm12393_vm5, %v12439_v48, 0.0  ;;  %v12411_v32 = vsel %vm12393_vm5, %v22979_v63, 0.0  ;;  %v12440_v50 = vmul.f32 %v22979_v63, %v22979_v63  ;;  %v13964_v37 = vpop.f32.mrb[156].mxu1  ;;  %v12466_v23 = vsel %vm12393_vm5, %v12441_v6, 0.0 }
 0x981   :  { %v12412_v7 = vadd.f32 %v12411_v32, %v12410_v38  ;;  %v12371_v4 = vadd.f32 %v13964_v37, %v22902_v30  ;;  %v12362_v31 = vpop.f32.mrb[157].mxu1  ;;  %v12463_v52 = vadd.f32 %v12462_v13, %v12461_v58  ;;  %v12468_v20 = vsel %vm12393_vm5, %v12442_v55, 0.0 }
 0x982   :  { %v12464_v56 = vsel %vm12393_vm5, %v12440_v50, 0.0  ;;  %v12363_v36 = vadd.f32 %v12362_v31, %v22902_v30  ;;  %v13965_v18 = vpop.f32.mrb[158].mxu1 }
 0x983   :  { %v12414_v45 = vadd.f32 %v12413_v60, %v12412_v7  ;;  %v12374_v12 = vadd.f32 %v13965_v18, %v22902_v30  ;;  %v12365_v10 = vpop.f32.mrb[159].mxu1  ;;  %v12465_v39 = vadd.f32 %v12464_v56, %v12463_v52  ;;  %v23005_v21 = vmax.f32 %v12371_v4, 0.0 }
 0x984   :  { %v23001_v47 = vmax.f32 %v12363_v36, 0.0  ;;  %v12366_v25 = vadd.f32 %v12365_v10, %v22902_v30 }
 0x985   :  { %v12416_v46 = vadd.f32 %v12415_v49, %v12414_v45  ;;  %v12467_v9 = vadd.f32 %v12466_v23, %v12465_v39  ;;  %v23012_v8 = vmax.f32 %v12374_v12, 0.0  ;;  %v12445_v43 = vmul.f32 %v23005_v21, %v23005_v21 }
 0x986   :  { %v12417_v59 = vsel %vm12393_vm5, %v23001_v47, 0.0  ;;  %v12443_v54 = vmul.f32 %v23001_v47, %v23001_v47  ;;  %v12390_v15 = vmax.f32 %v12366_v25, 0.0  ;;  %v12421_v61 = vsel %vm12393_vm5, %v23005_v21, 0.0 }
 0x987   :  { %v12418_v33 = vadd.f32 %v12417_v59, %v12416_v46  ;;  %v12469_v22 = vadd.f32 %v12468_v20, %v12467_v9  ;;  %v12446_v1 = vmul.f32 %v23012_v8, %v23012_v8  ;;  %v12423_v51 = vsel %vm12393_vm5, %v23012_v8, 0.0 }
 0x988   :  { %v12470_v30 = vsel %vm12393_vm5, %v12443_v54, 0.0  ;;  %v12419_v14 = vsel %vm12393_vm5, %v12390_v15, 0.0  ;;  %v12444_v5 = vmul.f32 %v12390_v15, %v12390_v15  ;;  %v12474_v26 = vsel %vm12393_vm5, %v12445_v43, 0.0 }
 0x989   :  { %v12420_v17 = vadd.f32 %v12419_v14, %v12418_v33  ;;  %v12471_v41 = vadd.f32 %v12470_v30, %v12469_v22  ;;  %v12476_v0 = vsel %vm12393_vm5, %v12446_v1, 0.0 }
 0x98a   :  { %v12472_v62 = vsel %vm12393_vm5, %v12444_v5, 0.0 }
 0x98b   :  { %v12422_v34 = vadd.f32 %v12421_v61, %v12420_v17  ;;  %v12473_v2 = vadd.f32 %v12472_v62, %v12471_v41 }
 0x98d   :  { %v12424_v29 = vadd.f32 %v12423_v51, %v12422_v34  ;;  %v12475_v57 = vadd.f32 %v12474_v26, %v12473_v2  ;;  %v23053_v2 = vld [vmem:[%s23270_s7 + $0x5] ss:$0 sm:$0xff] }
 0x98f   :  { %v12425_v48 = vrot.slane %v12424_v29, 4  ;;  %v12477_v40 = vadd.f32 %v12476_v0, %v12475_v57 }
 0x991   :  { %v12426_v38 = vadd.f32 %v12425_v48, %v12424_v29  ;;  %v12478_v58 = vrot.slane %v12477_v40, 4 }
 0x993   :  { %v12427_v13 = vrot.slane %v12426_v38, 2  ;;  %v12479_v32 = vadd.f32 %v12478_v58, %v12477_v40 }
 0x995   :  { %v12428_v50 = vadd.f32 %v12427_v13, %v12426_v38  ;;  %v12480_v37 = vrot.slane %v12479_v32, 2 }
 0x997   :  { %v12429_v6 = vrot.slane %v12428_v50, 1  ;;  %v12481_v7 = vadd.f32 %v12480_v37, %v12479_v32 }
 0x999   :  { %v12430_v4 = vadd.f32 %v12429_v6, %v12428_v50  ;;  %v12482_v31 = vrot.slane %v12481_v7, 1 }
 0x99b   :  { %v12484_v60 = vmul.f32 0.0078125, %v12430_v4  ;;  %v12483_v52 = vadd.f32 %v12482_v31, %v12481_v7 }
 0x99d   :  { %v12486_v56 = vmul.f32 %v12484_v60, %v12484_v60  ;;  %v12501_v36 = vsub.f32 %v12390_v15, %v12484_v60  ;;  %v12488_v18 = vsub.f32 %v22909_v3, %v12484_v60  ;;  %v12489_v55 = vsub.f32 %v22916_v19, %v12484_v60 }
 0x99e   :  { %v12485_v45 = vmul.f32 0.0078125, %v12483_v52  ;;  %v12490_v12 = vsub.f32 %v22906_v16, %v12484_v60  ;;  %v12491_v10 = vsub.f32 %v22914_v44, %v12484_v60  ;;  %v12492_v49 = vsub.f32 %v22940_v11, %v12484_v60 }
 0x99f   :  { %v12493_v39 = vsub.f32 %v22948_v35, %v12484_v60  ;;  %v12494_v25 = vsub.f32 %v22938_v42, %v12484_v60  ;;  %v12495_v23 = vsub.f32 %v22950_v27, %v12484_v60  ;;  %v12496_v46 = vsub.f32 %v22969_v53, %v12484_v60 }
 0x9a0   :  { %v12487_v9 = vsub.f32 %v12485_v45, %v12486_v56  ;;  %v12497_v3 = vsub.f32 %v22979_v63, %v12484_v60  ;;  %v12498_v19 = vsub.f32 %v22973_v28, %v12484_v60  ;;  %v12499_v59 = vsub.f32 %v22982_v24, %v12484_v60 }
 0x9a1   :  { %v12500_v16 = vsub.f32 %v23001_v47, %v12484_v60  ;;  %v12502_v44 = vsub.f32 %v23005_v21, %v12484_v60  ;;  %v12503_v11 = vsub.f32 %v23012_v8, %v12484_v60 }
 0x9a2   :  { %v12504_v35 = vadd.f32 1e-05, %v12487_v9 }
 0x9a4   :  { %15121 = vrsqrt.f32 %v12504_v35 }
 0x9ae   :  { %v15122_v42 = vpop.eup %15121 }
 0x9af   :  { %v12519_v54 = vmul.f32 %v15122_v42, %v12501_v36  ;;  %v12506_v27 = vmul.f32 %v15122_v42, %v12488_v18  ;;  %v12507_v15 = vmul.f32 %v15122_v42, %v12489_v55  ;;  %v12508_v53 = vmul.f32 %v15122_v42, %v12490_v12 }
 0x9b0   :  { %v12509_v20 = vmul.f32 %v15122_v42, %v12491_v10  ;;  %v12510_v33 = vmul.f32 %v15122_v42, %v12492_v49  ;;  %v12511_v63 = vmul.f32 %v15122_v42, %v12493_v39  ;;  %v12512_v22 = vmul.f32 %v15122_v42, %v12494_v25 }
 0x9b1   :  { %v12522_v28 = vpack.c.bf16 %v12507_v15, %v12506_v27  ;;  %v12513_v30 = vmul.f32 %v15122_v42, %v12495_v23  ;;  %v12514_v24 = vmul.f32 %v15122_v42, %v12496_v46  ;;  %v12515_v14 = vmul.f32 %v15122_v42, %v12497_v3 }
 0x9b2   :  { %v12523_v47 = vpack.c.bf16 %v12509_v20, %v12508_v53  ;;  %v12524_v5 = vpack.c.bf16 %v12511_v63, %v12510_v33  ;;  %v12516_v21 = vmul.f32 %v15122_v42, %v12498_v19  ;;  %v12517_v43 = vmul.f32 %v15122_v42, %v12499_v59 }
 0x9b3   :  { %13968 = vmatprep.mubr.msk.bf16.mxu1 %vm12393_vm5, %v12522_v28  ;;  %v12525_v8 = vpack.c.bf16 %v12513_v30, %v12512_v22  ;;  %v12526_v17 = vpack.c.bf16 %v12515_v14, %v12514_v24  ;;  %v12518_v61 = vmul.f32 %v15122_v42, %v12500_v16  ;;  %v12520_v41 = vmul.f32 %v15122_v42, %v12502_v44 }
 0x9b4   :  { %13969 = vmatmul.mubr.msk.bf16.vlgmr.msra.gmra.mrb[160].mxu1 %vm12393_vm5, %v12523_v47  ;;  %v12527_v62 = vpack.c.bf16 %v12517_v43, %v12516_v21  ;;  %v12521_v1 = vmul.f32 %v15122_v42, %v12503_v11 }
 0x9b5   :  { %13972 = vmatprep.mubr.msk.bf16.mxu1 %vm12393_vm5, %v12524_v5  ;;  %v12528_v34 = vpack.c.bf16 %v12519_v54, %v12518_v61 }
 0x9b6   :  { %v12529_v51 = vpack.c.bf16 %v12521_v1, %v12520_v41 }
 0x9bc   :  { %13973 = vmatmul.mubr.msk.bf16.gmra.mrb[164].mxu1 %vm12393_vm5, %v12525_v8 }
 0x9bd   :  { %13976 = vmatprep.mubr.msk.bf16.mxu1 %vm12393_vm5, %v12526_v17 }
 0x9c4   :  { %13977 = vmatmul.mubr.msk.bf16.gmra.mrb[168].mxu1 %vm12393_vm5, %v12527_v62 }
 0x9c5   :  { %13980 = vmatprep.mubr.msk.bf16.mxu1 %vm12393_vm5, %v12528_v34 }
 0x9cc   :  { %13981 = vmatmul.mubr.msk.bf16.gmra.mrb[172].mxu1 %vm12393_vm5, %v12529_v51 }
 0xa87   :  { %v13970_v26 = vpop.f32.mrb[160].mxu1 }
 0xa88   :  { %v12602_v29 = vadd.f32 %v13970_v26, %v23053_v2  ;;  %v12593_v57 = vpop.f32.mrb[161].mxu1 }
 0xa89   :  { %v12594_v0 = vadd.f32 %v12593_v57, %v23053_v2  ;;  %v13971_v48 = vpop.f32.mrb[162].mxu1 }
 0xa8a   :  { %v23057_v40 = vmax.f32 %v12602_v29, 0.0  ;;  %v12605_v38 = vadd.f32 %v13971_v48, %v23053_v2  ;;  %v12596_v58 = vpop.f32.mrb[163].mxu1 }
 0xa8b   :  { %v23060_v13 = vmax.f32 %v12594_v0, 0.0  ;;  %v12597_v32 = vadd.f32 %v12596_v58, %v23053_v2 }
 0xa8c   :  { %v23065_v37 = vmax.f32 %v12605_v38, 0.0  ;;  %v12712_v7 = vmul.f32 %v23057_v40, %v23057_v40  ;;  %v12676_v56 = vsel %vm12672_vm6, %v23057_v40, 0.0 }
 0xa8d   :  { %v12710_v50 = vmul.f32 %v23060_v13, %v23060_v13  ;;  %v23067_v6 = vmax.f32 %v12597_v32, 0.0  ;;  %v12673_v4 = vsel %vm12672_vm6, %v23060_v13, 0.0 }
 0xa8e   :  { %v12713_v12 = vmul.f32 %v23065_v37, %v23065_v37  ;;  %v12729_v25 = vsel %vm12672_vm6, %v12712_v7, 0.0  ;;  %v12678_v19 = vsel %vm12672_vm6, %v23065_v37, 0.0 }
 0xa8f   :  { %v12674_v31 = vsel %vm12672_vm6, %v23067_v6, 0.0  ;;  %v12711_v60 = vmul.f32 %v23067_v6, %v23067_v6  ;;  %v13974_v52 = vpop.f32.mrb[164].mxu1  ;;  %v12726_v45 = vsel %vm12672_vm6, %v12710_v50, 0.0 }
 0xa90   :  { %v12675_v36 = vadd.f32 %v12674_v31, %v12673_v4  ;;  %v12618_v18 = vadd.f32 %v13974_v52, %v23053_v2  ;;  %v12609_v55 = vpop.f32.mrb[165].mxu1  ;;  %v12731_v42 = vsel %vm12672_vm6, %v12713_v12, 0.0 }
 0xa91   :  { %v12727_v10 = vsel %vm12672_vm6, %v12711_v60, 0.0  ;;  %v12610_v49 = vadd.f32 %v12609_v55, %v23053_v2  ;;  %v13975_v39 = vpop.f32.mrb[166].mxu1 }
 0xa92   :  { %v12677_v23 = vadd.f32 %v12676_v56, %v12675_v36  ;;  %v12728_v46 = vadd.f32 %v12727_v10, %v12726_v45  ;;  %v12621_v9 = vadd.f32 %v13975_v39, %v23053_v2  ;;  %v12612_v3 = vpop.f32.mrb[167].mxu1  ;;  %v23089_v59 = vmax.f32 %v12618_v18, 0.0 }
 0xa93   :  { %v23091_v16 = vmax.f32 %v12610_v49, 0.0  ;;  %v12613_v44 = vadd.f32 %v12612_v3, %v23053_v2 }
 0xa94   :  { %v12730_v11 = vadd.f32 %v12729_v25, %v12728_v46  ;;  %v12679_v35 = vadd.f32 %v12678_v19, %v12677_v23  ;;  %v23101_v33 = vmax.f32 %v12621_v9, 0.0  ;;  %v12716_v63 = vmul.f32 %v23089_v59, %v23089_v59 }
 0xa95   :  { %v12680_v54 = vsel %vm12672_vm6, %v23091_v16, 0.0  ;;  %v12714_v27 = vmul.f32 %v23091_v16, %v23091_v16  ;;  %v23099_v15 = vmax.f32 %v12613_v44, 0.0  ;;  %v12684_v43 = vsel %vm12672_vm6, %v23089_v59, 0.0 }
 0xa96   :  { %v12681_v53 = vadd.f32 %v12680_v54, %v12679_v35  ;;  %v12732_v20 = vadd.f32 %v12731_v42, %v12730_v11  ;;  %v12717_v61 = vmul.f32 %v23101_v33, %v23101_v33  ;;  %v12686_v51 = vsel %vm12672_vm6, %v23101_v33, 0.0 }
 0xa97   :  { %v12733_v22 = vsel %vm12672_vm6, %v12714_v27, 0.0  ;;  %v12682_v28 = vsel %vm12672_vm6, %v23099_v15, 0.0  ;;  %v13978_v30 = vpop.f32.mrb[168].mxu1  ;;  %v12715_v47 = vmul.f32 %v23099_v15, %v23099_v15  ;;  %v12737_v0 = vsel %vm12672_vm6, %v12716_v63, 0.0 }
 0xa98   :  { %v12734_v24 = vadd.f32 %v12733_v22, %v12732_v20  ;;  %v12683_v14 = vadd.f32 %v12682_v28, %v12681_v53  ;;  %v12634_v5 = vadd.f32 %v13978_v30, %v23053_v2  ;;  %v12625_v21 = vpop.f32.mrb[169].mxu1  ;;  %v12739_v4 = vsel %vm12672_vm6, %v12717_v61, 0.0 }
 0xa99   :  { %v12626_v8 = vadd.f32 %v12625_v21, %v23053_v2  ;;  %v13979_v17 = vpop.f32.mrb[170].mxu1  ;;  %v12735_v62 = vsel %vm12672_vm6, %v12715_v47, 0.0 }
 0xa9a   :  { %v12685_v41 = vadd.f32 %v12684_v43, %v12683_v14  ;;  %v12637_v1 = vadd.f32 %v13979_v17, %v23053_v2  ;;  %v12628_v34 = vpop.f32.mrb[171].mxu1  ;;  %v12736_v26 = vadd.f32 %v12735_v62, %v12734_v24  ;;  %v23124_v48 = vmax.f32 %v12634_v5, 0.0 }
 0xa9b   :  { %v23120_v29 = vmax.f32 %v12626_v8, 0.0  ;;  %v12629_v57 = vadd.f32 %v12628_v34, %v23053_v2 }
 0xa9c   :  { %v12687_v38 = vadd.f32 %v12686_v51, %v12685_v41  ;;  %v12738_v58 = vadd.f32 %v12737_v0, %v12736_v26  ;;  %v23133_v60 = vmax.f32 %v12637_v1, 0.0  ;;  %v12720_v45 = vmul.f32 %v23124_v48, %v23124_v48 }
 0xa9d   :  { %v12688_v32 = vsel %vm12672_vm6, %v23120_v29, 0.0  ;;  %v12718_v50 = vmul.f32 %v23120_v29, %v23120_v29  ;;  %v23130_v7 = vmax.f32 %v12629_v57, 0.0  ;;  %v12692_v39 = vsel %vm12672_vm6, %v23124_v48, 0.0 }
 0xa9e   :  { %v12689_v31 = vadd.f32 %v12688_v32, %v12687_v38  ;;  %v12740_v52 = vadd.f32 %v12739_v4, %v12738_v58  ;;  %v12721_v3 = vmul.f32 %v23133_v60, %v23133_v60  ;;  %v12694_v35 = vsel %vm12672_vm6, %v23133_v60, 0.0 }
 0xa9f   :  { %v12741_v56 = vsel %vm12672_vm6, %v12718_v50, 0.0  ;;  %v12690_v36 = vsel %vm12672_vm6, %v23130_v7, 0.0  ;;  %v12719_v18 = vmul.f32 %v23130_v7, %v23130_v7  ;;  %v13982_v55 = vpop.f32.mrb[172].mxu1  ;;  %v12745_v53 = vsel %vm12672_vm6, %v12720_v45, 0.0 }
 0xaa0   :  { %v12691_v12 = vadd.f32 %v12690_v36, %v12689_v31  ;;  %v12650_v10 = vadd.f32 %v13982_v55, %v23053_v2  ;;  %v12641_v49 = vpop.f32.mrb[173].mxu1  ;;  %v12742_v25 = vadd.f32 %v12741_v56, %v12740_v52  ;;  %v12747_v14 = vsel %vm12672_vm6, %v12721_v3, 0.0 }
 0xaa1   :  { %v12743_v23 = vsel %vm12672_vm6, %v12719_v18, 0.0  ;;  %v12642_v46 = vadd.f32 %v12641_v49, %v23053_v2  ;;  %v13983_v9 = vpop.f32.mrb[174].mxu1 }
 0xaa2   :  { %v12693_v19 = vadd.f32 %v12692_v39, %v12691_v12  ;;  %v12653_v44 = vadd.f32 %v13983_v9, %v23053_v2  ;;  %v12644_v11 = vpop.f32.mrb[175].mxu1  ;;  %v12744_v42 = vadd.f32 %v12743_v23, %v12742_v25  ;;  %v23156_v20 = vmax.f32 %v12650_v10, 0.0 }
 0xaa3   :  { %v23152_v54 = vmax.f32 %v12642_v46, 0.0  ;;  %v12645_v27 = vadd.f32 %v12644_v11, %v23053_v2 }
 0xaa4   :  { %v12695_v63 = vadd.f32 %v12694_v35, %v12693_v19  ;;  %v12746_v22 = vadd.f32 %v12745_v53, %v12744_v42  ;;  %v23165_v5 = vmax.f32 %v12653_v44, 0.0  ;;  %v12724_v17 = vmul.f32 %v23156_v20, %v23156_v20 }
 0xaa5   :  { %v12696_v28 = vsel %vm12672_vm6, %v23152_v54, 0.0  ;;  %v12722_v30 = vmul.f32 %v23152_v54, %v23152_v54  ;;  %v23162_v24 = vmax.f32 %v12645_v27, 0.0  ;;  %v12700_v41 = vsel %vm12672_vm6, %v23156_v20, 0.0 }
 0xaa6   :  { %v12697_v47 = vadd.f32 %v12696_v28, %v12695_v63  ;;  %v12748_v2 = vadd.f32 %v12747_v14, %v12746_v22  ;;  %v12725_v34 = vmul.f32 %v23165_v5, %v23165_v5  ;;  %v12702_v26 = vsel %vm12672_vm6, %v23165_v5, 0.0 }
 0xaa7   :  { %v12749_v21 = vsel %vm12672_vm6, %v12722_v30, 0.0  ;;  %v12698_v43 = vsel %vm12672_vm6, %v23162_v24, 0.0  ;;  %v12723_v8 = vmul.f32 %v23162_v24, %v23162_v24  ;;  %v12753_v0 = vsel %vm12672_vm6, %v12724_v17, 0.0 }
 0xaa8   :  { %v12699_v61 = vadd.f32 %v12698_v43, %v12697_v47  ;;  %v12750_v62 = vadd.f32 %v12749_v21, %v12748_v2  ;;  %v12755_v32 = vsel %vm12672_vm6, %v12725_v34, 0.0 }
 0xaa9   :  { %v12751_v1 = vsel %vm12672_vm6, %v12723_v8, 0.0 }
 0xaaa   :  { %v12701_v51 = vadd.f32 %v12700_v41, %v12699_v61  ;;  %v12752_v57 = vadd.f32 %v12751_v1, %v12750_v62 }
 0xaac   :  { %v12703_v38 = vadd.f32 %v12702_v26, %v12701_v51  ;;  %v12754_v58 = vadd.f32 %v12753_v0, %v12752_v57 }
 0xaae   :  { %v12704_v50 = vrot.slane %v12703_v38, 4  ;;  %v12756_v4 = vadd.f32 %v12755_v32, %v12754_v58 }
 0xab0   :  { %v12705_v31 = vadd.f32 %v12704_v50, %v12703_v38  ;;  %v12757_v52 = vrot.slane %v12756_v4, 4 }
 0xab2   :  { %v12706_v56 = vrot.slane %v12705_v31, 2  ;;  %v12758_v36 = vadd.f32 %v12757_v52, %v12756_v4 }
 0xab4   :  { %v12707_v18 = vadd.f32 %v12706_v56, %v12705_v31  ;;  %v12759_v55 = vrot.slane %v12758_v36, 2 }
 0xab6   :  { %v12708_v45 = vrot.slane %v12707_v18, 1  ;;  %v12760_v12 = vadd.f32 %v12759_v55, %v12758_v36 }
 0xab8   :  { %v12709_v10 = vadd.f32 %v12708_v45, %v12707_v18  ;;  %v12761_v49 = vrot.slane %v12760_v12, 1 }
 0xaba   :  { %v12763_v39 = vmul.f32 0.0078125, %v12709_v10  ;;  %v12762_v25 = vadd.f32 %v12761_v49, %v12760_v12 }
 0xabc   :  { %v12765_v23 = vmul.f32 %v12763_v39, %v12763_v39  ;;  %v12767_v46 = vsub.f32 %v23060_v13, %v12763_v39  ;;  %v12768_v9 = vsub.f32 %v23067_v6, %v12763_v39  ;;  %v12769_v3 = vsub.f32 %v23057_v40, %v12763_v39 }
 0xabd   :  { %v12764_v19 = vmul.f32 0.0078125, %v12762_v25  ;;  %v12770_v44 = vsub.f32 %v23065_v37, %v12763_v39  ;;  %v12771_v11 = vsub.f32 %v23091_v16, %v12763_v39  ;;  %v12772_v35 = vsub.f32 %v23099_v15, %v12763_v39 }
 0xabe   :  { %v12773_v42 = vsub.f32 %v23089_v59, %v12763_v39  ;;  %v12774_v27 = vsub.f32 %v23101_v33, %v12763_v39  ;;  %v12775_v53 = vsub.f32 %v23120_v29, %v12763_v39  ;;  %v12776_v63 = vsub.f32 %v23130_v7, %v12763_v39 }
 0xabf   :  { %v12766_v13 = vsub.f32 %v12764_v19, %v12765_v23  ;;  %v12777_v6 = vsub.f32 %v23124_v48, %v12763_v39  ;;  %v12778_v40 = vsub.f32 %v23133_v60, %v12763_v39  ;;  %v12779_v22 = vsub.f32 %v23152_v54, %v12763_v39 }
 0xac0   :  { %v12780_v37 = vsub.f32 %v23162_v24, %v12763_v39  ;;  %v12781_v16 = vsub.f32 %v23156_v20, %v12763_v39  ;;  %v12782_v15 = vsub.f32 %v23165_v5, %v12763_v39 }
 0xac1   :  { %v12783_v59 = vadd.f32 1e-05, %v12766_v13 }
 0xac3   :  { %15123 = vrsqrt.f32 %v12783_v59 }
 0xacd   :  { %v15124_v33 = vpop.eup %15123 }
 0xace   :  { %v12785_v28 = vmul.f32 %v15124_v33, %v12767_v46  ;;  %v12786_v29 = vmul.f32 %v15124_v33, %v12768_v9  ;;  %v12787_v30 = vmul.f32 %v15124_v33, %v12769_v3  ;;  %v12788_v7 = vmul.f32 %v15124_v33, %v12770_v44 }
 0xacf   :  { %v12789_v14 = vmul.f32 %v15124_v33, %v12771_v11  ;;  %v12790_v47 = vmul.f32 %v15124_v33, %v12772_v35  ;;  %v12791_v48 = vmul.f32 %v15124_v33, %v12773_v42  ;;  %v12792_v2 = vmul.f32 %v15124_v33, %v12774_v27 }
 0xad0   :  { %v12793_v60 = vmul.f32 %v15124_v33, %v12775_v53  ;;  %v12794_v21 = vmul.f32 %v15124_v33, %v12776_v63  ;;  %v12795_v54 = vmul.f32 %v15124_v33, %v12777_v6  ;;  %v12796_v43 = vmul.f32 %v15124_v33, %v12778_v40  ;;  %12801 = vst.msk [vmem:[%s23271_s8] sm:$0xff] %vm12672_vm6, %v12785_v28 }
 0xad1   :  { %12802 = vst.msk [vmem:[%s23271_s8 + $0x8] sm:$0xff] %vm12672_vm6, %v12786_v29  ;;  %12803 = vst.msk [vmem:[%s23271_s8 + $0x10] sm:$0xff] %vm12672_vm6, %v12787_v30  ;;  %v12797_v20 = vmul.f32 %v15124_v33, %v12779_v22  ;;  %v12798_v24 = vmul.f32 %v15124_v33, %v12780_v37  ;;  %v12799_v5 = vmul.f32 %v15124_v33, %v12781_v16 }
 0xad2   :  { %12804 = vst.msk [vmem:[%s23271_s8 + $0x18] sm:$0xff] %vm12672_vm6, %v12788_v7  ;;  %v12800_v8 = vmul.f32 %v15124_v33, %v12782_v15  ;;  %12805 = vst.msk [vmem:[%s23271_s8 + $0x20] sm:$0xff] %vm12672_vm6, %v12789_v14 }
 0xad3   :  { %12806 = vst.msk [vmem:[%s23271_s8 + $0x28] sm:$0xff] %vm12672_vm6, %v12790_v47  ;;  %12807 = vst.msk [vmem:[%s23271_s8 + $0x30] sm:$0xff] %vm12672_vm6, %v12791_v48 }
 0xad4   :  { %12808 = vst.msk [vmem:[%s23271_s8 + $0x38] sm:$0xff] %vm12672_vm6, %v12792_v2  ;;  %12809 = vst.msk [vmem:[%s23271_s8 + $0x40] sm:$0xff] %vm12672_vm6, %v12793_v60 }
 0xad5   :  { %12810 = vst.msk [vmem:[%s23271_s8 + $0x48] sm:$0xff] %vm12672_vm6, %v12794_v21  ;;  %12811 = vst.msk [vmem:[%s23271_s8 + $0x50] sm:$0xff] %vm12672_vm6, %v12795_v54 }
 0xad6   :  { %12812 = vst.msk [vmem:[%s23271_s8 + $0x58] sm:$0xff] %vm12672_vm6, %v12796_v43  ;;  %12813 = vst.msk [vmem:[%s23271_s8 + $0x60] sm:$0xff] %vm12672_vm6, %v12797_v20 }
 0xad7   :  { %12814 = vst.msk [vmem:[%s23271_s8 + $0x68] sm:$0xff] %vm12672_vm6, %v12798_v24  ;;  %12815 = vst.msk [vmem:[%s23271_s8 + $0x70] sm:$0xff] %vm12672_vm6, %v12799_v5 }
 0xad8   :  { %12816 = vst.msk [vmem:[%s23271_s8 + $0x78] sm:$0xff] %vm12672_vm6, %v12800_v8 }
 0xad9   :  { %12821 = vsyncpa [#allocation3], 1 }

</bundles_post_ra>
